<compile_context>
chip_gen: v5e
topology: v5e:2x2
jax: 0.10.0
libtpu: 0.0.40
codegen_flags: <defaults>
</compile_context>

<pallas_src>
import math
import jax
import jax.numpy as jnp
from jax.experimental import pallas as pl
from jax.experimental.pallas import tpu as pltpu

LANE = 128  # TPU lane width: keep every last dim a multiple of this.


def _round_up(n, m):
    return ((n + m - 1) // m) * m


def _softplus(x):
    # Matches torch.nn.Softplus(beta=1, threshold=20):
    # returns x when x > 20, else log(1 + exp(x)).  exp/log1p go to the EUP.
    safe = jnp.minimum(x, 20.0)
    return jnp.where(x > 20.0, x, jnp.log1p(jnp.exp(safe)))


def _fnet_kernel(x_ref, *refs):
    # refs = (w1, b1, w2, b2, ..., w11, b11, out_ref)
    # Weights are already transposed to (in_pad, out_pad) and zero-padded, so
    # the MXU consumes them directly; biases are (1, out_pad) float32.
    out_ref = refs[-1]
    params = refs[:-1]
    n_layers = len(params) // 2  # 11

    h = x_ref[...]  # (TB, in_pad), compute dtype
    for layer in range(n_layers):
        w = params[2 * layer][...]       # (in_pad, out_pad), compute dtype
        b = params[2 * layer + 1][...]   # (1, out_pad), float32
        # MXU matmul with f32 accumulation regardless of input dtype.
        h = jnp.dot(h, w, preferred_element_type=jnp.float32) + b
        if layer < n_layers - 1:
            # Softplus in f32 on the VPU/EUP; cast back to compute dtype for
            # the next matmul (no-op when compute dtype is f32).
            h = _softplus(h).astype(w.dtype)
    out_ref[...] = h.astype(out_ref.dtype)


def fnet_forward(x, weights, biases, *, batch_tile=256, compute_dtype=jnp.float32):
    """x: (B, D_in); weights[i]: (H_out_i, H_in_i); biases[i]: (H_out_i,).

    compute_dtype=jnp.bfloat16 enables the fast bf16 MXU path on v6e/v7x
    (accumulation stays f32); default f32 reproduces torch.nn.Linear exactly.
    """
    B, d_in = x.shape
    n_layers = len(weights)
    d_out = weights[-1].shape[0]

    # Layer-boundary feature sizes, padded to lane width (128).
    dims = [d_in] + [w.shape[0] for w in weights]
    pdims = [_round_up(d, LANE) for d in dims]

    # Batch tile: multiple of 8 sublanes; don't pad a tiny batch beyond need.
    tb = min(batch_tile, _round_up(B, 8))
    b_pad = _round_up(B, tb)

    # Lane-padded, batch-padded input in the compute dtype.
    x_p = jnp.zeros((b_pad, pdims[0]), compute_dtype)
    x_p = x_p.at[:B, :d_in].set(x.astype(compute_dtype))

    args = [x_p]
    in_specs = [pl.BlockSpec((tb, pdims[0]), lambda i: (i, 0))]
    for li, (w, b) in enumerate(zip(weights, biases)):
        in_p, out_p = pdims[li], pdims[li + 1]
        # Pre-transposed + zero-padded weight: (in_pad, out_pad). Zero rows for
        # the padded input columns keep padded-activation garbage out of the
        # real outputs.
        w_t = jnp.zeros((in_p, out_p), compute_dtype)
        w_t = w_t.at[: w.shape[1], : w.shape[0]].set(w.T.astype(compute_dtype))
        b_p = jnp.zeros((1, out_p), jnp.float32)
        b_p = b_p.at[0, : b.shape[0]].set(b.astype(jnp.float32))
        args += [w_t, b_p]
        # Constant index_maps: weights/biases stay VMEM-resident across the
        # batch-tile grid steps.
        in_specs += [
            pl.BlockSpec((in_p, out_p), lambda i: (0, 0)),
            pl.BlockSpec((1, out_p), lambda i: (0, 0)),
        ]

    out_p = pdims[-1]
    out_specs = pl.BlockSpec((tb, out_p), lambda i: (i, 0))

    flops = 2 * b_pad * sum(pdims[i] * pdims[i + 1] for i in range(n_layers))
    transcendentals = 2 * b_pad * sum(pdims[1:-1])  # exp + log1p per hidden unit
    bytes_accessed = (
        4 * b_pad * (pdims[0] + pdims[-1])
        + sum(int(a.size) * int(a.dtype.itemsize) for a in args[1:])
    )

    y_p = pl.pallas_call(
        _fnet_kernel,
        out_shape=jax.ShapeDtypeStruct((b_pad, out_p), jnp.float32),
        grid_spec=pltpu.PrefetchScalarGridSpec(
            num_scalar_prefetch=0,
            grid=(b_pad // tb,),
            in_specs=in_specs,
            out_specs=out_specs,
        ),
        compiler_params=pltpu.CompilerParams(
            dimension_semantics=("parallel",),
        ),
        cost_estimate=pl.CostEstimate(
            flops=int(flops),
            transcendentals=int(transcendentals),
            bytes_accessed=int(bytes_accessed),
        ),
    )(*args)

    return y_p[:B, :d_out]


def init_linear_params(key, in_f, out_f):
    # Deterministic init mimicking torch.nn.Linear default:
    # W, b ~ U(-1/sqrt(in_f), 1/sqrt(in_f))
    kw, kb = jax.random.split(key)
    bound = 1.0 / math.sqrt(in_f)
    w = jax.random.uniform(kw, (out_f, in_f), jnp.float32, -bound, bound)
    b = jax.random.uniform(kb, (out_f,), jnp.float32, -bound, bound)
    return w, b


def reference_forward(x, weights, biases):
    h = x
    for i, (w, b) in enumerate(zip(weights, biases)):
        h = h @ w.T + b
        if i < len(weights) - 1:
            h = jnp.where(h > 20.0, h, jnp.log1p(jnp.exp(jnp.minimum(h, 20.0))))
    return h


if __name__ == "__main__":
    # Shapes consistent with fnet(D_in, H1..H10, D_out). Batch chosen so the
    # grid has 2 steps (TB=256) and the software pipeline path is exercised.
    D_in = 32
    hidden = [64, 32, 64, 32, 64, 32, 64, 32, 64, 32]  # H1..H10
    D_out = 8
    batch = 512

    dims = [D_in] + hidden + [D_out]

    key = jax.random.PRNGKey(0)
    keys = jax.random.split(key, len(dims))  # 12 keys: 1 for x, 11 for layers

    x = jax.random.normal(keys[0], (batch, D_in), jnp.float32)

    weights, biases = [], []
    for i in range(11):
        w, b = init_linear_params(keys[i + 1], dims[i], dims[i + 1])
        weights.append(w)
        biases.append(b)

    y = fnet_forward(x, weights, biases, batch_tile=256,
                     compute_dtype=jnp.float32)
    y = jax.block_until_ready(y)

    y_ref = reference_forward(x, weights, biases)
    assert y.shape == (batch, D_out)
    assert jnp.allclose(y, y_ref, atol=1e-3, rtol=1e-3), "mismatch vs reference"

    print("KERNEL_OK")
</pallas_src>

<mosaic_0001>
module attributes {stable_mosaic.version = 11 : i64} {
  func.func @_fnet_kernel(%arg0: i32, %arg1: memref<256x128xf32, #tpu.memory_space<vmem>>, %arg2: memref<128x128xf32, #tpu.memory_space<vmem>>, %arg3: memref<1x128xf32, #tpu.memory_space<vmem>>, %arg4: memref<128x128xf32, #tpu.memory_space<vmem>>, %arg5: memref<1x128xf32, #tpu.memory_space<vmem>>, %arg6: memref<128x128xf32, #tpu.memory_space<vmem>>, %arg7: memref<1x128xf32, #tpu.memory_space<vmem>>, %arg8: memref<128x128xf32, #tpu.memory_space<vmem>>, %arg9: memref<1x128xf32, #tpu.memory_space<vmem>>, %arg10: memref<128x128xf32, #tpu.memory_space<vmem>>, %arg11: memref<1x128xf32, #tpu.memory_space<vmem>>, %arg12: memref<128x128xf32, #tpu.memory_space<vmem>>, %arg13: memref<1x128xf32, #tpu.memory_space<vmem>>, %arg14: memref<128x128xf32, #tpu.memory_space<vmem>>, %arg15: memref<1x128xf32, #tpu.memory_space<vmem>>, %arg16: memref<128x128xf32, #tpu.memory_space<vmem>>, %arg17: memref<1x128xf32, #tpu.memory_space<vmem>>, %arg18: memref<128x128xf32, #tpu.memory_space<vmem>>, %arg19: memref<1x128xf32, #tpu.memory_space<vmem>>, %arg20: memref<128x128xf32, #tpu.memory_space<vmem>>, %arg21: memref<1x128xf32, #tpu.memory_space<vmem>>, %arg22: memref<128x128xf32, #tpu.memory_space<vmem>>, %arg23: memref<1x128xf32, #tpu.memory_space<vmem>>, %arg24: memref<256x128xf32, #tpu.memory_space<vmem>>) attributes {dimension_semantics = [#tpu.dimension_semantics<parallel>], iteration_bounds = array<i64: 2>, scalar_prefetch = 0 : i64, scratch_operands = 0 : i64, tpu.core_type = #tpu.core_type<tc>, window_params = [{transform_indices = @transform_0, window_bounds = array<i64: 256, 128>}, {pipeline_mode = #tpu.pipeline_mode<synchronous>, transform_indices = @transform_1, window_bounds = array<i64: 128, 128>}, {pipeline_mode = #tpu.pipeline_mode<synchronous>, transform_indices = @transform_2, window_bounds = array<i64: 1, 128>}, {pipeline_mode = #tpu.pipeline_mode<synchronous>, transform_indices = @transform_3, window_bounds = array<i64: 128, 128>}, {pipeline_mode = #tpu.pipeline_mode<synchronous>, transform_indices = @transform_4, window_bounds = array<i64: 1, 128>}, {pipeline_mode = #tpu.pipeline_mode<synchronous>, transform_indices = @transform_5, window_bounds = array<i64: 128, 128>}, {pipeline_mode = #tpu.pipeline_mode<synchronous>, transform_indices = @transform_6, window_bounds = array<i64: 1, 128>}, {pipeline_mode = #tpu.pipeline_mode<synchronous>, transform_indices = @transform_7, window_bounds = array<i64: 128, 128>}, {pipeline_mode = #tpu.pipeline_mode<synchronous>, transform_indices = @transform_8, window_bounds = array<i64: 1, 128>}, {pipeline_mode = #tpu.pipeline_mode<synchronous>, transform_indices = @transform_9, window_bounds = array<i64: 128, 128>}, {pipeline_mode = #tpu.pipeline_mode<synchronous>, transform_indices = @transform_10, window_bounds = array<i64: 1, 128>}, {pipeline_mode = #tpu.pipeline_mode<synchronous>, transform_indices = @transform_11, window_bounds = array<i64: 128, 128>}, {pipeline_mode = #tpu.pipeline_mode<synchronous>, transform_indices = @transform_12, window_bounds = array<i64: 1, 128>}, {pipeline_mode = #tpu.pipeline_mode<synchronous>, transform_indices = @transform_13, window_bounds = array<i64: 128, 128>}, {pipeline_mode = #tpu.pipeline_mode<synchronous>, transform_indices = @transform_14, window_bounds = array<i64: 1, 128>}, {pipeline_mode = #tpu.pipeline_mode<synchronous>, transform_indices = @transform_15, window_bounds = array<i64: 128, 128>}, {pipeline_mode = #tpu.pipeline_mode<synchronous>, transform_indices = @transform_16, window_bounds = array<i64: 1, 128>}, {pipeline_mode = #tpu.pipeline_mode<synchronous>, transform_indices = @transform_17, window_bounds = array<i64: 128, 128>}, {pipeline_mode = #tpu.pipeline_mode<synchronous>, transform_indices = @transform_18, window_bounds = array<i64: 1, 128>}, {pipeline_mode = #tpu.pipeline_mode<synchronous>, transform_indices = @transform_19, window_bounds = array<i64: 128, 128>}, {pipeline_mode = #tpu.pipeline_mode<synchronous>, transform_indices = @transform_20, window_bounds = array<i64: 1, 128>}, {pipeline_mode = #tpu.pipeline_mode<synchronous>, transform_indices = @transform_21, window_bounds = array<i64: 128, 128>}, {pipeline_mode = #tpu.pipeline_mode<synchronous>, transform_indices = @transform_22, window_bounds = array<i64: 1, 128>}, {transform_indices = @transform_23, window_bounds = array<i64: 256, 128>}]} {
    %c0 = arith.constant 0 : index
    %c0_0 = arith.constant 0 : index
    %0 = vector.load %arg1[%c0, %c0_0] : memref<256x128xf32, #tpu.memory_space<vmem>>, vector<256x128xf32>
    %c0_1 = arith.constant 0 : index
    %c0_2 = arith.constant 0 : index
    %1 = vector.load %arg2[%c0_1, %c0_2] : memref<128x128xf32, #tpu.memory_space<vmem>>, vector<128x128xf32>
    %c0_3 = arith.constant 0 : index
    %c0_4 = arith.constant 0 : index
    %2 = vector.load %arg3[%c0_3, %c0_4] : memref<1x128xf32, #tpu.memory_space<vmem>>, vector<1x128xf32>
    %cst = arith.constant dense<0.000000e+00> : vector<256x128xf32>
    %3 = tpu.matmul %0, %1, %cst {dimension_numbers = #tpu.dot_dimension_numbers<[1], [0], [0], [1], [0, 0, 1, 1], [], []>} : vector<256x128xf32>, vector<128x128xf32>, vector<256x128xf32> -> vector<256x128xf32>
    %4 = vector.broadcast %2 : vector<1x128xf32> to vector<256x128xf32>
    %5 = arith.addf %3, %4 : vector<256x128xf32>
    %cst_5 = arith.constant 2.000000e+01 : f32
    %6 = vector.broadcast %cst_5 : f32 to vector<256x128xf32>
    %7 = arith.minimumf %5, %6 : vector<256x128xf32>
    %cst_6 = arith.constant 2.000000e+01 : f32
    %8 = vector.broadcast %cst_6 : f32 to vector<256x128xf32>
    %9 = arith.cmpf ogt, %5, %8 : vector<256x128xf32>
    %10 = math.exp %7 : vector<256x128xf32>
    %11 = math.log1p %10 : vector<256x128xf32>
    %12 = arith.select %9, %5, %11 : vector<256x128xi1>, vector<256x128xf32>
    %c0_7 = arith.constant 0 : index
    %c0_8 = arith.constant 0 : index
    %13 = vector.load %arg4[%c0_7, %c0_8] : memref<128x128xf32, #tpu.memory_space<vmem>>, vector<128x128xf32>
    %c0_9 = arith.constant 0 : index
    %c0_10 = arith.constant 0 : index
    %14 = vector.load %arg5[%c0_9, %c0_10] : memref<1x128xf32, #tpu.memory_space<vmem>>, vector<1x128xf32>
    %cst_11 = arith.constant dense<0.000000e+00> : vector<256x128xf32>
    %15 = tpu.matmul %12, %13, %cst_11 {dimension_numbers = #tpu.dot_dimension_numbers<[1], [0], [0], [1], [0, 0, 1, 1], [], []>} : vector<256x128xf32>, vector<128x128xf32>, vector<256x128xf32> -> vector<256x128xf32>
    %16 = vector.broadcast %14 : vector<1x128xf32> to vector<256x128xf32>
    %17 = arith.addf %15, %16 : vector<256x128xf32>
    %cst_12 = arith.constant 2.000000e+01 : f32
    %18 = vector.broadcast %cst_12 : f32 to vector<256x128xf32>
    %19 = arith.minimumf %17, %18 : vector<256x128xf32>
    %cst_13 = arith.constant 2.000000e+01 : f32
    %20 = vector.broadcast %cst_13 : f32 to vector<256x128xf32>
    %21 = arith.cmpf ogt, %17, %20 : vector<256x128xf32>
    %22 = math.exp %19 : vector<256x128xf32>
    %23 = math.log1p %22 : vector<256x128xf32>
    %24 = arith.select %21, %17, %23 : vector<256x128xi1>, vector<256x128xf32>
    %c0_14 = arith.constant 0 : index
    %c0_15 = arith.constant 0 : index
    %25 = vector.load %arg6[%c0_14, %c0_15] : memref<128x128xf32, #tpu.memory_space<vmem>>, vector<128x128xf32>
    %c0_16 = arith.constant 0 : index
    %c0_17 = arith.constant 0 : index
    %26 = vector.load %arg7[%c0_16, %c0_17] : memref<1x128xf32, #tpu.memory_space<vmem>>, vector<1x128xf32>
    %cst_18 = arith.constant dense<0.000000e+00> : vector<256x128xf32>
    %27 = tpu.matmul %24, %25, %cst_18 {dimension_numbers = #tpu.dot_dimension_numbers<[1], [0], [0], [1], [0, 0, 1, 1], [], []>} : vector<256x128xf32>, vector<128x128xf32>, vector<256x128xf32> -> vector<256x128xf32>
    %28 = vector.broadcast %26 : vector<1x128xf32> to vector<256x128xf32>
    %29 = arith.addf %27, %28 : vector<256x128xf32>
    %cst_19 = arith.constant 2.000000e+01 : f32
    %30 = vector.broadcast %cst_19 : f32 to vector<256x128xf32>
    %31 = arith.minimumf %29, %30 : vector<256x128xf32>
    %cst_20 = arith.constant 2.000000e+01 : f32
    %32 = vector.broadcast %cst_20 : f32 to vector<256x128xf32>
    %33 = arith.cmpf ogt, %29, %32 : vector<256x128xf32>
    %34 = math.exp %31 : vector<256x128xf32>
    %35 = math.log1p %34 : vector<256x128xf32>
    %36 = arith.select %33, %29, %35 : vector<256x128xi1>, vector<256x128xf32>
    %c0_21 = arith.constant 0 : index
    %c0_22 = arith.constant 0 : index
    %37 = vector.load %arg8[%c0_21, %c0_22] : memref<128x128xf32, #tpu.memory_space<vmem>>, vector<128x128xf32>
    %c0_23 = arith.constant 0 : index
    %c0_24 = arith.constant 0 : index
    %38 = vector.load %arg9[%c0_23, %c0_24] : memref<1x128xf32, #tpu.memory_space<vmem>>, vector<1x128xf32>
    %cst_25 = arith.constant dense<0.000000e+00> : vector<256x128xf32>
    %39 = tpu.matmul %36, %37, %cst_25 {dimension_numbers = #tpu.dot_dimension_numbers<[1], [0], [0], [1], [0, 0, 1, 1], [], []>} : vector<256x128xf32>, vector<128x128xf32>, vector<256x128xf32> -> vector<256x128xf32>
    %40 = vector.broadcast %38 : vector<1x128xf32> to vector<256x128xf32>
    %41 = arith.addf %39, %40 : vector<256x128xf32>
    %cst_26 = arith.constant 2.000000e+01 : f32
    %42 = vector.broadcast %cst_26 : f32 to vector<256x128xf32>
    %43 = arith.minimumf %41, %42 : vector<256x128xf32>
    %cst_27 = arith.constant 2.000000e+01 : f32
    %44 = vector.broadcast %cst_27 : f32 to vector<256x128xf32>
    %45 = arith.cmpf ogt, %41, %44 : vector<256x128xf32>
    %46 = math.exp %43 : vector<256x128xf32>
    %47 = math.log1p %46 : vector<256x128xf32>
    %48 = arith.select %45, %41, %47 : vector<256x128xi1>, vector<256x128xf32>
    %c0_28 = arith.constant 0 : index
    %c0_29 = arith.constant 0 : index
    %49 = vector.load %arg10[%c0_28, %c0_29] : memref<128x128xf32, #tpu.memory_space<vmem>>, vector<128x128xf32>
    %c0_30 = arith.constant 0 : index
    %c0_31 = arith.constant 0 : index
    %50 = vector.load %arg11[%c0_30, %c0_31] : memref<1x128xf32, #tpu.memory_space<vmem>>, vector<1x128xf32>
    %cst_32 = arith.constant dense<0.000000e+00> : vector<256x128xf32>
    %51 = tpu.matmul %48, %49, %cst_32 {dimension_numbers = #tpu.dot_dimension_numbers<[1], [0], [0], [1], [0, 0, 1, 1], [], []>} : vector<256x128xf32>, vector<128x128xf32>, vector<256x128xf32> -> vector<256x128xf32>
    %52 = vector.broadcast %50 : vector<1x128xf32> to vector<256x128xf32>
    %53 = arith.addf %51, %52 : vector<256x128xf32>
    %cst_33 = arith.constant 2.000000e+01 : f32
    %54 = vector.broadcast %cst_33 : f32 to vector<256x128xf32>
    %55 = arith.minimumf %53, %54 : vector<256x128xf32>
    %cst_34 = arith.constant 2.000000e+01 : f32
    %56 = vector.broadcast %cst_34 : f32 to vector<256x128xf32>
    %57 = arith.cmpf ogt, %53, %56 : vector<256x128xf32>
    %58 = math.exp %55 : vector<256x128xf32>
    %59 = math.log1p %58 : vector<256x128xf32>
    %60 = arith.select %57, %53, %59 : vector<256x128xi1>, vector<256x128xf32>
    %c0_35 = arith.constant 0 : index
    %c0_36 = arith.constant 0 : index
    %61 = vector.load %arg12[%c0_35, %c0_36] : memref<128x128xf32, #tpu.memory_space<vmem>>, vector<128x128xf32>
    %c0_37 = arith.constant 0 : index
    %c0_38 = arith.constant 0 : index
    %62 = vector.load %arg13[%c0_37, %c0_38] : memref<1x128xf32, #tpu.memory_space<vmem>>, vector<1x128xf32>
    %cst_39 = arith.constant dense<0.000000e+00> : vector<256x128xf32>
    %63 = tpu.matmul %60, %61, %cst_39 {dimension_numbers = #tpu.dot_dimension_numbers<[1], [0], [0], [1], [0, 0, 1, 1], [], []>} : vector<256x128xf32>, vector<128x128xf32>, vector<256x128xf32> -> vector<256x128xf32>
    %64 = vector.broadcast %62 : vector<1x128xf32> to vector<256x128xf32>
    %65 = arith.addf %63, %64 : vector<256x128xf32>
    %cst_40 = arith.constant 2.000000e+01 : f32
    %66 = vector.broadcast %cst_40 : f32 to vector<256x128xf32>
    %67 = arith.minimumf %65, %66 : vector<256x128xf32>
    %cst_41 = arith.constant 2.000000e+01 : f32
    %68 = vector.broadcast %cst_41 : f32 to vector<256x128xf32>
    %69 = arith.cmpf ogt, %65, %68 : vector<256x128xf32>
    %70 = math.exp %67 : vector<256x128xf32>
    %71 = math.log1p %70 : vector<256x128xf32>
    %72 = arith.select %69, %65, %71 : vector<256x128xi1>, vector<256x128xf32>
    %c0_42 = arith.constant 0 : index
    %c0_43 = arith.constant 0 : index
    %73 = vector.load %arg14[%c0_42, %c0_43] : memref<128x128xf32, #tpu.memory_space<vmem>>, vector<128x128xf32>
    %c0_44 = arith.constant 0 : index
    %c0_45 = arith.constant 0 : index
    %74 = vector.load %arg15[%c0_44, %c0_45] : memref<1x128xf32, #tpu.memory_space<vmem>>, vector<1x128xf32>
    %cst_46 = arith.constant dense<0.000000e+00> : vector<256x128xf32>
    %75 = tpu.matmul %72, %73, %cst_46 {dimension_numbers = #tpu.dot_dimension_numbers<[1], [0], [0], [1], [0, 0, 1, 1], [], []>} : vector<256x128xf32>, vector<128x128xf32>, vector<256x128xf32> -> vector<256x128xf32>
    %76 = vector.broadcast %74 : vector<1x128xf32> to vector<256x128xf32>
    %77 = arith.addf %75, %76 : vector<256x128xf32>
    %cst_47 = arith.constant 2.000000e+01 : f32
    %78 = vector.broadcast %cst_47 : f32 to vector<256x128xf32>
    %79 = arith.minimumf %77, %78 : vector<256x128xf32>
    %cst_48 = arith.constant 2.000000e+01 : f32
    %80 = vector.broadcast %cst_48 : f32 to vector<256x128xf32>
    %81 = arith.cmpf ogt, %77, %80 : vector<256x128xf32>
    %82 = math.exp %79 : vector<256x128xf32>
    %83 = math.log1p %82 : vector<256x128xf32>
    %84 = arith.select %81, %77, %83 : vector<256x128xi1>, vector<256x128xf32>
    %c0_49 = arith.constant 0 : index
    %c0_50 = arith.constant 0 : index
    %85 = vector.load %arg16[%c0_49, %c0_50] : memref<128x128xf32, #tpu.memory_space<vmem>>, vector<128x128xf32>
    %c0_51 = arith.constant 0 : index
    %c0_52 = arith.constant 0 : index
    %86 = vector.load %arg17[%c0_51, %c0_52] : memref<1x128xf32, #tpu.memory_space<vmem>>, vector<1x128xf32>
    %cst_53 = arith.constant dense<0.000000e+00> : vector<256x128xf32>
    %87 = tpu.matmul %84, %85, %cst_53 {dimension_numbers = #tpu.dot_dimension_numbers<[1], [0], [0], [1], [0, 0, 1, 1], [], []>} : vector<256x128xf32>, vector<128x128xf32>, vector<256x128xf32> -> vector<256x128xf32>
    %88 = vector.broadcast %86 : vector<1x128xf32> to vector<256x128xf32>
    %89 = arith.addf %87, %88 : vector<256x128xf32>
    %cst_54 = arith.constant 2.000000e+01 : f32
    %90 = vector.broadcast %cst_54 : f32 to vector<256x128xf32>
    %91 = arith.minimumf %89, %90 : vector<256x128xf32>
    %cst_55 = arith.constant 2.000000e+01 : f32
    %92 = vector.broadcast %cst_55 : f32 to vector<256x128xf32>
    %93 = arith.cmpf ogt, %89, %92 : vector<256x128xf32>
    %94 = math.exp %91 : vector<256x128xf32>
    %95 = math.log1p %94 : vector<256x128xf32>
    %96 = arith.select %93, %89, %95 : vector<256x128xi1>, vector<256x128xf32>
    %c0_56 = arith.constant 0 : index
    %c0_57 = arith.constant 0 : index
    %97 = vector.load %arg18[%c0_56, %c0_57] : memref<128x128xf32, #tpu.memory_space<vmem>>, vector<128x128xf32>
    %c0_58 = arith.constant 0 : index
    %c0_59 = arith.constant 0 : index
    %98 = vector.load %arg19[%c0_58, %c0_59] : memref<1x128xf32, #tpu.memory_space<vmem>>, vector<1x128xf32>
    %cst_60 = arith.constant dense<0.000000e+00> : vector<256x128xf32>
    %99 = tpu.matmul %96, %97, %cst_60 {dimension_numbers = #tpu.dot_dimension_numbers<[1], [0], [0], [1], [0, 0, 1, 1], [], []>} : vector<256x128xf32>, vector<128x128xf32>, vector<256x128xf32> -> vector<256x128xf32>
    %100 = vector.broadcast %98 : vector<1x128xf32> to vector<256x128xf32>
    %101 = arith.addf %99, %100 : vector<256x128xf32>
    %cst_61 = arith.constant 2.000000e+01 : f32
    %102 = vector.broadcast %cst_61 : f32 to vector<256x128xf32>
    %103 = arith.minimumf %101, %102 : vector<256x128xf32>
    %cst_62 = arith.constant 2.000000e+01 : f32
    %104 = vector.broadcast %cst_62 : f32 to vector<256x128xf32>
    %105 = arith.cmpf ogt, %101, %104 : vector<256x128xf32>
    %106 = math.exp %103 : vector<256x128xf32>
    %107 = math.log1p %106 : vector<256x128xf32>
    %108 = arith.select %105, %101, %107 : vector<256x128xi1>, vector<256x128xf32>
    %c0_63 = arith.constant 0 : index
    %c0_64 = arith.constant 0 : index
    %109 = vector.load %arg20[%c0_63, %c0_64] : memref<128x128xf32, #tpu.memory_space<vmem>>, vector<128x128xf32>
    %c0_65 = arith.constant 0 : index
    %c0_66 = arith.constant 0 : index
    %110 = vector.load %arg21[%c0_65, %c0_66] : memref<1x128xf32, #tpu.memory_space<vmem>>, vector<1x128xf32>
    %cst_67 = arith.constant dense<0.000000e+00> : vector<256x128xf32>
    %111 = tpu.matmul %108, %109, %cst_67 {dimension_numbers = #tpu.dot_dimension_numbers<[1], [0], [0], [1], [0, 0, 1, 1], [], []>} : vector<256x128xf32>, vector<128x128xf32>, vector<256x128xf32> -> vector<256x128xf32>
    %112 = vector.broadcast %110 : vector<1x128xf32> to vector<256x128xf32>
    %113 = arith.addf %111, %112 : vector<256x128xf32>
    %cst_68 = arith.constant 2.000000e+01 : f32
    %114 = vector.broadcast %cst_68 : f32 to vector<256x128xf32>
    %115 = arith.minimumf %113, %114 : vector<256x128xf32>
    %cst_69 = arith.constant 2.000000e+01 : f32
    %116 = vector.broadcast %cst_69 : f32 to vector<256x128xf32>
    %117 = arith.cmpf ogt, %113, %116 : vector<256x128xf32>
    %118 = math.exp %115 : vector<256x128xf32>
    %119 = math.log1p %118 : vector<256x128xf32>
    %120 = arith.select %117, %113, %119 : vector<256x128xi1>, vector<256x128xf32>
    %c0_70 = arith.constant 0 : index
    %c0_71 = arith.constant 0 : index
    %121 = vector.load %arg22[%c0_70, %c0_71] : memref<128x128xf32, #tpu.memory_space<vmem>>, vector<128x128xf32>
    %c0_72 = arith.constant 0 : index
    %c0_73 = arith.constant 0 : index
    %122 = vector.load %arg23[%c0_72, %c0_73] : memref<1x128xf32, #tpu.memory_space<vmem>>, vector<1x128xf32>
    %cst_74 = arith.constant dense<0.000000e+00> : vector<256x128xf32>
    %123 = tpu.matmul %120, %121, %cst_74 {dimension_numbers = #tpu.dot_dimension_numbers<[1], [0], [0], [1], [0, 0, 1, 1], [], []>} : vector<256x128xf32>, vector<128x128xf32>, vector<256x128xf32> -> vector<256x128xf32>
    %124 = vector.broadcast %122 : vector<1x128xf32> to vector<256x128xf32>
    %125 = arith.addf %123, %124 : vector<256x128xf32>
    %c0_75 = arith.constant 0 : index
    %c0_76 = arith.constant 0 : index
    %126 = vector.load %arg24[%c0_75, %c0_76] : memref<256x128xf32, #tpu.memory_space<vmem>>, vector<256x128xf32>
    tpu.vector_store %arg24[%c0_75, %c0_76], %125 {strides = array<i32>} : memref<256x128xf32, #tpu.memory_space<vmem>>, vector<256x128xf32>,
    return
  }
  func.func @transform_0(%arg0: i32) -> (i32, i32) {
    %c0_i32 = arith.constant 0 : i32
    %c0_i32_0 = arith.constant 0 : i32
    return %arg0, %c0_i32 : i32, i32
  }
  func.func @transform_1(%arg0: i32) -> (i32, i32) {
    %c0_i32 = arith.constant 0 : i32
    %c0_i32_0 = arith.constant 0 : i32
    %c0_i32_1 = arith.constant 0 : i32
    return %c0_i32, %c0_i32_0 : i32, i32
  }
  func.func @transform_2(%arg0: i32) -> (i32, i32) {
    %c0_i32 = arith.constant 0 : i32
    %c0_i32_0 = arith.constant 0 : i32
    %c0_i32_1 = arith.constant 0 : i32
    return %c0_i32, %c0_i32_0 : i32, i32
  }
  func.func @transform_3(%arg0: i32) -> (i32, i32) {
    %c0_i32 = arith.constant 0 : i32
    %c0_i32_0 = arith.constant 0 : i32
    %c0_i32_1 = arith.constant 0 : i32
    return %c0_i32, %c0_i32_0 : i32, i32
  }
  func.func @transform_4(%arg0: i32) -> (i32, i32) {
    %c0_i32 = arith.constant 0 : i32
    %c0_i32_0 = arith.constant 0 : i32
    %c0_i32_1 = arith.constant 0 : i32
    return %c0_i32, %c0_i32_0 : i32, i32
  }
  func.func @transform_5(%arg0: i32) -> (i32, i32) {
    %c0_i32 = arith.constant 0 : i32
    %c0_i32_0 = arith.constant 0 : i32
    %c0_i32_1 = arith.constant 0 : i32
    return %c0_i32, %c0_i32_0 : i32, i32
  }
  func.func @transform_6(%arg0: i32) -> (i32, i32) {
    %c0_i32 = arith.constant 0 : i32
    %c0_i32_0 = arith.constant 0 : i32
    %c0_i32_1 = arith.constant 0 : i32
    return %c0_i32, %c0_i32_0 : i32, i32
  }
  func.func @transform_7(%arg0: i32) -> (i32, i32) {
    %c0_i32 = arith.constant 0 : i32
    %c0_i32_0 = arith.constant 0 : i32
    %c0_i32_1 = arith.constant 0 : i32
    return %c0_i32, %c0_i32_0 : i32, i32
  }
  func.func @transform_8(%arg0: i32) -> (i32, i32) {
    %c0_i32 = arith.constant 0 : i32
    %c0_i32_0 = arith.constant 0 : i32
    %c0_i32_1 = arith.constant 0 : i32
    return %c0_i32, %c0_i32_0 : i32, i32
  }
  func.func @transform_9(%arg0: i32) -> (i32, i32) {
    %c0_i32 = arith.constant 0 : i32
    %c0_i32_0 = arith.constant 0 : i32
    %c0_i32_1 = arith.constant 0 : i32
    return %c0_i32, %c0_i32_0 : i32, i32
  }
  func.func @transform_10(%arg0: i32) -> (i32, i32) {
    %c0_i32 = arith.constant 0 : i32
    %c0_i32_0 = arith.constant 0 : i32
    %c0_i32_1 = arith.constant 0 : i32
    return %c0_i32, %c0_i32_0 : i32, i32
  }
  func.func @transform_11(%arg0: i32) -> (i32, i32) {
    %c0_i32 = arith.constant 0 : i32
    %c0_i32_0 = arith.constant 0 : i32
    %c0_i32_1 = arith.constant 0 : i32
    return %c0_i32, %c0_i32_0 : i32, i32
  }
  func.func @transform_12(%arg0: i32) -> (i32, i32) {
    %c0_i32 = arith.constant 0 : i32
    %c0_i32_0 = arith.constant 0 : i32
    %c0_i32_1 = arith.constant 0 : i32
    return %c0_i32, %c0_i32_0 : i32, i32
  }
  func.func @transform_13(%arg0: i32) -> (i32, i32) {
    %c0_i32 = arith.constant 0 : i32
    %c0_i32_0 = arith.constant 0 : i32
    %c0_i32_1 = arith.constant 0 : i32
    return %c0_i32, %c0_i32_0 : i32, i32
  }
  func.func @transform_14(%arg0: i32) -> (i32, i32) {
    %c0_i32 = arith.constant 0 : i32
    %c0_i32_0 = arith.constant 0 : i32
    %c0_i32_1 = arith.constant 0 : i32
    return %c0_i32, %c0_i32_0 : i32, i32
  }
  func.func @transform_15(%arg0: i32) -> (i32, i32) {
    %c0_i32 = arith.constant 0 : i32
    %c0_i32_0 = arith.constant 0 : i32
    %c0_i32_1 = arith.constant 0 : i32
    return %c0_i32, %c0_i32_0 : i32, i32
  }
  func.func @transform_16(%arg0: i32) -> (i32, i32) {
    %c0_i32 = arith.constant 0 : i32
    %c0_i32_0 = arith.constant 0 : i32
    %c0_i32_1 = arith.constant 0 : i32
    return %c0_i32, %c0_i32_0 : i32, i32
  }
  func.func @transform_17(%arg0: i32) -> (i32, i32) {
    %c0_i32 = arith.constant 0 : i32
    %c0_i32_0 = arith.constant 0 : i32
    %c0_i32_1 = arith.constant 0 : i32
    return %c0_i32, %c0_i32_0 : i32, i32
  }
  func.func @transform_18(%arg0: i32) -> (i32, i32) {
    %c0_i32 = arith.constant 0 : i32
    %c0_i32_0 = arith.constant 0 : i32
    %c0_i32_1 = arith.constant 0 : i32
    return %c0_i32, %c0_i32_0 : i32, i32
  }
  func.func @transform_19(%arg0: i32) -> (i32, i32) {
    %c0_i32 = arith.constant 0 : i32
    %c0_i32_0 = arith.constant 0 : i32
    %c0_i32_1 = arith.constant 0 : i32
    return %c0_i32, %c0_i32_0 : i32, i32
  }
  func.func @transform_20(%arg0: i32) -> (i32, i32) {
    %c0_i32 = arith.constant 0 : i32
    %c0_i32_0 = arith.constant 0 : i32
    %c0_i32_1 = arith.constant 0 : i32
    return %c0_i32, %c0_i32_0 : i32, i32
  }
  func.func @transform_21(%arg0: i32) -> (i32, i32) {
    %c0_i32 = arith.constant 0 : i32
    %c0_i32_0 = arith.constant 0 : i32
    %c0_i32_1 = arith.constant 0 : i32
    return %c0_i32, %c0_i32_0 : i32, i32
  }
  func.func @transform_22(%arg0: i32) -> (i32, i32) {
    %c0_i32 = arith.constant 0 : i32
    %c0_i32_0 = arith.constant 0 : i32
    %c0_i32_1 = arith.constant 0 : i32
    return %c0_i32, %c0_i32_0 : i32, i32
  }
  func.func @transform_23(%arg0: i32) -> (i32, i32) {
    %c0_i32 = arith.constant 0 : i32
    %c0_i32_0 = arith.constant 0 : i32
    return %arg0, %c0_i32 : i32, i32
  }
}

</mosaic_0001>

<bundles_post_ra>
// kernel: tpu_custom_call.1
= control target key start
LH: loop header
LB: loop body
LE: loop exit
PB: predicated region body
PF: predicated region fallthrough
CT: control target
= control target key end

     0   :  { %s12743_s0 = inlined_call_operand.hbm [shape: f32[512,128], index: 0, kind: input, shape index: {}]   ;;  %s12744_s1 = inlined_call_operand.hbm [shape: f32[128,128], index: 1, kind: input, shape index: {}]   ;;  %s12745_s2 = inlined_call_operand.vmem [shape: f32[1,128], index: 2, kind: input, shape index: {}]   ;;  %s12746_s3 = inlined_call_operand.hbm [shape: f32[128,128], index: 3, kind: input, shape index: {}]   ;;  %s12747_s4 = inlined_call_operand.vmem [shape: f32[1,128], index: 4, kind: input, shape index: {}]   ;;  %s12748_s5 = inlined_call_operand.hbm [shape: f32[128,128], index: 5, kind: input, shape index: {}]   ;;  %s12749_s6 = inlined_call_operand.vmem [shape: f32[1,128], index: 6, kind: input, shape index: {}]   ;;  %s12750_s7 = inlined_call_operand.hbm [shape: f32[128,128], index: 7, kind: input, shape index: {}]   ;;  %s12751_s8 = inlined_call_operand.vmem [shape: f32[1,128], index: 8, kind: input, shape index: {}]   ;;  %s12752_s9 = inlined_call_operand.hbm [shape: f32[128,128], index: 9, kind: input, shape index: {}]   ;;  %s12753_s10 = inlined_call_operand.vmem [shape: f32[1,128], index: 10, kind: input, shape index: {}]   ;;  %s12754_s11 = inlined_call_operand.hbm [shape: f32[128,128], index: 11, kind: input, shape index: {}]   ;;  %s12755_s12 = inlined_call_operand.vmem [shape: f32[1,128], index: 12, kind: input, shape index: {}]   ;;  %s12756_s13 = inlined_call_operand.hbm [shape: f32[128,128], index: 13, kind: input, shape index: {}]   ;;  %s12757_s14 = inlined_call_operand.vmem [shape: f32[1,128], index: 14, kind: input, shape index: {}]   ;;  %s12758_s15 = inlined_call_operand.hbm [shape: f32[128,128], index: 15, kind: input, shape index: {}]   ;;  %s12759_s16 = inlined_call_operand.vmem [shape: f32[1,128], index: 16, kind: input, shape index: {}]   ;;  %s12760_s17 = inlined_call_operand.hbm [shape: f32[128,128], index: 17, kind: input, shape index: {}]   ;;  %s12761_s18 = inlined_call_operand.vmem [shape: f32[1,128], index: 18, kind: input, shape index: {}]   ;;  %s12762_s19 = inlined_call_operand.hbm [shape: f32[128,128], index: 19, kind: input, shape index: {}]   ;;  %s12763_s20 = inlined_call_operand.vmem [shape: f32[1,128], index: 20, kind: input, shape index: {}]   ;;  %s12764_s21 = inlined_call_operand.hbm [shape: f32[128,128], index: 21, kind: input, shape index: {}]   ;;  %s12765_s22 = inlined_call_operand.vmem [shape: f32[1,128], index: 22, kind: input, shape index: {}]   ;;  %s12766_s23 = inlined_call_operand.hbm [shape: f32[512,128], index: 23, kind: output, shape index: {}]  }
   0x1   :  { %12779 = sst [smem:[#allocation31_spill]] %s12743_s0 }
   0x2   :  { %12780 = sst [smem:[#allocation32_spill]] %s12744_s1 }
   0x3   :  { %12781 = sst [smem:[#allocation33_spill]] %s12745_s2 }
   0x4   :  { %12782 = sst [smem:[#allocation34_spill]] %s12746_s3 }
   0x5   :  { %12783 = sst [smem:[#allocation35_spill]] %s12747_s4 }
   0x6   :  { %12784 = sst [smem:[#allocation36_spill]] %s12748_s5 }
   0x7   :  { %12785 = sst [smem:[#allocation37_spill]] %s12749_s6 }
   0x8   :  { %12786 = sst [smem:[#allocation38_spill]] %s12750_s7 }
   0x9   :  { %12787 = sst [smem:[#allocation39_spill]] %s12751_s8 }
   0xa   :  { %12788 = sst [smem:[#allocation40_spill]] %s12752_s9 }
   0xb   :  { %12789 = sst [smem:[#allocation41_spill]] %s12753_s10 }
   0xc   :  { %12790 = sst [smem:[#allocation42_spill]] %s12754_s11 }
   0xd   :  { %12791 = sst [smem:[#allocation43_spill]] %s12756_s13 }
   0xe   :  { %12792 = sst [smem:[#allocation44_spill]] %s12758_s15 }
   0xf   :  { %12793 = sst [smem:[#allocation45_spill]] %s12759_s16 }
  0x10   :  { %12794 = sst [smem:[#allocation46_spill]] %s12760_s17 }
  0x11   :  { %12795 = sst [smem:[#allocation47_spill]] %s12761_s18 }
  0x12   :  { %12796 = sst [smem:[#allocation48_spill]] %s12763_s20 }
  0x13   :  { %12797 = sst [smem:[#allocation49_spill]] %s12765_s22 }
  0x14   :  { %12798 = sst [smem:[#allocation50_spill]] %s12766_s23 }
  0x15   :  { %28 = vsyncpa [#allocation3], 0 }
  0x16   :  { %30 = vsyncpa [#allocation3 + $0x1], 0 }
  0x17   :  { %31 = vsyncpa [#allocation6], 0 }
  0x18   :  { %32 = vsyncpa [#allocation9], 0 }
  0x19   :  { %33 = vsyncpa [#allocation12], 0 }
  0x1a   :  { %34 = vsyncpa [#allocation15], 0 }
  0x1b   :  { %35 = vsyncpa [#allocation18], 0 }
  0x1c   :  { %36 = vsyncpa [#allocation21], 0 }
  0x1d   :  { %37 = vsyncpa [#allocation4], 0 }
  0x1e   :  { %39 = vsyncpa [#allocation4 + $0x1], 0  ;;  %s9257_s4 = smov 0   ;;  %s9259_s30 = smov 0  }
  0x1f   :  { %s9261_s24 = smov 0   ;;  %s9263_s25 = smov 0  }
  0x20 LB: > { %s12799_s26 = sld [smem:[#allocation32_spill]]  ;;  %s9281_s6 = sadd.s32 4294967295, %s9120_s25   ;;  %s9120_s25 = sphi %s9263_s25, %s13047_s25   ;;  %s9116_s24 = sphi %s9261_s24, %s13046_s24   ;;  %s9112_s30 = sphi %s9259_s30, %s13045_s30   ;;  %s9108_s4 = sphi %s9257_s4, %s13044_s4  }
  0x21   : > { %p7117_p0 = scmp.ge.s32.totalorder %s9120_s25, 1  ;;  %p66_p1 = scmp.eq.s32.totalorder %s9281_s6, 0 }
  0x22   : > { %p564_p2 = scmp.lt.s32.totalorder %s9120_s25, 3  ;;  %s9122_s7 = smov [#allocation5]  }
  0x23   : > { %s577_s28 = sshll.u32 %s9122_s7, 4  ;;  %s12801_s0 = sld [smem:[#allocation36_spill]]  ;;  %s578_s28 = int_to_ptr.vmem [resolvable:$true] %s577_s28 }
  0x24   : > { %p9286_p3 = pnand %p7117_p0, %p564_p2  ;;  %s12803_s9 = sld [smem:[#allocation40_spill]] }
  0x25   : > { %s9123_s22 = smov [#allocation8]   ;;  %s12775_s18 = smov 128  }
  0x26   : > { %s575_s2 = sshll.u32 %s12799_s26, 4  ;;  %p7250_p4 = pneg %p9286_p3  ;;  %s576_s2 = int_to_ptr.hbm [resolvable:$true] %s575_s2 }
  0x27   : > { %s611_s20 = sshll.u32 %s9123_s22, 4  ;;  %s12776_s16 = smov 8   ;;  %s612_s20 = int_to_ptr.vmem [resolvable:$true] %s611_s20 }
  0x28   : > { %p9298_p6 = pnand %p7250_p4, %p66_p1  ;;  %s12804_s13 = sld [smem:[#allocation43_spill]] }
  0x29   : > { %s609_s5 = sshll.u32 %s12801_s0, 4  ;;  %s9126_s22 = smov [#allocation11]   ;;  %s610_s5 = int_to_ptr.hbm [resolvable:$true] %s609_s5 }
  0x2a   : > { %s643_s7 = sshll.u32 %s12803_s9, 4  ;;  %s645_s0 = sshll.u32 %s9126_s22, 4  ;;  %s644_s7 = int_to_ptr.hbm [resolvable:$true] %s643_s7  ;;  %s646_s0 = int_to_ptr.vmem [resolvable:$true] %s645_s0 }
  0x2b   : > { %7253 = dma.hbm_to_vmem [thread:$0]  (!%p9298_p6), %s576_s2, 2048, %s578_s28, [#allocation6], %s12775_s18, %s12775_s18, %s12776_s16  }
  0x2c   : > { %7259 = dma.hbm_to_vmem [thread:$0]  (!%p9298_p6), %s610_s5, 2048, %s612_s20, [#allocation9], %s12775_s18, %s12775_s18, %s12776_s16  }
  0x2d   : > { %7265 = dma.hbm_to_vmem [thread:$0]  (!%p9298_p6), %s644_s7, 2048, %s646_s0, [#allocation12], %s12775_s18, %s12775_s18, %s12776_s16  }
  0x2e   : > { %s677_s3 = sshll.u32 %s12804_s13, 4  ;;  %s9127_s2 = smov [#allocation14]   ;;  %s678_s3 = int_to_ptr.hbm [resolvable:$true] %s677_s3 }
  0x2f   : > { %s679_s28 = sshll.u32 %s9127_s2, 4  ;;  %s12805_s17 = sld [smem:[#allocation46_spill]]  ;;  %s680_s28 = int_to_ptr.vmem [resolvable:$true] %s679_s28 }
  0x30   : > { %7271 = dma.hbm_to_vmem [thread:$0]  (!%p9298_p6), %s678_s3, 2048, %s680_s28, [#allocation15], %s12775_s18, %s12775_s18, %s12776_s16  }
  0x31   : > { %s12806_s23 = sld [smem:[#allocation34_spill]]  ;;  %s9128_s13 = smov [#allocation17]  }
  0x32   : > { %s713_s7 = sshll.u32 %s9128_s13, 4  ;;  %s9129_s9 = smov [#allocation7]   ;;  %s714_s7 = int_to_ptr.vmem [resolvable:$true] %s713_s7 }
  0x33   : > { %s594_s0 = sshll.u32 %s9129_s9, 4  ;;  %s12808_s11 = sld [smem:[#allocation42_spill]]  ;;  %s595_s0 = int_to_ptr.vmem [resolvable:$true] %s594_s0 }
  0x34   : > { %s9130_s29 = smov [#allocation10]   ;;  %s12809_s15 = sld [smem:[#allocation44_spill]] }
  0x35   : > { %s711_s20 = sshll.u32 %s12805_s17, 4  ;;  %s12807_s17 = sld [smem:[#allocation38_spill]]  ;;  %s712_s20 = int_to_ptr.hbm [resolvable:$true] %s711_s20 }
  0x36   : > { %7277 = dma.hbm_to_vmem [thread:$0]  (!%p9298_p6), %s712_s20, 2048, %s714_s7, [#allocation18], %s12775_s18, %s12775_s18, %s12776_s16  }
  0x37   : > { %s592_s22 = sshll.u32 %s12806_s23, 4  ;;  %s628_s20 = sshll.u32 %s9130_s29, 4  ;;  %s593_s22 = int_to_ptr.hbm [resolvable:$true] %s592_s22  ;;  %s629_s20 = int_to_ptr.vmem [resolvable:$true] %s628_s20 }
  0x38   : > { %7256 = dma.hbm_to_vmem [thread:$0]  (!%p9298_p6), %s593_s22, 2048, %s595_s0, [#allocation6], %s12775_s18, %s12775_s18, %s12776_s16  }
  0x39   : > { %s660_s5 = sshll.u32 %s12808_s11, 4  ;;  %s728_s26 = sshll.u32 %s12762_s19, 4  ;;  %s661_s5 = int_to_ptr.hbm [resolvable:$true] %s660_s5  ;;  %s729_s26 = int_to_ptr.hbm [resolvable:$true] %s728_s26 }
  0x3a   : > { %s694_s22 = sshll.u32 %s12809_s15, 4  ;;  %s9133_s28 = smov [#allocation19]   ;;  %s695_s22 = int_to_ptr.hbm [resolvable:$true] %s694_s22 }
  0x3b   : > { %s626_s3 = sshll.u32 %s12807_s17, 4  ;;  %s9131_s17 = smov [#allocation13]   ;;  %s627_s3 = int_to_ptr.hbm [resolvable:$true] %s626_s3 }
  0x3c   : > { %7262 = dma.hbm_to_vmem [thread:$0]  (!%p9298_p6), %s627_s3, 2048, %s629_s20, [#allocation9], %s12775_s18, %s12775_s18, %s12776_s16  }
  0x3d   : > { %s662_s23 = sshll.u32 %s9131_s17, 4  ;;  %s9132_s3 = smov [#allocation16]   ;;  %s663_s23 = int_to_ptr.vmem [resolvable:$true] %s662_s23 }
  0x3e   : > { %7268 = dma.hbm_to_vmem [thread:$0]  (!%p9298_p6), %s661_s5, 2048, %s663_s23, [#allocation12], %s12775_s18, %s12775_s18, %s12776_s16  }
  0x3f   : > { %s696_s13 = sshll.u32 %s9132_s3, 4  ;;  %s730_s5 = sshll.u32 %s9133_s28, 4  ;;  %s697_s13 = int_to_ptr.vmem [resolvable:$true] %s696_s13  ;;  %s731_s5 = int_to_ptr.vmem [resolvable:$true] %s730_s5 }
  0x40   : > { %7274 = dma.hbm_to_vmem [thread:$0]  (!%p9298_p6), %s695_s22, 2048, %s697_s13, [#allocation15], %s12775_s18, %s12775_s18, %s12776_s16  }
  0x41   : > { %s745_s17 = sshll.u32 %s12764_s21, 4  ;;  %s9134_s23 = smov [#allocation20]   ;;  %s746_s17 = int_to_ptr.hbm [resolvable:$true] %s745_s17 }
  0x42   : > { %7280 = dma.hbm_to_vmem [thread:$0]  (!%p9298_p6), %s729_s26, 2048, %s731_s5, [#allocation18], %s12775_s18, %s12775_s18, %s12776_s16  }
  0x43   : > { %s747_s7 = sshll.u32 %s9134_s23, 4  ;;  %s7116_s9 = sadd.s32 4294967294, %s9120_s25   ;;  %s748_s7 = int_to_ptr.vmem [resolvable:$true] %s747_s7 }
  0x44   : > { %7283 = dma.hbm_to_vmem [thread:$0]  (!%p9298_p6), %s746_s17, 2048, %s748_s7, [#allocation21], %s12775_s18, %s12775_s18, %s12776_s16  }
  0x45   : > { %s9386_s22 = sadd.s32 1, %s9120_s25   ;;  %s52_s0 = sadd.s32 1, %s9116_s24 }
  0x46   : > { %s49_s2 = ssub.s32 %s9120_s25, %s9386_s22  ;;  %p59_p7 = scmp.ne.s32.totalorder %s9116_s24, %s9112_s30 }
  0x47   : > { %p50_p8 = scmp.eq.s32.totalorder %s49_s2, 0  ;;  %p60_p9 = scmp.eq.s32.totalorder %s9120_s25, 0 }
  0x48   : > { %p65_p10 = scmp.ne.s32.totalorder %s9112_s30, %s9108_s4  ;;  %p551_p11 = scmp.eq.s32.totalorder %s9281_s6, 1 }
  0x49   : > { %s9398_s26 = scalar_select %p50_p8, %s9116_s24, %s52_s0  }
  0x4a   : > { %p9402_p12 = por %p66_p1, %p65_p10  ;;  %p9406_p13 = por %p551_p11, %p59_p7 }
  0x4b   : > { %p557_p0 = scmp.eq.s32.totalorder %s7116_s9, 1  ;;  %p61_p2 = por %p60_p9, %p59_p7 }
  0x4c   : > { %s764_s13 = sand.u32 1, %s9116_s24   ;;  %p7303_p6 = scmp.lt.s32.totalorder %s9120_s25, 2 }
  0x4d   : > { %p9411_p4 = por %p557_p0, %p65_p10  ;;  %s7130_s5 = sshll.u32 %s764_s13, 8 }
  0x4e   : > { %s7152_s29 = sshll.u32 %s9120_s25, 8  ;;  %s12813_s23 = sld [smem:[#allocation31_spill]] }
  0x4f   : > { %s768_s2 = scalar_lea.vmem [#allocation2], %s7130_s5  ;;  %p9420_p8 = pnand %p7303_p6, %p61_p2 }
  0x50   : > { %s776_s18 = sshll.u32 %s768_s2, 4  ;;  %s765_s16 = scalar_lea.sflag [#allocation3], %s764_s13  ;;  %s777_s18 = int_to_ptr.vmem [resolvable:$true] %s776_s18 }
  0x51   : > { %p9004_p9 = pneg %p9420_p8 }
  0x54   : > { %s773_s7 = scalar_lea.hbm %s12813_s23, %s7152_s29  ;;  %s9007_s5 = scalar_lea.hbm %s12813_s23, 512 }
  0x55   : > { %s774_s0 = sshll.u32 %s773_s7, 4  ;;  %s775_s0 = int_to_ptr.hbm [resolvable:$true] %s774_s0 }
  0x56   : > { %s9000_s11 = sshra.s32 %s775_s0, 4  ;;  %s9001_s11 = int_to_ptr.hbm [resolvable:$true] %s9000_s11 }
  0x57   : > { %s9002_s15 = scalar_lea.hbm %s9001_s11, 256  ;;  %p9008_p0 = scmp.lt.s32.totalorder %s9001_s11, %s12813_s23 }
  0x58   : > { %p9003_p7 = scmp.ne.s32.totalorder %s9001_s11, %s9002_s15  ;;  %p9009_p2 = scmp.lt.s32.totalorder %s9007_s5, %s9002_s15 }
  0x5a   : > { %p9005_p10 = pnand %p9004_p9, %p9003_p7  ;;  %p9010_p6 = por %p9009_p2, %p9008_p0 }
  0x5c   : > { %p9006_p11 = pneg %p9005_p10 }
  0x5e   : > { %p9011_p5 = pnand %p9010_p6, %p9006_p11 }
  0x60   : > { %9014 = shalt.err (!%p9011_p5)
}
  0x61   : > { %s12815_s13 = smov 8   ;;  %s12816_s2 = smov 128  }
  0x62   : > { %7287 = dma.hbm_to_vmem [thread:$0]  (!%p9420_p8), %s775_s0, 4096, %s777_s18, %s765_s16, %s12816_s2, %s12816_s2, %s12815_s13  }
  0x63   : > { %788 = sbr.rel (%p9286_p3) target bundleno = 2096 (0x830), region = 112  ;;  %s9440_s29 = sand.u32 (!%p9286_p3), 1, %s9112_s30  }
  0x64   : > { %s7134_s11 = sshll.u32 (!%p9286_p3), %s9440_s29, 8  ;;  %s791_s15 = scalar_lea.sflag (!%p9286_p3), [#allocation3], %s9440_s29 }
  0x65   : > { %s9446_s20 = scalar_lea.vmem (!%p9286_p3), [#allocation2], %s7134_s11 }
  0x68   : > { %9075 = dma.done.wait (%p9402_p12), %s791_s15, 4096  }
  0x69   : > { %9077 = vsyncadd (%p9402_p12), %s791_s15, 4294963200 }
  0x6a   : > { %9079 = dma.done.wait (%p66_p1), [#allocation6], 4096  }
  0x6b   : > { %9081 = vsyncadd (%p66_p1), [#allocation6], 4294963200 }
  0x6c   : > { %9083 = dma.done.wait (%p66_p1), [#allocation9], 4096  }
  0x6d   : > { %9085 = vsyncadd (%p66_p1), [#allocation9], 4294963200 }
  0x6e   : > { %9087 = dma.done.wait (%p66_p1), [#allocation12], 4096  }
  0x6f   : > { %9089 = vsyncadd (%p66_p1), [#allocation12], 4294963200 }
  0x70   : > { %9091 = dma.done.wait (%p66_p1), [#allocation15], 4096  }
  0x71   : > { %9093 = vsyncadd (%p66_p1), [#allocation15], 4294963200 }
  0x72   : > { %9095 = dma.done.wait (%p66_p1), [#allocation18], 4096  }
  0x73   : > { %9097 = vsyncadd (%p66_p1), [#allocation18], 4294963200 }
  0x74   : > { %9099 = dma.done.wait (%p66_p1), [#allocation21], 2048  }
  0x75   : > { %9101 = vsyncadd (%p66_p1), [#allocation21], 4294965248  ;;  %v962_v0 = vld [vmem:[#allocation5 + $0x78] sm:$0xff]  ;;  %v961_v1 = vld [vmem:[#allocation5 + $0x70] sm:$0xff]  ;;  %s12817_s27 = sld [smem:[#allocation33_spill]]  ;;  %s12570_s1 = scalar_lea.vmem [#allocation22], %s7134_s11 }
  0x76   : > { %967 = vmatpush.msra.mxu0 %v962_v0  ;;  %7154 = vmatpush.msra.mxu3 %v962_v0  ;;  %v960_v2 = vld [vmem:[#allocation5 + $0x68] sm:$0xff]  ;;  %v959_v3 = vld [vmem:[#allocation5 + $0x60] sm:$0xff]  ;;  %v958_v4 = vld [vmem:[#allocation5 + $0x58] sm:$0xff]  ;;  %s12834_s17 = sld [smem:[#allocation35_spill]]  ;;  %s7153_s11 = sshll.u32 %s9281_s6, 8 }
  0x77   : > { %v957_v5 = vld [vmem:[#allocation5 + $0x50] sm:$0xff]  ;;  %v956_v6 = vld [vmem:[#allocation5 + $0x48] sm:$0xff]  ;;  %v955_v7 = vld [vmem:[#allocation5 + $0x40] sm:$0xff]  ;;  %s12884_s8 = sld [smem:[#allocation39_spill]]  ;;  %s6935_s15 = sshll.u32 %s12570_s1, 4  ;;  %s6936_s15 = int_to_ptr.vmem [resolvable:$true] %s6935_s15 }
  0x78   : > { %968 = vmatpush.msra.mxu0 %v961_v1  ;;  %7155 = vmatpush.msra.mxu3 %v961_v1  ;;  %v954_v8 = vld [vmem:[#allocation5 + $0x38] sm:$0xff]  ;;  %v953_v9 = vld [vmem:[#allocation5 + $0x30] sm:$0xff]  ;;  %v952_v10 = vld [vmem:[#allocation5 + $0x28] sm:$0xff]  ;;  %s12901_s10 = sld [smem:[#allocation41_spill]] }
  0x79   : > { %v951_v11 = vld [vmem:[#allocation5 + $0x20] sm:$0xff]  ;;  %v950_v12 = vld [vmem:[#allocation5 + $0x18] sm:$0xff]  ;;  %v949_v13 = vld [vmem:[#allocation5 + $0x10] sm:$0xff]  ;;  %s12976_s7 = sld [smem:[#allocation45_spill]] }
  0x7a   : > { %969 = vmatpush.msra.mxu0 %v960_v2  ;;  %7156 = vmatpush.msra.mxu3 %v960_v2  ;;  %v948_v14 = vld [vmem:[#allocation5 + $0x8] sm:$0xff]  ;;  %v947_v15 = vld [vmem:[#allocation5] sm:$0xff]  ;;  %v917_v20 = vld [vmem:[%s9446_s20 + $0x10] sm:$0xff]  ;;  %s12999_s0 = sld [smem:[#allocation47_spill]] }
  0x7b   : > { %v915_v16 = vld [vmem:[%s9446_s20] sm:$0xff]  ;;  %v916_v18 = vld [vmem:[%s9446_s20 + $0x8] sm:$0xff]  ;;  %v941_v21 = vld [vmem:[%s9446_s20 + $0xd0] sm:$0xff]  ;;  %s13018_s18 = sld [smem:[#allocation48_spill]] }
  0x7c   : > { %970 = vmatpush.msra.mxu0 %v959_v3  ;;  %7157 = vmatpush.msra.mxu3 %v959_v3  ;;  %v939_v17 = vld [vmem:[%s9446_s20 + $0xc0] sm:$0xff]  ;;  %v940_v19 = vld [vmem:[%s9446_s20 + $0xc8] sm:$0xff]  ;;  %v918_v22 = vld [vmem:[%s9446_s20 + $0x18] sm:$0xff]  ;;  %s13041_s16 = sld [smem:[#allocation49_spill]] }
  0x7d   : > { %v942_v23 = vld [vmem:[%s9446_s20 + $0xd8] sm:$0xff]  ;;  %v919_v24 = vld [vmem:[%s9446_s20 + $0x20] sm:$0xff]  ;;  %v920_v26 = vld [vmem:[%s9446_s20 + $0x28] sm:$0xff]  ;;  %s13042_s13 = sld [smem:[#allocation50_spill]] }
  0x7e   : > { %971 = vmatpush.msra.mxu0 %v958_v4  ;;  %7158 = vmatpush.msra.mxu3 %v958_v4  ;;  %v943_v25 = vld [vmem:[%s9446_s20 + $0xe0] sm:$0xff]  ;;  %v944_v27 = vld [vmem:[%s9446_s20 + $0xe8] sm:$0xff]  ;;  %v921_v28 = vld [vmem:[%s9446_s20 + $0x30] sm:$0xff] }
  0x7f   : > { %v945_v29 = vld [vmem:[%s9446_s20 + $0xf0] sm:$0xff]  ;;  %v922_v30 = vld [vmem:[%s9446_s20 + $0x38] sm:$0xff]  ;;  %v923_v32 = vld [vmem:[%s9446_s20 + $0x40] sm:$0xff] }
  0x80   : > { %972 = vmatpush.msra.mxu0 %v957_v5  ;;  %7159 = vmatpush.msra.mxu3 %v957_v5  ;;  %v946_v31 = vld [vmem:[%s9446_s20 + $0xf8] sm:$0xff]  ;;  %v924_v33 = vld [vmem:[%s9446_s20 + $0x48] sm:$0xff]  ;;  %v925_v34 = vld [vmem:[%s9446_s20 + $0x50] sm:$0xff] }
  0x81   : > { %v926_v35 = vld [vmem:[%s9446_s20 + $0x58] sm:$0xff]  ;;  %v1542_v37 = vld [vmem:[#allocation7 + $0x70] sm:$0xff]  ;;  %v1541_v38 = vld [vmem:[#allocation7 + $0x68] sm:$0xff] }
  0x82   : > { %973 = vmatpush.msra.mxu0 %v956_v6  ;;  %7160 = vmatpush.msra.mxu3 %v956_v6  ;;  %v1543_v36 = vld [vmem:[#allocation7 + $0x78] sm:$0xff]  ;;  %v927_v39 = vld [vmem:[%s9446_s20 + $0x60] sm:$0xff]  ;;  %v1538_v42 = vld [vmem:[#allocation7 + $0x50] sm:$0xff] }
  0x83   : > { %1548 = vmatpush.msra.mxu1 %v1543_v36  ;;  %v1540_v40 = vld [vmem:[#allocation7 + $0x60] sm:$0xff]  ;;  %v1539_v41 = vld [vmem:[#allocation7 + $0x58] sm:$0xff]  ;;  %v1537_v43 = vld [vmem:[#allocation7 + $0x48] sm:$0xff]  ;;  %s6934_s2 = scalar_lea.hbm %s13042_s13, %s7153_s11  ;;  %s9050_s11 = scalar_lea.hbm %s13042_s13, 512 }
  0x84   : > { %974 = vmatpush.msra.mxu0 %v955_v7  ;;  %7161 = vmatpush.msra.mxu3 %v955_v7  ;;  %v928_v44 = vld [vmem:[%s9446_s20 + $0x68] sm:$0xff]  ;;  %v1536_v45 = vld [vmem:[#allocation7 + $0x40] sm:$0xff]  ;;  %v1535_v46 = vld [vmem:[#allocation7 + $0x38] sm:$0xff] }
  0x85   : > { %1549 = vmatpush.msra.mxu1 %v1542_v37  ;;  %v1534_v47 = vld [vmem:[#allocation7 + $0x30] sm:$0xff]  ;;  %v1533_v48 = vld [vmem:[#allocation7 + $0x28] sm:$0xff]  ;;  %v1532_v50 = vld [vmem:[#allocation7 + $0x20] sm:$0xff] }
  0x86   : > { %975 = vmatpush.msra.mxu0 %v954_v8  ;;  %7162 = vmatpush.msra.mxu3 %v954_v8  ;;  %v929_v49 = vld [vmem:[%s9446_s20 + $0x70] sm:$0xff]  ;;  %v1531_v51 = vld [vmem:[#allocation7 + $0x18] sm:$0xff]  ;;  %v1529_v53 = vld [vmem:[#allocation7 + $0x8] sm:$0xff] }
  0x87   : > { %1550 = vmatpush.msra.mxu1 %v1541_v38  ;;  %v1530_v52 = vld [vmem:[#allocation7 + $0x10] sm:$0xff]  ;;  %v930_v54 = vld [vmem:[%s9446_s20 + $0x78] sm:$0xff]  ;;  %v1528_v55 = vld [vmem:[#allocation7] sm:$0xff] }
  0x88   : > { %976 = vmatpush.msra.mxu0 %v953_v9  ;;  %7163 = vmatpush.msra.mxu3 %v953_v9  ;;  %v9503_v56 = vld [vmem:[%s12817_s27] ss:$0 sm:$0xff]  ;;  %v932_v1 = vld [vmem:[%s9446_s20 + $0x88] sm:$0xff] }
  0x89   : > { %1551 = vmatpush.msra.mxu1 %v1540_v40  ;;  %v931_v58 = vld [vmem:[%s9446_s20 + $0x80] sm:$0xff] }
  0x8a   : > { %977 = vmatpush.msra.mxu0 %v952_v10  ;;  %7164 = vmatpush.msra.mxu3 %v952_v10 }
  0x8b   : > { %1552 = vmatpush.msra.mxu1 %v1539_v41 }
  0x8c   : > { %978 = vmatpush.msra.mxu0 %v951_v11  ;;  %7165 = vmatpush.msra.mxu3 %v951_v11 }
  0x8d   : > { %1553 = vmatpush.msra.mxu1 %v1538_v42 }
  0x8e   : > { %979 = vmatpush.msra.mxu0 %v950_v12  ;;  %7166 = vmatpush.msra.mxu3 %v950_v12 }
  0x8f   : > { %1554 = vmatpush.msra.mxu1 %v1537_v43 }
  0x90   : > { %980 = vmatpush.msra.mxu0 %v949_v13  ;;  %7167 = vmatpush.msra.mxu3 %v949_v13  ;;  %v933_v13 = vld [vmem:[%s9446_s20 + $0x90] sm:$0xff] }
  0x91   : > { %1555 = vmatpush.msra.mxu1 %v1536_v45 }
  0x92   : > { %981 = vmatpush.msra.mxu0 %v948_v14  ;;  %7168 = vmatpush.msra.mxu3 %v948_v14 }
  0x93   : > { %1556 = vmatpush.msra.mxu1 %v1535_v46 }
  0x94   : > { %982 = vmatpush.msra.mxu0 %v947_v15  ;;  %7169 = vmatpush.msra.mxu3 %v947_v15 }
  0x95   : > { %983 = vmatmul.f32.vlgmr.msra.gmra.mxu0 %v915_v16  ;;  %1055 = vmatmul.f32.vlgmr.msra.gmra.mxu3 %v939_v17 }
  0x96   : > { %7170 = vmatpush.msrb.mxu3 %v1543_v36  ;;  %1557 = vmatpush.msra.mxu1 %v1534_v47 }
  0x98   : > { %7171 = vmatpush.msrb.mxu3 %v1542_v37  ;;  %1558 = vmatpush.msra.mxu1 %v1533_v48 }
  0x9a   : > { %7172 = vmatpush.msrb.mxu3 %v1541_v38  ;;  %1559 = vmatpush.msra.mxu1 %v1532_v50 }
  0x9c   : > { %7173 = vmatpush.msrb.mxu3 %v1540_v40  ;;  %1560 = vmatpush.msra.mxu1 %v1531_v51 }
  0x9d   : > { %986 = vmatmul.f32.gmra.mxu0 %v916_v18  ;;  %1058 = vmatmul.f32.gmra.mxu3 %v940_v19 }
  0x9e   : > { %7174 = vmatpush.msrb.mxu3 %v1539_v41  ;;  %1561 = vmatpush.msra.mxu1 %v1530_v52 }
  0xa0   : > { %7175 = vmatpush.msrb.mxu3 %v1538_v42  ;;  %1562 = vmatpush.msra.mxu1 %v1529_v53 }
  0xa2   : > { %7176 = vmatpush.msrb.mxu3 %v1537_v43  ;;  %1563 = vmatpush.msra.mxu1 %v1528_v55 }
  0xa4   : > { %7177 = vmatpush.msrb.mxu3 %v1536_v45 }
  0xa5   : > { %989 = vmatmul.f32.gmra.mxu0 %v917_v20  ;;  %1061 = vmatmul.f32.gmra.mxu3 %v941_v21 }
  0xa6   : > { %7178 = vmatpush.msrb.mxu3 %v1535_v46 }
  0xa8   : > { %7179 = vmatpush.msrb.mxu3 %v1534_v47 }
  0xaa   : > { %7180 = vmatpush.msrb.mxu3 %v1533_v48 }
  0xac   : > { %7181 = vmatpush.msrb.mxu3 %v1532_v50 }
  0xad   : > { %992 = vmatmul.f32.gmra.mxu0 %v918_v22  ;;  %1064 = vmatmul.f32.gmra.mxu3 %v942_v23 }
  0xae   : > { %7182 = vmatpush.msrb.mxu3 %v1531_v51 }
  0xb0   : > { %7183 = vmatpush.msrb.mxu3 %v1530_v52 }
  0xb2   : > { %7184 = vmatpush.msrb.mxu3 %v1529_v53 }
  0xb4   : > { %7185 = vmatpush.msrb.mxu3 %v1528_v55 }
  0xb5   : > { %995 = vmatmul.f32.gmra.mxu0 %v919_v24  ;;  %1067 = vmatmul.f32.gmra.mxu3 %v943_v25 }
  0xbd   : > { %998 = vmatmul.f32.gmra.mxu0 %v920_v26  ;;  %1070 = vmatmul.f32.gmra.mxu3 %v944_v27 }
  0xc5   : > { %1001 = vmatmul.f32.gmra.mxu0 %v921_v28  ;;  %1073 = vmatmul.f32.gmra.mxu3 %v945_v29 }
  0xcd   : > { %1004 = vmatmul.f32.gmra.mxu0 %v922_v30  ;;  %1076 = vmatmul.f32.gmra.mxu3 %v946_v31 }
  0xd5   : > { %1007 = vmatmul.f32.gmra.mxu0 %v923_v32 }
  0xdd   : > { %1010 = vmatmul.f32.gmra.mxu0 %v924_v33 }
  0xe5   : > { %1013 = vmatmul.f32.gmra.mxu0 %v925_v34  ;;  %v934_v34 = vld [vmem:[%s9446_s20 + $0x98] sm:$0xff] }
  0xed   : > { %1016 = vmatmul.f32.gmra.mxu0 %v926_v35 }
  0xf5   : > { %1019 = vmatmul.f32.gmra.mxu0 %v927_v39 }
  0xfd   : > { %1022 = vmatmul.f32.gmra.mxu0 %v928_v44 }
 0x105   : > { %1025 = vmatmul.f32.gmra.mxu0 %v929_v49 }
 0x10d   : > { %1028 = vmatmul.f32.gmra.mxu0 %v930_v54 }
 0x112   : > { %v984_v57 = vpop.f32.mrf.mxu0 }
 0x113   : > { %v985_v59 = vadd.f32 %v9503_v56, %v984_v57 }
 0x115   : > { %v1080_v60 = vmin.f32 %v985_v59, 20.0  ;;  %1031 = vmatmul.f32.gmra.mxu0 %v931_v58  ;;  %vm1112_vm1 = vcmp.gt.f32.partialorder %v985_v59, 20.0 }
 0x117   : > { %v1144_v61 = vmul.f32 1.442695, %v1080_v60 }
 0x118   : > { %v1056_v62 = vpop.f32.mrf.mxu3 }
 0x119   : > { %7374 = vpow2.f32 %v1144_v61  ;;  %v9508_v63 = vadd.f32 %v9503_v56, %v1056_v62 }
 0x11a   : > { %v987_v0 = vpop.f32.mrf.mxu0 }
 0x11b   : > { %v9512_v2 = vadd.f32 %v9503_v56, %v987_v0  ;;  %v1104_v3 = vmin.f32 %v9508_v63, 20.0  ;;  %vm1136_vm3 = vcmp.gt.f32.partialorder %v9508_v63, 20.0  ;;  %v935_v0 = vld [vmem:[%s9446_s20 + $0xa0] sm:$0xff] }
 0x11d   : > { %v1081_v4 = vmin.f32 %v9512_v2, 20.0  ;;  %1034 = vmatmul.f32.gmra.mxu0 %v932_v1  ;;  %v1192_v5 = vmul.f32 1.442695, %v1104_v3  ;;  %vm1113_vm2 = vcmp.gt.f32.partialorder %v9512_v2, 20.0 }
 0x11f   : > { %v7375_v6 = vpop.eup %7374  ;;  %v1146_v7 = vmul.f32 1.442695, %v1081_v4  ;;  %7376 = vpow2.f32 %v1192_v5 }
 0x120   : > { %v1059_v8 = vpop.f32.mrf.mxu3  ;;  %v1208_v9 = vadd.f32 1.0, %v7375_v6  ;;  %v1211_v10 = vmul.f32 -0.5, %v7375_v6  ;;  %v1214_v20 = vand.u32 2147483647, %v7375_v6 }
 0x121   : > { %7378 = vpow2.f32 %v1146_v7  ;;  %v9517_v11 = vadd.f32 %v9503_v56, %v1059_v8 }
 0x122   : > { %v990_v12 = vpop.f32.mrf.mxu0  ;;  %7380 = vlog2.f32 %v1208_v9  ;;  %v1212_v16 = vadd.f32 1.0, %v1211_v10  ;;  %vm1215_vm0 = vcmp.lt.f32.partialorder %v1214_v20, 0.0004427343 }
 0x123   : > { %v9521_v14 = vadd.f32 %v9503_v56, %v990_v12  ;;  %v1105_v15 = vmin.f32 %v9517_v11, 20.0  ;;  %vm1137_vm7 = vcmp.gt.f32.partialorder %v9517_v11, 20.0 }
 0x124   : > { %v1213_v26 = vmul.f32 %v7375_v6, %v1212_v16 }
 0x125   : > { %v7377_v17 = vpop.eup %7376  ;;  %v1082_v18 = vmin.f32 %v9521_v14, 20.0  ;;  %1037 = vmatmul.f32.gmra.mxu0 %v933_v13  ;;  %v1194_v19 = vmul.f32 1.442695, %v1105_v15  ;;  %vm1114_vm6 = vcmp.gt.f32.partialorder %v9521_v14, 20.0 }
 0x126   : > { %v1424_v21 = vadd.f32 1.0, %v7377_v17  ;;  %v1427_v22 = vmul.f32 -0.5, %v7377_v17  ;;  %v1430_v35 = vand.u32 2147483647, %v7377_v17 }
 0x127   : > { %v7379_v23 = vpop.eup %7378  ;;  %v1148_v24 = vmul.f32 1.442695, %v1082_v18  ;;  %7382 = vpow2.f32 %v1194_v19 }
 0x128   : > { %v7381_v25 = vpop.eup %7380  ;;  %v1062_v27 = vpop.f32.mrf.mxu3  ;;  %v1217_v28 = vadd.f32 1.0, %v7379_v23  ;;  %v1220_v29 = vmul.f32 -0.5, %v7379_v23  ;;  %7384 = vlog2.f32 %v1424_v21  ;;  %v1428_v32 = vadd.f32 1.0, %v1427_v22 }
 0x129   : > { %7386 = vpow2.f32 %v1148_v24  ;;  %v1210_v30 = vmul.f32 0.6931472, %v7381_v25  ;;  %v9526_v31 = vadd.f32 %v9503_v56, %v1062_v27  ;;  %v1223_v46 = vand.u32 2147483647, %v7379_v23 }
 0x12a   : > { %v993_v33 = vpop.f32.mrf.mxu0  ;;  %7388 = vlog2.f32 %v1217_v28  ;;  %v1221_v40 = vadd.f32 1.0, %v1220_v29  ;;  %v1429_v44 = vmul.f32 %v7377_v17, %v1428_v32  ;;  %vm9536_vm4 = vcmp.lt.f32.partialorder %v1430_v35, 0.0004427343  ;;  %v936_v32 = vld [vmem:[%s9446_s20 + $0xa8] sm:$0xff] }
 0x12b   : > { %v9530_v36 = vadd.f32 %v9503_v56, %v993_v33  ;;  %v1216_v37 = vsel %vm1215_vm0, %v1213_v26, %v1210_v30  ;;  %v1106_v38 = vmin.f32 %v9526_v31, 20.0  ;;  %vm1224_vm5 = vcmp.lt.f32.partialorder %v1223_v46, 0.0004427343 }
 0x12c   : > { %v1496_v39 = vsel %vm1112_vm1, %v985_v59, %v1216_v37  ;;  %v1222_v54 = vmul.f32 %v7379_v23, %v1221_v40  ;;  %vm1138_vm11 = vcmp.gt.f32.partialorder %v9526_v31, 20.0 }
 0x12d   : > { %v7383_v41 = vpop.eup %7382  ;;  %v1083_v42 = vmin.f32 %v9530_v36, 20.0  ;;  %1040 = vmatmul.f32.gmra.mxu0 %v934_v34  ;;  %1564 = vmatmul.f32.vlgmr.msra.gmra.mxu1 %v1496_v39  ;;  %v1196_v43 = vmul.f32 1.442695, %v1106_v38  ;;  %vm1115_vm10 = vcmp.gt.f32.partialorder %v9530_v36, 20.0 }
 0x12e   : > { %v7385_v45 = vpop.eup %7384  ;;  %v1433_v48 = vadd.f32 1.0, %v7383_v41  ;;  %v1436_v52 = vmul.f32 -0.5, %v7383_v41  ;;  %v1439_v3 = vand.u32 2147483647, %v7383_v41 }
 0x12f   : > { %v7387_v49 = vpop.eup %7386  ;;  %v1150_v50 = vmul.f32 1.442695, %v1083_v42  ;;  %7390 = vpow2.f32 %v1196_v43  ;;  %v1426_v51 = vmul.f32 0.6931472, %v7385_v45 }
 0x130   : > { %v7389_v53 = vpop.eup %7388  ;;  %v1065_v55 = vpop.f32.mrf.mxu3  ;;  %v1226_v57 = vadd.f32 1.0, %v7387_v49  ;;  %v1229_v58 = vmul.f32 -0.5, %v7387_v49  ;;  %7392 = vlog2.f32 %v1433_v48  ;;  %v1437_v7 = vadd.f32 1.0, %v1436_v52 }
 0x131   : > { %7394 = vpow2.f32 %v1150_v50  ;;  %v1219_v59 = vmul.f32 0.6931472, %v7389_v53  ;;  %v9541_v60 = vadd.f32 %v9503_v56, %v1065_v55  ;;  %v1432_v61 = vsel %vm9536_vm4, %v1429_v44, %v1426_v51 }
 0x132   : > { %v996_v62 = vpop.f32.mrf.mxu0  ;;  %7396 = vlog2.f32 %v1226_v57  ;;  %v1520_v1 = vsel %vm1136_vm3, %v9508_v63, %v1432_v61  ;;  %v1230_v9 = vadd.f32 1.0, %v1229_v58  ;;  %v1438_v13 = vmul.f32 %v7383_v41, %v1437_v7 }
 0x133   : > { %v9550_v4 = vadd.f32 %v9503_v56, %v996_v62  ;;  %v1225_v5 = vsel %vm1224_vm5, %v1222_v54, %v1219_v59  ;;  %v1107_v6 = vmin.f32 %v9541_v60, 20.0  ;;  %1636 = vmatmul.f32.vlgmr.msrb.gmra.mxu3 %v1520_v1  ;;  %v1232_v16 = vand.u32 2147483647, %v7387_v49 }
 0x134   : > { %v1497_v8 = vsel %vm1113_vm2, %v9512_v2, %v1225_v5  ;;  %vm9559_vm8 = vcmp.lt.f32.partialorder %v1439_v3, 0.0004427343  ;;  %v1231_v23 = vmul.f32 %v7387_v49, %v1230_v9  ;;  %vm1139_vm15 = vcmp.gt.f32.partialorder %v9541_v60, 20.0 }
 0x135   : > { %v7391_v10 = vpop.eup %7390  ;;  %v1084_v12 = vmin.f32 %v9550_v4, 20.0  ;;  %1043 = vmatmul.f32.gmra.mxu0 %v935_v0  ;;  %1567 = vmatmul.f32.gmra.mxu1 %v1497_v8  ;;  %v1198_v63 = vmul.f32 1.442695, %v1107_v6  ;;  %vm1233_vm9 = vcmp.lt.f32.partialorder %v1232_v16, 0.0004427343  ;;  %v937_v0 = vld [vmem:[%s9446_s20 + $0xb0] sm:$0xff] }
 0x136   : > { %v7393_v15 = vpop.eup %7392  ;;  %v1442_v18 = vadd.f32 1.0, %v7391_v10  ;;  %v1445_v21 = vmul.f32 -0.5, %v7391_v10  ;;  %v1448_v34 = vand.u32 2147483647, %v7391_v10  ;;  %vm1116_vm14 = vcmp.gt.f32.partialorder %v9550_v4, 20.0 }
 0x137   : > { %v7395_v2 = vpop.eup %7394  ;;  %v1152_v19 = vmul.f32 1.442695, %v1084_v12  ;;  %7398 = vpow2.f32 %v1198_v63  ;;  %v1435_v20 = vmul.f32 0.6931472, %v7393_v15 }
 0x138   : > { %v7397_v22 = vpop.eup %7396  ;;  %v1068_v24 = vpop.f32.mrf.mxu3  ;;  %v1235_v25 = vadd.f32 1.0, %v7395_v2  ;;  %v1238_v26 = vmul.f32 -0.5, %v7395_v2  ;;  %7400 = vlog2.f32 %v1442_v18  ;;  %v1446_v39 = vadd.f32 1.0, %v1445_v21 }
 0x139   : > { %7402 = vpow2.f32 %v1152_v19  ;;  %v1228_v27 = vmul.f32 0.6931472, %v7397_v22  ;;  %v9564_v28 = vadd.f32 %v9503_v56, %v1068_v24  ;;  %v1441_v29 = vsel %vm9559_vm8, %v1438_v13, %v1435_v20 }
 0x13a   : > { %v999_v30 = vpop.f32.mrf.mxu0  ;;  %7404 = vlog2.f32 %v1235_v25  ;;  %v1521_v33 = vsel %vm1137_vm7, %v9517_v11, %v1441_v29  ;;  %v1239_v41 = vadd.f32 1.0, %v1238_v26  ;;  %v1447_v44 = vmul.f32 %v7391_v10, %v1446_v39 }
 0x13b   : > { %v9573_v35 = vadd.f32 %v9503_v56, %v999_v30  ;;  %v1234_v37 = vsel %vm1233_vm9, %v1231_v23, %v1228_v27  ;;  %v1108_v38 = vmin.f32 %v9564_v28, 20.0  ;;  %1639 = vmatmul.f32.gmra.mxu3 %v1521_v33  ;;  %v1241_v46 = vand.u32 2147483647, %v7395_v2 }
 0x13c   : > { %v1498_v40 = vsel %vm1114_vm6, %v9521_v14, %v1234_v37  ;;  %vm9582_vm12 = vcmp.lt.f32.partialorder %v1448_v34, 0.0004427343  ;;  %v1240_v53 = vmul.f32 %v7395_v2, %v1239_v41  ;;  %vm1140_vm3 = vcmp.gt.f32.partialorder %v9564_v28, 20.0 }
 0x13d   : > { %v7399_v42 = vpop.eup %7398  ;;  %v1085_v43 = vmin.f32 %v9573_v35, 20.0  ;;  %1046 = vmatmul.f32.gmra.mxu0 %v936_v32  ;;  %1570 = vmatmul.f32.gmra.mxu1 %v1498_v40  ;;  %v1200_v11 = vmul.f32 1.442695, %v1108_v38  ;;  %vm1242_vm13 = vcmp.lt.f32.partialorder %v1241_v46, 0.0004427343  ;;  %v938_v32 = vld [vmem:[%s9446_s20 + $0xb8] sm:$0xff] }
 0x13e   : > { %v7401_v45 = vpop.eup %7400  ;;  %v1451_v48 = vadd.f32 1.0, %v7399_v42  ;;  %v1454_v51 = vmul.f32 -0.5, %v7399_v42  ;;  %v1457_v3 = vand.u32 2147483647, %v7399_v42  ;;  %vm1117_vm2 = vcmp.gt.f32.partialorder %v9573_v35, 20.0  ;;  %s12875_s20 = sld [smem:[#allocation37_spill]] }
 0x13f   : > { %v7403_v14 = vpop.eup %7402  ;;  %v1154_v49 = vmul.f32 1.442695, %v1085_v43  ;;  %7406 = vpow2.f32 %v1200_v11  ;;  %v1444_v50 = vmul.f32 0.6931472, %v7401_v45 }
 0x140   : > { %v7405_v52 = vpop.eup %7404  ;;  %v1071_v54 = vpop.f32.mrf.mxu3  ;;  %v1244_v55 = vadd.f32 1.0, %v7403_v14  ;;  %v1247_v57 = vmul.f32 -0.5, %v7403_v14  ;;  %7408 = vlog2.f32 %v1451_v48  ;;  %v1455_v8 = vadd.f32 1.0, %v1454_v51 }
 0x141   : > { %7410 = vpow2.f32 %v1154_v49  ;;  %v1237_v58 = vmul.f32 0.6931472, %v7405_v52  ;;  %v9587_v59 = vadd.f32 %v9503_v56, %v1071_v54  ;;  %v1450_v61 = vsel %vm9582_vm12, %v1447_v44, %v1444_v50 }
 0x142   : > { %v1002_v62 = vpop.f32.mrf.mxu0  ;;  %7412 = vlog2.f32 %v1244_v55  ;;  %v1522_v1 = vsel %vm1138_vm11, %v9526_v31, %v1450_v61  ;;  %v1248_v10 = vadd.f32 1.0, %v1247_v57  ;;  %v1456_v13 = vmul.f32 %v7399_v42, %v1455_v8 }
 0x143   : > { %v9596_v5 = vadd.f32 %v9503_v56, %v1002_v62  ;;  %v1243_v6 = vsel %vm1242_vm13, %v1240_v53, %v1237_v58  ;;  %v1109_v7 = vmin.f32 %v9587_v59, 20.0  ;;  %1642 = vmatmul.f32.gmra.mxu3 %v1522_v1  ;;  %v1250_v16 = vand.u32 2147483647, %v7403_v14 }
 0x144   : > { %v1499_v9 = vsel %vm1115_vm10, %v9530_v36, %v1243_v6  ;;  %vm9605_vm0 = vcmp.lt.f32.partialorder %v1457_v3, 0.0004427343  ;;  %v1249_v22 = vmul.f32 %v7403_v14, %v1248_v10  ;;  %vm1141_vm7 = vcmp.gt.f32.partialorder %v9587_v59, 20.0 }
 0x145   : > { %v7407_v12 = vpop.eup %7406  ;;  %v1086_v63 = vmin.f32 %v9596_v5, 20.0  ;;  %1049 = vmatmul.f32.gmra.mxu0 %v937_v0  ;;  %1573 = vmatmul.f32.gmra.mxu1 %v1499_v9  ;;  %v1202_v31 = vmul.f32 1.442695, %v1109_v7  ;;  %vm1251_vm1 = vcmp.lt.f32.partialorder %v1250_v16, 0.0004427343  ;;  %vm1118_vm9 = vcmp.gt.f32.partialorder %v9596_v5, 20.0 }
 0x146   : > { %v7409_v15 = vpop.eup %7408  ;;  %v1460_v18 = vadd.f32 1.0, %v7407_v12  ;;  %v1463_v20 = vmul.f32 -0.5, %v7407_v12  ;;  %v1466_v34 = vand.u32 2147483647, %v7407_v12 }
 0x147   : > { %v7411_v36 = vpop.eup %7410  ;;  %v1156_v2 = vmul.f32 1.442695, %v1086_v63  ;;  %7414 = vpow2.f32 %v1202_v31  ;;  %v1453_v19 = vmul.f32 0.6931472, %v7409_v15 }
 0x148   : > { %v7413_v21 = vpop.eup %7412  ;;  %v1074_v23 = vpop.f32.mrf.mxu3  ;;  %v1253_v24 = vadd.f32 1.0, %v7411_v36  ;;  %v1256_v25 = vmul.f32 -0.5, %v7411_v36  ;;  %7416 = vlog2.f32 %v1460_v18  ;;  %v1464_v40 = vadd.f32 1.0, %v1463_v20 }
 0x149   : > { %7418 = vpow2.f32 %v1156_v2  ;;  %v1246_v26 = vmul.f32 0.6931472, %v7413_v21  ;;  %v9610_v27 = vadd.f32 %v9503_v56, %v1074_v23  ;;  %v1459_v29 = vsel %vm9605_vm0, %v1456_v13, %v1453_v19 }
 0x14a   : > { %v1005_v30 = vpop.f32.mrf.mxu0  ;;  %7420 = vlog2.f32 %v1253_v24  ;;  %v1523_v33 = vsel %vm1139_vm15, %v9541_v60, %v1459_v29  ;;  %v1257_v42 = vadd.f32 1.0, %v1256_v25  ;;  %v1465_v44 = vmul.f32 %v7407_v12, %v1464_v40 }
 0x14b   : > { %v9619_v37 = vadd.f32 %v9503_v56, %v1005_v30  ;;  %v1252_v38 = vsel %vm1251_vm1, %v1249_v22, %v1246_v26  ;;  %v1110_v39 = vmin.f32 %v9610_v27, 20.0  ;;  %1645 = vmatmul.f32.gmra.mxu3 %v1523_v33  ;;  %v1259_v46 = vand.u32 2147483647, %v7411_v36 }
 0x14c   : > { %v1500_v41 = vsel %vm1116_vm14, %v9550_v4, %v1252_v38  ;;  %vm9628_vm4 = vcmp.lt.f32.partialorder %v1466_v34, 0.0004427343  ;;  %v1258_v52 = vmul.f32 %v7411_v36, %v1257_v42  ;;  %vm1142_vm11 = vcmp.gt.f32.partialorder %v9610_v27, 20.0 }
 0x14d   : > { %v7415_v43 = vpop.eup %7414  ;;  %v1087_v11 = vmin.f32 %v9619_v37, 20.0  ;;  %1052 = vmatmul.f32.gmra.mxu0 %v938_v32  ;;  %1576 = vmatmul.f32.gmra.mxu1 %v1500_v41  ;;  %v1204_v60 = vmul.f32 1.442695, %v1110_v39  ;;  %vm1260_vm5 = vcmp.lt.f32.partialorder %v1259_v46, 0.0004427343  ;;  %vm1119_vm13 = vcmp.gt.f32.partialorder %v9619_v37, 20.0 }
 0x14e   : > { %v7417_v45 = vpop.eup %7416  ;;  %v1469_v48 = vadd.f32 1.0, %v7415_v43  ;;  %v1472_v50 = vmul.f32 -0.5, %v7415_v43  ;;  %v1475_v1 = vand.u32 2147483647, %v7415_v43 }
 0x14f   : > { %v7419_v4 = vpop.eup %7418  ;;  %v1158_v14 = vmul.f32 1.442695, %v1087_v11  ;;  %7422 = vpow2.f32 %v1204_v60  ;;  %v1462_v49 = vmul.f32 0.6931472, %v7417_v45 }
 0x150   : > { %v7421_v51 = vpop.eup %7420  ;;  %v1077_v53 = vpop.f32.mrf.mxu3  ;;  %v1262_v54 = vadd.f32 1.0, %v7419_v4  ;;  %v1265_v55 = vmul.f32 -0.5, %v7419_v4  ;;  %7424 = vlog2.f32 %v1469_v48  ;;  %v1473_v8 = vadd.f32 1.0, %v1472_v50 }
 0x151   : > { %7426 = vpow2.f32 %v1158_v14  ;;  %v1255_v57 = vmul.f32 0.6931472, %v7421_v51  ;;  %v9633_v58 = vadd.f32 %v9503_v56, %v1077_v53  ;;  %v1468_v61 = vsel %vm9628_vm4, %v1465_v44, %v1462_v49 }
 0x152   : > { %v1008_v62 = vpop.f32.mrf.mxu0  ;;  %7428 = vlog2.f32 %v1262_v54  ;;  %v1524_v0 = vsel %vm1140_vm3, %v9564_v28, %v1468_v61  ;;  %v1266_v10 = vadd.f32 1.0, %v1265_v55  ;;  %v1474_v28 = vmul.f32 %v7415_v43, %v1473_v8 }
 0x153   : > { %v9641_v3 = vadd.f32 %v9503_v56, %v1008_v62  ;;  %v1261_v6 = vsel %vm1260_vm5, %v1258_v52, %v1255_v57  ;;  %v1111_v7 = vmin.f32 %v9633_v58, 20.0  ;;  %1648 = vmatmul.f32.gmra.mxu3 %v1524_v0  ;;  %v1268_v15 = vand.u32 2147483647, %v7419_v4 }
 0x154   : > { %v1501_v9 = vsel %vm1117_vm2, %v9573_v35, %v1261_v6  ;;  %vm9648_vm6 = vcmp.lt.f32.partialorder %v1475_v1, 0.0004427343  ;;  %v1267_v20 = vmul.f32 %v7419_v4, %v1266_v10  ;;  %vm1143_vm15 = vcmp.gt.f32.partialorder %v9633_v58, 20.0 }
 0x155   : > { %v7423_v12 = vpop.eup %7422  ;;  %v1088_v63 = vmin.f32 %v9641_v3, 20.0  ;;  %1579 = vmatmul.f32.gmra.mxu1 %v1501_v9  ;;  %v1206_v31 = vmul.f32 1.442695, %v1111_v7  ;;  %vm1269_vm8 = vcmp.lt.f32.partialorder %v1268_v15, 0.0004427343  ;;  %vm1120_vm1 = vcmp.gt.f32.partialorder %v9641_v3, 20.0 }
 0x156   : > { %v7425_v13 = vpop.eup %7424  ;;  %v1478_v17 = vadd.f32 1.0, %v7423_v12  ;;  %v1481_v18 = vmul.f32 -0.5, %v7423_v12  ;;  %v1484_v30 = vand.u32 2147483647, %v7423_v12  ;;  %v2123_v7 = vld [vmem:[#allocation8 + $0x70] sm:$0xff] }
 0x157   : > { %v7427_v36 = vpop.eup %7426  ;;  %v1160_v2 = vmul.f32 1.442695, %v1088_v63  ;;  %7430 = vpow2.f32 %v1206_v31  ;;  %v1471_v35 = vmul.f32 0.6931472, %v7425_v13 }
 0x158   : > { %v7429_v19 = vpop.eup %7428  ;;  %v1271_v21 = vadd.f32 1.0, %v7427_v36  ;;  %v1274_v22 = vmul.f32 -0.5, %v7427_v36  ;;  %7432 = vlog2.f32 %v1478_v17  ;;  %v1482_v25 = vadd.f32 1.0, %v1481_v18 }
 0x159   : > { %7434 = vpow2.f32 %v1160_v2  ;;  %v1264_v23 = vmul.f32 0.6931472, %v7429_v19  ;;  %v1477_v24 = vsel %vm9648_vm6, %v1474_v28, %v1471_v35  ;;  %v1277_v43 = vand.u32 2147483647, %v7427_v36 }
 0x15a   : > { %v1011_v26 = vpop.f32.mrf.mxu0  ;;  %7436 = vlog2.f32 %v1271_v21  ;;  %v1525_v29 = vsel %vm1141_vm7, %v9587_v59, %v1477_v24  ;;  %v1275_v38 = vadd.f32 1.0, %v1274_v22  ;;  %v1483_v41 = vmul.f32 %v7423_v12, %v1482_v25 }
 0x15b   : > { %v9657_v32 = vadd.f32 %v9503_v56, %v1011_v26  ;;  %v1270_v33 = vsel %vm1269_vm8, %v1267_v20, %v1264_v23  ;;  %1651 = vmatmul.f32.gmra.mxu3 %v1525_v29  ;;  %vm9662_vm10 = vcmp.lt.f32.partialorder %v1484_v30, 0.0004427343  ;;  %vm1278_vm12 = vcmp.lt.f32.partialorder %v1277_v43, 0.0004427343 }
 0x15c   : > { %v1502_v34 = vsel %vm1118_vm9, %v9596_v5, %v1270_v33  ;;  %v1276_v47 = vmul.f32 %v7427_v36, %v1275_v38 }
 0x15d   : > { %v7431_v39 = vpop.eup %7430  ;;  %v1089_v40 = vmin.f32 %v9657_v32, 20.0  ;;  %1582 = vmatmul.f32.gmra.mxu1 %v1502_v34  ;;  %vm1121_vm3 = vcmp.gt.f32.partialorder %v9657_v32, 20.0 }
 0x15e   : > { %v7433_v42 = vpop.eup %7432  ;;  %v1487_v11 = vadd.f32 1.0, %v7431_v39  ;;  %v1490_v60 = vmul.f32 -0.5, %v7431_v39  ;;  %v1493_v53 = vand.u32 2147483647, %v7431_v39 }
 0x15f   : > { %v7435_v44 = vpop.eup %7434  ;;  %v1162_v45 = vmul.f32 1.442695, %v1089_v40  ;;  %v1480_v46 = vmul.f32 0.6931472, %v7433_v42 }
 0x160   : > { %v7437_v5 = vpop.eup %7436  ;;  %v1280_v48 = vadd.f32 1.0, %v7435_v44  ;;  %v1283_v4 = vmul.f32 -0.5, %v7435_v44  ;;  %7438 = vlog2.f32 %v1487_v11  ;;  %v1491_v50 = vadd.f32 1.0, %v1490_v60 }
 0x161   : > { %7440 = vpow2.f32 %v1162_v45  ;;  %v1273_v14 = vmul.f32 0.6931472, %v7437_v5  ;;  %v1486_v49 = vsel %vm9662_vm10, %v1483_v41, %v1480_v46  ;;  %v1286_v6 = vand.u32 2147483647, %v7435_v44 }
 0x162   : > { %v1014_v51 = vpop.f32.mrf.mxu0  ;;  %7442 = vlog2.f32 %v1280_v48  ;;  %v1526_v52 = vsel %vm1142_vm11, %v9610_v27, %v1486_v49  ;;  %v1284_v61 = vadd.f32 1.0, %v1283_v4  ;;  %v1492_v0 = vmul.f32 %v7431_v39, %v1491_v50 }
 0x163   : > { %v9671_v54 = vadd.f32 %v9503_v56, %v1014_v51  ;;  %v1279_v55 = vsel %vm1278_vm12, %v1276_v47, %v1273_v14  ;;  %1654 = vmatmul.f32.gmra.mxu3 %v1526_v52  ;;  %vm9676_vm14 = vcmp.lt.f32.partialorder %v1493_v53, 0.0004427343  ;;  %vm1287_vm0 = vcmp.lt.f32.partialorder %v1286_v6, 0.0004427343 }
 0x164   : > { %v1503_v57 = vsel %vm1119_vm13, %v9619_v37, %v1279_v55  ;;  %v1285_v12 = vmul.f32 %v7435_v44, %v1284_v61 }
 0x165   : > { %v1090_v62 = vmin.f32 %v9671_v54, 20.0  ;;  %1585 = vmatmul.f32.gmra.mxu1 %v1503_v57  ;;  %vm1122_vm5 = vcmp.gt.f32.partialorder %v9671_v54, 20.0 }
 0x166   : > { %v7439_v1 = vpop.eup %7438 }
 0x167   : > { %v7441_v27 = vpop.eup %7440  ;;  %v1164_v8 = vmul.f32 1.442695, %v1090_v62  ;;  %v1489_v9 = vmul.f32 0.6931472, %v7439_v1  ;;  %v2124_v62 = vld [vmem:[#allocation8 + $0x78] sm:$0xff] }
 0x168   : > { %v7443_v10 = vpop.eup %7442  ;;  %v1289_v63 = vadd.f32 1.0, %v7441_v27  ;;  %v1292_v31 = vmul.f32 -0.5, %v7441_v27  ;;  %v1295_v35 = vand.u32 2147483647, %v7441_v27  ;;  %2129 = vmatpush.msra.mxu2 %v2124_v62  ;;  %7186 = vmatpush.msra.mxu3 %v2124_v62 }
 0x169   : > { %7444 = vpow2.f32 %v1164_v8  ;;  %v1282_v37 = vmul.f32 0.6931472, %v7443_v10  ;;  %v1495_v28 = vsel %vm9676_vm14, %v1492_v0, %v1489_v9 }
 0x16a   : > { %v1017_v13 = vpop.f32.mrf.mxu0  ;;  %7446 = vlog2.f32 %v1289_v63  ;;  %v1527_v15 = vsel %vm1143_vm15, %v9633_v58, %v1495_v28  ;;  %v1293_v2 = vadd.f32 1.0, %v1292_v31  ;;  %vm1296_vm2 = vcmp.lt.f32.partialorder %v1295_v35, 0.0004427343  ;;  %2130 = vmatpush.msra.mxu2 %v2123_v7  ;;  %7187 = vmatpush.msra.mxu3 %v2123_v7 }
 0x16b   : > { %v1018_v16 = vadd.f32 %v9503_v56, %v1017_v13  ;;  %v1288_v17 = vsel %vm1287_vm0, %v1285_v12, %v1282_v37  ;;  %1657 = vmatmul.f32.gmra.mxu3 %v1527_v15  ;;  %v2122_v37 = vld [vmem:[#allocation8 + $0x68] sm:$0xff]  ;;  %v2121_v15 = vld [vmem:[#allocation8 + $0x60] sm:$0xff] }
 0x16c   : > { %v1504_v18 = vsel %vm1120_vm1, %v9641_v3, %v1288_v17  ;;  %v1294_v24 = vmul.f32 %v7441_v27, %v1293_v2  ;;  %2131 = vmatpush.msra.mxu2 %v2122_v37  ;;  %7188 = vmatpush.msra.mxu3 %v2122_v37 }
 0x16d   : > { %v1091_v36 = vmin.f32 %v1018_v16, 20.0  ;;  %1588 = vmatmul.f32.gmra.mxu1 %v1504_v18  ;;  %vm1123_vm7 = vcmp.gt.f32.partialorder %v1018_v16, 20.0 }
 0x16e   : > { %2132 = vmatpush.msra.mxu2 %v2121_v15  ;;  %7189 = vmatpush.msra.mxu3 %v2121_v15 }
 0x16f   : > { %v7445_v19 = vpop.eup %7444  ;;  %v1166_v20 = vmul.f32 1.442695, %v1091_v36  ;;  %v2120_v36 = vld [vmem:[#allocation8 + $0x58] sm:$0xff] }
 0x170   : > { %v7447_v21 = vpop.eup %7446  ;;  %v1298_v22 = vadd.f32 1.0, %v7445_v19  ;;  %v1301_v58 = vmul.f32 -0.5, %v7445_v19  ;;  %v1304_v34 = vand.u32 2147483647, %v7445_v19  ;;  %2133 = vmatpush.msra.mxu2 %v2120_v36  ;;  %7190 = vmatpush.msra.mxu3 %v2120_v36 }
 0x171   : > { %7448 = vpow2.f32 %v1166_v20  ;;  %v1291_v23 = vmul.f32 0.6931472, %v7447_v21  ;;  %v2119_v21 = vld [vmem:[#allocation8 + $0x50] sm:$0xff] }
 0x172   : > { %v1020_v25 = vpop.f32.mrf.mxu0  ;;  %7450 = vlog2.f32 %v1298_v22  ;;  %v1302_v33 = vadd.f32 1.0, %v1301_v58  ;;  %vm1305_vm4 = vcmp.lt.f32.partialorder %v1304_v34, 0.0004427343  ;;  %2134 = vmatpush.msra.mxu2 %v2119_v21  ;;  %7191 = vmatpush.msra.mxu3 %v2119_v21 }
 0x173   : > { %v9688_v26 = vadd.f32 %v9503_v56, %v1020_v25  ;;  %v1297_v3 = vsel %vm1296_vm2, %v1294_v24, %v1291_v23  ;;  %v2118_v25 = vld [vmem:[#allocation8 + $0x48] sm:$0xff] }
 0x174   : > { %v1505_v29 = vsel %vm1121_vm3, %v9657_v32, %v1297_v3  ;;  %v1303_v43 = vmul.f32 %v7445_v19, %v1302_v33  ;;  %2135 = vmatpush.msra.mxu2 %v2118_v25  ;;  %7192 = vmatpush.msra.mxu3 %v2118_v25 }
 0x175   : > { %v1092_v30 = vmin.f32 %v9688_v26, 20.0  ;;  %1591 = vmatmul.f32.gmra.mxu1 %v1505_v29  ;;  %vm1124_vm9 = vcmp.gt.f32.partialorder %v9688_v26, 20.0 }
 0x177   : > { %v7449_v38 = vpop.eup %7448  ;;  %v1168_v39 = vmul.f32 1.442695, %v1092_v30  ;;  %v2117_v30 = vld [vmem:[#allocation8 + $0x40] sm:$0xff] }
 0x178   : > { %v7451_v40 = vpop.eup %7450  ;;  %v1307_v41 = vadd.f32 1.0, %v7449_v38  ;;  %v1310_v59 = vmul.f32 -0.5, %v7449_v38  ;;  %v1313_v5 = vand.u32 2147483647, %v7449_v38  ;;  %2136 = vmatpush.msra.mxu2 %v2117_v30  ;;  %7193 = vmatpush.msra.mxu3 %v2117_v30 }
 0x179   : > { %7452 = vpow2.f32 %v1168_v39  ;;  %v1300_v42 = vmul.f32 0.6931472, %v7451_v40  ;;  %v2116_v39 = vld [vmem:[#allocation8 + $0x38] sm:$0xff] }
 0x17a   : > { %v1023_v11 = vpop.f32.mrf.mxu0  ;;  %7454 = vlog2.f32 %v1307_v41  ;;  %v1311_v46 = vadd.f32 1.0, %v1310_v59  ;;  %vm1314_vm6 = vcmp.lt.f32.partialorder %v1313_v5, 0.0004427343  ;;  %2137 = vmatpush.msra.mxu2 %v2116_v39  ;;  %v2115_v59 = vld [vmem:[#allocation8 + $0x30] sm:$0xff]  ;;  %7194 = vmatpush.msra.mxu3 %v2116_v39 }
 0x17b   : > { %v9694_v60 = vadd.f32 %v9503_v56, %v1023_v11  ;;  %v1306_v32 = vsel %vm1305_vm4, %v1303_v43, %v1300_v42 }
 0x17c   : > { %v1506_v44 = vsel %vm1122_vm5, %v9671_v54, %v1306_v32  ;;  %v1312_v50 = vmul.f32 %v7449_v38, %v1311_v46  ;;  %2138 = vmatpush.msra.mxu2 %v2115_v59  ;;  %7195 = vmatpush.msra.mxu3 %v2115_v59 }
 0x17d   : > { %v1093_v45 = vmin.f32 %v9694_v60, 20.0  ;;  %1594 = vmatmul.f32.gmra.mxu1 %v1506_v44  ;;  %vm1125_vm11 = vcmp.gt.f32.partialorder %v9694_v60, 20.0 }
 0x17f   : > { %v7453_v47 = vpop.eup %7452  ;;  %v1170_v48 = vmul.f32 1.442695, %v1093_v45  ;;  %v2114_v45 = vld [vmem:[#allocation8 + $0x28] sm:$0xff] }
 0x180   : > { %v7455_v4 = vpop.eup %7454  ;;  %v1316_v14 = vadd.f32 1.0, %v7453_v47  ;;  %v1319_v51 = vmul.f32 -0.5, %v7453_v47  ;;  %v1322_v0 = vand.u32 2147483647, %v7453_v47  ;;  %2139 = vmatpush.msra.mxu2 %v2114_v45  ;;  %7196 = vmatpush.msra.mxu3 %v2114_v45 }
 0x181   : > { %7456 = vpow2.f32 %v1170_v48  ;;  %v1309_v49 = vmul.f32 0.6931472, %v7455_v4  ;;  %v2113_v48 = vld [vmem:[#allocation8 + $0x20] sm:$0xff] }
 0x182   : > { %v1026_v52 = vpop.f32.mrf.mxu0  ;;  %7458 = vlog2.f32 %v1316_v14  ;;  %v1320_v61 = vadd.f32 1.0, %v1319_v51  ;;  %vm1323_vm8 = vcmp.lt.f32.partialorder %v1322_v0, 0.0004427343  ;;  %2140 = vmatpush.msra.mxu2 %v2113_v48  ;;  %7197 = vmatpush.msra.mxu3 %v2113_v48  ;;  %v2110_v0 = vld [vmem:[#allocation8 + $0x8] sm:$0xff] }
 0x183   : > { %v9700_v53 = vadd.f32 %v9503_v56, %v1026_v52  ;;  %v1315_v54 = vsel %vm1314_vm6, %v1312_v50, %v1309_v49  ;;  %v2112_v50 = vld [vmem:[#allocation8 + $0x18] sm:$0xff] }
 0x184   : > { %v1507_v55 = vsel %vm1123_vm7, %v1018_v16, %v1315_v54  ;;  %v1321_v10 = vmul.f32 %v7453_v47, %v1320_v61  ;;  %2141 = vmatpush.msra.mxu2 %v2112_v50  ;;  %7198 = vmatpush.msra.mxu3 %v2112_v50 }
 0x185   : > { %v1094_v57 = vmin.f32 %v9700_v53, 20.0  ;;  %1597 = vmatmul.f32.gmra.mxu1 %v1507_v55  ;;  %vm1126_vm13 = vcmp.gt.f32.partialorder %v9700_v53, 20.0  ;;  %v2111_v55 = vld [vmem:[#allocation8 + $0x10] sm:$0xff] }
 0x186   : > { %2142 = vmatpush.msra.mxu2 %v2111_v55  ;;  %7199 = vmatpush.msra.mxu3 %v2111_v55 }
 0x187   : > { %v7457_v1 = vpop.eup %7456  ;;  %v1172_v6 = vmul.f32 1.442695, %v1094_v57 }
 0x188   : > { %v7459_v27 = vpop.eup %7458  ;;  %v1325_v8 = vadd.f32 1.0, %v7457_v1  ;;  %v1328_v12 = vmul.f32 -0.5, %v7457_v1  ;;  %v1331_v18 = vand.u32 2147483647, %v7457_v1  ;;  %2143 = vmatpush.msra.mxu2 %v2110_v0  ;;  %7200 = vmatpush.msra.mxu3 %v2110_v0 }
 0x189   : > { %7460 = vpow2.f32 %v1172_v6  ;;  %v1318_v9 = vmul.f32 0.6931472, %v7459_v27 }
 0x18a   : > { %v1029_v63 = vpop.f32.mrf.mxu0  ;;  %7462 = vlog2.f32 %v1325_v8  ;;  %v1329_v17 = vadd.f32 1.0, %v1328_v12  ;;  %vm1332_vm10 = vcmp.lt.f32.partialorder %v1331_v18, 0.0004427343  ;;  %v2109_v8 = vld [vmem:[#allocation8] sm:$0xff] }
 0x18b   : > { %v9704_v31 = vadd.f32 %v9503_v56, %v1029_v63  ;;  %v1324_v28 = vsel %vm1323_vm8, %v1321_v10, %v1318_v9  ;;  %2144 = vmatpush.msra.mxu2 %v2109_v8  ;;  %7201 = vmatpush.msra.mxu3 %v2109_v8 }
 0x18c   : > { %v1508_v13 = vsel %vm1124_vm9, %v9688_v26, %v1324_v28  ;;  %v1330_v23 = vmul.f32 %v7457_v1, %v1329_v17  ;;  %v9724_v1 = vld [vmem:[%s12817_s27] ss:$0 sm:$0xff] }
 0x18d   : > { %v1095_v16 = vmin.f32 %v9704_v31, 20.0  ;;  %1600 = vmatmul.f32.gmra.mxu1 %v1508_v13  ;;  %vm1127_vm15 = vcmp.gt.f32.partialorder %v9704_v31, 20.0  ;;  %v9735_v28 = vld [vmem:[%s12834_s17] ss:$0 sm:$0xff] }
 0x18f   : > { %v7461_v2 = vpop.eup %7460  ;;  %v1174_v35 = vmul.f32 1.442695, %v1095_v16 }
 0x190   : > { %v7463_v19 = vpop.eup %7462  ;;  %v1334_v20 = vadd.f32 1.0, %v7461_v2  ;;  %v1337_v24 = vmul.f32 -0.5, %v7461_v2  ;;  %v1340_v38 = vand.u32 2147483647, %v7461_v2 }
 0x191   : > { %7464 = vpow2.f32 %v1174_v35  ;;  %v1327_v22 = vmul.f32 0.6931472, %v7463_v19 }
 0x192   : > { %v1032_v58 = vpop.f32.mrf.mxu0  ;;  %7466 = vlog2.f32 %v1334_v20  ;;  %v1338_v34 = vadd.f32 1.0, %v1337_v24  ;;  %vm1341_vm12 = vcmp.lt.f32.partialorder %v1340_v38, 0.0004427343 }
 0x193   : > { %v9710_v26 = vadd.f32 %v9503_v56, %v1032_v58  ;;  %v1333_v3 = vsel %vm1332_vm10, %v1330_v23, %v1327_v22 }
 0x194   : > { %v1509_v29 = vsel %vm1125_vm11, %v9694_v60, %v1333_v3  ;;  %v1339_v60 = vmul.f32 %v7461_v2, %v1338_v34 }
 0x195   : > { %v1096_v33 = vmin.f32 %v9710_v26, 20.0  ;;  %1603 = vmatmul.f32.gmra.mxu1 %v1509_v29  ;;  %vm1128_vm1 = vcmp.gt.f32.partialorder %v9710_v26, 20.0 }
 0x197   : > { %v7465_v40 = vpop.eup %7464  ;;  %v1176_v41 = vmul.f32 1.442695, %v1096_v33 }
 0x198   : > { %v7467_v42 = vpop.eup %7466  ;;  %v1343_v43 = vadd.f32 1.0, %v7465_v40  ;;  %v1346_v32 = vmul.f32 -0.5, %v7465_v40  ;;  %v1349_v49 = vand.u32 2147483647, %v7465_v40 }
 0x199   : > { %7468 = vpow2.f32 %v1176_v41  ;;  %v1336_v11 = vmul.f32 0.6931472, %v7467_v42 }
 0x19a   : > { %v1035_v44 = vpop.f32.mrf.mxu0  ;;  %7470 = vlog2.f32 %v1343_v43  ;;  %v1347_v14 = vadd.f32 1.0, %v1346_v32  ;;  %vm1350_vm14 = vcmp.lt.f32.partialorder %v1349_v49, 0.0004427343 }
 0x19b   : > { %v9716_v46 = vadd.f32 %v9503_v56, %v1035_v44  ;;  %v1342_v5 = vsel %vm1341_vm12, %v1339_v60, %v1336_v11 }
 0x19c   : > { %v1510_v47 = vsel %vm1126_vm13, %v9700_v53, %v1342_v5  ;;  %v1348_v53 = vmul.f32 %v7465_v40, %v1347_v14 }
 0x19d   : > { %v1097_v4 = vmin.f32 %v9716_v46, 20.0  ;;  %1606 = vmatmul.f32.gmra.mxu1 %v1510_v47  ;;  %vm1129_vm2 = vcmp.gt.f32.partialorder %v9716_v46, 20.0 }
 0x19f   : > { %v7469_v51 = vpop.eup %7468  ;;  %v1178_v52 = vmul.f32 1.442695, %v1097_v4 }
 0x1a0   : > { %v7471_v56 = vpop.eup %7470  ;;  %v1352_v54 = vadd.f32 1.0, %v7469_v51  ;;  %v1355_v61 = vmul.f32 -0.5, %v7469_v51  ;;  %v1358_v12 = vand.u32 2147483647, %v7469_v51 }
 0x1a1   : > { %7472 = vpow2.f32 %v1178_v52  ;;  %v1345_v57 = vmul.f32 0.6931472, %v7471_v56 }
 0x1a2   : > { %v1038_v62 = vpop.f32.mrf.mxu0  ;;  %7474 = vlog2.f32 %v1352_v54  ;;  %v1356_v10 = vadd.f32 1.0, %v1355_v61  ;;  %vm1359_vm0 = vcmp.lt.f32.partialorder %v1358_v12, 0.0004427343 }
 0x1a3   : > { %v9727_v6 = vadd.f32 %v9724_v1, %v1038_v62  ;;  %v1351_v7 = vsel %vm1350_vm14, %v1348_v53, %v1345_v57 }
 0x1a4   : > { %v1511_v27 = vsel %vm1127_vm15, %v9704_v31, %v1351_v7  ;;  %v1357_v16 = vmul.f32 %v7469_v51, %v1356_v10 }
 0x1a5   : > { %v1098_v9 = vmin.f32 %v9727_v6, 20.0  ;;  %1609 = vmatmul.f32.gmra.mxu1 %v1511_v27  ;;  %vm1130_vm4 = vcmp.gt.f32.partialorder %v9727_v6, 20.0 }
 0x1a7   : > { %v7473_v63 = vpop.eup %7472  ;;  %v1180_v37 = vmul.f32 1.442695, %v1098_v9 }
 0x1a8   : > { %v7475_v13 = vpop.eup %7474  ;;  %v1361_v15 = vadd.f32 1.0, %v7473_v63  ;;  %v1364_v17 = vmul.f32 -0.5, %v7473_v63  ;;  %v1367_v24 = vand.u32 2147483647, %v7473_v63 }
 0x1a9   : > { %7476 = vpow2.f32 %v1180_v37  ;;  %v1354_v31 = vmul.f32 0.6931472, %v7475_v13 }
 0x1aa   : > { %v1041_v18 = vpop.f32.mrf.mxu0  ;;  %v1565_v36 = vpop.f32.mrf.mxu1  ;;  %7478 = vlog2.f32 %v1361_v15  ;;  %v1365_v23 = vadd.f32 1.0, %v1364_v17  ;;  %vm1368_vm3 = vcmp.lt.f32.partialorder %v1367_v24, 0.0004427343 }
 0x1ab   : > { %v9738_v2 = vadd.f32 %v9724_v1, %v1041_v18  ;;  %v9741_v35 = vadd.f32 %v9735_v28, %v1565_v36  ;;  %v1360_v19 = vsel %vm1359_vm0, %v1357_v16, %v1354_v31 }
 0x1ac   : > { %v1512_v20 = vsel %vm1128_vm1, %v9710_v26, %v1360_v19  ;;  %v1366_v34 = vmul.f32 %v7473_v63, %v1365_v23 }
 0x1ad   : > { %v1099_v21 = vmin.f32 %v9738_v2, 20.0  ;;  %v1661_v22 = vmin.f32 %v9741_v35, 20.0  ;;  %1612 = vmatmul.f32.gmra.mxu1 %v1512_v20  ;;  %vm1131_vm6 = vcmp.gt.f32.partialorder %v9738_v2, 20.0  ;;  %vm1693_vm7 = vcmp.gt.f32.partialorder %v9741_v35, 20.0 }
 0x1af   : > { %v7477_v58 = vpop.eup %7476  ;;  %v1182_v25 = vmul.f32 1.442695, %v1099_v21  ;;  %v1725_v3 = vmul.f32 1.442695, %v1661_v22 }
 0x1b0   : > { %v7479_v29 = vpop.eup %7478  ;;  %v1370_v30 = vadd.f32 1.0, %v7477_v58  ;;  %v1373_v26 = vmul.f32 -0.5, %v7477_v58  ;;  %v1376_v32 = vand.u32 2147483647, %v7477_v58 }
 0x1b1   : > { %7480 = vpow2.f32 %v1182_v25  ;;  %v1363_v33 = vmul.f32 0.6931472, %v7479_v29 }
 0x1b2   : > { %7482 = vpow2.f32 %v1725_v3  ;;  %v1044_v38 = vpop.f32.mrf.mxu0  ;;  %v1568_v39 = vpop.f32.mrf.mxu1  ;;  %v1374_v60 = vadd.f32 1.0, %v1373_v26  ;;  %vm1377_vm5 = vcmp.lt.f32.partialorder %v1376_v32, 0.0004427343 }
 0x1b3   : > { %v9749_v40 = vadd.f32 %v9724_v1, %v1044_v38  ;;  %v9752_v41 = vadd.f32 %v9735_v28, %v1568_v39  ;;  %v1369_v42 = vsel %vm1368_vm3, %v1366_v34, %v1363_v33  ;;  %7484 = vlog2.f32 %v1370_v30 }
 0x1b4   : > { %v1513_v43 = vsel %vm1129_vm2, %v9716_v46, %v1369_v42  ;;  %v1375_v55 = vmul.f32 %v7477_v58, %v1374_v60 }
 0x1b5   : > { %v1100_v59 = vmin.f32 %v9749_v40, 20.0  ;;  %v1662_v11 = vmin.f32 %v9752_v41, 20.0  ;;  %1615 = vmatmul.f32.gmra.mxu1 %v1513_v43  ;;  %vm1132_vm10 = vcmp.gt.f32.partialorder %v9749_v40, 20.0  ;;  %vm1694_vm11 = vcmp.gt.f32.partialorder %v9752_v41, 20.0 }
 0x1b6   : > { %v1637_v44 = vpop.f32.mrf.mxu3 }
 0x1b7   : > { %v7481_v45 = vpop.eup %7480  ;;  %v1184_v5 = vmul.f32 1.442695, %v1100_v59  ;;  %v1727_v47 = vmul.f32 1.442695, %v1662_v11  ;;  %v9758_v4 = vadd.f32 %v9735_v28, %v1637_v44 }
 0x1b8   : > { %v7483_v48 = vpop.eup %7482  ;;  %v1379_v14 = vadd.f32 1.0, %v7481_v45  ;;  %v1382_v49 = vmul.f32 -0.5, %v7481_v45  ;;  %v1385_v61 = vand.u32 2147483647, %v7481_v45 }
 0x1b9   : > { %v7485_v50 = vpop.eup %7484  ;;  %7486 = vpow2.f32 %v1184_v5  ;;  %v1789_v46 = vadd.f32 1.0, %v7483_v48  ;;  %v1792_v51 = vmul.f32 -0.5, %v7483_v48  ;;  %v1685_v0 = vmin.f32 %v9758_v4, 20.0 }
 0x1ba   : > { %7488 = vpow2.f32 %v1727_v47  ;;  %v1047_v52 = vpop.f32.mrf.mxu0  ;;  %v1571_v56 = vpop.f32.mrf.mxu1  ;;  %v1372_v54 = vmul.f32 0.6931472, %v7485_v50  ;;  %v1383_v7 = vadd.f32 1.0, %v1382_v49  ;;  %v1795_v12 = vand.u32 2147483647, %v7483_v48 }
 0x1bb   : > { %v9762_v57 = vadd.f32 %v9724_v1, %v1047_v52  ;;  %v9765_v53 = vadd.f32 %v9735_v28, %v1571_v56  ;;  %7490 = vlog2.f32 %v1379_v14  ;;  %v1793_v10 = vadd.f32 1.0, %v1792_v51 }
 0x1bc   : > { %v1378_v62 = vsel %vm1377_vm5, %v1375_v55, %v1372_v54  ;;  %7492 = vlog2.f32 %v1789_v46  ;;  %v1773_v16 = vmul.f32 1.442695, %v1685_v0  ;;  %vm9777_vm8 = vcmp.lt.f32.partialorder %v1385_v61, 0.0004427343 }
 0x1bd   : > { %v1101_v27 = vmin.f32 %v9762_v57, 20.0  ;;  %v1663_v8 = vmin.f32 %v9765_v53, 20.0  ;;  %v1514_v9 = vsel %vm1130_vm4, %v9727_v6, %v1378_v62  ;;  %v1384_v19 = vmul.f32 %v7481_v45, %v1383_v7 }
 0x1be   : > { %1618 = vmatmul.f32.gmra.mxu1 %v1514_v9  ;;  %v1640_v63 = vpop.f32.mrf.mxu3  ;;  %v1794_v20 = vmul.f32 %v7483_v48, %v1793_v10  ;;  %vm9784_vm9 = vcmp.lt.f32.partialorder %v1795_v12, 0.0004427343  ;;  %vm1133_vm13 = vcmp.gt.f32.partialorder %v9762_v57, 20.0  ;;  %vm1695_vm15 = vcmp.gt.f32.partialorder %v9765_v53, 20.0 }
 0x1bf   : > { %v7487_v37 = vpop.eup %7486  ;;  %v1186_v13 = vmul.f32 1.442695, %v1101_v27  ;;  %v1729_v15 = vmul.f32 1.442695, %v1663_v8  ;;  %v9782_v6 = vadd.f32 %v9735_v28, %v1640_v63 }
 0x1c0   : > { %v9775_v31 = vpop.eup %7488  ;;  %v1388_v18 = vadd.f32 1.0, %v7487_v37  ;;  %v1391_v25 = vmul.f32 -0.5, %v7487_v37  ;;  %v1394_v3 = vand.u32 2147483647, %v7487_v37 }
 0x1c1   : > { %v7491_v36 = vpop.eup %7490  ;;  %7494 = vpow2.f32 %v1186_v13  ;;  %v1798_v34 = vadd.f32 1.0, %v9775_v31  ;;  %v1686_v39 = vmin.f32 %v9782_v6, 20.0  ;;  %v1801_v26 = vmul.f32 -0.5, %v9775_v31 }
 0x1c2   : > { %v7493_v22 = vpop.eup %7492  ;;  %7496 = vpow2.f32 %v1729_v15  ;;  %v1050_v23 = vpop.f32.mrf.mxu0  ;;  %v1381_v58 = vmul.f32 0.6931472, %v7491_v36  ;;  %v1392_v32 = vadd.f32 1.0, %v1391_v25  ;;  %vm9814_vm12 = vcmp.lt.f32.partialorder %v1394_v3, 0.0004427343 }
 0x1c3   : > { %v1574_v24 = vpop.f32.mrf.mxu1  ;;  %v9789_v29 = vadd.f32 %v9724_v1, %v1050_v23  ;;  %v1791_v33 = vmul.f32 0.6931472, %v7493_v22  ;;  %7498 = vlog2.f32 %v1388_v18  ;;  %v1802_v14 = vadd.f32 1.0, %v1801_v26 }
 0x1c4   : > { %v9792_v30 = vadd.f32 %v9735_v28, %v1574_v24  ;;  %v1387_v38 = vsel %vm9777_vm8, %v1384_v19, %v1381_v58  ;;  %7500 = vlog2.f32 %v1798_v34  ;;  %v1393_v55 = vmul.f32 %v7487_v37, %v1392_v32 }
 0x1c5   : > { %v1102_v42 = vmin.f32 %v9789_v29, 20.0  ;;  %v1515_v59 = vsel %vm1131_vm6, %v9738_v2, %v1387_v38  ;;  %v1797_v11 = vsel %vm9784_vm9, %v1794_v20, %v1791_v33  ;;  %7502 = vpow2.f32 %v1773_v16 }
 0x1c6   : > { %v1664_v43 = vmin.f32 %v9792_v30, 20.0  ;;  %1621 = vmatmul.f32.gmra.mxu1 %v1515_v59  ;;  %v2077_v60 = vsel %vm1693_vm7, %v9741_v35, %v1797_v11  ;;  %v1643_v44 = vpop.f32.mrf.mxu3  ;;  %v1775_v35 = vmul.f32 1.442695, %v1686_v39  ;;  %v1804_v61 = vand.u32 2147483647, %v9775_v31 }
 0x1c7   : > { %v7495_v45 = vpop.eup %7494  ;;  %v1188_v5 = vmul.f32 1.442695, %v1102_v42  ;;  %2145 = vmatmul.f32.vlgmr.msra.gmra.mxu2 %v2077_v60  ;;  %v9811_v48 = vadd.f32 %v9735_v28, %v1643_v44  ;;  %v1803_v9 = vmul.f32 %v9775_v31, %v1802_v14  ;;  %vm1134_vm2 = vcmp.gt.f32.partialorder %v9789_v29, 20.0 }
 0x1c8   : > { %v1731_v47 = vmul.f32 1.442695, %v1664_v43  ;;  %v7497_v2 = vpop.eup %7496  ;;  %v1397_v49 = vadd.f32 1.0, %v7495_v45  ;;  %v1400_v50 = vmul.f32 -0.5, %v7495_v45  ;;  %v1403_v12 = vand.u32 2147483647, %v7495_v45 }
 0x1c9   : > { %7504 = vpow2.f32 %v1188_v5  ;;  %v1687_v51 = vmin.f32 %v9811_v48, 20.0  ;;  %v7499_v52 = vpop.eup %7498  ;;  %v1807_v62 = vadd.f32 1.0, %v7497_v2  ;;  %v1810_v8 = vmul.f32 -0.5, %v7497_v2 }
 0x1ca   : > { %7506 = vpow2.f32 %v1731_v47  ;;  %v1053_v56 = vpop.f32.mrf.mxu0  ;;  %v1390_v27 = vmul.f32 0.6931472, %v7499_v52  ;;  %v1401_v10 = vadd.f32 1.0, %v1400_v50  ;;  %v7501_v63 = vpop.eup %7500  ;;  %vm1805_vm14 = vcmp.lt.f32.partialorder %v1804_v61, 0.0004427343 }
 0x1cb   : > { %v1577_v54 = vpop.f32.mrf.mxu1  ;;  %v9821_v0 = vadd.f32 %v9724_v1, %v1053_v56  ;;  %7508 = vlog2.f32 %v1397_v49  ;;  %v1777_v15 = vmul.f32 1.442695, %v1687_v51  ;;  %v1813_v1 = vand.u32 2147483647, %v7497_v2  ;;  %v9831_v16 = vpop.eup %7502 }
 0x1cc   : > { %v9824_v7 = vadd.f32 %v9735_v28, %v1577_v54  ;;  %v1396_v37 = vsel %vm9814_vm12, %v1393_v55, %v1390_v27  ;;  %v1800_v18 = vmul.f32 0.6931472, %v7501_v63  ;;  %7510 = vlog2.f32 %v1807_v62 }
 0x1cd   : > { %v1103_v13 = vmin.f32 %v9821_v0, 20.0  ;;  %v1516_v31 = vsel %vm1132_vm10, %v9749_v40, %v1396_v37  ;;  %7512 = vpow2.f32 %v1775_v35  ;;  %v1811_v21 = vadd.f32 1.0, %v1810_v8 }
 0x1ce   : > { %v1665_v17 = vmin.f32 %v9824_v7, 20.0  ;;  %v1646_v36 = vpop.f32.mrf.mxu3  ;;  %1624 = vmatmul.f32.gmra.mxu1 %v1516_v31  ;;  %v1806_v23 = vsel %vm1805_vm14, %v1803_v9, %v1800_v18  ;;  %vm9838_vm0 = vcmp.lt.f32.partialorder %v1403_v12, 0.0004427343  ;;  %v1402_v3 = vmul.f32 %v7495_v45, %v1401_v10 }
 0x1cf   : > { %v7505_v19 = vpop.eup %7504  ;;  %v1190_v20 = vmul.f32 1.442695, %v1103_v13  ;;  %v9843_v58 = vadd.f32 %v9735_v28, %v1646_v36  ;;  %v2078_v25 = vsel %vm1694_vm11, %v9752_v41, %v1806_v23  ;;  %vm9848_vm1 = vcmp.lt.f32.partialorder %v1813_v1, 0.0004427343 }
 0x1d0   : > { %v7507_v22 = vpop.eup %7506  ;;  %v1406_v40 = vadd.f32 1.0, %v7505_v19  ;;  %v1409_v33 = vmul.f32 -0.5, %v7505_v19  ;;  %v1733_v38 = vmul.f32 1.442695, %v1665_v17  ;;  %2148 = vmatmul.f32.gmra.mxu2 %v2078_v25  ;;  %v1812_v11 = vmul.f32 %v7497_v2, %v1811_v21 }
 0x1d1   : > { %7514 = vpow2.f32 %v1190_v20  ;;  %v7509_v34 = vpop.eup %7508  ;;  %v1816_v42 = vadd.f32 1.0, %v7507_v22  ;;  %v1688_v41 = vmin.f32 %v9843_v58, 20.0  ;;  %v1412_v32 = vand.u32 2147483647, %v7505_v19 }
 0x1d2   : > { %7516 = vpow2.f32 %v1777_v15  ;;  %v1399_v59 = vmul.f32 0.6931472, %v7509_v34  ;;  %v7511_v60 = vpop.eup %7510  ;;  %v1819_v44 = vmul.f32 -0.5, %v7507_v22  ;;  %v1410_v49 = vadd.f32 1.0, %v1409_v33 }
 0x1d3   : > { %v1580_v39 = vpop.f32.mrf.mxu1  ;;  %7518 = vlog2.f32 %v1406_v40  ;;  %v9856_v45 = vpop.eup %7512  ;;  %v1809_v14 = vmul.f32 0.6931472, %v7511_v60  ;;  %v1822_v35 = vand.u32 2147483647, %v7507_v22  ;;  %v2005_v56 = vadd.f32 1.0, %v9831_v16 }
 0x1d4   : > { %v9853_v43 = vadd.f32 %v9735_v28, %v1580_v39  ;;  %7520 = vlog2.f32 %v1816_v42  ;;  %v1405_v47 = vsel %vm9838_vm0, %v1402_v3, %v1399_v59  ;;  %v1820_v50 = vadd.f32 1.0, %v1819_v44 }
 0x1d5   : > { %7522 = vpow2.f32 %v1733_v38  ;;  %v1517_v2 = vsel %vm1133_vm13, %v9762_v57, %v1405_v47  ;;  %v1815_v52 = vsel %vm9848_vm1, %v1812_v11, %v1809_v14  ;;  %v2008_v54 = vmul.f32 -0.5, %v9831_v16 }
 0x1d6   : > { %v1666_v5 = vmin.f32 %v9853_v43, 20.0  ;;  %v1649_v46 = vpop.f32.mrf.mxu3  ;;  %1627 = vmatmul.f32.gmra.mxu1 %v1517_v2  ;;  %v2079_v57 = vsel %vm1695_vm15, %v9765_v53, %v1815_v52  ;;  %vm9874_vm3 = vcmp.lt.f32.partialorder %v1412_v32, 0.0004427343  ;;  %vm1696_vm4 = vcmp.gt.f32.partialorder %v9792_v30, 20.0 }
 0x1d7   : > { %v7515_v51 = vpop.eup %7514  ;;  %v1779_v8 = vmul.f32 1.442695, %v1688_v41  ;;  %v1411_v9 = vmul.f32 %v7505_v19, %v1410_v49  ;;  %v9880_v10 = vadd.f32 %v9735_v28, %v1649_v46  ;;  %v1821_v15 = vmul.f32 %v7507_v22, %v1820_v50 }
 0x1d8   : > { %v9869_v55 = vpop.eup %7516  ;;  %v1735_v61 = vmul.f32 1.442695, %v1666_v5  ;;  %v1415_v12 = vadd.f32 1.0, %v7515_v51  ;;  %2151 = vmatmul.f32.gmra.mxu2 %v2079_v57  ;;  %vm9882_vm5 = vcmp.lt.f32.partialorder %v1822_v35, 0.0004427343  ;;  %7524 = vlog2.f32 %v2005_v56 }
 0x1d9   : > { %v7519_v27 = vpop.eup %7518  ;;  %v2009_v31 = vadd.f32 1.0, %v2008_v54  ;;  %v2011_v19 = vand.u32 2147483647, %v9831_v16  ;;  %v1418_v20 = vmul.f32 -0.5, %v7515_v51  ;;  %v1689_v24 = vmin.f32 %v9880_v10, 20.0 }
 0x1da   : > { %v7521_v63 = vpop.eup %7520  ;;  %v1408_v37 = vmul.f32 0.6931472, %v7519_v27  ;;  %7526 = vlog2.f32 %v1415_v12  ;;  %vm1717_vm6 = vcmp.gt.f32.partialorder %v9758_v4, 20.0  ;;  %v1421_v25 = vand.u32 2147483647, %v7515_v51 }
 0x1db   : > { %v1583_v13 = vpop.f32.mrf.mxu1  ;;  %v1818_v17 = vmul.f32 0.6931472, %v7521_v63  ;;  %v9889_v18 = vpop.eup %7522  ;;  %7528 = vpow2.f32 %v1735_v61  ;;  %v1419_v40 = vadd.f32 1.0, %v1418_v20  ;;  %v2010_v38 = vmul.f32 %v9831_v16, %v2009_v31 }
 0x1dc   : > { %v9887_v1 = vadd.f32 %v9735_v28, %v1583_v13  ;;  %v1414_v36 = vsel %vm9874_vm3, %v1411_v9, %v1408_v37  ;;  %7530 = vpow2.f32 %v1779_v8  ;;  %vm9907_vm7 = vcmp.lt.f32.partialorder %v2011_v19, 0.0004427343 }
 0x1dd   : > { %v1518_v22 = vsel %vm1134_vm2, %v9789_v29, %v1414_v36  ;;  %v1824_v23 = vsel %vm9882_vm5, %v1821_v15, %v1818_v17  ;;  %v1825_v29 = vadd.f32 1.0, %v9889_v18  ;;  %v1828_v42 = vmul.f32 -0.5, %v9889_v18 }
 0x1de   : > { %v1667_v21 = vmin.f32 %v9887_v1, 20.0  ;;  %v1652_v3 = vpop.f32.mrf.mxu3  ;;  %1630 = vmatmul.f32.gmra.mxu1 %v1518_v22  ;;  %v2080_v34 = vsel %vm1696_vm4, %v9792_v30, %v1824_v23  ;;  %v7525_v39 = vpop.eup %7524  ;;  %v2014_v59 = vadd.f32 1.0, %v9856_v45  ;;  %v2017_v11 = vmul.f32 -0.5, %v9856_v45 }
 0x1df   : > { %v2007_v41 = vmul.f32 0.6931472, %v7525_v39  ;;  %v1781_v32 = vmul.f32 1.442695, %v1689_v24  ;;  %vm1135_vm8 = vcmp.gt.f32.partialorder %v9821_v0, 20.0  ;;  %v1420_v5 = vmul.f32 %v7515_v51, %v1419_v40 }
 0x1e0   : > { %v1737_v33 = vmul.f32 1.442695, %v1667_v21  ;;  %v7527_v60 = vpop.eup %7526  ;;  %2154 = vmatmul.f32.gmra.mxu2 %v2080_v34  ;;  %vm1422_vm9 = vcmp.lt.f32.partialorder %v1421_v25, 0.0004427343  ;;  %vm1697_vm10 = vcmp.gt.f32.partialorder %v9824_v7, 20.0  ;;  %v1829_v46 = vadd.f32 1.0, %v1828_v42 }
 0x1e1   : > { %v9915_v30 = vpop.eup %7528  ;;  %v1417_v44 = vmul.f32 0.6931472, %v7527_v60  ;;  %v2013_v47 = vsel %vm9907_vm7, %v2010_v38, %v2007_v41  ;;  %v1831_v49 = vand.u32 2147483647, %v9889_v18  ;;  %v2018_v51 = vadd.f32 1.0, %v2017_v11 }
 0x1e2   : > { %7532 = vpow2.f32 %v1737_v33  ;;  %v9924_v2 = vpop.eup %7530  ;;  %v2101_v50 = vsel %vm1717_vm6, %v9758_v4, %v2013_v47  ;;  %v2020_v54 = vand.u32 2147483647, %v9856_v45  ;;  %v9935_v61 = vadd.f32 %v9735_v28, %v1652_v3 }
 0x1e3   : > { %v1586_v16 = vpop.f32.mrf.mxu1  ;;  %7534 = vlog2.f32 %v1825_v29  ;;  %v1423_v35 = vsel %vm1422_vm9, %v1420_v5, %v1417_v44  ;;  %2217 = vmatmul.f32.vlgmr.msra.gmra.mxu3 %v2101_v50  ;;  %vm1718_vm11 = vcmp.gt.f32.partialorder %v9782_v6, 20.0  ;;  %v1834_v4 = vadd.f32 1.0, %v9915_v30 }
 0x1e4   : > { %v9920_v14 = vadd.f32 %v9735_v28, %v1586_v16  ;;  %7536 = vlog2.f32 %v2014_v59  ;;  %v1519_v56 = vsel %vm1135_vm8, %v9821_v0, %v1423_v35  ;;  %v1837_v57 = vmul.f32 -0.5, %v9915_v30 }
 0x1e5   : > { %7538 = vpow2.f32 %v1781_v32  ;;  %v1840_v9 = vand.u32 2147483647, %v9915_v30  ;;  %v2023_v0 = vadd.f32 1.0, %v9869_v55  ;;  %v2026_v12 = vmul.f32 -0.5, %v9869_v55 }
 0x1e6   : > { %v1668_v52 = vmin.f32 %v9920_v14, 20.0  ;;  %v1655_v62 = vpop.f32.mrf.mxu3  ;;  %1633 = vmatmul.f32.gmra.mxu1 %v1519_v56  ;;  %v1830_v13 = vmul.f32 %v9889_v18, %v1829_v46  ;;  %vm9946_vm12 = vcmp.lt.f32.partialorder %v1831_v49, 0.0004427343  ;;  %v2019_v15 = vmul.f32 %v9856_v45, %v2018_v51 }
 0x1e7   : > { %7540 = vlog2.f32 %v1834_v4  ;;  %vm9951_vm13 = vcmp.lt.f32.partialorder %v2020_v54, 0.0004427343  ;;  %v1690_v36 = vmin.f32 %v9935_v61, 20.0  ;;  %vm1698_vm14 = vcmp.gt.f32.partialorder %v9853_v43, 20.0 }
 0x1e8   : > { %v9940_v27 = vpop.eup %7532  ;;  %v1739_v8 = vmul.f32 1.442695, %v1668_v52  ;;  %v1838_v18 = vadd.f32 1.0, %v1837_v57  ;;  %7542 = vlog2.f32 %v2023_v0  ;;  %v2027_v21 = vadd.f32 1.0, %v2026_v12 }
 0x1e9   : > { %v7535_v63 = vpop.eup %7534  ;;  %vm9962_vm15 = vcmp.lt.f32.partialorder %v1840_v9, 0.0004427343  ;;  %v2029_v3 = vand.u32 2147483647, %v9869_v55  ;;  %v9975_v33 = vadd.f32 %v9735_v28, %v1655_v62  ;;  %v1843_v29 = vadd.f32 1.0, %v9940_v27 }
 0x1ea   : > { %v7537_v53 = vpop.eup %7536  ;;  %v1827_v17 = vmul.f32 0.6931472, %v7535_v63  ;;  %7544 = vpow2.f32 %v1739_v8  ;;  %v1846_v39 = vmul.f32 -0.5, %v9940_v27  ;;  %v1783_v26 = vmul.f32 1.442695, %v1690_v36 }
 0x1eb   : > { %v2016_v19 = vmul.f32 0.6931472, %v7537_v53  ;;  %v1589_v20 = vpop.f32.mrf.mxu1  ;;  %v9966_v24 = vpop.eup %7538  ;;  %v1839_v42 = vmul.f32 %v9915_v30, %v1838_v18  ;;  %v2028_v59 = vmul.f32 %v9869_v55, %v2027_v21  ;;  %v2032_v11 = vadd.f32 1.0, %v9924_v2 }
 0x1ec   : > { %v1833_v45 = vsel %vm9946_vm12, %v1830_v13, %v1827_v17  ;;  %v9960_v22 = vadd.f32 %v9735_v28, %v1589_v20  ;;  %v1691_v32 = vmin.f32 %v9975_v33, 20.0  ;;  %7546 = vlog2.f32 %v1843_v29 }
 0x1ed   : > { %v2081_v40 = vsel %vm1697_vm10, %v9824_v7, %v1833_v45  ;;  %v2022_v25 = vsel %vm9951_vm13, %v2019_v15, %v2016_v19  ;;  %v7541_v7 = vpop.eup %7540  ;;  %vm9987_vm0 = vcmp.lt.f32.partialorder %v2029_v3, 0.0004427343  ;;  %v1847_v44 = vadd.f32 1.0, %v1846_v39 }
 0x1ee   : > { %2157 = vmatmul.f32.gmra.mxu2 %v2081_v40  ;;  %v2102_v34 = vsel %vm1718_vm11, %v9782_v6, %v2022_v25  ;;  %v1669_v38 = vmin.f32 %v9960_v22, 20.0  ;;  %v1836_v41 = vmul.f32 0.6931472, %v7541_v7  ;;  %v7543_v6 = vpop.eup %7542  ;;  %7548 = vlog2.f32 %v2032_v11  ;;  %v1658_v47 = vpop.f32.mrf.mxu3 }
 0x1ef   : > { %2220 = vmatmul.f32.gmra.mxu3 %v2102_v34  ;;  %v2035_v5 = vmul.f32 -0.5, %v9924_v2  ;;  %vm1719_vm1 = vcmp.gt.f32.partialorder %v9811_v48, 20.0  ;;  %v2025_v49 = vmul.f32 0.6931472, %v7543_v6  ;;  %v1849_v50 = vand.u32 2147483647, %v9940_v27 }
 0x1f0   : > { %v1741_v60 = vmul.f32 1.442695, %v1669_v38  ;;  %v9992_v30 = vpop.eup %7544  ;;  %v1842_v55 = vsel %vm9962_vm15, %v1839_v42, %v1836_v41  ;;  %v2038_v52 = vand.u32 2147483647, %v9924_v2  ;;  %v1785_v4 = vmul.f32 1.442695, %v1691_v32 }
 0x1f1   : > { %v2082_v35 = vsel %vm1698_vm14, %v9853_v43, %v1842_v55  ;;  %v2036_v51 = vadd.f32 1.0, %v2035_v5  ;;  %v2031_v56 = vsel %vm9987_vm0, %v2028_v59, %v2025_v49  ;;  %v10008_v57 = vadd.f32 %v9735_v28, %v1658_v47 }
 0x1f2   : > { %7550 = vpow2.f32 %v1741_v60  ;;  %v2103_v62 = vsel %vm1719_vm1, %v9811_v48, %v2031_v56  ;;  %v1848_v8 = vmul.f32 %v9940_v27, %v1847_v44  ;;  %v1852_v43 = vadd.f32 1.0, %v9992_v30  ;;  %v7547_v9 = vpop.eup %7546 }
 0x1f3   : > { %v1592_v46 = vpop.f32.mrf.mxu1  ;;  %7552 = vpow2.f32 %v1783_v26  ;;  %v2037_v12 = vmul.f32 %v9924_v2, %v2036_v51  ;;  %vm10015_vm2 = vcmp.lt.f32.partialorder %v2038_v52, 0.0004427343  ;;  %v1855_v13 = vmul.f32 -0.5, %v9992_v30 }
 0x1f4   : > { %v10005_v54 = vadd.f32 %v9735_v28, %v1592_v46  ;;  %v7549_v37 = vpop.eup %7548  ;;  %v1845_v15 = vmul.f32 0.6931472, %v7547_v9  ;;  %v1692_v48 = vmin.f32 %v10008_v57, 20.0  ;;  %7554 = vlog2.f32 %v1852_v43 }
 0x1f5   : > { %v2041_v27 = vadd.f32 1.0, %v9966_v24  ;;  %7556 = vpow2.f32 %v1785_v4  ;;  %vm1850_vm3 = vcmp.lt.f32.partialorder %v1849_v50, 0.0004427343  ;;  %v2034_v17 = vmul.f32 0.6931472, %v7549_v37 }
 0x1f6   : > { %2160 = vmatmul.f32.gmra.mxu2 %v2082_v35  ;;  %v1670_v0 = vmin.f32 %v10005_v54, 20.0  ;;  %v1851_v2 = vsel %vm1850_vm3, %v1848_v8, %v1845_v15  ;;  %vm1720_vm4 = vcmp.gt.f32.partialorder %v9843_v58, 20.0  ;;  %v1856_v36 = vadd.f32 1.0, %v1855_v13  ;;  %v2701_v13 = vld [vmem:[#allocation10 + $0x58] sm:$0xff] }
 0x1f7   : > { %2223 = vmatmul.f32.gmra.mxu3 %v2103_v62  ;;  %7558 = vlog2.f32 %v2041_v27  ;;  %vm1699_vm5 = vcmp.gt.f32.partialorder %v9887_v1, 20.0  ;;  %v2040_v19 = vsel %vm10015_vm2, %v2037_v12, %v2034_v17  ;;  %v2044_v20 = vmul.f32 -0.5, %v9966_v24 }
 0x1f8   : > { %v1743_v53 = vmul.f32 1.442695, %v1670_v0  ;;  %v10022_v31 = vpop.eup %7550  ;;  %v2083_v21 = vsel %vm1699_vm5, %v9887_v1, %v1851_v2  ;;  %v1787_v23 = vmul.f32 1.442695, %v1692_v48  ;;  %v1858_v40 = vand.u32 2147483647, %v9992_v30 }
 0x1f9   : > { %v7553_v18 = vpop.eup %7552  ;;  %v2047_v25 = vand.u32 2147483647, %v9966_v24  ;;  %v2104_v3 = vsel %vm1720_vm4, %v9843_v58, %v2040_v19  ;;  %v2045_v38 = vadd.f32 1.0, %v2044_v20  ;;  %v1861_v29 = vadd.f32 1.0, %v10022_v31 }
 0x1fa   : > { %7560 = vpow2.f32 %v1743_v53  ;;  %v7555_v39 = vpop.eup %7554  ;;  %v1857_v7 = vmul.f32 %v9992_v30, %v1856_v36  ;;  %v1864_v26 = vmul.f32 -0.5, %v10022_v31  ;;  %vm10043_vm6 = vcmp.lt.f32.partialorder %v1858_v40, 0.0004427343 }
 0x1fb   : > { %v1595_v45 = vpop.f32.mrf.mxu1  ;;  %v10039_v1 = vpop.eup %7556  ;;  %v1854_v59 = vmul.f32 0.6931472, %v7555_v39  ;;  %v2046_v11 = vmul.f32 %v9966_v24, %v2045_v38  ;;  %7562 = vlog2.f32 %v1861_v29  ;;  %vm10047_vm7 = vcmp.lt.f32.partialorder %v2047_v25, 0.0004427343 }
 0x1fc   : > { %v10034_v34 = vadd.f32 %v9735_v28, %v1595_v45  ;;  %v2050_v32 = vadd.f32 1.0, %v7553_v18  ;;  %v2053_v6 = vmul.f32 -0.5, %v7553_v18  ;;  %7564 = vpow2.f32 %v1787_v23 }
 0x1fd   : > { %v7559_v58 = vpop.eup %7558  ;;  %v1860_v24 = vsel %vm10043_vm6, %v1857_v7, %v1854_v59  ;;  %vm1700_vm8 = vcmp.gt.f32.partialorder %v9920_v14, 20.0  ;;  %vm1721_vm9 = vcmp.gt.f32.partialorder %v9880_v10, 20.0  ;;  %v1865_v30 = vadd.f32 1.0, %v1864_v26  ;;  %v2698_v59 = vld [vmem:[#allocation10 + $0x40] sm:$0xff] }
 0x1fe   : > { %2163 = vmatmul.f32.gmra.mxu2 %v2083_v21  ;;  %v1671_v42 = vmin.f32 %v10034_v34, 20.0  ;;  %v2043_v5 = vmul.f32 0.6931472, %v7559_v58  ;;  %7566 = vlog2.f32 %v2050_v32  ;;  %v2054_v55 = vadd.f32 1.0, %v2053_v6 }
 0x1ff   : > { %2226 = vmatmul.f32.gmra.mxu3 %v2104_v3  ;;  %v2084_v49 = vsel %vm1700_vm8, %v9920_v14, %v1860_v24  ;;  %v1867_v35 = vand.u32 2147483647, %v10022_v31  ;;  %v2056_v46 = vand.u32 2147483647, %v7553_v18  ;;  %v2059_v62 = vadd.f32 1.0, %v10039_v1 }
 0x200   : > { %v10051_v16 = vpop.eup %7560  ;;  %v1745_v44 = vmul.f32 1.442695, %v1671_v42  ;;  %v2049_v47 = vsel %vm10047_vm7, %v2046_v11, %v2043_v5  ;;  %v2062_v14 = vmul.f32 -0.5, %v10039_v1  ;;  %v1866_v12 = vmul.f32 %v10022_v31, %v1865_v30  ;;  %v2704_v11 = vld [vmem:[#allocation10 + $0x70] sm:$0xff]  ;;  %v2703_v30 = vld [vmem:[#allocation10 + $0x68] sm:$0xff] }
 0x201   : > { %v1870_v51 = vadd.f32 1.0, %v10051_v16  ;;  %v7563_v52 = vpop.eup %7562  ;;  %v2105_v56 = vsel %vm1721_vm9, %v9880_v10, %v2049_v47  ;;  %v1873_v43 = vmul.f32 -0.5, %v10051_v16  ;;  %v2055_v63 = vmul.f32 %v7553_v18, %v2054_v55  ;;  %v2705_v18 = vld [vmem:[#allocation10 + $0x78] sm:$0xff] }
 0x202   : > { %7568 = vpow2.f32 %v1745_v44  ;;  %v1863_v8 = vmul.f32 0.6931472, %v7563_v52  ;;  %v10069_v9 = vpop.eup %7564  ;;  %vm10073_vm10 = vcmp.lt.f32.partialorder %v1867_v35, 0.0004427343  ;;  %vm10077_vm11 = vcmp.lt.f32.partialorder %v2056_v46, 0.0004427343  ;;  %2710 = vmatpush.msrb.mxu3 %v2705_v18 }
 0x203   : > { %v1598_v50 = vpop.f32.mrf.mxu1  ;;  %7570 = vlog2.f32 %v1870_v51  ;;  %vm1701_vm12 = vcmp.gt.f32.partialorder %v9960_v22, 20.0  ;;  %vm1722_vm13 = vcmp.gt.f32.partialorder %v9935_v61, 20.0  ;;  %v1874_v17 = vadd.f32 1.0, %v1873_v43 }
 0x204   : > { %v10064_v4 = vadd.f32 %v9735_v28, %v1598_v50  ;;  %7572 = vlog2.f32 %v2059_v62  ;;  %v7567_v10 = vpop.eup %7566  ;;  %v1869_v27 = vsel %vm10073_vm10, %v1866_v12, %v1863_v8  ;;  %v2063_v31 = vadd.f32 1.0, %v2062_v14  ;;  %2711 = vmatpush.msrb.mxu3 %v2704_v11  ;;  %v2702_v14 = vld [vmem:[#allocation10 + $0x60] sm:$0xff] }
 0x205   : > { %v2052_v53 = vmul.f32 0.6931472, %v7567_v10  ;;  %v2065_v19 = vand.u32 2147483647, %v10039_v1  ;;  %v2068_v20 = vadd.f32 1.0, %v10069_v9  ;;  %v2085_v45 = vsel %vm1701_vm12, %v9960_v22, %v1869_v27 }
 0x206   : > { %2166 = vmatmul.f32.gmra.mxu2 %v2084_v49  ;;  %v1672_v0 = vmin.f32 %v10064_v4, 20.0  ;;  %v1876_v40 = vand.u32 2147483647, %v10051_v16  ;;  %v2064_v7 = vmul.f32 %v10039_v1, %v2063_v31  ;;  %v2071_v22 = vmul.f32 -0.5, %v10069_v9  ;;  %2712 = vmatpush.msrb.mxu3 %v2703_v30 }
 0x207   : > { %2229 = vmatmul.f32.gmra.mxu3 %v2105_v56  ;;  %v2058_v36 = vsel %vm10077_vm11, %v2055_v63, %v2052_v53  ;;  %v1875_v42 = vmul.f32 %v10051_v16, %v1874_v17  ;;  %vm10104_vm14 = vcmp.lt.f32.partialorder %v2065_v19, 0.0004427343  ;;  %vm1723_vm0 = vcmp.gt.f32.partialorder %v9975_v33, 20.0  ;;  %v10142_v53 = vld [vmem:[%s12834_s17] ss:$0 sm:$0xff]  ;;  %v2700_v19 = vld [vmem:[#allocation10 + $0x50] sm:$0xff] }
 0x208   : > { %v10081_v15 = vpop.eup %7568  ;;  %v1747_v48 = vmul.f32 1.442695, %v1672_v0  ;;  %v2106_v3 = vsel %vm1722_vm13, %v9935_v61, %v2058_v36  ;;  %vm10109_vm15 = vcmp.lt.f32.partialorder %v1876_v40, 0.0004427343  ;;  %v2072_v16 = vadd.f32 1.0, %v2071_v22  ;;  %2713 = vmatpush.msrb.mxu3 %v2702_v14 }
 0x209   : > { %v1879_v2 = vadd.f32 1.0, %v10081_v15  ;;  %v7571_v21 = vpop.eup %7570  ;;  %v1882_v61 = vmul.f32 -0.5, %v10081_v15  ;;  %vm1702_vm1 = vcmp.gt.f32.partialorder %v10005_v54, 20.0  ;;  %v2074_v47 = vand.u32 2147483647, %v10069_v9 }
 0x20a   : > { %7574 = vpow2.f32 %v1747_v48  ;;  %v7573_v25 = vpop.eup %7572  ;;  %v1872_v29 = vmul.f32 0.6931472, %v7571_v21  ;;  %v1885_v50 = vand.u32 2147483647, %v10081_v15  ;;  %v2073_v56 = vmul.f32 %v10069_v9, %v2072_v16  ;;  %2714 = vmatpush.msrb.mxu3 %v2701_v13 }
 0x20b   : > { %v1601_v23 = vpop.f32.mrf.mxu1  ;;  %7576 = vlog2.f32 %v1879_v2  ;;  %v2061_v39 = vmul.f32 0.6931472, %v7573_v25  ;;  %v1883_v5 = vadd.f32 1.0, %v1882_v61  ;;  %vm10129_vm2 = vcmp.lt.f32.partialorder %v2074_v47, 0.0004427343  ;;  %v3286_v61 = vld [vmem:[#allocation11 + $0x78] sm:$0xff] }
 0x20c   : > { %v10098_v38 = vadd.f32 %v9735_v28, %v1601_v23  ;;  %7578 = vlog2.f32 %v2068_v20  ;;  %v1878_v41 = vsel %vm10109_vm15, %v1875_v42, %v1872_v29  ;;  %vm1886_vm3 = vcmp.lt.f32.partialorder %v1885_v50, 0.0004427343  ;;  %2715 = vmatpush.msrb.mxu3 %v2700_v19  ;;  %v2699_v29 = vld [vmem:[#allocation10 + $0x48] sm:$0xff]  ;;  %3291 = vmatpush.msrb.mxu0 %v3286_v61  ;;  %v2693_v19 = vld [vmem:[#allocation10 + $0x18] sm:$0xff] }
 0x20d   : > { %v2067_v6 = vsel %vm10104_vm14, %v2064_v7, %v2061_v39  ;;  %v2086_v55 = vsel %vm1702_vm1, %v10005_v54, %v1878_v41  ;;  %v1884_v8 = vmul.f32 %v10081_v15, %v1883_v5  ;;  %vm1724_vm4 = vcmp.gt.f32.partialorder %v10008_v57, 20.0  ;;  %v2691_v61 = vld [vmem:[#allocation10 + $0x8] sm:$0xff] }
 0x20e   : > { %2169 = vmatmul.f32.gmra.mxu2 %v2085_v45  ;;  %v1673_v26 = vmin.f32 %v10098_v38, 20.0  ;;  %v2107_v35 = vsel %vm1723_vm0, %v9975_v33, %v2067_v6  ;;  %vm1703_vm5 = vcmp.gt.f32.partialorder %v10034_v34, 20.0  ;;  %vm1704_vm7 = vcmp.gt.f32.partialorder %v10064_v4, 20.0  ;;  %2716 = vmatpush.msrb.mxu3 %v2699_v29 }
 0x20f   : > { %2232 = vmatmul.f32.gmra.mxu3 %v2106_v3  ;;  %vm1705_vm9 = vcmp.gt.f32.partialorder %v10098_v38, 20.0 }
 0x210   : > { %v7575_v1 = vpop.eup %7574  ;;  %v1749_v60 = vmul.f32 1.442695, %v1673_v26  ;;  %2717 = vmatpush.msrb.mxu3 %v2698_v59  ;;  %v3284_v59 = vld [vmem:[#allocation11 + $0x68] sm:$0xff] }
 0x211   : > { %v7577_v32 = vpop.eup %7576  ;;  %v1888_v44 = vadd.f32 1.0, %v7575_v1  ;;  %v1891_v43 = vmul.f32 -0.5, %v7575_v1  ;;  %v1894_v48 = vand.u32 2147483647, %v7575_v1 }
 0x212   : > { %v7579_v24 = vpop.eup %7578  ;;  %7580 = vpow2.f32 %v1749_v60  ;;  %v1881_v51 = vmul.f32 0.6931472, %v7577_v32 }
 0x213   : > { %v1604_v49 = vpop.f32.mrf.mxu1  ;;  %7582 = vlog2.f32 %v1888_v44  ;;  %v2070_v52 = vmul.f32 0.6931472, %v7579_v24  ;;  %v1892_v10 = vadd.f32 1.0, %v1891_v43  ;;  %vm1895_vm6 = vcmp.lt.f32.partialorder %v1894_v48, 0.0004427343  ;;  %v2697_v44 = vld [vmem:[#allocation10 + $0x38] sm:$0xff] }
 0x214   : > { %v10124_v46 = vadd.f32 %v9735_v28, %v1604_v49  ;;  %v1887_v0 = vsel %vm1886_vm3, %v1884_v8, %v1881_v51  ;;  %2718 = vmatpush.msrb.mxu3 %v2697_v44  ;;  %v2696_v49 = vld [vmem:[#allocation10 + $0x30] sm:$0xff] }
 0x215   : > { %v2076_v9 = vsel %vm10129_vm2, %v2073_v56, %v2070_v52  ;;  %v2087_v37 = vsel %vm1703_vm5, %v10034_v34, %v1887_v0  ;;  %v1893_v36 = vmul.f32 %v7575_v1, %v1892_v10 }
 0x216   : > { %2172 = vmatmul.f32.gmra.mxu2 %v2086_v55  ;;  %v1674_v62 = vmin.f32 %v10124_v46, 20.0  ;;  %v2108_v27 = vsel %vm1724_vm4, %v10008_v57, %v2076_v9  ;;  %2719 = vmatpush.msrb.mxu3 %v2696_v49  ;;  %vm1706_vm11 = vcmp.gt.f32.partialorder %v10124_v46, 20.0  ;;  %v3285_v9 = vld [vmem:[#allocation11 + $0x70] sm:$0xff] }
 0x217   : > { %2235 = vmatmul.f32.gmra.mxu3 %v2107_v35  ;;  %3292 = vmatpush.msrb.mxu0 %v3285_v9 }
 0x218   : > { %v7581_v33 = vpop.eup %7580  ;;  %v1751_v28 = vmul.f32 1.442695, %v1674_v62 }
 0x219   : > { %v7583_v12 = vpop.eup %7582  ;;  %v1897_v63 = vadd.f32 1.0, %v7581_v33  ;;  %v1900_v34 = vmul.f32 -0.5, %v7581_v33  ;;  %v1903_v3 = vand.u32 2147483647, %v7581_v33  ;;  %3293 = vmatpush.msrb.mxu0 %v3284_v59 }
 0x21a   : > { %7584 = vpow2.f32 %v1751_v28  ;;  %v1890_v31 = vmul.f32 0.6931472, %v7583_v12 }
 0x21b   : > { %v1607_v15 = vpop.f32.mrf.mxu1  ;;  %7586 = vlog2.f32 %v1897_v63  ;;  %v1901_v23 = vadd.f32 1.0, %v1900_v34  ;;  %vm1904_vm8 = vcmp.lt.f32.partialorder %v1903_v3, 0.0004427343  ;;  %v2694_v63 = vld [vmem:[#allocation10 + $0x20] sm:$0xff] }
 0x21c   : > { %v10145_v17 = vadd.f32 %v10142_v53, %v1607_v15  ;;  %v1896_v57 = vsel %vm1895_vm6, %v1893_v36, %v1890_v31 }
 0x21d   : > { %v2088_v40 = vsel %vm1704_vm7, %v10064_v4, %v1896_v57  ;;  %v1902_v26 = vmul.f32 %v7581_v33, %v1901_v23  ;;  %v2695_v33 = vld [vmem:[#allocation10 + $0x28] sm:$0xff]  ;;  %v2692_v57 = vld [vmem:[#allocation10 + $0x10] sm:$0xff] }
 0x21e   : > { %2175 = vmatmul.f32.gmra.mxu2 %v2087_v37  ;;  %v1675_v2 = vmin.f32 %v10145_v17, 20.0  ;;  %2720 = vmatpush.msrb.mxu3 %v2695_v33  ;;  %vm1707_vm13 = vcmp.gt.f32.partialorder %v10145_v17, 20.0 }
 0x21f   : > { %2238 = vmatmul.f32.gmra.mxu3 %v2108_v27 }
 0x220   : > { %v7585_v20 = vpop.eup %7584  ;;  %v1753_v18 = vmul.f32 1.442695, %v1675_v2  ;;  %2721 = vmatpush.msrb.mxu3 %v2694_v63 }
 0x221   : > { %v7587_v21 = vpop.eup %7586  ;;  %v1906_v45 = vadd.f32 1.0, %v7585_v20  ;;  %v1909_v42 = vmul.f32 -0.5, %v7585_v20  ;;  %v1912_v16 = vand.u32 2147483647, %v7585_v20 }
 0x222   : > { %7588 = vpow2.f32 %v1753_v18  ;;  %v1899_v7 = vmul.f32 0.6931472, %v7587_v21  ;;  %2722 = vmatpush.msrb.mxu3 %v2693_v19 }
 0x223   : > { %v1610_v25 = vpop.f32.mrf.mxu1  ;;  %7590 = vlog2.f32 %v1906_v45  ;;  %v1910_v41 = vadd.f32 1.0, %v1909_v42  ;;  %vm1913_vm10 = vcmp.lt.f32.partialorder %v1912_v16, 0.0004427343 }
 0x224   : > { %v10151_v39 = vadd.f32 %v10142_v53, %v1610_v25  ;;  %v1905_v58 = vsel %vm1904_vm8, %v1902_v26, %v1899_v7  ;;  %2723 = vmatpush.msrb.mxu3 %v2692_v57 }
 0x225   : > { %v2089_v32 = vsel %vm1705_vm9, %v10098_v38, %v1905_v58  ;;  %v1911_v30 = vmul.f32 %v7585_v20, %v1910_v41  ;;  %v2690_v58 = vld [vmem:[#allocation10] sm:$0xff] }
 0x226   : > { %2178 = vmatmul.f32.gmra.mxu2 %v2088_v40  ;;  %v1676_v22 = vmin.f32 %v10151_v39, 20.0  ;;  %vm1708_vm15 = vcmp.gt.f32.partialorder %v10151_v39, 20.0  ;;  %2724 = vmatpush.msrb.mxu3 %v2691_v61 }
 0x228   : > { %v7589_v4 = vpop.eup %7588  ;;  %v1755_v11 = vmul.f32 1.442695, %v1676_v22  ;;  %2725 = vmatpush.msrb.mxu3 %v2690_v58 }
 0x229   : > { %v7591_v1 = vpop.eup %7590  ;;  %v1915_v60 = vadd.f32 1.0, %v7589_v4  ;;  %v1918_v55 = vmul.f32 -0.5, %v7589_v4  ;;  %v1921_v54 = vand.u32 2147483647, %v7589_v4 }
 0x22a   : > { %7592 = vpow2.f32 %v1755_v11  ;;  %v1908_v5 = vmul.f32 0.6931472, %v7591_v1 }
 0x22b   : > { %v1613_v6 = vpop.f32.mrf.mxu1  ;;  %7594 = vlog2.f32 %v1915_v60  ;;  %v1919_v56 = vadd.f32 1.0, %v1918_v55  ;;  %vm1922_vm12 = vcmp.lt.f32.partialorder %v1921_v54, 0.0004427343 }
 0x22c   : > { %v10157_v24 = vadd.f32 %v10142_v53, %v1613_v6  ;;  %v1914_v38 = vsel %vm1913_vm10, %v1911_v30, %v1908_v5 }
 0x22d   : > { %v2090_v62 = vsel %vm1706_vm11, %v10124_v46, %v1914_v38  ;;  %v1920_v0 = vmul.f32 %v7589_v4, %v1919_v56 }
 0x22e   : > { %2181 = vmatmul.f32.gmra.mxu2 %v2089_v32  ;;  %v1677_v47 = vmin.f32 %v10157_v24, 20.0  ;;  %vm1709_vm1 = vcmp.gt.f32.partialorder %v10157_v24, 20.0 }
 0x230   : > { %v7593_v50 = vpop.eup %7592  ;;  %v1757_v35 = vmul.f32 1.442695, %v1677_v47 }
 0x231   : > { %v7595_v51 = vpop.eup %7594  ;;  %v1924_v52 = vadd.f32 1.0, %v7593_v50  ;;  %v1927_v12 = vmul.f32 -0.5, %v7593_v50  ;;  %v1930_v31 = vand.u32 2147483647, %v7593_v50 }
 0x232   : > { %7596 = vpow2.f32 %v1757_v35  ;;  %v1917_v14 = vmul.f32 0.6931472, %v7595_v51 }
 0x233   : > { %v1616_v8 = vpop.f32.mrf.mxu1  ;;  %7598 = vlog2.f32 %v1924_v52  ;;  %v1928_v48 = vadd.f32 1.0, %v1927_v12  ;;  %vm1931_vm14 = vcmp.lt.f32.partialorder %v1930_v31, 0.0004427343 }
 0x234   : > { %v10163_v43 = vadd.f32 %v10142_v53, %v1616_v8  ;;  %v1923_v13 = vsel %vm1922_vm12, %v1920_v0, %v1917_v14  ;;  %v3283_v8 = vld [vmem:[#allocation11 + $0x60] sm:$0xff] }
 0x235   : > { %v2091_v27 = vsel %vm1707_vm13, %v10145_v17, %v1923_v13  ;;  %v1929_v20 = vmul.f32 %v7593_v50, %v1928_v48  ;;  %3294 = vmatpush.msrb.mxu0 %v3283_v8 }
 0x236   : > { %2184 = vmatmul.f32.gmra.mxu2 %v2090_v62  ;;  %v1678_v28 = vmin.f32 %v10163_v43, 20.0  ;;  %vm1710_vm3 = vcmp.gt.f32.partialorder %v10163_v43, 20.0 }
 0x238   : > { %v7597_v46 = vpop.eup %7596  ;;  %v1759_v10 = vmul.f32 1.442695, %v1678_v28 }
 0x239   : > { %v7599_v37 = vpop.eup %7598  ;;  %v1933_v15 = vadd.f32 1.0, %v7597_v46  ;;  %v1936_v18 = vmul.f32 -0.5, %v7597_v46  ;;  %v1939_v7 = vand.u32 2147483647, %v7597_v46 }
 0x23a   : > { %7600 = vpow2.f32 %v1759_v10  ;;  %v1926_v36 = vmul.f32 0.6931472, %v7599_v37 }
 0x23b   : > { %7602 = vlog2.f32 %v1933_v15  ;;  %v1619_v2 = vpop.f32.mrf.mxu1  ;;  %v1937_v3 = vadd.f32 1.0, %v1936_v18  ;;  %vm1940_vm0 = vcmp.lt.f32.partialorder %v1939_v7, 0.0004427343 }
 0x23c   : > { %v10169_v34 = vadd.f32 %v10142_v53, %v1619_v2  ;;  %v1932_v23 = vsel %vm1931_vm14, %v1929_v20, %v1926_v36 }
 0x23d   : > { %v2092_v29 = vsel %vm1708_vm15, %v10151_v39, %v1932_v23  ;;  %v1938_v4 = vmul.f32 %v7597_v46, %v1937_v3  ;;  %v10181_v39 = vld [vmem:[%s12875_s20] ss:$0 sm:$0xff] }
 0x23e   : > { %2187 = vmatmul.f32.gmra.mxu2 %v2091_v27  ;;  %v1679_v21 = vmin.f32 %v10169_v34, 20.0  ;;  %vm1711_vm5 = vcmp.gt.f32.partialorder %v10169_v34, 20.0 }
 0x240   : > { %v7601_v45 = vpop.eup %7600  ;;  %v1761_v40 = vmul.f32 1.442695, %v1679_v21 }
 0x241   : > { %v7603_v17 = vpop.eup %7602  ;;  %v1942_v25 = vadd.f32 1.0, %v7601_v45  ;;  %v1945_v11 = vmul.f32 -0.5, %v7601_v45  ;;  %v1948_v30 = vand.u32 2147483647, %v7601_v45 }
 0x242   : > { %7604 = vpow2.f32 %v1761_v40  ;;  %v1935_v26 = vmul.f32 0.6931472, %v7603_v17 }
 0x243   : > { %v1622_v22 = vpop.f32.mrf.mxu1  ;;  %7606 = vlog2.f32 %v1942_v25  ;;  %v1946_v16 = vadd.f32 1.0, %v1945_v11  ;;  %vm1949_vm2 = vcmp.lt.f32.partialorder %v1948_v30, 0.0004427343 }
 0x244   : > { %v10175_v42 = vadd.f32 %v10142_v53, %v1622_v22  ;;  %v1941_v60 = vsel %vm1940_vm0, %v1938_v4, %v1935_v26 }
 0x245   : > { %v2093_v5 = vsel %vm1709_vm1, %v10157_v24, %v1941_v60  ;;  %v1947_v51 = vmul.f32 %v7601_v45, %v1946_v16 }
 0x246   : > { %2190 = vmatmul.f32.gmra.mxu2 %v2092_v29  ;;  %v1680_v1 = vmin.f32 %v10175_v42, 20.0  ;;  %vm1712_vm7 = vcmp.gt.f32.partialorder %v10175_v42, 20.0 }
 0x248   : > { %v7605_v41 = vpop.eup %7604  ;;  %v1763_v32 = vmul.f32 1.442695, %v1680_v1 }
 0x249   : > { %v7607_v6 = vpop.eup %7606  ;;  %v1951_v44 = vadd.f32 1.0, %v7605_v41  ;;  %v1954_v52 = vmul.f32 -0.5, %v7605_v41  ;;  %v1957_v9 = vand.u32 2147483647, %v7605_v41 }
 0x24a   : > { %7608 = vpow2.f32 %v1763_v32  ;;  %v2146_v47 = vpop.f32.mrf.mxu2  ;;  %v1944_v49 = vmul.f32 0.6931472, %v7607_v6  ;;  %v3282_v32 = vld [vmem:[#allocation11 + $0x58] sm:$0xff] }
 0x24b   : > { %v10186_v55 = vadd.f32 %v10181_v39, %v2146_v47  ;;  %7610 = vlog2.f32 %v1951_v44  ;;  %v1625_v50 = vpop.f32.mrf.mxu1  ;;  %v1955_v28 = vadd.f32 1.0, %v1954_v52  ;;  %vm1958_vm4 = vcmp.lt.f32.partialorder %v1957_v9, 0.0004427343  ;;  %3295 = vmatpush.msrb.mxu0 %v3282_v32 }
 0x24c   : > { %v10190_v38 = vadd.f32 %v10142_v53, %v1625_v50  ;;  %v1950_v62 = vsel %vm1949_vm2, %v1947_v51, %v1944_v49 }
 0x24d   : > { %v2242_v35 = vmin.f32 %v10186_v55, 20.0  ;;  %v2094_v12 = vsel %vm1710_vm3, %v10163_v43, %v1950_v62  ;;  %v1956_v15 = vmul.f32 %v7605_v41, %v1955_v28  ;;  %vm2274_vm9 = vcmp.gt.f32.partialorder %v10186_v55, 20.0 }
 0x24e   : > { %2193 = vmatmul.f32.gmra.mxu2 %v2093_v5  ;;  %v1681_v24 = vmin.f32 %v10190_v38, 20.0  ;;  %vm1713_vm11 = vcmp.gt.f32.partialorder %v10190_v38, 20.0 }
 0x24f   : > { %v2306_v56 = vmul.f32 1.442695, %v2242_v35 }
 0x250   : > { %v7609_v54 = vpop.eup %7608  ;;  %v1765_v33 = vmul.f32 1.442695, %v1681_v24 }
 0x251   : > { %v7611_v14 = vpop.eup %7610  ;;  %7612 = vpow2.f32 %v2306_v56  ;;  %v1960_v0 = vadd.f32 1.0, %v7609_v54  ;;  %v1963_v10 = vmul.f32 -0.5, %v7609_v54  ;;  %v1966_v17 = vand.u32 2147483647, %v7609_v54 }
 0x252   : > { %7614 = vpow2.f32 %v1765_v33  ;;  %v1953_v63 = vmul.f32 0.6931472, %v7611_v14 }
 0x253   : > { %v1628_v46 = vpop.f32.mrf.mxu1  ;;  %7616 = vlog2.f32 %v1960_v0  ;;  %v2149_v13 = vpop.f32.mrf.mxu2  ;;  %v1964_v36 = vadd.f32 1.0, %v1963_v10  ;;  %vm10211_vm6 = vcmp.lt.f32.partialorder %v1966_v17, 0.0004427343  ;;  %v3281_v10 = vld [vmem:[#allocation11 + $0x50] sm:$0xff] }
 0x254   : > { %v10196_v37 = vadd.f32 %v10142_v53, %v1628_v46  ;;  %v10199_v48 = vadd.f32 %v10181_v39, %v2149_v13  ;;  %v1959_v43 = vsel %vm1958_vm4, %v1956_v15, %v1953_v63  ;;  %3296 = vmatpush.msrb.mxu0 %v3281_v10 }
 0x255   : > { %v2095_v23 = vsel %vm1711_vm5, %v10169_v34, %v1959_v43  ;;  %v1965_v29 = vmul.f32 %v7609_v54, %v1964_v36 }
 0x256   : > { %2196 = vmatmul.f32.gmra.mxu2 %v2094_v12  ;;  %v1682_v31 = vmin.f32 %v10196_v37, 20.0  ;;  %v2243_v2 = vmin.f32 %v10199_v48, 20.0  ;;  %vm2275_vm13 = vcmp.gt.f32.partialorder %v10199_v48, 20.0  ;;  %vm1714_vm15 = vcmp.gt.f32.partialorder %v10196_v37, 20.0 }
 0x257   : > { %v7613_v27 = vpop.eup %7612 }
 0x258   : > { %v2370_v19 = vadd.f32 1.0, %v7613_v27  ;;  %v7615_v20 = vpop.eup %7614  ;;  %v1767_v18 = vmul.f32 1.442695, %v1682_v31  ;;  %v2373_v57 = vmul.f32 -0.5, %v7613_v27  ;;  %v2308_v45 = vmul.f32 1.442695, %v2243_v2 }
 0x259   : > { %v7617_v21 = vpop.eup %7616  ;;  %v1969_v25 = vadd.f32 1.0, %v7615_v20  ;;  %v2376_v7 = vand.u32 2147483647, %v7613_v27  ;;  %v1972_v61 = vmul.f32 -0.5, %v7615_v20  ;;  %v1975_v35 = vand.u32 2147483647, %v7615_v20 }
 0x25a   : > { %7618 = vlog2.f32 %v2370_v19  ;;  %v1962_v40 = vmul.f32 0.6931472, %v7617_v21  ;;  %v2374_v59 = vadd.f32 1.0, %v2373_v57 }
 0x25b   : > { %7620 = vpow2.f32 %v1767_v18  ;;  %v1631_v3 = vpop.f32.mrf.mxu1  ;;  %v2152_v22 = vpop.f32.mrf.mxu2  ;;  %vm10220_vm8 = vcmp.lt.f32.partialorder %v2376_v7, 0.0004427343  ;;  %v1973_v47 = vadd.f32 1.0, %v1972_v61  ;;  %vm10239_vm10 = vcmp.lt.f32.partialorder %v1975_v35, 0.0004427343 }
 0x25c   : > { %7622 = vpow2.f32 %v2308_v45  ;;  %v10206_v26 = vadd.f32 %v10142_v53, %v1631_v3  ;;  %v10209_v4 = vadd.f32 %v10181_v39, %v2152_v22  ;;  %v1968_v58 = vsel %vm10211_vm6, %v1965_v29, %v1962_v40 }
 0x25d   : > { %7624 = vlog2.f32 %v1969_v25  ;;  %v2375_v5 = vmul.f32 %v7613_v27, %v2374_v59  ;;  %v2096_v50 = vsel %vm1712_vm7, %v10175_v42, %v1968_v58  ;;  %v1974_v28 = vmul.f32 %v7615_v20, %v1973_v47 }
 0x25e   : > { %2199 = vmatmul.f32.gmra.mxu2 %v2095_v23  ;;  %v1683_v11 = vmin.f32 %v10206_v26, 20.0  ;;  %v2244_v60 = vmin.f32 %v10209_v4, 20.0  ;;  %vm2276_vm1 = vcmp.gt.f32.partialorder %v10209_v4, 20.0  ;;  %vm1715_vm3 = vcmp.gt.f32.partialorder %v10206_v26, 20.0 }
 0x260   : > { %v7619_v1 = vpop.eup %7618  ;;  %v1769_v16 = vmul.f32 1.442695, %v1683_v11  ;;  %v2310_v49 = vmul.f32 1.442695, %v2244_v60 }
 0x261   : > { %v10224_v6 = vpop.eup %7620  ;;  %v2372_v44 = vmul.f32 0.6931472, %v7619_v1 }
 0x262   : > { %v7623_v30 = vpop.eup %7622  ;;  %v1978_v51 = vadd.f32 1.0, %v10224_v6  ;;  %7626 = vpow2.f32 %v1769_v16  ;;  %v1981_v0 = vmul.f32 -0.5, %v10224_v6  ;;  %v1984_v19 = vand.u32 2147483647, %v10224_v6 }
 0x263   : > { %v7625_v52 = vpop.eup %7624  ;;  %v2378_v56 = vsel %vm10220_vm8, %v2375_v5, %v2372_v44  ;;  %v2379_v24 = vadd.f32 1.0, %v7623_v30  ;;  %7628 = vpow2.f32 %v2310_v49  ;;  %v1634_v62 = vpop.f32.mrf.mxu1  ;;  %v2382_v14 = vmul.f32 -0.5, %v7623_v30 }
 0x264   : > { %v2658_v8 = vsel %vm2274_vm9, %v10186_v55, %v2378_v56  ;;  %v1971_v54 = vmul.f32 0.6931472, %v7625_v52  ;;  %v2155_v33 = vpop.f32.mrf.mxu2  ;;  %v10233_v42 = vadd.f32 %v10142_v53, %v1634_v62  ;;  %v2385_v27 = vand.u32 2147483647, %v7623_v30 }
 0x265   : > { %2726 = vmatmul.f32.vlgmr.msrb.gmra.mxu3 %v2658_v8  ;;  %7630 = vlog2.f32 %v2379_v24  ;;  %v10237_v12 = vadd.f32 %v10181_v39, %v2155_v33  ;;  %v2383_v46 = vadd.f32 1.0, %v2382_v14  ;;  %v1982_v31 = vadd.f32 1.0, %v1981_v0 }
 0x266   : > { %2202 = vmatmul.f32.gmra.mxu2 %v2096_v50  ;;  %7632 = vlog2.f32 %v1978_v51  ;;  %v1684_v55 = vmin.f32 %v10233_v42, 20.0  ;;  %v1977_v63 = vsel %vm10239_vm10, %v1974_v28, %v1971_v54  ;;  %vm2386_vm12 = vcmp.lt.f32.partialorder %v2385_v27, 0.0004427343  ;;  %v3280_v54 = vld [vmem:[#allocation11 + $0x48] sm:$0xff] }
 0x267   : > { %v2245_v53 = vmin.f32 %v10237_v12, 20.0  ;;  %v2097_v36 = vsel %vm1713_vm11, %v10190_v38, %v1977_v63  ;;  %v2384_v17 = vmul.f32 %v7623_v30, %v2383_v46  ;;  %v1983_v3 = vmul.f32 %v10224_v6, %v1982_v31  ;;  %3297 = vmatpush.msrb.mxu0 %v3280_v54 }
 0x268   : > { %v7627_v13 = vpop.eup %7626  ;;  %v1771_v15 = vmul.f32 1.442695, %v1684_v55  ;;  %vm1985_vm14 = vcmp.lt.f32.partialorder %v1984_v19, 0.0004427343  ;;  %vm2277_vm5 = vcmp.gt.f32.partialorder %v10237_v12, 20.0  ;;  %vm1716_vm7 = vcmp.gt.f32.partialorder %v10233_v42, 20.0 }
 0x269   : > { %v7629_v43 = vpop.eup %7628  ;;  %v2312_v2 = vmul.f32 1.442695, %v2245_v53  ;;  %v1987_v20 = vadd.f32 1.0, %v7627_v13  ;;  %v1990_v21 = vmul.f32 -0.5, %v7627_v13  ;;  %v1993_v41 = vand.u32 2147483647, %v7627_v13 }
 0x26a   : > { %7634 = vpow2.f32 %v1771_v15  ;;  %v2388_v57 = vadd.f32 1.0, %v7629_v43  ;;  %v2391_v40 = vmul.f32 -0.5, %v7629_v43  ;;  %v2394_v22 = vand.u32 2147483647, %v7629_v43 }
 0x26b   : > { %v7631_v18 = vpop.eup %7630  ;;  %7636 = vpow2.f32 %v2312_v2  ;;  %v1991_v59 = vadd.f32 1.0, %v1990_v21  ;;  %vm1994_vm2 = vcmp.lt.f32.partialorder %v1993_v41, 0.0004427343 }
 0x26c   : > { %v7633_v45 = vpop.eup %7632  ;;  %v2381_v23 = vmul.f32 0.6931472, %v7631_v18  ;;  %7638 = vlog2.f32 %v2388_v57  ;;  %v2392_v34 = vadd.f32 1.0, %v2391_v40  ;;  %vm10259_vm0 = vcmp.lt.f32.partialorder %v2394_v22, 0.0004427343 }
 0x26d   : > { %v1980_v25 = vmul.f32 0.6931472, %v7633_v45  ;;  %7640 = vlog2.f32 %v1987_v20  ;;  %v1992_v44 = vmul.f32 %v7627_v13, %v1991_v59  ;;  %v3279_v20 = vld [vmem:[#allocation11 + $0x40] sm:$0xff] }
 0x26e   : > { %2205 = vmatmul.f32.gmra.mxu2 %v2097_v36  ;;  %v2387_v38 = vsel %vm2386_vm12, %v2384_v17, %v2381_v23  ;;  %v2393_v49 = vmul.f32 %v7629_v43, %v2392_v34  ;;  %3298 = vmatpush.msrb.mxu0 %v3279_v20 }
 0x26f   : > { %v2659_v29 = vsel %vm2275_vm13, %v10199_v48, %v2387_v38  ;;  %v1986_v7 = vsel %vm1985_vm14, %v1983_v3, %v1980_v25 }
 0x270   : > { %2729 = vmatmul.f32.gmra.mxu3 %v2659_v29  ;;  %v7635_v11 = vpop.eup %7634  ;;  %v2098_v60 = vsel %vm1714_vm15, %v10196_v37, %v1986_v7 }
 0x271   : > { %v2158_v61 = vpop.f32.mrf.mxu2  ;;  %v7637_v1 = vpop.eup %7636  ;;  %v1996_v32 = vadd.f32 1.0, %v7635_v11  ;;  %v1999_v37 = vmul.f32 -0.5, %v7635_v11  ;;  %v2002_v55 = vand.u32 2147483647, %v7635_v11 }
 0x272   : > { %v10254_v58 = vadd.f32 %v10181_v39, %v2158_v61  ;;  %v7639_v6 = vpop.eup %7638  ;;  %v2397_v5 = vadd.f32 1.0, %v7637_v1  ;;  %v2400_v50 = vmul.f32 -0.5, %v7637_v1  ;;  %v2403_v33 = vand.u32 2147483647, %v7637_v1 }
 0x273   : > { %v7641_v47 = vpop.eup %7640  ;;  %v2390_v30 = vmul.f32 0.6931472, %v7639_v6  ;;  %7642 = vlog2.f32 %v1996_v32  ;;  %v2000_v28 = vadd.f32 1.0, %v1999_v37  ;;  %vm2003_vm6 = vcmp.lt.f32.partialorder %v2002_v55, 0.0004427343  ;;  %v3278_v6 = vld [vmem:[#allocation11 + $0x38] sm:$0xff] }
 0x274   : > { %v2246_v48 = vmin.f32 %v10254_v58, 20.0  ;;  %v1989_v51 = vmul.f32 0.6931472, %v7641_v47  ;;  %7644 = vlog2.f32 %v2397_v5  ;;  %v2401_v8 = vadd.f32 1.0, %v2400_v50  ;;  %3299 = vmatpush.msrb.mxu0 %v3278_v6  ;;  %v3275_v6 = vld [vmem:[#allocation11 + $0x20] sm:$0xff] }
 0x275   : > { %v2396_v52 = vsel %vm10259_vm0, %v2393_v49, %v2390_v30  ;;  %vm2404_vm4 = vcmp.lt.f32.partialorder %v2403_v33, 0.0004427343  ;;  %v2001_v27 = vmul.f32 %v7635_v11, %v2000_v28  ;;  %vm2278_vm9 = vcmp.gt.f32.partialorder %v10254_v58, 20.0 }
 0x276   : > { %v2314_v35 = vmul.f32 1.442695, %v2246_v48  ;;  %2208 = vmatmul.f32.gmra.mxu2 %v2098_v60  ;;  %v2660_v56 = vsel %vm2276_vm1, %v10209_v4, %v2396_v52  ;;  %v1995_v24 = vsel %vm1994_vm2, %v1992_v44, %v1989_v51  ;;  %v2402_v10 = vmul.f32 %v7637_v1, %v2401_v8 }
 0x277   : > { %v2099_v9 = vsel %vm1715_vm3, %v10206_v26, %v1995_v24  ;;  %v3277_v24 = vld [vmem:[#allocation11 + $0x30] sm:$0xff] }
 0x278   : > { %7646 = vpow2.f32 %v2314_v35  ;;  %2732 = vmatmul.f32.gmra.mxu3 %v2660_v56  ;;  %3300 = vmatpush.msrb.mxu0 %v3277_v24 }
 0x279   : > { %v2161_v62 = vpop.f32.mrf.mxu2  ;;  %v7643_v0 = vpop.eup %7642 }
 0x27a   : > { %v10268_v14 = vadd.f32 %v10181_v39, %v2161_v62  ;;  %v7645_v63 = vpop.eup %7644  ;;  %v1998_v53 = vmul.f32 0.6931472, %v7643_v0 }
 0x27b   : > { %v2399_v46 = vmul.f32 0.6931472, %v7645_v63 }
 0x27c   : > { %v2247_v4 = vmin.f32 %v10268_v14, 20.0  ;;  %v2004_v2 = vsel %vm2003_vm6, %v2001_v27, %v1998_v53  ;;  %vm2279_vm11 = vcmp.gt.f32.partialorder %v10268_v14, 20.0 }
 0x27d   : > { %v2405_v31 = vsel %vm2404_vm4, %v2402_v10, %v2399_v46  ;;  %v2100_v57 = vsel %vm1716_vm7, %v10233_v42, %v2004_v2 }
 0x27e   : > { %v7647_v13 = vpop.eup %7646  ;;  %v2316_v15 = vmul.f32 1.442695, %v2247_v4  ;;  %2211 = vmatmul.f32.gmra.mxu2 %v2099_v9  ;;  %v2661_v26 = vsel %vm2277_vm5, %v10237_v12, %v2405_v31 }
 0x27f   : > { %v2406_v43 = vadd.f32 1.0, %v7647_v13  ;;  %v2409_v19 = vmul.f32 -0.5, %v7647_v13  ;;  %v2412_v12 = vand.u32 2147483647, %v7647_v13 }
 0x280   : > { %7648 = vpow2.f32 %v2316_v15  ;;  %2735 = vmatmul.f32.gmra.mxu3 %v2661_v26 }
 0x281   : > { %v2164_v36 = vpop.f32.mrf.mxu2  ;;  %7650 = vlog2.f32 %v2406_v43  ;;  %v2410_v45 = vadd.f32 1.0, %v2409_v19  ;;  %vm2413_vm8 = vcmp.lt.f32.partialorder %v2412_v12, 0.0004427343  ;;  %v3276_v12 = vld [vmem:[#allocation11 + $0x28] sm:$0xff] }
 0x282   : > { %v10276_v18 = vadd.f32 %v10181_v39, %v2164_v36  ;;  %3301 = vmatpush.msrb.mxu0 %v3276_v12 }
 0x283   : > { %v2411_v29 = vmul.f32 %v7647_v13, %v2410_v45 }
 0x284   : > { %v2248_v21 = vmin.f32 %v10276_v18, 20.0  ;;  %vm2280_vm13 = vcmp.gt.f32.partialorder %v10276_v18, 20.0  ;;  %3302 = vmatpush.msrb.mxu0 %v3275_v6 }
 0x286   : > { %v7649_v23 = vpop.eup %7648  ;;  %v2318_v17 = vmul.f32 1.442695, %v2248_v21  ;;  %2214 = vmatmul.f32.gmra.mxu2 %v2100_v57 }
 0x287   : > { %v2415_v40 = vadd.f32 1.0, %v7649_v23  ;;  %v7651_v25 = vpop.eup %7650  ;;  %v2418_v7 = vmul.f32 -0.5, %v7649_v23  ;;  %v2421_v60 = vand.u32 2147483647, %v7649_v23 }
 0x288   : > { %7652 = vpow2.f32 %v2318_v17  ;;  %v2408_v38 = vmul.f32 0.6931472, %v7651_v25 }
 0x289   : > { %v2167_v3 = vpop.f32.mrf.mxu2  ;;  %7654 = vlog2.f32 %v2415_v40  ;;  %v2419_v34 = vadd.f32 1.0, %v2418_v7  ;;  %vm2422_vm10 = vcmp.lt.f32.partialorder %v2421_v60, 0.0004427343 }
 0x28a   : > { %v10282_v22 = vadd.f32 %v10181_v39, %v2167_v3  ;;  %v2414_v42 = vsel %vm2413_vm8, %v2411_v29, %v2408_v38 }
 0x28b   : > { %v2662_v61 = vsel %vm2278_vm9, %v10254_v58, %v2414_v42  ;;  %v2420_v44 = vmul.f32 %v7649_v23, %v2419_v34 }
 0x28c   : > { %v2249_v59 = vmin.f32 %v10282_v22, 20.0  ;;  %2738 = vmatmul.f32.gmra.mxu3 %v2662_v61  ;;  %vm2281_vm15 = vcmp.gt.f32.partialorder %v10282_v22, 20.0 }
 0x28e   : > { %v7653_v11 = vpop.eup %7652  ;;  %v2320_v1 = vmul.f32 1.442695, %v2249_v59 }
 0x28f   : > { %v2424_v41 = vadd.f32 1.0, %v7653_v11  ;;  %v7655_v32 = vpop.eup %7654  ;;  %v2427_v5 = vmul.f32 -0.5, %v7653_v11  ;;  %v2430_v37 = vand.u32 2147483647, %v7653_v11 }
 0x290   : > { %7656 = vpow2.f32 %v2320_v1  ;;  %v2417_v16 = vmul.f32 0.6931472, %v7655_v32 }
 0x291   : > { %v2170_v48 = vpop.f32.mrf.mxu2  ;;  %7658 = vlog2.f32 %v2424_v41  ;;  %v2428_v50 = vadd.f32 1.0, %v2427_v5  ;;  %vm2431_vm12 = vcmp.lt.f32.partialorder %v2430_v37, 0.0004427343 }
 0x292   : > { %v10288_v47 = vadd.f32 %v10181_v39, %v2170_v48  ;;  %v2423_v58 = vsel %vm2422_vm10, %v2420_v44, %v2417_v16 }
 0x293   : > { %v2663_v49 = vsel %vm2279_vm11, %v10268_v14, %v2423_v58  ;;  %v2429_v54 = vmul.f32 %v7653_v11, %v2428_v50  ;;  %v10296_v14 = vpop.f32.mrf.mxu3 }
 0x294   : > { %v2250_v30 = vmin.f32 %v10288_v47, 20.0  ;;  %2741 = vmatmul.f32.gmra.mxu3 %v2663_v49  ;;  %vm2282_vm1 = vcmp.gt.f32.partialorder %v10288_v47, 20.0 }
 0x296   : > { %v7657_v35 = vpop.eup %7656  ;;  %v2322_v51 = vmul.f32 1.442695, %v2250_v30 }
 0x297   : > { %v2433_v52 = vadd.f32 1.0, %v7657_v35  ;;  %v7659_v56 = vpop.eup %7658  ;;  %v2436_v33 = vmul.f32 -0.5, %v7657_v35  ;;  %v2439_v46 = vand.u32 2147483647, %v7657_v35 }
 0x298   : > { %7660 = vpow2.f32 %v2322_v51  ;;  %v2426_v8 = vmul.f32 0.6931472, %v7659_v56 }
 0x299   : > { %v2173_v62 = vpop.f32.mrf.mxu2  ;;  %7662 = vlog2.f32 %v2433_v52  ;;  %v2437_v63 = vadd.f32 1.0, %v2436_v33  ;;  %vm2440_vm14 = vcmp.lt.f32.partialorder %v2439_v46, 0.0004427343 }
 0x29a   : > { %v10294_v28 = vadd.f32 %v10181_v39, %v2173_v62  ;;  %v2432_v0 = vsel %vm2431_vm12, %v2429_v54, %v2426_v8 }
 0x29b   : > { %v2664_v55 = vsel %vm2280_vm13, %v10276_v18, %v2432_v0  ;;  %v2438_v31 = vmul.f32 %v7657_v35, %v2437_v63  ;;  %v10307_v20 = vpop.f32.mrf.mxu3 }
 0x29c   : > { %v2251_v9 = vmin.f32 %v10294_v28, 20.0  ;;  %2744 = vmatmul.f32.gmra.mxu3 %v2664_v55  ;;  %vm2283_vm3 = vcmp.gt.f32.partialorder %v10294_v28, 20.0 }
 0x29e   : > { %v7661_v4 = vpop.eup %7660  ;;  %v2324_v53 = vmul.f32 1.442695, %v2251_v9 }
 0x29f   : > { %v2442_v10 = vadd.f32 1.0, %v7661_v4  ;;  %v7663_v13 = vpop.eup %7662  ;;  %v2445_v43 = vmul.f32 -0.5, %v7661_v4  ;;  %v2448_v45 = vand.u32 2147483647, %v7661_v4 }
 0x2a0   : > { %7664 = vpow2.f32 %v2324_v53  ;;  %v2435_v27 = vmul.f32 0.6931472, %v7663_v13 }
 0x2a1   : > { %v2176_v15 = vpop.f32.mrf.mxu2  ;;  %7666 = vlog2.f32 %v2442_v10  ;;  %v2446_v18 = vadd.f32 1.0, %v2445_v43  ;;  %vm2449_vm0 = vcmp.lt.f32.partialorder %v2448_v45, 0.0004427343 }
 0x2a2   : > { %v10302_v26 = vadd.f32 %v10181_v39, %v2176_v15  ;;  %v2441_v2 = vsel %vm2440_vm14, %v2438_v31, %v2435_v27  ;;  %v3274_v31 = vld [vmem:[#allocation11 + $0x18] sm:$0xff] }
 0x2a3   : > { %v2665_v19 = vsel %vm2281_vm15, %v10282_v22, %v2441_v2  ;;  %v2447_v3 = vmul.f32 %v7661_v4, %v2446_v18  ;;  %v10315_v1 = vpop.f32.mrf.mxu3  ;;  %3303 = vmatpush.msrb.mxu0 %v3274_v31 }
 0x2a4   : > { %v2252_v36 = vmin.f32 %v10302_v26, 20.0  ;;  %2747 = vmatmul.f32.gmra.mxu3 %v2665_v19  ;;  %vm2284_vm5 = vcmp.gt.f32.partialorder %v10302_v26, 20.0 }
 0x2a6   : > { %v7665_v57 = vpop.eup %7664  ;;  %v2326_v21 = vmul.f32 1.442695, %v2252_v36 }
 0x2a7   : > { %v2451_v23 = vadd.f32 1.0, %v7665_v57  ;;  %v7667_v17 = vpop.eup %7666  ;;  %v2454_v38 = vmul.f32 -0.5, %v7665_v57  ;;  %v2457_v11 = vand.u32 2147483647, %v7665_v57 }
 0x2a8   : > { %7668 = vpow2.f32 %v2326_v21  ;;  %v2444_v25 = vmul.f32 0.6931472, %v7667_v17 }
 0x2a9   : > { %v2179_v40 = vpop.f32.mrf.mxu2  ;;  %7670 = vlog2.f32 %v2451_v23  ;;  %v2455_v59 = vadd.f32 1.0, %v2454_v38  ;;  %vm2458_vm2 = vcmp.lt.f32.partialorder %v2457_v11, 0.0004427343  ;;  %v3867_v38 = vld [vmem:[#allocation13 + $0x78] sm:$0xff] }
 0x2aa   : > { %v10310_v29 = vadd.f32 %v10181_v39, %v2179_v40  ;;  %v2450_v7 = vsel %vm2449_vm0, %v2447_v3, %v2444_v25  ;;  %3872 = vmatpush.msrb.mxu1 %v3867_v38 }
 0x2ab   : > { %v2666_v42 = vsel %vm2282_vm1, %v10288_v47, %v2450_v7  ;;  %v2456_v44 = vmul.f32 %v7665_v57, %v2455_v59  ;;  %v10323_v8 = vpop.f32.mrf.mxu3  ;;  %v3273_v7 = vld [vmem:[#allocation11 + $0x10] sm:$0xff] }
 0x2ac   : > { %v2253_v22 = vmin.f32 %v10310_v29, 20.0  ;;  %2750 = vmatmul.f32.gmra.mxu3 %v2666_v42  ;;  %vm2285_vm7 = vcmp.gt.f32.partialorder %v10310_v29, 20.0  ;;  %3304 = vmatpush.msrb.mxu0 %v3273_v7 }
 0x2ae   : > { %v7669_v61 = vpop.eup %7668  ;;  %v2328_v34 = vmul.f32 1.442695, %v2253_v22 }
 0x2af   : > { %v2460_v60 = vadd.f32 1.0, %v7669_v61  ;;  %v7671_v41 = vpop.eup %7670  ;;  %v2463_v32 = vmul.f32 -0.5, %v7669_v61  ;;  %v2466_v50 = vand.u32 2147483647, %v7669_v61 }
 0x2b0   : > { %7672 = vpow2.f32 %v2328_v34  ;;  %v2453_v16 = vmul.f32 0.6931472, %v7671_v41 }
 0x2b1   : > { %v2182_v48 = vpop.f32.mrf.mxu2  ;;  %7674 = vlog2.f32 %v2460_v60  ;;  %v2464_v49 = vadd.f32 1.0, %v2463_v32  ;;  %vm2467_vm4 = vcmp.lt.f32.partialorder %v2466_v50, 0.0004427343 }
 0x2b2   : > { %v10318_v5 = vadd.f32 %v10181_v39, %v2182_v48  ;;  %v2459_v47 = vsel %vm2458_vm2, %v2456_v44, %v2453_v16 }
 0x2b3   : > { %v2667_v30 = vsel %vm2283_vm3, %v10294_v28, %v2459_v47  ;;  %v2465_v24 = vmul.f32 %v7669_v61, %v2464_v49  ;;  %v10335_v36 = vpop.f32.mrf.mxu3 }
 0x2b4   : > { %v2254_v58 = vmin.f32 %v10318_v5, 20.0  ;;  %2753 = vmatmul.f32.gmra.mxu3 %v2667_v30  ;;  %vm2286_vm9 = vcmp.gt.f32.partialorder %v10318_v5, 20.0 }
 0x2b6   : > { %v7673_v35 = vpop.eup %7672  ;;  %v2330_v51 = vmul.f32 1.442695, %v2254_v58  ;;  %v3866_v58 = vld [vmem:[#allocation13 + $0x70] sm:$0xff] }
 0x2b7   : > { %v7675_v37 = vpop.eup %7674  ;;  %v2469_v52 = vadd.f32 1.0, %v7673_v35  ;;  %v2472_v62 = vmul.f32 -0.5, %v7673_v35  ;;  %v2475_v63 = vand.u32 2147483647, %v7673_v35  ;;  %3873 = vmatpush.msrb.mxu1 %v3866_v58 }
 0x2b8   : > { %7676 = vpow2.f32 %v2330_v51  ;;  %v2462_v56 = vmul.f32 0.6931472, %v7675_v37 }
 0x2b9   : > { %v2185_v54 = vpop.f32.mrf.mxu2  ;;  %7678 = vlog2.f32 %v2469_v52  ;;  %v2473_v55 = vadd.f32 1.0, %v2472_v62  ;;  %vm2476_vm6 = vcmp.lt.f32.partialorder %v2475_v63, 0.0004427343 }
 0x2ba   : > { %v10326_v33 = vadd.f32 %v10181_v39, %v2185_v54  ;;  %v2468_v28 = vsel %vm2467_vm4, %v2465_v24, %v2462_v56 }
 0x2bb   : > { %v2668_v0 = vsel %vm2284_vm5, %v10302_v26, %v2468_v28  ;;  %v2474_v15 = vmul.f32 %v7673_v35, %v2473_v55  ;;  %v10345_v11 = vpop.f32.mrf.mxu3  ;;  %v3272_v55 = vld [vmem:[#allocation11 + $0x8] sm:$0xff] }
 0x2bc   : > { %v2255_v9 = vmin.f32 %v10326_v33, 20.0  ;;  %2756 = vmatmul.f32.gmra.mxu3 %v2668_v0  ;;  %vm2287_vm11 = vcmp.gt.f32.partialorder %v10326_v33, 20.0  ;;  %3305 = vmatpush.msrb.mxu0 %v3272_v55 }
 0x2be   : > { %v7677_v4 = vpop.eup %7676  ;;  %v2332_v53 = vmul.f32 1.442695, %v2255_v9 }
 0x2bf   : > { %v7679_v46 = vpop.eup %7678  ;;  %v2478_v10 = vadd.f32 1.0, %v7677_v4  ;;  %v2481_v27 = vmul.f32 -0.5, %v7677_v4  ;;  %v2484_v21 = vand.u32 2147483647, %v7677_v4 }
 0x2c0   : > { %7680 = vpow2.f32 %v2332_v53  ;;  %v2471_v13 = vmul.f32 0.6931472, %v7679_v46 }
 0x2c1   : > { %v2188_v43 = vpop.f32.mrf.mxu2  ;;  %7682 = vlog2.f32 %v2478_v10  ;;  %v2482_v57 = vadd.f32 1.0, %v2481_v27  ;;  %vm2485_vm8 = vcmp.lt.f32.partialorder %v2484_v21, 0.0004427343  ;;  %v3271_v21 = vld [vmem:[#allocation11] sm:$0xff] }
 0x2c2   : > { %v10332_v26 = vadd.f32 %v10181_v39, %v2188_v43  ;;  %v2477_v2 = vsel %vm2476_vm6, %v2474_v15, %v2471_v13  ;;  %3306 = vmatpush.msrb.mxu0 %v3271_v21 }
 0x2c3   : > { %v2669_v19 = vsel %vm2285_vm7, %v10310_v29, %v2477_v2  ;;  %v2483_v25 = vmul.f32 %v7677_v4, %v2482_v57  ;;  %v10353_v62 = vpop.f32.mrf.mxu3  ;;  %v3865_v57 = vld [vmem:[#allocation13 + $0x68] sm:$0xff] }
 0x2c4   : > { %v2256_v18 = vmin.f32 %v10332_v26, 20.0  ;;  %2759 = vmatmul.f32.gmra.mxu3 %v2669_v19  ;;  %vm2288_vm13 = vcmp.gt.f32.partialorder %v10332_v26, 20.0  ;;  %3874 = vmatpush.msrb.mxu1 %v3865_v57 }
 0x2c6   : > { %v7681_v45 = vpop.eup %7680  ;;  %v2334_v23 = vmul.f32 1.442695, %v2256_v18 }
 0x2c7   : > { %v7683_v17 = vpop.eup %7682  ;;  %v2487_v12 = vadd.f32 1.0, %v7681_v45  ;;  %v2490_v3 = vmul.f32 -0.5, %v7681_v45  ;;  %v2493_v60 = vand.u32 2147483647, %v7681_v45 }
 0x2c8   : > { %7684 = vpow2.f32 %v2334_v23  ;;  %v2480_v40 = vmul.f32 0.6931472, %v7683_v17 }
 0x2c9   : > { %v2191_v22 = vpop.f32.mrf.mxu2  ;;  %7686 = vlog2.f32 %v2487_v12  ;;  %v2491_v34 = vadd.f32 1.0, %v2490_v3  ;;  %vm2494_vm10 = vcmp.lt.f32.partialorder %v2493_v60, 0.0004427343 }
 0x2ca   : > { %v10340_v29 = vadd.f32 %v10181_v39, %v2191_v22  ;;  %v2486_v42 = vsel %vm2485_vm8, %v2483_v25, %v2480_v40  ;;  %v10372_v22 = vld [vmem:[%s12884_s8] ss:$0 sm:$0xff] }
 0x2cb   : > { %v2670_v59 = vsel %vm2286_vm9, %v10318_v5, %v2486_v42  ;;  %v2492_v44 = vmul.f32 %v7681_v45, %v2491_v34  ;;  %v10361_v45 = vpop.f32.mrf.mxu3 }
 0x2cc   : > { %v2257_v61 = vmin.f32 %v10340_v29, 20.0  ;;  %2762 = vmatmul.f32.gmra.mxu3 %v2670_v59  ;;  %vm2289_vm15 = vcmp.gt.f32.partialorder %v10340_v29, 20.0 }
 0x2ce   : > { %v7685_v41 = vpop.eup %7684  ;;  %v2336_v32 = vmul.f32 1.442695, %v2257_v61 }
 0x2cf   : > { %v7687_v6 = vpop.eup %7686  ;;  %v2496_v48 = vadd.f32 1.0, %v7685_v41  ;;  %v2499_v47 = vmul.f32 -0.5, %v7685_v41  ;;  %v2502_v37 = vand.u32 2147483647, %v7685_v41 }
 0x2d0   : > { %7688 = vpow2.f32 %v2336_v32  ;;  %v2489_v16 = vmul.f32 0.6931472, %v7687_v6 }
 0x2d1   : > { %v2194_v30 = vpop.f32.mrf.mxu2  ;;  %7690 = vlog2.f32 %v2496_v48  ;;  %v2500_v51 = vadd.f32 1.0, %v2499_v47  ;;  %vm2503_vm12 = vcmp.lt.f32.partialorder %v2502_v37, 0.0004427343 }
 0x2d2   : > { %v10348_v5 = vadd.f32 %v10181_v39, %v2194_v30  ;;  %v2495_v49 = vsel %vm2494_vm10, %v2492_v44, %v2489_v16 }
 0x2d3   : > { %v2671_v50 = vsel %vm2287_vm11, %v10326_v33, %v2495_v49  ;;  %v2501_v0 = vmul.f32 %v7685_v41, %v2500_v51  ;;  %v3864_v41 = vld [vmem:[#allocation13 + $0x60] sm:$0xff] }
 0x2d4   : > { %v2258_v35 = vmin.f32 %v10348_v5, 20.0  ;;  %2765 = vmatmul.f32.gmra.mxu3 %v2671_v50  ;;  %3875 = vmatpush.msrb.mxu1 %v3864_v41  ;;  %vm2290_vm1 = vcmp.gt.f32.partialorder %v10348_v5, 20.0 }
 0x2d6   : > { %v7689_v52 = vpop.eup %7688  ;;  %v2338_v56 = vmul.f32 1.442695, %v2258_v35 }
 0x2d7   : > { %v7691_v24 = vpop.eup %7690  ;;  %v2505_v54 = vadd.f32 1.0, %v7689_v52  ;;  %v2508_v9 = vmul.f32 -0.5, %v7689_v52  ;;  %v2511_v13 = vand.u32 2147483647, %v7689_v52 }
 0x2d8   : > { %7692 = vpow2.f32 %v2338_v56  ;;  %v2498_v28 = vmul.f32 0.6931472, %v7691_v24 }
 0x2d9   : > { %v2197_v63 = vpop.f32.mrf.mxu2  ;;  %7694 = vlog2.f32 %v2505_v54  ;;  %v2509_v10 = vadd.f32 1.0, %v2508_v9  ;;  %vm2512_vm14 = vcmp.lt.f32.partialorder %v2511_v13, 0.0004427343 }
 0x2da   : > { %v10356_v33 = vadd.f32 %v10181_v39, %v2197_v63  ;;  %v2504_v4 = vsel %vm2503_vm12, %v2501_v0, %v2498_v28 }
 0x2db   : > { %v2672_v53 = vsel %vm2288_vm13, %v10332_v26, %v2504_v4  ;;  %v2510_v19 = vmul.f32 %v7689_v52, %v2509_v10 }
 0x2dc   : > { %v2259_v46 = vmin.f32 %v10356_v33, 20.0  ;;  %2768 = vmatmul.f32.gmra.mxu3 %v2672_v53  ;;  %vm2291_vm3 = vcmp.gt.f32.partialorder %v10356_v33, 20.0 }
 0x2de   : > { %v7693_v15 = vpop.eup %7692  ;;  %v2340_v27 = vmul.f32 1.442695, %v2259_v46 }
 0x2df   : > { %v7695_v31 = vpop.eup %7694  ;;  %v2514_v43 = vadd.f32 1.0, %v7693_v15  ;;  %v2517_v18 = vmul.f32 -0.5, %v7693_v15  ;;  %v2520_v3 = vand.u32 2147483647, %v7693_v15 }
 0x2e0   : > { %7696 = vpow2.f32 %v2340_v27  ;;  %v2507_v2 = vmul.f32 0.6931472, %v7695_v31 }
 0x2e1   : > { %v2200_v23 = vpop.f32.mrf.mxu2  ;;  %7698 = vlog2.f32 %v2514_v43  ;;  %v2518_v25 = vadd.f32 1.0, %v2517_v18  ;;  %vm2521_vm0 = vcmp.lt.f32.partialorder %v2520_v3, 0.0004427343 }
 0x2e2   : > { %v10364_v26 = vadd.f32 %v10181_v39, %v2200_v23  ;;  %v2513_v17 = vsel %vm2512_vm14, %v2510_v19, %v2507_v2 }
 0x2e3   : > { %v2673_v12 = vsel %vm2289_vm15, %v10340_v29, %v2513_v17  ;;  %v2519_v34 = vmul.f32 %v7693_v15, %v2518_v25 }
 0x2e4   : > { %v2260_v40 = vmin.f32 %v10364_v26, 20.0  ;;  %2771 = vmatmul.f32.gmra.mxu3 %v2673_v12  ;;  %vm2292_vm5 = vcmp.gt.f32.partialorder %v10364_v26, 20.0 }
 0x2e6   : > { %v7697_v38 = vpop.eup %7696  ;;  %v2342_v7 = vmul.f32 1.442695, %v2260_v40 }
 0x2e7   : > { %v7699_v42 = vpop.eup %7698  ;;  %v2523_v59 = vadd.f32 1.0, %v7697_v38  ;;  %v2526_v60 = vmul.f32 -0.5, %v7697_v38  ;;  %v2529_v49 = vand.u32 2147483647, %v7697_v38 }
 0x2e8   : > { %7700 = vpow2.f32 %v2342_v7  ;;  %v2516_v61 = vmul.f32 0.6931472, %v7699_v42  ;;  %v2727_v32 = vpop.f32.mrf.mxu3 }
 0x2e9   : > { %v2203_v29 = vpop.f32.mrf.mxu2  ;;  %7702 = vlog2.f32 %v2523_v59  ;;  %v10379_v16 = vadd.f32 %v10372_v22, %v2727_v32  ;;  %v2527_v30 = vadd.f32 1.0, %v2526_v60  ;;  %vm2530_vm2 = vcmp.lt.f32.partialorder %v2529_v49, 0.0004427343 }
 0x2ea   : > { %v10375_v6 = vadd.f32 %v10181_v39, %v2203_v29  ;;  %v2522_v48 = vsel %vm2521_vm0, %v2519_v34, %v2516_v61 }
 0x2eb   : > { %v2674_v44 = vsel %vm2290_vm1, %v10348_v5, %v2522_v48  ;;  %v2823_v58 = vmin.f32 %v10379_v16, 20.0  ;;  %v2528_v56 = vmul.f32 %v7697_v38, %v2527_v30  ;;  %v10387_v5 = vld [vmem:[%s12875_s20] ss:$0 sm:$0xff]  ;;  %vm2855_vm7 = vcmp.gt.f32.partialorder %v10379_v16, 20.0 }
 0x2ec   : > { %v2261_v47 = vmin.f32 %v10375_v6, 20.0  ;;  %2774 = vmatmul.f32.gmra.mxu3 %v2674_v44  ;;  %v10400_v27 = vadd.f32 %v10387_v5, %v10296_v14  ;;  %v10415_v41 = vadd.f32 %v10387_v5, %v10307_v20  ;;  %vm2293_vm6 = vcmp.gt.f32.partialorder %v10375_v6, 20.0 }
 0x2ed   : > { %v2887_v51 = vmul.f32 1.442695, %v2823_v58  ;;  %v3862_v58 = vld [vmem:[#allocation13 + $0x50] sm:$0xff] }
 0x2ee   : > { %v7701_v50 = vpop.eup %7700  ;;  %v2344_v35 = vmul.f32 1.442695, %v2261_v47  ;;  %v2266_v59 = vmin.f32 %v10400_v27, 20.0 }
 0x2ef   : > { %v7703_v39 = vpop.eup %7702  ;;  %v2532_v37 = vadd.f32 1.0, %v7701_v50  ;;  %v2535_v24 = vmul.f32 -0.5, %v7701_v50  ;;  %v2538_v13 = vand.u32 2147483647, %v7701_v50 }
 0x2f0   : > { %7704 = vpow2.f32 %v2344_v35  ;;  %v2525_v52 = vmul.f32 0.6931472, %v7703_v39 }
 0x2f1   : > { %7706 = vpow2.f32 %v2887_v51  ;;  %v2206_v54 = vpop.f32.mrf.mxu2  ;;  %v2536_v4 = vadd.f32 1.0, %v2535_v24  ;;  %vm2539_vm4 = vcmp.lt.f32.partialorder %v2538_v13, 0.0004427343 }
 0x2f2   : > { %v10390_v28 = vadd.f32 %v10387_v5, %v2206_v54  ;;  %v2531_v0 = vsel %vm2530_vm2, %v2528_v56, %v2525_v52  ;;  %7708 = vlog2.f32 %v2532_v37 }
 0x2f3   : > { %v2675_v9 = vsel %vm2291_vm3, %v10356_v33, %v2531_v0  ;;  %v2730_v63 = vpop.f32.mrf.mxu3  ;;  %v3863_v33 = vld [vmem:[#allocation13 + $0x58] sm:$0xff]  ;;  %v2537_v19 = vmul.f32 %v7701_v50, %v2536_v4 }
 0x2f4   : > { %v2262_v55 = vmin.f32 %v10390_v28, 20.0  ;;  %2777 = vmatmul.f32.gmra.mxu3 %v2675_v9  ;;  %v10396_v53 = vadd.f32 %v10372_v22, %v2730_v63  ;;  %3876 = vmatpush.msrb.mxu1 %v3863_v33  ;;  %vm2294_vm10 = vcmp.gt.f32.partialorder %v10390_v28, 20.0 }
 0x2f6   : > { %v7705_v46 = vpop.eup %7704  ;;  %v2346_v10 = vmul.f32 1.442695, %v2262_v55  ;;  %v2824_v31 = vmin.f32 %v10396_v53, 20.0  ;;  %3877 = vmatpush.msrb.mxu1 %v3862_v58  ;;  %vm2856_vm13 = vcmp.gt.f32.partialorder %v10396_v53, 20.0 }
 0x2f7   : > { %v7707_v15 = vpop.eup %7706  ;;  %v2541_v43 = vadd.f32 1.0, %v7705_v46  ;;  %v2544_v18 = vmul.f32 -0.5, %v7705_v46  ;;  %v2547_v42 = vand.u32 2147483647, %v7705_v46 }
 0x2f8   : > { %v7709_v2 = vpop.eup %7708  ;;  %7710 = vpow2.f32 %v2346_v10  ;;  %v2951_v57 = vadd.f32 1.0, %v7707_v15  ;;  %v2889_v21 = vmul.f32 1.442695, %v2824_v31  ;;  %v2954_v12 = vmul.f32 -0.5, %v7707_v15 }
 0x2f9   : > { %v2209_v23 = vpop.f32.mrf.mxu2  ;;  %v2534_v17 = vmul.f32 0.6931472, %v7709_v2  ;;  %7712 = vlog2.f32 %v2541_v43  ;;  %v2545_v7 = vadd.f32 1.0, %v2544_v18  ;;  %v2957_v32 = vand.u32 2147483647, %v7707_v15 }
 0x2fa   : > { %v10404_v40 = vadd.f32 %v10387_v5, %v2209_v23  ;;  %7714 = vlog2.f32 %v2951_v57  ;;  %v2955_v34 = vadd.f32 1.0, %v2954_v12  ;;  %vm2548_vm8 = vcmp.lt.f32.partialorder %v2547_v42, 0.0004427343 }
 0x2fb   : > { %7716 = vpow2.f32 %v2889_v21  ;;  %v2540_v14 = vsel %vm2539_vm4, %v2537_v19, %v2534_v17  ;;  %v2733_v38 = vpop.f32.mrf.mxu3  ;;  %v2546_v50 = vmul.f32 %v7705_v46, %v2545_v7  ;;  %vm2958_vm9 = vcmp.lt.f32.partialorder %v2957_v32, 0.0004427343 }
 0x2fc   : > { %v2263_v25 = vmin.f32 %v10404_v40, 20.0  ;;  %v2676_v3 = vsel %vm2292_vm5, %v10364_v26, %v2540_v14  ;;  %v10411_v61 = vadd.f32 %v10372_v22, %v2733_v38  ;;  %v2956_v37 = vmul.f32 %v7707_v15, %v2955_v34 }
 0x2fd   : > { %2780 = vmatmul.f32.gmra.mxu3 %v2676_v3  ;;  %v2354_v31 = vmul.f32 1.442695, %v2266_v59  ;;  %v2267_v2 = vmin.f32 %v10415_v41, 20.0  ;;  %vm2295_vm15 = vcmp.gt.f32.partialorder %v10404_v40, 20.0 }
 0x2fe   : > { %v7711_v60 = vpop.eup %7710  ;;  %v2348_v29 = vmul.f32 1.442695, %v2263_v25  ;;  %v2825_v48 = vmin.f32 %v10411_v61, 20.0  ;;  %vm2857_vm1 = vcmp.gt.f32.partialorder %v10411_v61, 20.0 }
 0x2ff   : > { %v7713_v26 = vpop.eup %7712  ;;  %v2550_v44 = vadd.f32 1.0, %v7711_v60  ;;  %v2553_v47 = vmul.f32 -0.5, %v7711_v60  ;;  %v2556_v13 = vand.u32 2147483647, %v7711_v60 }
 0x300   : > { %v7715_v30 = vpop.eup %7714  ;;  %7718 = vpow2.f32 %v2348_v29  ;;  %v2543_v49 = vmul.f32 0.6931472, %v7713_v26  ;;  %v2891_v35 = vmul.f32 1.442695, %v2825_v48 }
 0x301   : > { %v7717_v20 = vpop.eup %7716  ;;  %v2212_v51 = vpop.f32.mrf.mxu2  ;;  %v2953_v39 = vmul.f32 0.6931472, %v7715_v30  ;;  %7720 = vlog2.f32 %v2550_v44  ;;  %v2554_v9 = vadd.f32 1.0, %v2553_v47  ;;  %vm2557_vm11 = vcmp.lt.f32.partialorder %v2556_v13, 0.0004427343 }
 0x302   : > { %v10421_v52 = vadd.f32 %v10387_v5, %v2212_v51  ;;  %v2549_v56 = vsel %vm2548_vm8, %v2546_v50, %v2543_v49  ;;  %v2960_v24 = vadd.f32 1.0, %v7717_v20  ;;  %7722 = vpow2.f32 %v2891_v35  ;;  %v3861_v35 = vld [vmem:[#allocation13 + $0x48] sm:$0xff] }
 0x303   : > { %v2677_v54 = vsel %vm2293_vm6, %v10375_v6, %v2549_v56  ;;  %v2959_v0 = vsel %vm2958_vm9, %v2956_v37, %v2953_v39  ;;  %v2736_v63 = vpop.f32.mrf.mxu3  ;;  %v2963_v46 = vmul.f32 -0.5, %v7717_v20  ;;  %v2555_v21 = vmul.f32 %v7711_v60, %v2554_v9  ;;  %3878 = vmatpush.msrb.mxu1 %v3861_v35 }
 0x304   : > { %v2264_v55 = vmin.f32 %v10421_v52, 20.0  ;;  %v3239_v4 = vsel %vm2855_vm7, %v10379_v16, %v2959_v0  ;;  %7724 = vlog2.f32 %v2960_v24  ;;  %v10431_v10 = vadd.f32 %v10372_v22, %v2736_v63 }
 0x305   : > { %2783 = vmatmul.f32.gmra.mxu3 %v2677_v54  ;;  %3307 = vmatmul.f32.vlgmr.msrb.gmra.mxu0 %v3239_v4  ;;  %v2964_v43 = vadd.f32 1.0, %v2963_v46  ;;  %v2966_v23 = vand.u32 2147483647, %v7717_v20  ;;  %v10445_v54 = vadd.f32 %v10387_v5, %v10315_v1  ;;  %vm2296_vm3 = vcmp.gt.f32.partialorder %v10421_v52, 20.0 }
 0x306   : > { %v7719_v15 = vpop.eup %7718  ;;  %v2350_v6 = vmul.f32 1.442695, %v2264_v55  ;;  %v2826_v19 = vmin.f32 %v10431_v10, 20.0  ;;  %vm2858_vm5 = vcmp.gt.f32.partialorder %v10431_v10, 20.0  ;;  %vm2298_vm8 = vcmp.gt.f32.partialorder %v10400_v27, 20.0 }
 0x307   : > { %v7721_v33 = vpop.eup %7720  ;;  %v2559_v18 = vadd.f32 1.0, %v7719_v15  ;;  %v2562_v57 = vmul.f32 -0.5, %v7719_v15  ;;  %v2965_v7 = vmul.f32 %v7717_v20, %v2964_v43  ;;  %vm2967_vm12 = vcmp.lt.f32.partialorder %v2966_v23, 0.0004427343  ;;  %v3860_v23 = vld [vmem:[#allocation13 + $0x40] sm:$0xff] }
 0x308   : > { %7726 = vpow2.f32 %v2350_v6  ;;  %v2552_v16 = vmul.f32 0.6931472, %v7721_v33  ;;  %v7723_v17 = vpop.eup %7722  ;;  %v2893_v12 = vmul.f32 1.442695, %v2826_v19  ;;  %v2565_v48 = vand.u32 2147483647, %v7719_v15  ;;  %3879 = vmatpush.msrb.mxu1 %v3860_v23 }
 0x309   : > { %v2215_v14 = vpop.f32.mrf.mxu2  ;;  %7728 = vlog2.f32 %v2559_v18  ;;  %v2969_v42 = vadd.f32 1.0, %v7723_v17  ;;  %v2563_v60 = vadd.f32 1.0, %v2562_v57  ;;  %v2972_v32 = vmul.f32 -0.5, %v7723_v17 }
 0x30a   : > { %v7725_v25 = vpop.eup %7724  ;;  %v10437_v3 = vadd.f32 %v10387_v5, %v2215_v14  ;;  %v2558_v38 = vsel %vm2557_vm11, %v2555_v21, %v2552_v16  ;;  %7730 = vpow2.f32 %v2893_v12  ;;  %v2975_v37 = vand.u32 2147483647, %v7723_v17 }
 0x30b   : > { %v2678_v59 = vsel %vm2294_vm10, %v10390_v28, %v2558_v38  ;;  %v2962_v34 = vmul.f32 0.6931472, %v7725_v25  ;;  %7732 = vlog2.f32 %v2969_v42  ;;  %v2973_v30 = vadd.f32 1.0, %v2972_v32 }
 0x30c   : > { %v2265_v29 = vmin.f32 %v10437_v3, 20.0  ;;  %7734 = vpow2.f32 %v2354_v31  ;;  %v2356_v28 = vmul.f32 1.442695, %v2267_v2  ;;  %v2564_v50 = vmul.f32 %v7719_v15, %v2563_v60 }
 0x30d   : > { %2786 = vmatmul.f32.gmra.mxu3 %v2678_v59  ;;  %v2968_v26 = vsel %vm2967_vm12, %v2965_v7, %v2962_v34  ;;  %vm2566_vm14 = vcmp.lt.f32.partialorder %v2565_v48, 0.0004427343  ;;  %v2974_v55 = vmul.f32 %v7723_v17, %v2973_v30  ;;  %vm2976_vm0 = vcmp.lt.f32.partialorder %v2975_v37, 0.0004427343 }
 0x30e   : > { %v7727_v44 = vpop.eup %7726  ;;  %v2352_v47 = vmul.f32 1.442695, %v2265_v29  ;;  %v3240_v58 = vsel %vm2856_vm13, %v10396_v53, %v2968_v26  ;;  %v2268_v19 = vmin.f32 %v10445_v54, 20.0  ;;  %v10464_v59 = vadd.f32 %v10387_v5, %v10323_v8 }
 0x30f   : > { %v7729_v49 = vpop.eup %7728  ;;  %3310 = vmatmul.f32.gmra.mxu0 %v3240_v58  ;;  %v2568_v20 = vadd.f32 1.0, %v7727_v44  ;;  %v2739_v51 = vpop.f32.mrf.mxu3  ;;  %v2571_v56 = vmul.f32 -0.5, %v7727_v44  ;;  %v2574_v33 = vand.u32 2147483647, %v7727_v44  ;;  %vm2297_vm7 = vcmp.gt.f32.partialorder %v10437_v3, 20.0 }
 0x310   : > { %7736 = vpow2.f32 %v2352_v47  ;;  %v2561_v39 = vmul.f32 0.6931472, %v7729_v49  ;;  %v7731_v24 = vpop.eup %7730  ;;  %v10448_v53 = vadd.f32 %v10372_v22, %v2739_v51  ;;  %v2358_v42 = vmul.f32 1.442695, %v2268_v19 }
 0x311   : > { %7738 = vlog2.f32 %v2568_v20  ;;  %v7733_v0 = vpop.eup %7732  ;;  %v2978_v63 = vadd.f32 1.0, %v7731_v24  ;;  %v2981_v15 = vmul.f32 -0.5, %v7731_v24  ;;  %v2572_v1 = vadd.f32 1.0, %v2571_v56 }
 0x312   : > { %v2567_v9 = vsel %vm2566_vm14, %v2564_v50, %v2561_v39  ;;  %v2827_v4 = vmin.f32 %v10448_v53, 20.0  ;;  %v2971_v13 = vmul.f32 0.6931472, %v7733_v0  ;;  %v10453_v31 = vpop.eup %7734  ;;  %v2984_v25 = vand.u32 2147483647, %v7731_v24 }
 0x313   : > { %v2679_v46 = vsel %vm2295_vm15, %v10404_v40, %v2567_v9  ;;  %7740 = vlog2.f32 %v2978_v63  ;;  %v2982_v57 = vadd.f32 1.0, %v2981_v15  ;;  %v2586_v21 = vadd.f32 1.0, %v10453_v31 }
 0x314   : > { %v2895_v6 = vmul.f32 1.442695, %v2827_v4  ;;  %v2977_v43 = vsel %vm2976_vm0, %v2974_v55, %v2971_v13  ;;  %7742 = vpow2.f32 %v2356_v28  ;;  %v2573_v14 = vmul.f32 %v7727_v44, %v2572_v1 }
 0x315   : > { %2789 = vmatmul.f32.gmra.mxu3 %v2679_v46  ;;  %v3241_v18 = vsel %vm2857_vm1, %v10411_v61, %v2977_v43  ;;  %vm2575_vm2 = vcmp.lt.f32.partialorder %v2574_v33, 0.0004427343  ;;  %v2983_v26 = vmul.f32 %v7731_v24, %v2982_v57  ;;  %vm2985_vm4 = vcmp.lt.f32.partialorder %v2984_v25, 0.0004427343 }
 0x316   : > { %v7737_v2 = vpop.eup %7736  ;;  %7744 = vpow2.f32 %v2895_v6  ;;  %v2589_v47 = vmul.f32 -0.5, %v10453_v31  ;;  %v2269_v28 = vmin.f32 %v10464_v59, 20.0  ;;  %v2592_v9 = vand.u32 2147483647, %v10453_v31 }
 0x317   : > { %v7739_v40 = vpop.eup %7738  ;;  %3313 = vmatmul.f32.gmra.mxu0 %v3241_v18  ;;  %v2577_v16 = vadd.f32 1.0, %v7737_v2  ;;  %v2742_v17 = vpop.f32.mrf.mxu3  ;;  %v2580_v38 = vmul.f32 -0.5, %v7737_v2  ;;  %v2583_v49 = vand.u32 2147483647, %v7737_v2  ;;  %v10482_v63 = vadd.f32 %v10387_v5, %v10335_v36 }
 0x318   : > { %v2570_v12 = vmul.f32 0.6931472, %v7739_v40  ;;  %v10460_v7 = vadd.f32 %v10372_v22, %v2742_v17  ;;  %v2590_v0 = vadd.f32 1.0, %v2589_v47  ;;  %vm10493_vm9 = vcmp.lt.f32.partialorder %v2592_v9, 0.0004427343  ;;  %v3859_v17 = vld [vmem:[#allocation13 + $0x38] sm:$0xff] }
 0x319   : > { %7746 = vlog2.f32 %v2577_v16  ;;  %v7741_v61 = vpop.eup %7740  ;;  %v2581_v44 = vadd.f32 1.0, %v2580_v38  ;;  %vm2584_vm6 = vcmp.lt.f32.partialorder %v2583_v49, 0.0004427343  ;;  %v2270_v40 = vmin.f32 %v10482_v63, 20.0  ;;  %3880 = vmatpush.msrb.mxu1 %v3859_v17 }
 0x31a   : > { %v2576_v34 = vsel %vm2575_vm2, %v2573_v14, %v2570_v12  ;;  %v2828_v60 = vmin.f32 %v10460_v7, 20.0  ;;  %v2980_v32 = vmul.f32 0.6931472, %v7741_v61  ;;  %v10469_v48 = vpop.eup %7742  ;;  %7748 = vlog2.f32 %v2586_v21 }
 0x31b   : > { %v2680_v29 = vsel %vm2296_vm3, %v10421_v52, %v2576_v34  ;;  %7750 = vpow2.f32 %v2358_v42  ;;  %v2582_v37 = vmul.f32 %v7737_v2, %v2581_v44  ;;  %v2595_v56 = vadd.f32 1.0, %v10469_v48 }
 0x31c   : > { %v7745_v58 = vpop.eup %7744  ;;  %v2897_v30 = vmul.f32 1.442695, %v2828_v60  ;;  %v2986_v8 = vsel %vm2985_vm4, %v2983_v26, %v2980_v32  ;;  %v2598_v43 = vmul.f32 -0.5, %v10469_v48  ;;  %v2591_v19 = vmul.f32 %v10453_v31, %v2590_v0 }
 0x31d   : > { %2792 = vmatmul.f32.gmra.mxu3 %v2680_v29  ;;  %v3242_v52 = vsel %vm2858_vm5, %v10431_v10, %v2986_v8  ;;  %v2987_v50 = vadd.f32 1.0, %v7745_v58  ;;  %v2990_v35 = vmul.f32 -0.5, %v7745_v58  ;;  %v2360_v10 = vmul.f32 1.442695, %v2269_v28 }
 0x31e   : > { %7752 = vpow2.f32 %v2897_v30  ;;  %v2993_v6 = vand.u32 2147483647, %v7745_v58  ;;  %v2599_v14 = vadd.f32 1.0, %v2598_v43  ;;  %vm2859_vm11 = vcmp.gt.f32.partialorder %v10448_v53, 20.0 }
 0x31f   : > { %v7747_v20 = vpop.eup %7746  ;;  %3316 = vmatmul.f32.gmra.mxu0 %v3242_v52  ;;  %v2745_v51 = vpop.f32.mrf.mxu3  ;;  %7754 = vlog2.f32 %v2987_v50  ;;  %v2991_v15 = vadd.f32 1.0, %v2990_v35  ;;  %v2362_v34 = vmul.f32 1.442695, %v2270_v40  ;;  %v10506_v60 = vadd.f32 %v10387_v5, %v10345_v11 }
 0x320   : > { %v2579_v39 = vmul.f32 0.6931472, %v7747_v20  ;;  %v10477_v24 = vadd.f32 %v10372_v22, %v2745_v51  ;;  %v7749_v55 = vpop.eup %7748  ;;  %7756 = vlog2.f32 %v2595_v56  ;;  %vm2994_vm10 = vcmp.lt.f32.partialorder %v2993_v6, 0.0004427343 }
 0x321   : > { %v10487_v1 = vpop.eup %7750  ;;  %v2588_v36 = vmul.f32 0.6931472, %v7749_v55  ;;  %7758 = vpow2.f32 %v2360_v10  ;;  %v2992_v21 = vmul.f32 %v7745_v58, %v2991_v15  ;;  %v2601_v32 = vand.u32 2147483647, %v10469_v48 }
 0x322   : > { %v2585_v4 = vsel %vm2584_vm6, %v2582_v37, %v2579_v39  ;;  %v2829_v46 = vmin.f32 %v10477_v24, 20.0  ;;  %v2604_v31 = vadd.f32 1.0, %v10487_v1  ;;  %v2607_v8 = vmul.f32 -0.5, %v10487_v1  ;;  %v3858_v37 = vld [vmem:[#allocation13 + $0x30] sm:$0xff] }
 0x323   : > { %v2681_v13 = vsel %vm2297_vm7, %v10437_v3, %v2585_v4  ;;  %v2594_v61 = vsel %vm10493_vm9, %v2591_v19, %v2588_v36  ;;  %vm2299_vm12 = vcmp.gt.f32.partialorder %v10415_v41, 20.0  ;;  %v2600_v28 = vmul.f32 %v10469_v48, %v2599_v14  ;;  %3881 = vmatpush.msrb.mxu1 %v3858_v37 }
 0x324   : > { %v7753_v33 = vpop.eup %7752  ;;  %v2899_v2 = vmul.f32 1.442695, %v2829_v46  ;;  %v2682_v58 = vsel %vm2298_vm8, %v10400_v27, %v2594_v61  ;;  %v2271_v50 = vmin.f32 %v10506_v60, 20.0  ;;  %vm10520_vm13 = vcmp.lt.f32.partialorder %v2601_v32, 0.0004427343 }
 0x325   : > { %2795 = vmatmul.f32.gmra.mxu3 %v2681_v13  ;;  %v7755_v18 = vpop.eup %7754  ;;  %v2996_v57 = vadd.f32 1.0, %v7753_v33  ;;  %v2999_v23 = vmul.f32 -0.5, %v7753_v33  ;;  %v3002_v30 = vand.u32 2147483647, %v7753_v33  ;;  %v2608_v0 = vadd.f32 1.0, %v2607_v8 }
 0x326   : > { %7760 = vpow2.f32 %v2899_v2  ;;  %v2989_v16 = vmul.f32 0.6931472, %v7755_v18  ;;  %v7757_v42 = vpop.eup %7756  ;;  %vm2860_vm15 = vcmp.gt.f32.partialorder %v10460_v7, 20.0  ;;  %v2364_v46 = vmul.f32 1.442695, %v2271_v50 }
 0x327   : > { %v2748_v12 = vpop.f32.mrf.mxu3  ;;  %7762 = vlog2.f32 %v2996_v57  ;;  %v3000_v44 = vadd.f32 1.0, %v2999_v23  ;;  %v10511_v47 = vpop.eup %7758  ;;  %vm3003_vm14 = vcmp.lt.f32.partialorder %v3002_v30, 0.0004427343  ;;  %v10533_v13 = vadd.f32 %v10387_v5, %v10353_v62 }
 0x328   : > { %v10499_v25 = vadd.f32 %v10372_v22, %v2748_v12  ;;  %v2995_v38 = vsel %vm2994_vm10, %v2992_v21, %v2989_v16  ;;  %7764 = vlog2.f32 %v2604_v31  ;;  %v2613_v48 = vadd.f32 1.0, %v10511_v47 }
 0x329   : > { %v3243_v29 = vsel %vm2859_vm11, %v10448_v53, %v2995_v38  ;;  %v2597_v53 = vmul.f32 0.6931472, %v7757_v42  ;;  %7766 = vpow2.f32 %v2362_v34  ;;  %v3001_v51 = vmul.f32 %v7753_v33, %v3000_v44 }
 0x32a   : > { %v2830_v26 = vmin.f32 %v10499_v25, 20.0  ;;  %3319 = vmatmul.f32.gmra.mxu0 %v3243_v29  ;;  %v2610_v6 = vand.u32 2147483647, %v10487_v1  ;;  %v2616_v18 = vmul.f32 -0.5, %v10511_v47  ;;  %vm2300_vm0 = vcmp.gt.f32.partialorder %v10445_v54, 20.0 }
 0x32b   : > { %v2603_v10 = vsel %vm10520_vm13, %v2600_v28, %v2597_v53  ;;  %v2609_v3 = vmul.f32 %v10487_v1, %v2608_v0  ;;  %v2272_v16 = vmin.f32 %v10533_v13, 20.0  ;;  %vm2861_vm3 = vcmp.gt.f32.partialorder %v10477_v24, 20.0 }
 0x32c   : > { %v7761_v11 = vpop.eup %7760  ;;  %v2901_v49 = vmul.f32 1.442695, %v2830_v26  ;;  %v2683_v36 = vsel %vm2299_vm12, %v10415_v41, %v2603_v10  ;;  %vm10547_vm1 = vcmp.lt.f32.partialorder %v2610_v6, 0.0004427343  ;;  %v2617_v31 = vadd.f32 1.0, %v2616_v18 }
 0x32d   : > { %2798 = vmatmul.f32.gmra.mxu3 %v2682_v58  ;;  %v7763_v52 = vpop.eup %7762  ;;  %v3005_v27 = vadd.f32 1.0, %v7761_v11  ;;  %v3008_v39 = vmul.f32 -0.5, %v7761_v11  ;;  %v3011_v19 = vand.u32 2147483647, %v7761_v11  ;;  %v2366_v29 = vmul.f32 1.442695, %v2272_v16 }
 0x32e   : > { %7768 = vpow2.f32 %v2901_v49  ;;  %v2998_v35 = vmul.f32 0.6931472, %v7763_v52  ;;  %v7765_v4 = vpop.eup %7764  ;;  %v10560_v32 = vadd.f32 %v10387_v5, %v10361_v45  ;;  %v2619_v44 = vand.u32 2147483647, %v10511_v47 }
 0x32f   : > { %v2751_v56 = vpop.f32.mrf.mxu3  ;;  %7770 = vlog2.f32 %v3005_v27  ;;  %v3009_v33 = vadd.f32 1.0, %v3008_v39  ;;  %v10538_v2 = vpop.eup %7766  ;;  %vm3012_vm2 = vcmp.lt.f32.partialorder %v3011_v19, 0.0004427343  ;;  %vm2301_vm4 = vcmp.gt.f32.partialorder %v10464_v59, 20.0  ;;  %v3857_v39 = vld [vmem:[#allocation13 + $0x28] sm:$0xff] }
 0x330   : > { %v10526_v9 = vadd.f32 %v10372_v22, %v2751_v56  ;;  %v3004_v55 = vsel %vm3003_vm14, %v3001_v51, %v2998_v35  ;;  %7772 = vlog2.f32 %v2613_v48  ;;  %v2622_v38 = vadd.f32 1.0, %v10538_v2  ;;  %3882 = vmatpush.msrb.mxu1 %v3857_v39 }
 0x331   : > { %v3244_v15 = vsel %vm2860_vm15, %v10460_v7, %v3004_v55  ;;  %v2606_v7 = vmul.f32 0.6931472, %v7765_v4  ;;  %7774 = vpow2.f32 %v2364_v46  ;;  %v3010_v17 = vmul.f32 %v7761_v11, %v3009_v33 }
 0x332   : > { %v2831_v43 = vmin.f32 %v10526_v9, 20.0  ;;  %3322 = vmatmul.f32.gmra.mxu0 %v3244_v15  ;;  %v2625_v53 = vmul.f32 -0.5, %v10538_v2  ;;  %v2618_v28 = vmul.f32 %v10511_v47, %v2617_v31  ;;  %v2273_v50 = vmin.f32 %v10560_v32, 20.0 }
 0x333   : > { %v2612_v42 = vsel %vm10547_vm1, %v2609_v3, %v2606_v7  ;;  %vm10574_vm5 = vcmp.lt.f32.partialorder %v2619_v44, 0.0004427343  ;;  %vm2862_vm7 = vcmp.gt.f32.partialorder %v10499_v25, 20.0  ;;  %v2628_v15 = vand.u32 2147483647, %v10538_v2 }
 0x334   : > { %v7769_v62 = vpop.eup %7768  ;;  %v2903_v40 = vmul.f32 1.442695, %v2831_v43  ;;  %v2684_v11 = vsel %vm2300_vm0, %v10445_v54, %v2612_v42  ;;  %v2626_v56 = vadd.f32 1.0, %v2625_v53  ;;  %v2368_v4 = vmul.f32 1.442695, %v2273_v50 }
 0x335   : > { %2801 = vmatmul.f32.gmra.mxu3 %v2683_v36  ;;  %v7771_v57 = vpop.eup %7770  ;;  %v3014_v41 = vadd.f32 1.0, %v7769_v62  ;;  %v3017_v12 = vmul.f32 -0.5, %v7769_v62  ;;  %v3020_v49 = vand.u32 2147483647, %v7769_v62  ;;  %vm2302_vm8 = vcmp.gt.f32.partialorder %v10482_v63, 20.0 }
 0x336   : > { %7776 = vpow2.f32 %v2903_v40  ;;  %v3007_v23 = vmul.f32 0.6931472, %v7771_v57  ;;  %v7773_v34 = vpop.eup %7772  ;;  %v2627_v7 = vmul.f32 %v10538_v2, %v2626_v56  ;;  %vm10596_vm9 = vcmp.lt.f32.partialorder %v2628_v15, 0.0004427343 }
 0x337   : > { %v2754_v14 = vpop.f32.mrf.mxu3  ;;  %7778 = vlog2.f32 %v3014_v41  ;;  %v3018_v30 = vadd.f32 1.0, %v3017_v12  ;;  %v10565_v8 = vpop.eup %7774  ;;  %vm3021_vm6 = vcmp.lt.f32.partialorder %v3020_v49, 0.0004427343  ;;  %vm2863_vm11 = vcmp.gt.f32.partialorder %v10526_v9, 20.0 }
 0x338   : > { %v10553_v1 = vadd.f32 %v10372_v22, %v2754_v14  ;;  %v3013_v61 = vsel %vm3012_vm2, %v3010_v17, %v3007_v23  ;;  %7780 = vlog2.f32 %v2622_v38  ;;  %v2631_v47 = vadd.f32 1.0, %v10565_v8  ;;  %v3856_v23 = vld [vmem:[#allocation13 + $0x20] sm:$0xff] }
 0x339   : > { %v3245_v26 = vsel %vm2861_vm3, %v10477_v24, %v3013_v61  ;;  %v2615_v24 = vmul.f32 0.6931472, %v7773_v34  ;;  %7782 = vpow2.f32 %v2366_v29  ;;  %v3019_v35 = vmul.f32 %v7769_v62, %v3018_v30  ;;  %3883 = vmatpush.msrb.mxu1 %v3856_v23 }
 0x33a   : > { %v2832_v58 = vmin.f32 %v10553_v1, 20.0  ;;  %3325 = vmatmul.f32.gmra.mxu0 %v3245_v26  ;;  %v2634_v18 = vmul.f32 -0.5, %v10565_v8  ;;  %v2637_v34 = vand.u32 2147483647, %v10565_v8  ;;  %vm2303_vm12 = vcmp.gt.f32.partialorder %v10506_v60, 20.0 }
 0x33b   : > { %v2621_v55 = vsel %vm10574_vm5, %v2618_v28, %v2615_v24  ;;  %vm2864_vm15 = vcmp.gt.f32.partialorder %v10553_v1, 20.0  ;;  %vm2304_vm2 = vcmp.gt.f32.partialorder %v10533_v13, 20.0 }
 0x33c   : > { %v7777_v45 = vpop.eup %7776  ;;  %v2905_v5 = vmul.f32 1.442695, %v2832_v58  ;;  %v2685_v36 = vsel %vm2301_vm4, %v10464_v59, %v2621_v55  ;;  %v2635_v12 = vadd.f32 1.0, %v2634_v18  ;;  %vm10618_vm13 = vcmp.lt.f32.partialorder %v2637_v34, 0.0004427343 }
 0x33d   : > { %2804 = vmatmul.f32.gmra.mxu3 %v2684_v11  ;;  %v7779_v52 = vpop.eup %7778  ;;  %v3023_v54 = vadd.f32 1.0, %v7777_v45  ;;  %v3026_v51 = vmul.f32 -0.5, %v7777_v45  ;;  %v3029_v19 = vand.u32 2147483647, %v7777_v45 }
 0x33e   : > { %7784 = vpow2.f32 %v2905_v5  ;;  %v3016_v27 = vmul.f32 0.6931472, %v7779_v52  ;;  %v7781_v10 = vpop.eup %7780 }
 0x33f   : > { %v2757_v37 = vpop.f32.mrf.mxu3  ;;  %7786 = vlog2.f32 %v3023_v54  ;;  %v3027_v43 = vadd.f32 1.0, %v3026_v51  ;;  %v10588_v33 = vpop.eup %7782  ;;  %vm3030_vm10 = vcmp.lt.f32.partialorder %v3029_v19, 0.0004427343 }
 0x340   : > { %v10580_v0 = vadd.f32 %v10372_v22, %v2757_v37  ;;  %v3022_v48 = vsel %vm3021_vm6, %v3019_v35, %v3016_v27  ;;  %7788 = vlog2.f32 %v2631_v47  ;;  %v2640_v2 = vadd.f32 1.0, %v10588_v33 }
 0x341   : > { %v3246_v46 = vsel %vm2862_vm7, %v10499_v25, %v3022_v48  ;;  %v2624_v25 = vmul.f32 0.6931472, %v7781_v10  ;;  %7790 = vpow2.f32 %v2368_v4  ;;  %v3028_v21 = vmul.f32 %v7777_v45, %v3027_v43 }
 0x342   : > { %v2833_v6 = vmin.f32 %v10580_v0, 20.0  ;;  %3328 = vmatmul.f32.gmra.mxu0 %v3246_v46  ;;  %v2643_v11 = vmul.f32 -0.5, %v10588_v33  ;;  %v2636_v45 = vmul.f32 %v10565_v8, %v2635_v12  ;;  %v2646_v56 = vand.u32 2147483647, %v10588_v33 }
 0x343   : > { %v2630_v38 = vsel %vm10596_vm9, %v2627_v7, %v2624_v25  ;;  %vm2865_vm3 = vcmp.gt.f32.partialorder %v10580_v0, 20.0  ;;  %vm2305_vm6 = vcmp.gt.f32.partialorder %v10560_v32, 20.0 }
 0x344   : > { %v7785_v62 = vpop.eup %7784  ;;  %v2907_v40 = vmul.f32 1.442695, %v2833_v6  ;;  %v2686_v58 = vsel %vm2302_vm8, %v10482_v63, %v2630_v38  ;;  %v2644_v54 = vadd.f32 1.0, %v2643_v11  ;;  %vm10637_vm0 = vcmp.lt.f32.partialorder %v2646_v56, 0.0004427343 }
 0x345   : > { %2807 = vmatmul.f32.gmra.mxu3 %v2685_v36  ;;  %v7787_v3 = vpop.eup %7786  ;;  %v3032_v16 = vadd.f32 1.0, %v7785_v62  ;;  %v3035_v41 = vmul.f32 -0.5, %v7785_v62  ;;  %v3038_v30 = vand.u32 2147483647, %v7785_v62 }
 0x346   : > { %7792 = vpow2.f32 %v2907_v40  ;;  %v3025_v59 = vmul.f32 0.6931472, %v7787_v3  ;;  %v7789_v61 = vpop.eup %7788  ;;  %v3855_v40 = vld [vmem:[#allocation13 + $0x18] sm:$0xff] }
 0x347   : > { %v2760_v17 = vpop.f32.mrf.mxu3  ;;  %7794 = vlog2.f32 %v3032_v16  ;;  %v3036_v26 = vadd.f32 1.0, %v3035_v41  ;;  %v10610_v44 = vpop.eup %7790  ;;  %vm3039_vm14 = vcmp.lt.f32.partialorder %v3038_v30, 0.0004427343  ;;  %3884 = vmatpush.msrb.mxu1 %v3855_v40  ;;  %v3854_v30 = vld [vmem:[#allocation13 + $0x10] sm:$0xff] }
 0x348   : > { %v10602_v14 = vadd.f32 %v10372_v22, %v2760_v17  ;;  %v3031_v31 = vsel %vm3030_vm10, %v3028_v21, %v3025_v59  ;;  %7796 = vlog2.f32 %v2640_v2  ;;  %v2649_v27 = vadd.f32 1.0, %v10610_v44 }
 0x349   : > { %v3247_v42 = vsel %vm2863_vm11, %v10526_v9, %v3031_v31  ;;  %v2633_v9 = vmul.f32 0.6931472, %v7789_v61  ;;  %v3037_v52 = vmul.f32 %v7785_v62, %v3036_v26  ;;  %v2652_v4 = vmul.f32 -0.5, %v10610_v44  ;;  %3885 = vmatpush.msrb.mxu1 %v3854_v30 }
 0x34a   : > { %v2834_v29 = vmin.f32 %v10602_v14, 20.0  ;;  %3331 = vmatmul.f32.gmra.mxu0 %v3247_v42  ;;  %v2655_v21 = vand.u32 2147483647, %v10610_v44  ;;  %vm2866_vm7 = vcmp.gt.f32.partialorder %v10602_v14, 20.0 }
 0x34b   : > { %v2639_v51 = vsel %vm10618_vm13, %v2636_v45, %v2633_v9  ;;  %v2653_v7 = vadd.f32 1.0, %v2652_v4 }
 0x34c   : > { %v7793_v49 = vpop.eup %7792  ;;  %v2909_v53 = vmul.f32 1.442695, %v2834_v29  ;;  %v2687_v55 = vsel %vm2303_vm12, %v10506_v60, %v2639_v51  ;;  %vm10653_vm4 = vcmp.lt.f32.partialorder %v2655_v21, 0.0004427343  ;;  %v4447_v51 = vld [vmem:[#allocation14 + $0x70] sm:$0xff] }
 0x34d   : > { %2810 = vmatmul.f32.gmra.mxu3 %v2686_v58  ;;  %v7795_v5 = vpop.eup %7794  ;;  %v3041_v28 = vadd.f32 1.0, %v7793_v49  ;;  %v3044_v50 = vmul.f32 -0.5, %v7793_v49  ;;  %v3047_v10 = vand.u32 2147483647, %v7793_v49  ;;  %v2654_v38 = vmul.f32 %v10610_v44, %v2653_v7  ;;  %v4448_v58 = vld [vmem:[#allocation14 + $0x78] sm:$0xff] }
 0x34e   : > { %7798 = vpow2.f32 %v2909_v53  ;;  %v3034_v63 = vmul.f32 0.6931472, %v7795_v5  ;;  %v7797_v39 = vpop.eup %7796  ;;  %4453 = vmatpush.msrb.mxu2 %v4448_v58  ;;  %v10661_v44 = vld [vmem:[%s12884_s8] ss:$0 sm:$0xff] }
 0x34f   : > { %v2763_v20 = vpop.f32.mrf.mxu3  ;;  %7800 = vlog2.f32 %v3041_v28  ;;  %v3045_v48 = vadd.f32 1.0, %v3044_v50  ;;  %v2642_v6 = vmul.f32 0.6931472, %v7797_v39  ;;  %vm3048_vm1 = vcmp.lt.f32.partialorder %v3047_v10, 0.0004427343 }
 0x350   : > { %v10624_v8 = vadd.f32 %v10372_v22, %v2763_v20  ;;  %v3040_v35 = vsel %vm3039_vm14, %v3037_v52, %v3034_v63  ;;  %7802 = vlog2.f32 %v2649_v27  ;;  %4454 = vmatpush.msrb.mxu2 %v4447_v51  ;;  %v10693_v58 = vld [vmem:[%s12901_s10] ss:$0 sm:$0xff] }
 0x351   : > { %v3248_v37 = vsel %vm2864_vm15, %v10553_v1, %v3040_v35  ;;  %v2645_v1 = vmul.f32 %v10588_v33, %v2644_v54  ;;  %v3046_v62 = vmul.f32 %v7793_v49, %v3045_v48 }
 0x352   : > { %v2835_v47 = vmin.f32 %v10624_v8, 20.0  ;;  %3334 = vmatmul.f32.gmra.mxu0 %v3248_v37  ;;  %vm2867_vm9 = vcmp.gt.f32.partialorder %v10624_v8, 20.0 }
 0x353   : > { %v2648_v57 = vsel %vm10637_vm0, %v2645_v1, %v2642_v6 }
 0x354   : > { %v7799_v46 = vpop.eup %7798  ;;  %v2911_v15 = vmul.f32 1.442695, %v2835_v47  ;;  %v2688_v17 = vsel %vm2304_vm2, %v10533_v13, %v2648_v57 }
 0x355   : > { %2813 = vmatmul.f32.gmra.mxu3 %v2687_v55  ;;  %v7801_v43 = vpop.eup %7800  ;;  %v3050_v19 = vadd.f32 1.0, %v7799_v46  ;;  %v3053_v60 = vmul.f32 -0.5, %v7799_v46  ;;  %v3056_v12 = vand.u32 2147483647, %v7799_v46 }
 0x356   : > { %7804 = vpow2.f32 %v2911_v15  ;;  %v3043_v18 = vmul.f32 0.6931472, %v7801_v43  ;;  %v7803_v16 = vpop.eup %7802  ;;  %v3853_v43 = vld [vmem:[#allocation13 + $0x8] sm:$0xff] }
 0x357   : > { %v2766_v25 = vpop.f32.mrf.mxu3  ;;  %7806 = vlog2.f32 %v3050_v19  ;;  %v3054_v23 = vadd.f32 1.0, %v3053_v60  ;;  %v2651_v31 = vmul.f32 0.6931472, %v7803_v16  ;;  %vm3057_vm5 = vcmp.lt.f32.partialorder %v3056_v12, 0.0004427343  ;;  %3886 = vmatpush.msrb.mxu1 %v3853_v43 }
 0x358   : > { %v10643_v33 = vadd.f32 %v10372_v22, %v2766_v25  ;;  %v3049_v3 = vsel %vm3048_vm1, %v3046_v62, %v3043_v18 }
 0x359   : > { %v3249_v59 = vsel %vm2865_vm3, %v10580_v0, %v3049_v3  ;;  %v3055_v29 = vmul.f32 %v7799_v46, %v3054_v23  ;;  %v2657_v53 = vsel %vm10653_vm4, %v2654_v38, %v2651_v31  ;;  %v3852_v23 = vld [vmem:[#allocation13] sm:$0xff] }
 0x35a   : > { %v2836_v41 = vmin.f32 %v10643_v33, 20.0  ;;  %3337 = vmatmul.f32.gmra.mxu0 %v3249_v59  ;;  %v2689_v24 = vsel %vm2305_vm6, %v10560_v32, %v2657_v53  ;;  %vm2868_vm11 = vcmp.gt.f32.partialorder %v10643_v33, 20.0  ;;  %3887 = vmatpush.msrb.mxu1 %v3852_v23 }
 0x35c   : > { %v7805_v22 = vpop.eup %7804  ;;  %v2913_v2 = vmul.f32 1.442695, %v2836_v41  ;;  %v4446_v41 = vld [vmem:[#allocation14 + $0x68] sm:$0xff] }
 0x35d   : > { %2816 = vmatmul.f32.gmra.mxu3 %v2688_v17  ;;  %v7807_v61 = vpop.eup %7806  ;;  %v3059_v0 = vadd.f32 1.0, %v7805_v22  ;;  %v3062_v26 = vmul.f32 -0.5, %v7805_v22  ;;  %v3065_v28 = vand.u32 2147483647, %v7805_v22  ;;  %4455 = vmatpush.msrb.mxu2 %v4446_v41 }
 0x35e   : > { %7808 = vpow2.f32 %v2913_v2  ;;  %v3052_v34 = vmul.f32 0.6931472, %v7807_v61 }
 0x35f   : > { %v2769_v13 = vpop.f32.mrf.mxu3  ;;  %7810 = vlog2.f32 %v3059_v0  ;;  %v3063_v5 = vadd.f32 1.0, %v3062_v26  ;;  %vm3066_vm8 = vcmp.lt.f32.partialorder %v3065_v28, 0.0004427343 }
 0x360   : > { %v10664_v11 = vadd.f32 %v10661_v44, %v2769_v13  ;;  %v3058_v49 = vsel %vm3057_vm5, %v3055_v29, %v3052_v34  ;;  %v4445_v13 = vld [vmem:[#allocation14 + $0x60] sm:$0xff] }
 0x361   : > { %v3250_v9 = vsel %vm2866_vm7, %v10602_v14, %v3058_v49  ;;  %v3064_v27 = vmul.f32 %v7805_v22, %v3063_v5  ;;  %4456 = vmatpush.msrb.mxu2 %v4445_v13 }
 0x362   : > { %v2837_v45 = vmin.f32 %v10664_v11, 20.0  ;;  %3340 = vmatmul.f32.gmra.mxu0 %v3250_v9  ;;  %vm2869_vm13 = vcmp.gt.f32.partialorder %v10664_v11, 20.0 }
 0x364   : > { %v7809_v63 = vpop.eup %7808  ;;  %v2915_v52 = vmul.f32 1.442695, %v2837_v45 }
 0x365   : > { %2819 = vmatmul.f32.gmra.mxu3 %v2689_v24  ;;  %v7811_v50 = vpop.eup %7810  ;;  %v3068_v20 = vadd.f32 1.0, %v7809_v63  ;;  %v3071_v35 = vmul.f32 -0.5, %v7809_v63  ;;  %v3074_v48 = vand.u32 2147483647, %v7809_v63 }
 0x366   : > { %7812 = vpow2.f32 %v2915_v52  ;;  %v3061_v54 = vmul.f32 0.6931472, %v7811_v50 }
 0x367   : > { %v2772_v39 = vpop.f32.mrf.mxu3  ;;  %7814 = vlog2.f32 %v3068_v20  ;;  %v3072_v47 = vadd.f32 1.0, %v3071_v35  ;;  %vm3075_vm10 = vcmp.lt.f32.partialorder %v3074_v48, 0.0004427343 }
 0x368   : > { %v10673_v14 = vadd.f32 %v10661_v44, %v2772_v39  ;;  %v3067_v32 = vsel %vm3066_vm8, %v3064_v27, %v3061_v54 }
 0x369   : > { %v3251_v37 = vsel %vm2867_vm9, %v10624_v8, %v3067_v32  ;;  %v3073_v6 = vmul.f32 %v7809_v63, %v3072_v47 }
 0x36a   : > { %v2838_v56 = vmin.f32 %v10673_v14, 20.0  ;;  %3343 = vmatmul.f32.gmra.mxu0 %v3251_v37  ;;  %vm2870_vm15 = vcmp.gt.f32.partialorder %v10673_v14, 20.0 }
 0x36c   : > { %v7813_v55 = vpop.eup %7812  ;;  %v2917_v10 = vmul.f32 1.442695, %v2838_v56 }
 0x36d   : > { %v7815_v4 = vpop.eup %7814  ;;  %v3077_v46 = vadd.f32 1.0, %v7813_v55  ;;  %v3080_v1 = vmul.f32 -0.5, %v7813_v55  ;;  %v3083_v40 = vand.u32 2147483647, %v7813_v55 }
 0x36e   : > { %7816 = vpow2.f32 %v2917_v10  ;;  %v3070_v15 = vmul.f32 0.6931472, %v7815_v4 }
 0x36f   : > { %v2775_v36 = vpop.f32.mrf.mxu3  ;;  %7818 = vlog2.f32 %v3077_v46  ;;  %v3081_v60 = vadd.f32 1.0, %v3080_v1  ;;  %vm3084_vm12 = vcmp.lt.f32.partialorder %v3083_v40, 0.0004427343 }
 0x370   : > { %v10679_v8 = vadd.f32 %v10661_v44, %v2775_v36  ;;  %v3076_v19 = vsel %vm3075_vm10, %v3073_v6, %v3070_v15 }
 0x371   : > { %v3252_v18 = vsel %vm2868_vm11, %v10643_v33, %v3076_v19  ;;  %v3082_v59 = vmul.f32 %v7813_v55, %v3081_v60 }
 0x372   : > { %v2839_v62 = vmin.f32 %v10679_v8, 20.0  ;;  %3346 = vmatmul.f32.gmra.mxu0 %v3252_v18  ;;  %vm2871_vm1 = vcmp.gt.f32.partialorder %v10679_v8, 20.0 }
 0x374   : > { %v7817_v25 = vpop.eup %7816  ;;  %v2919_v7 = vmul.f32 1.442695, %v2839_v62 }
 0x375   : > { %v7819_v3 = vpop.eup %7818  ;;  %v3086_v57 = vadd.f32 1.0, %v7817_v25  ;;  %v3089_v21 = vmul.f32 -0.5, %v7817_v25  ;;  %v3092_v38 = vand.u32 2147483647, %v7817_v25 }
 0x376   : > { %7820 = vpow2.f32 %v2919_v7  ;;  %v3079_v16 = vmul.f32 0.6931472, %v7819_v3 }
 0x377   : > { %v2778_v17 = vpop.f32.mrf.mxu3  ;;  %7822 = vlog2.f32 %v3086_v57  ;;  %v3090_v31 = vadd.f32 1.0, %v3089_v21  ;;  %vm3093_vm14 = vcmp.lt.f32.partialorder %v3092_v38, 0.0004427343 }
 0x378   : > { %v10685_v33 = vadd.f32 %v10661_v44, %v2778_v17  ;;  %v3085_v12 = vsel %vm3084_vm12, %v3082_v59, %v3079_v16 }
 0x379   : > { %v3253_v22 = vsel %vm2869_vm13, %v10664_v11, %v3085_v12  ;;  %v3091_v26 = vmul.f32 %v7817_v25, %v3090_v31  ;;  %v4444_v25 = vld [vmem:[#allocation14 + $0x58] sm:$0xff] }
 0x37a   : > { %v2840_v2 = vmin.f32 %v10685_v33, 20.0  ;;  %3349 = vmatmul.f32.gmra.mxu0 %v3253_v22  ;;  %vm2872_vm2 = vcmp.gt.f32.partialorder %v10685_v33, 20.0  ;;  %4457 = vmatpush.msrb.mxu2 %v4444_v25 }
 0x37c   : > { %v7821_v61 = vpop.eup %7820  ;;  %v2921_v42 = vmul.f32 1.442695, %v2840_v2 }
 0x37d   : > { %v7823_v0 = vpop.eup %7822  ;;  %v3095_v34 = vadd.f32 1.0, %v7821_v61  ;;  %v3098_v30 = vmul.f32 -0.5, %v7821_v61  ;;  %v3101_v63 = vand.u32 2147483647, %v7821_v61 }
 0x37e   : > { %7824 = vpow2.f32 %v2921_v42  ;;  %v3088_v29 = vmul.f32 0.6931472, %v7823_v0 }
 0x37f   : > { %7826 = vlog2.f32 %v3095_v34  ;;  %v3099_v28 = vadd.f32 1.0, %v3098_v30  ;;  %vm3102_vm0 = vcmp.lt.f32.partialorder %v3101_v63, 0.0004427343 }
 0x380   : > { %v2781_v11 = vpop.f32.mrf.mxu3  ;;  %v3094_v53 = vsel %vm3093_vm14, %v3091_v26, %v3088_v29 }
 0x381   : > { %v10696_v49 = vadd.f32 %v10661_v44, %v2781_v11  ;;  %v3254_v9 = vsel %vm2870_vm15, %v10673_v14, %v3094_v53  ;;  %v3100_v14 = vmul.f32 %v7821_v61, %v3099_v28  ;;  %v4443_v53 = vld [vmem:[#allocation14 + $0x50] sm:$0xff] }
 0x382   : > { %v3308_v45 = vpop.f32.mrf.mxu0  ;;  %3352 = vmatmul.f32.gmra.mxu0 %v3254_v9  ;;  %4458 = vmatpush.msrb.mxu2 %v4443_v53 }
 0x383   : > { %v2841_v5 = vmin.f32 %v10696_v49, 20.0  ;;  %v10702_v24 = vadd.f32 %v10693_v58, %v3308_v45  ;;  %vm2873_vm4 = vcmp.gt.f32.partialorder %v10696_v49, 20.0 }
 0x384   : > { %v7825_v52 = vpop.eup %7824 }
 0x385   : > { %v2923_v50 = vmul.f32 1.442695, %v2841_v5  ;;  %v3404_v20 = vmin.f32 %v10702_v24, 20.0  ;;  %v7827_v54 = vpop.eup %7826  ;;  %v3104_v27 = vadd.f32 1.0, %v7825_v52  ;;  %v3107_v35 = vmul.f32 -0.5, %v7825_v52 }
 0x386   : > { %v3097_v39 = vmul.f32 0.6931472, %v7827_v54  ;;  %v3110_v4 = vand.u32 2147483647, %v7825_v52  ;;  %vm3436_vm7 = vcmp.gt.f32.partialorder %v10702_v24, 20.0 }
 0x387   : > { %7828 = vpow2.f32 %v2923_v50  ;;  %v3468_v51 = vmul.f32 1.442695, %v3404_v20  ;;  %v3108_v48 = vadd.f32 1.0, %v3107_v35 }
 0x388   : > { %v2784_v32 = vpop.f32.mrf.mxu3  ;;  %7830 = vlog2.f32 %v3104_v27  ;;  %v3103_v56 = vsel %vm3102_vm0, %v3100_v14, %v3097_v39  ;;  %vm3111_vm3 = vcmp.lt.f32.partialorder %v3110_v4, 0.0004427343 }
 0x389   : > { %v10706_v37 = vadd.f32 %v10661_v44, %v2784_v32  ;;  %7832 = vpow2.f32 %v3468_v51  ;;  %v3255_v47 = vsel %vm2871_vm1, %v10679_v8, %v3103_v56  ;;  %v3109_v43 = vmul.f32 %v7825_v52, %v3108_v48 }
 0x38a   : > { %3355 = vmatmul.f32.gmra.mxu0 %v3255_v47 }
 0x38b   : > { %v2842_v55 = vmin.f32 %v10706_v37, 20.0  ;;  %vm2874_vm9 = vcmp.gt.f32.partialorder %v10706_v37, 20.0 }
 0x38c   : > { %v3311_v10 = vpop.f32.mrf.mxu0 }
 0x38d   : > { %v7829_v46 = vpop.eup %7828  ;;  %v2925_v15 = vmul.f32 1.442695, %v2842_v55  ;;  %v10712_v6 = vadd.f32 %v10693_v58, %v3311_v10 }
 0x38e   : > { %v7831_v1 = vpop.eup %7830  ;;  %v3113_v36 = vadd.f32 1.0, %v7829_v46  ;;  %v3116_v8 = vmul.f32 -0.5, %v7829_v46  ;;  %v3119_v17 = vand.u32 2147483647, %v7829_v46 }
 0x38f   : > { %v7833_v19 = vpop.eup %7832  ;;  %7834 = vpow2.f32 %v2925_v15  ;;  %v3405_v18 = vmin.f32 %v10712_v6, 20.0  ;;  %v3106_v62 = vmul.f32 0.6931472, %v7831_v1  ;;  %vm3437_vm11 = vcmp.gt.f32.partialorder %v10712_v6, 20.0 }
 0x390   : > { %v2787_v60 = vpop.f32.mrf.mxu3  ;;  %7836 = vlog2.f32 %v3113_v36  ;;  %v3532_v40 = vadd.f32 1.0, %v7833_v19  ;;  %v3535_v16 = vmul.f32 -0.5, %v7833_v19  ;;  %v3117_v41 = vadd.f32 1.0, %v3116_v8 }
 0x391   : > { %v10717_v7 = vadd.f32 %v10661_v44, %v2787_v60  ;;  %v3470_v3 = vmul.f32 1.442695, %v3405_v18  ;;  %v3112_v57 = vsel %vm3111_vm3, %v3109_v43, %v3106_v62  ;;  %v3538_v22 = vand.u32 2147483647, %v7833_v19 }
 0x392   : > { %v3256_v59 = vsel %vm2872_vm2, %v10685_v33, %v3112_v57  ;;  %7838 = vlog2.f32 %v3532_v40  ;;  %v3536_v12 = vadd.f32 1.0, %v3535_v16  ;;  %v3118_v29 = vmul.f32 %v7829_v46, %v3117_v41 }
 0x393   : > { %v2843_v21 = vmin.f32 %v10717_v7, 20.0  ;;  %7840 = vpow2.f32 %v3470_v3  ;;  %3358 = vmatmul.f32.gmra.mxu0 %v3256_v59  ;;  %vm3120_vm5 = vcmp.lt.f32.partialorder %v3119_v17, 0.0004427343  ;;  %vm10726_vm6 = vcmp.lt.f32.partialorder %v3538_v22, 0.0004427343 }
 0x394   : > { %v3314_v23 = vpop.f32.mrf.mxu0  ;;  %v3537_v13 = vmul.f32 %v7833_v19, %v3536_v12  ;;  %vm2875_vm13 = vcmp.gt.f32.partialorder %v10717_v7, 20.0 }
 0x395   : > { %v7835_v2 = vpop.eup %7834  ;;  %v2927_v31 = vmul.f32 1.442695, %v2843_v21  ;;  %v10722_v38 = vadd.f32 %v10693_v58, %v3314_v23 }
 0x396   : > { %v7837_v61 = vpop.eup %7836  ;;  %v3122_v42 = vadd.f32 1.0, %v7835_v2  ;;  %v3125_v33 = vmul.f32 -0.5, %v7835_v2  ;;  %v3128_v39 = vand.u32 2147483647, %v7835_v2 }
 0x397   : > { %7842 = vpow2.f32 %v2927_v31  ;;  %v3406_v0 = vmin.f32 %v10722_v38, 20.0  ;;  %v3115_v34 = vmul.f32 0.6931472, %v7837_v61  ;;  %vm3438_vm15 = vcmp.gt.f32.partialorder %v10722_v38, 20.0 }
 0x398   : > { %v7839_v26 = vpop.eup %7838  ;;  %v2790_v30 = vpop.f32.mrf.mxu3  ;;  %7844 = vlog2.f32 %v3122_v42  ;;  %v3126_v50 = vadd.f32 1.0, %v3125_v33  ;;  %vm3129_vm8 = vcmp.lt.f32.partialorder %v3128_v39, 0.0004427343 }
 0x399   : > { %v7841_v9 = vpop.eup %7840  ;;  %v10731_v45 = vadd.f32 %v10661_v44, %v2790_v30  ;;  %v3472_v5 = vmul.f32 1.442695, %v3406_v0  ;;  %v3121_v28 = vsel %vm3120_vm5, %v3118_v29, %v3115_v34  ;;  %v3534_v63 = vmul.f32 0.6931472, %v7839_v26  ;;  %v4442_v34 = vld [vmem:[#allocation14 + $0x48] sm:$0xff] }
 0x39a   : > { %v3257_v52 = vsel %vm2873_vm4, %v10696_v49, %v3121_v28  ;;  %v3541_v20 = vadd.f32 1.0, %v7841_v9  ;;  %v3544_v54 = vmul.f32 -0.5, %v7841_v9  ;;  %v3127_v48 = vmul.f32 %v7835_v2, %v3126_v50  ;;  %4459 = vmatpush.msrb.mxu2 %v4442_v34 }
 0x39b   : > { %v2844_v27 = vmin.f32 %v10731_v45, 20.0  ;;  %7846 = vpow2.f32 %v3472_v5  ;;  %3361 = vmatmul.f32.gmra.mxu0 %v3257_v52  ;;  %v3540_v35 = vsel %vm10726_vm6, %v3537_v13, %v3534_v63  ;;  %vm2876_vm0 = vcmp.gt.f32.partialorder %v10731_v45, 20.0 }
 0x39c   : > { %v3317_v51 = vpop.f32.mrf.mxu0  ;;  %v3820_v14 = vsel %vm3436_vm7, %v10702_v24, %v3540_v35  ;;  %7848 = vlog2.f32 %v3541_v20  ;;  %v3545_v10 = vadd.f32 1.0, %v3544_v54  ;;  %v3547_v24 = vand.u32 2147483647, %v7841_v9 }
 0x39d   : > { %v7843_v32 = vpop.eup %7842  ;;  %v2929_v56 = vmul.f32 1.442695, %v2844_v27  ;;  %v10742_v49 = vadd.f32 %v10693_v58, %v3317_v51  ;;  %3888 = vmatmul.f32.vlgmr.msrb.gmra.mxu1 %v3820_v14 }
 0x39e   : > { %v7845_v47 = vpop.eup %7844  ;;  %v3131_v55 = vadd.f32 1.0, %v7843_v32  ;;  %v3134_v15 = vmul.f32 -0.5, %v7843_v32  ;;  %v3546_v60 = vmul.f32 %v7841_v9, %v3545_v10  ;;  %v3137_v59 = vand.u32 2147483647, %v7843_v32 }
 0x39f   : > { %7850 = vpow2.f32 %v2929_v56  ;;  %v3407_v4 = vmin.f32 %v10742_v49, 20.0  ;;  %v3124_v46 = vmul.f32 0.6931472, %v7845_v47  ;;  %vm3548_vm10 = vcmp.lt.f32.partialorder %v3547_v24, 0.0004427343 }
 0x3a0   : > { %v2793_v1 = vpop.f32.mrf.mxu3  ;;  %7852 = vlog2.f32 %v3131_v55  ;;  %v3135_v57 = vadd.f32 1.0, %v3134_v15  ;;  %vm3138_vm12 = vcmp.lt.f32.partialorder %v3137_v59, 0.0004427343  ;;  %vm3439_vm3 = vcmp.gt.f32.partialorder %v10742_v49, 20.0 }
 0x3a1   : > { %v7847_v43 = vpop.eup %7846  ;;  %v10746_v36 = vadd.f32 %v10661_v44, %v2793_v1  ;;  %v3474_v19 = vmul.f32 1.442695, %v3407_v4  ;;  %v3130_v18 = vsel %vm3129_vm8, %v3127_v48, %v3124_v46  ;;  %v4441_v46 = vld [vmem:[#allocation14 + $0x40] sm:$0xff] }
 0x3a2   : > { %v7849_v62 = vpop.eup %7848  ;;  %v3258_v8 = vsel %vm2874_vm9, %v10706_v37, %v3130_v18  ;;  %v3550_v40 = vadd.f32 1.0, %v7847_v43  ;;  %v3553_v25 = vmul.f32 -0.5, %v7847_v43  ;;  %v3136_v61 = vmul.f32 %v7843_v32, %v3135_v57  ;;  %4460 = vmatpush.msrb.mxu2 %v4441_v46 }
 0x3a3   : > { %v2845_v3 = vmin.f32 %v10746_v36, 20.0  ;;  %7854 = vpow2.f32 %v3474_v19  ;;  %3364 = vmatmul.f32.gmra.mxu0 %v3258_v8  ;;  %v3543_v16 = vmul.f32 0.6931472, %v7849_v62  ;;  %v3556_v0 = vand.u32 2147483647, %v7847_v43 }
 0x3a4   : > { %7856 = vlog2.f32 %v3550_v40  ;;  %v3554_v2 = vadd.f32 1.0, %v3553_v25  ;;  %vm2877_vm4 = vcmp.gt.f32.partialorder %v10746_v36, 20.0 }
 0x3a5   : > { %v7851_v21 = vpop.eup %7850  ;;  %v2931_v41 = vmul.f32 1.442695, %v2845_v3  ;;  %v3549_v23 = vsel %vm3548_vm10, %v3546_v60, %v3543_v16  ;;  %vm3557_vm14 = vcmp.lt.f32.partialorder %v3556_v0, 0.0004427343 }
 0x3a6   : > { %v7853_v17 = vpop.eup %7852  ;;  %v3821_v37 = vsel %vm3437_vm11, %v10712_v6, %v3549_v23  ;;  %v3140_v12 = vadd.f32 1.0, %v7851_v21  ;;  %v3143_v22 = vmul.f32 -0.5, %v7851_v21  ;;  %v3555_v9 = vmul.f32 %v7847_v43, %v3554_v2 }
 0x3a7   : > { %7858 = vpow2.f32 %v2931_v41  ;;  %v3133_v31 = vmul.f32 0.6931472, %v7853_v17  ;;  %3891 = vmatmul.f32.gmra.mxu1 %v3821_v37  ;;  %v3320_v33 = vpop.f32.mrf.mxu0  ;;  %v3146_v20 = vand.u32 2147483647, %v7851_v21 }
 0x3a8   : > { %v2796_v42 = vpop.f32.mrf.mxu3  ;;  %7860 = vlog2.f32 %v3140_v12  ;;  %v10757_v30 = vadd.f32 %v10693_v58, %v3320_v33  ;;  %v3144_v53 = vadd.f32 1.0, %v3143_v22 }
 0x3a9   : > { %v7855_v29 = vpop.eup %7854  ;;  %v10754_v26 = vadd.f32 %v10661_v44, %v2796_v42  ;;  %v3139_v6 = vsel %vm3138_vm12, %v3136_v61, %v3133_v31  ;;  %vm3147_vm1 = vcmp.lt.f32.partialorder %v3146_v20, 0.0004427343 }
 0x3aa   : > { %v7857_v13 = vpop.eup %7856  ;;  %v3259_v11 = vsel %vm2875_vm13, %v10717_v7, %v3139_v6  ;;  %v3559_v5 = vadd.f32 1.0, %v7855_v29  ;;  %v3408_v63 = vmin.f32 %v10757_v30, 20.0  ;;  %v3562_v50 = vmul.f32 -0.5, %v7855_v29 }
 0x3ab   : > { %v2846_v28 = vmin.f32 %v10754_v26, 20.0  ;;  %3367 = vmatmul.f32.gmra.mxu0 %v3259_v11  ;;  %v3552_v52 = vmul.f32 0.6931472, %v7857_v13  ;;  %v3145_v56 = vmul.f32 %v7851_v21, %v3144_v53  ;;  %v3565_v4 = vand.u32 2147483647, %v7855_v29 }
 0x3ac   : > { %7862 = vlog2.f32 %v3559_v5  ;;  %v3476_v35 = vmul.f32 1.442695, %v3408_v63  ;;  %v3563_v47 = vadd.f32 1.0, %v3562_v50  ;;  %vm2878_vm6 = vcmp.gt.f32.partialorder %v10754_v26, 20.0 }
 0x3ad   : > { %v7859_v54 = vpop.eup %7858  ;;  %v2933_v27 = vmul.f32 1.442695, %v2846_v28  ;;  %v3558_v51 = vsel %vm3557_vm14, %v3555_v9, %v3552_v52  ;;  %vm3566_vm2 = vcmp.lt.f32.partialorder %v3565_v4, 0.0004427343  ;;  %vm3440_vm7 = vcmp.gt.f32.partialorder %v10757_v30, 20.0 }
 0x3ae   : > { %v7861_v7 = vpop.eup %7860  ;;  %v3822_v39 = vsel %vm3438_vm15, %v10722_v38, %v3558_v51  ;;  %v3149_v14 = vadd.f32 1.0, %v7859_v54  ;;  %v3152_v10 = vmul.f32 -0.5, %v7859_v54  ;;  %v3155_v19 = vand.u32 2147483647, %v7859_v54 }
 0x3af   : > { %7864 = vpow2.f32 %v2933_v27  ;;  %v3142_v32 = vmul.f32 0.6931472, %v7861_v7  ;;  %3894 = vmatmul.f32.gmra.mxu1 %v3822_v39  ;;  %v3323_v55 = vpop.f32.mrf.mxu0  ;;  %v3564_v60 = vmul.f32 %v7855_v29, %v3563_v47 }
 0x3b0   : > { %7866 = vpow2.f32 %v3476_v35  ;;  %v2799_v48 = vpop.f32.mrf.mxu3  ;;  %v10770_v1 = vadd.f32 %v10693_v58, %v3323_v55  ;;  %v3153_v40 = vadd.f32 1.0, %v3152_v10  ;;  %vm10780_vm5 = vcmp.lt.f32.partialorder %v3155_v19, 0.0004427343  ;;  %v5029_v55 = vld [vmem:[#allocation16 + $0x78] sm:$0xff] }
 0x3b1   : > { %v10767_v15 = vadd.f32 %v10661_v44, %v2799_v48  ;;  %v3148_v38 = vsel %vm3147_vm1, %v3145_v56, %v3142_v32  ;;  %7868 = vlog2.f32 %v3149_v14  ;;  %5034 = vmatpush.msra.mxu3 %v5029_v55 }
 0x3b2   : > { %v7863_v24 = vpop.eup %7862  ;;  %v3260_v43 = vsel %vm2876_vm0, %v10731_v45, %v3148_v38  ;;  %v3409_v62 = vmin.f32 %v10770_v1, 20.0  ;;  %v3154_v31 = vmul.f32 %v7859_v54, %v3153_v40  ;;  %v4440_v38 = vld [vmem:[#allocation14 + $0x38] sm:$0xff]  ;;  %vm3441_vm11 = vcmp.gt.f32.partialorder %v10770_v1, 20.0 }
 0x3b3   : > { %v2847_v18 = vmin.f32 %v10767_v15, 20.0  ;;  %3370 = vmatmul.f32.gmra.mxu0 %v3260_v43  ;;  %v3561_v8 = vmul.f32 0.6931472, %v7863_v24  ;;  %4461 = vmatpush.msrb.mxu2 %v4440_v38  ;;  %vm2879_vm10 = vcmp.gt.f32.partialorder %v10767_v15, 20.0  ;;  %v5028_v38 = vld [vmem:[#allocation16 + $0x70] sm:$0xff] }
 0x3b4   : > { %v3478_v57 = vmul.f32 1.442695, %v3409_v62  ;;  %5035 = vmatpush.msra.mxu3 %v5028_v38 }
 0x3b5   : > { %v7865_v25 = vpop.eup %7864  ;;  %v2935_v3 = vmul.f32 1.442695, %v2847_v18  ;;  %v3567_v16 = vsel %vm3566_vm2, %v3564_v60, %v3561_v8 }
 0x3b6   : > { %v7867_v59 = vpop.eup %7866  ;;  %v3823_v21 = vsel %vm3439_vm3, %v10742_v49, %v3567_v16  ;;  %v3158_v45 = vadd.f32 1.0, %v7865_v25  ;;  %v3161_v41 = vmul.f32 -0.5, %v7865_v25  ;;  %v3164_v33 = vand.u32 2147483647, %v7865_v25 }
 0x3b7   : > { %v7869_v23 = vpop.eup %7868  ;;  %7870 = vpow2.f32 %v2935_v3  ;;  %3897 = vmatmul.f32.gmra.mxu1 %v3823_v21  ;;  %v3568_v37 = vadd.f32 1.0, %v7867_v59  ;;  %v3326_v22 = vpop.f32.mrf.mxu0  ;;  %v3571_v61 = vmul.f32 -0.5, %v7867_v59  ;;  %v3574_v29 = vand.u32 2147483647, %v7867_v59 }
 0x3b8   : > { %7872 = vpow2.f32 %v3478_v57  ;;  %v2802_v12 = vpop.f32.mrf.mxu3  ;;  %v3151_v2 = vmul.f32 0.6931472, %v7869_v23  ;;  %v10788_v42 = vadd.f32 %v10693_v58, %v3326_v22  ;;  %v3162_v34 = vadd.f32 1.0, %v3161_v41 }
 0x3b9   : > { %v10785_v49 = vadd.f32 %v10661_v44, %v2802_v12  ;;  %7874 = vlog2.f32 %v3158_v45  ;;  %v3572_v53 = vadd.f32 1.0, %v3571_v61  ;;  %vm10799_vm8 = vcmp.lt.f32.partialorder %v3164_v33, 0.0004427343  ;;  %v4439_v33 = vld [vmem:[#allocation14 + $0x30] sm:$0xff] }
 0x3ba   : > { %v3157_v0 = vsel %vm10780_vm5, %v3154_v31, %v3151_v2  ;;  %7876 = vlog2.f32 %v3568_v37  ;;  %v3410_v13 = vmin.f32 %v10788_v42, 20.0  ;;  %v3163_v50 = vmul.f32 %v7865_v25, %v3162_v34  ;;  %4462 = vmatpush.msrb.mxu2 %v4439_v33 }
 0x3bb   : > { %v2848_v6 = vmin.f32 %v10785_v49, 20.0  ;;  %v3261_v11 = vsel %vm2877_vm4, %v10746_v36, %v3157_v0  ;;  %vm10803_vm9 = vcmp.lt.f32.partialorder %v3574_v29, 0.0004427343  ;;  %v3573_v47 = vmul.f32 %v7867_v59, %v3572_v53 }
 0x3bc   : > { %3373 = vmatmul.f32.gmra.mxu0 %v3261_v11  ;;  %v3480_v28 = vmul.f32 1.442695, %v3410_v13  ;;  %vm2880_vm14 = vcmp.gt.f32.partialorder %v10785_v49, 20.0  ;;  %vm3442_vm15 = vcmp.gt.f32.partialorder %v10788_v42, 20.0 }
 0x3bd   : > { %v7871_v9 = vpop.eup %7870  ;;  %v2937_v5 = vmul.f32 1.442695, %v2848_v6 }
 0x3be   : > { %v7873_v52 = vpop.eup %7872  ;;  %v3167_v36 = vadd.f32 1.0, %v7871_v9  ;;  %v3170_v54 = vmul.f32 -0.5, %v7871_v9  ;;  %v3173_v35 = vand.u32 2147483647, %v7871_v9 }
 0x3bf   : > { %v7875_v27 = vpop.eup %7874  ;;  %7878 = vpow2.f32 %v2937_v5  ;;  %v3577_v51 = vadd.f32 1.0, %v7873_v52  ;;  %v3580_v7 = vmul.f32 -0.5, %v7873_v52  ;;  %v3329_v32 = vpop.f32.mrf.mxu0  ;;  %v3583_v48 = vand.u32 2147483647, %v7873_v52 }
 0x3c0   : > { %v7877_v39 = vpop.eup %7876  ;;  %7880 = vpow2.f32 %v3480_v28  ;;  %v2805_v14 = vpop.f32.mrf.mxu3  ;;  %v3160_v56 = vmul.f32 0.6931472, %v7875_v27  ;;  %v10811_v4 = vadd.f32 %v10693_v58, %v3329_v32  ;;  %v3171_v43 = vadd.f32 1.0, %v3170_v54 }
 0x3c1   : > { %v10808_v10 = vadd.f32 %v10661_v44, %v2805_v14  ;;  %v3570_v46 = vmul.f32 0.6931472, %v7877_v39  ;;  %7882 = vlog2.f32 %v3167_v36  ;;  %v3581_v19 = vadd.f32 1.0, %v3580_v7 }
 0x3c2   : > { %v3166_v24 = vsel %vm10799_vm8, %v3163_v50, %v3160_v56  ;;  %7884 = vlog2.f32 %v3577_v51  ;;  %v3411_v62 = vmin.f32 %v10811_v4, 20.0  ;;  %v3172_v59 = vmul.f32 %v7871_v9, %v3171_v43 }
 0x3c3   : > { %v2849_v18 = vmin.f32 %v10808_v10, 20.0  ;;  %v3262_v8 = vsel %vm2878_vm6, %v10754_v26, %v3166_v24  ;;  %v3576_v60 = vsel %vm10803_vm9, %v3573_v47, %v3570_v46  ;;  %vm10827_vm12 = vcmp.lt.f32.partialorder %v3173_v35, 0.0004427343 }
 0x3c4   : > { %3376 = vmatmul.f32.gmra.mxu0 %v3262_v8  ;;  %v3824_v40 = vsel %vm3440_vm7, %v10757_v30, %v3576_v60  ;;  %v3482_v57 = vmul.f32 1.442695, %v3411_v62  ;;  %v3582_v23 = vmul.f32 %v7873_v52, %v3581_v19  ;;  %vm10831_vm13 = vcmp.lt.f32.partialorder %v3583_v48, 0.0004427343 }
 0x3c5   : > { %v7879_v25 = vpop.eup %7878  ;;  %v2939_v3 = vmul.f32 1.442695, %v2849_v18  ;;  %3900 = vmatmul.f32.gmra.mxu1 %v3824_v40  ;;  %vm2881_vm2 = vcmp.gt.f32.partialorder %v10808_v10, 20.0  ;;  %vm3443_vm3 = vcmp.gt.f32.partialorder %v10811_v4, 20.0 }
 0x3c6   : > { %v7881_v16 = vpop.eup %7880  ;;  %v3176_v21 = vadd.f32 1.0, %v7879_v25  ;;  %v3179_v45 = vmul.f32 -0.5, %v7879_v25  ;;  %v3182_v31 = vand.u32 2147483647, %v7879_v25 }
 0x3c7   : > { %v7883_v41 = vpop.eup %7882  ;;  %7886 = vpow2.f32 %v2939_v3  ;;  %v3586_v17 = vadd.f32 1.0, %v7881_v16  ;;  %v3332_v22 = vpop.f32.mrf.mxu0  ;;  %v3589_v61 = vmul.f32 -0.5, %v7881_v16  ;;  %v3592_v11 = vand.u32 2147483647, %v7881_v16 }
 0x3c8   : > { %v7885_v37 = vpop.eup %7884  ;;  %7888 = vpow2.f32 %v3482_v57  ;;  %v2808_v12 = vpop.f32.mrf.mxu3  ;;  %v3169_v2 = vmul.f32 0.6931472, %v7883_v41  ;;  %v10839_v34 = vadd.f32 %v10693_v58, %v3332_v22  ;;  %v3180_v13 = vadd.f32 1.0, %v3179_v45  ;;  %v4438_v22 = vld [vmem:[#allocation14 + $0x28] sm:$0xff] }
 0x3c9   : > { %v10836_v0 = vadd.f32 %v10661_v44, %v2808_v12  ;;  %v3579_v29 = vmul.f32 0.6931472, %v7885_v37  ;;  %7890 = vlog2.f32 %v3176_v21  ;;  %v3590_v52 = vadd.f32 1.0, %v3589_v61  ;;  %4463 = vmatpush.msrb.mxu2 %v4438_v22 }
 0x3ca   : > { %v3175_v6 = vsel %vm10827_vm12, %v3172_v59, %v3169_v2  ;;  %7892 = vlog2.f32 %v3586_v17  ;;  %v3412_v9 = vmin.f32 %v10839_v34, 20.0  ;;  %v3181_v27 = vmul.f32 %v7879_v25, %v3180_v13 }
 0x3cb   : > { %v2850_v53 = vmin.f32 %v10836_v0, 20.0  ;;  %v3263_v5 = vsel %vm2879_vm10, %v10767_v15, %v3175_v6  ;;  %v3585_v28 = vsel %vm10831_vm13, %v3582_v23, %v3579_v29  ;;  %vm10855_vm0 = vcmp.lt.f32.partialorder %v3182_v31, 0.0004427343 }
 0x3cc   : > { %3379 = vmatmul.f32.gmra.mxu0 %v3263_v5  ;;  %v3825_v63 = vsel %vm3441_vm11, %v10770_v1, %v3585_v28  ;;  %v3484_v36 = vmul.f32 1.442695, %v3412_v9  ;;  %vm10859_vm1 = vcmp.lt.f32.partialorder %v3592_v11, 0.0004427343  ;;  %v3591_v55 = vmul.f32 %v7881_v16, %v3590_v52 }
 0x3cd   : > { %v7887_v50 = vpop.eup %7886  ;;  %v2941_v20 = vmul.f32 1.442695, %v2850_v53  ;;  %3903 = vmatmul.f32.gmra.mxu1 %v3825_v63  ;;  %vm2882_vm6 = vcmp.gt.f32.partialorder %v10836_v0, 20.0  ;;  %vm3444_vm7 = vcmp.gt.f32.partialorder %v10839_v34, 20.0 }
 0x3ce   : > { %v7889_v54 = vpop.eup %7888  ;;  %v3185_v35 = vadd.f32 1.0, %v7887_v50  ;;  %v3188_v51 = vmul.f32 -0.5, %v7887_v50  ;;  %v3191_v46 = vand.u32 2147483647, %v7887_v50 }
 0x3cf   : > { %v7891_v7 = vpop.eup %7890  ;;  %7894 = vpow2.f32 %v2941_v20  ;;  %v3595_v39 = vadd.f32 1.0, %v7889_v54  ;;  %v3598_v14 = vmul.f32 -0.5, %v7889_v54  ;;  %v3335_v47 = vpop.f32.mrf.mxu0  ;;  %v3601_v16 = vand.u32 2147483647, %v7889_v54 }
 0x3d0   : > { %v7893_v32 = vpop.eup %7892  ;;  %7896 = vpow2.f32 %v3484_v36  ;;  %v2811_v56 = vpop.f32.mrf.mxu3  ;;  %v3178_v48 = vmul.f32 0.6931472, %v7891_v7  ;;  %v10867_v43 = vadd.f32 %v10693_v58, %v3335_v47  ;;  %v3189_v62 = vadd.f32 1.0, %v3188_v51  ;;  %v4437_v47 = vld [vmem:[#allocation14 + $0x20] sm:$0xff] }
 0x3d1   : > { %v10864_v24 = vadd.f32 %v10661_v44, %v2811_v56  ;;  %v3588_v19 = vmul.f32 0.6931472, %v7893_v32  ;;  %7898 = vlog2.f32 %v3185_v35  ;;  %v3599_v8 = vadd.f32 1.0, %v3598_v14  ;;  %v5027_v56 = vld [vmem:[#allocation16 + $0x68] sm:$0xff]  ;;  %4464 = vmatpush.msrb.mxu2 %v4437_v47 }
 0x3d2   : > { %v3184_v18 = vsel %vm10855_vm0, %v3181_v27, %v3178_v48  ;;  %7900 = vlog2.f32 %v3595_v39  ;;  %v3413_v40 = vmin.f32 %v10867_v43, 20.0  ;;  %v3190_v41 = vmul.f32 %v7887_v50, %v3189_v62  ;;  %5036 = vmatpush.msra.mxu3 %v5027_v56  ;;  %v8658_v62 = vld [vmem:[%s12884_s8] ss:$0 sm:$0xff] }
 0x3d3   : > { %v2851_v60 = vmin.f32 %v10864_v24, 20.0  ;;  %v3264_v25 = vsel %vm2880_vm14, %v10785_v49, %v3184_v18  ;;  %v3594_v3 = vsel %vm10859_vm1, %v3591_v55, %v3588_v19  ;;  %vm10883_vm4 = vcmp.lt.f32.partialorder %v3191_v46, 0.0004427343 }
 0x3d4   : > { %3382 = vmatmul.f32.gmra.mxu0 %v3264_v25  ;;  %v3826_v57 = vsel %vm3442_vm15, %v10788_v42, %v3594_v3  ;;  %v3486_v21 = vmul.f32 1.442695, %v3413_v40  ;;  %v3600_v42 = vmul.f32 %v7889_v54, %v3599_v8  ;;  %vm10887_vm5 = vcmp.lt.f32.partialorder %v3601_v16, 0.0004427343 }
 0x3d5   : > { %v7895_v59 = vpop.eup %7894  ;;  %v2943_v26 = vmul.f32 1.442695, %v2851_v60  ;;  %3906 = vmatmul.f32.gmra.mxu1 %v3826_v57  ;;  %vm2883_vm10 = vcmp.gt.f32.partialorder %v10864_v24, 20.0  ;;  %vm3445_vm12 = vcmp.gt.f32.partialorder %v10867_v43, 20.0 }
 0x3d6   : > { %v7897_v45 = vpop.eup %7896  ;;  %v3194_v23 = vadd.f32 1.0, %v7895_v59  ;;  %v3197_v30 = vmul.f32 -0.5, %v7895_v59  ;;  %v3200_v6 = vand.u32 2147483647, %v7895_v59 }
 0x3d7   : > { %v7899_v17 = vpop.eup %7898  ;;  %7902 = vpow2.f32 %v2943_v26  ;;  %v3604_v37 = vadd.f32 1.0, %v7897_v45  ;;  %v3607_v12 = vmul.f32 -0.5, %v7897_v45  ;;  %v3338_v61 = vpop.f32.mrf.mxu0  ;;  %v3610_v36 = vand.u32 2147483647, %v7897_v45 }
 0x3d8   : > { %v7901_v2 = vpop.eup %7900  ;;  %7904 = vpow2.f32 %v3486_v21  ;;  %v2814_v31 = vpop.f32.mrf.mxu3  ;;  %v3187_v33 = vmul.f32 0.6931472, %v7899_v17  ;;  %v10895_v11 = vadd.f32 %v10693_v58, %v3338_v61  ;;  %v3198_v5 = vadd.f32 1.0, %v3197_v30 }
 0x3d9   : > { %v10892_v13 = vadd.f32 %v10661_v44, %v2814_v31  ;;  %v3597_v53 = vmul.f32 0.6931472, %v7901_v2  ;;  %7906 = vlog2.f32 %v3194_v23  ;;  %v3608_v28 = vadd.f32 1.0, %v3607_v12 }
 0x3da   : > { %v3193_v9 = vsel %vm10883_vm4, %v3190_v41, %v3187_v33  ;;  %7908 = vlog2.f32 %v3604_v37  ;;  %v3414_v52 = vmin.f32 %v10895_v11, 20.0  ;;  %v3199_v51 = vmul.f32 %v7895_v59, %v3198_v5 }
 0x3db   : > { %v2852_v63 = vmin.f32 %v10892_v13, 20.0  ;;  %v3265_v44 = vsel %vm2881_vm2, %v10808_v10, %v3193_v9  ;;  %v3603_v50 = vsel %vm10887_vm5, %v3600_v42, %v3597_v53  ;;  %vm10911_vm8 = vcmp.lt.f32.partialorder %v3200_v6, 0.0004427343 }
 0x3dc   : > { %3385 = vmatmul.f32.gmra.mxu0 %v3265_v44  ;;  %v3827_v20 = vsel %vm3443_vm3, %v10811_v4, %v3603_v50  ;;  %v3488_v15 = vmul.f32 1.442695, %v3414_v52  ;;  %v3609_v4 = vmul.f32 %v7897_v45, %v3608_v28  ;;  %vm10915_vm9 = vcmp.lt.f32.partialorder %v3610_v36, 0.0004427343 }
 0x3dd   : > { %v7903_v54 = vpop.eup %7902  ;;  %v2945_v27 = vmul.f32 1.442695, %v2852_v63  ;;  %3909 = vmatmul.f32.gmra.mxu1 %v3827_v20  ;;  %vm2884_vm14 = vcmp.gt.f32.partialorder %v10892_v13, 20.0  ;;  %vm3446_vm0 = vcmp.gt.f32.partialorder %v10895_v11, 20.0 }
 0x3de   : > { %v7905_v35 = vpop.eup %7904  ;;  %v3203_v7 = vadd.f32 1.0, %v7903_v54  ;;  %v3206_v1 = vmul.f32 -0.5, %v7903_v54  ;;  %v3209_v18 = vand.u32 2147483647, %v7903_v54 }
 0x3df   : > { %v7907_v39 = vpop.eup %7906  ;;  %7910 = vpow2.f32 %v2945_v27  ;;  %v3613_v14 = vadd.f32 1.0, %v7905_v35  ;;  %v3616_v32 = vmul.f32 -0.5, %v7905_v35  ;;  %v3341_v46 = vpop.f32.mrf.mxu0  ;;  %v3619_v41 = vand.u32 2147483647, %v7905_v35 }
 0x3e0   : > { %v7909_v48 = vpop.eup %7908  ;;  %7912 = vpow2.f32 %v3488_v15  ;;  %v2817_v55 = vpop.f32.mrf.mxu3  ;;  %v3196_v38 = vmul.f32 0.6931472, %v7907_v39  ;;  %v10925_v60 = vadd.f32 %v10693_v58, %v3341_v46  ;;  %v3207_v3 = vadd.f32 1.0, %v3206_v1 }
 0x3e1   : > { %v10922_v8 = vadd.f32 %v8658_v62, %v2817_v55  ;;  %v3606_v40 = vmul.f32 0.6931472, %v7909_v48  ;;  %7914 = vlog2.f32 %v3203_v7  ;;  %v3617_v57 = vadd.f32 1.0, %v3616_v32  ;;  %v5026_v32 = vld [vmem:[#allocation16 + $0x60] sm:$0xff] }
 0x3e2   : > { %v3202_v25 = vsel %vm10911_vm8, %v3199_v51, %v3196_v38  ;;  %7916 = vlog2.f32 %v3613_v14  ;;  %v3415_v59 = vmin.f32 %v10925_v60, 20.0  ;;  %vm10940_vm11 = vcmp.lt.f32.partialorder %v3209_v18, 0.0004427343  ;;  %5037 = vmatpush.msra.mxu3 %v5026_v32  ;;  %v10974_v38 = vld [vmem:[%s12901_s10] ss:$0 sm:$0xff] }
 0x3e3   : > { %v2853_v16 = vmin.f32 %v10922_v8, 20.0  ;;  %v3266_v26 = vsel %vm2882_vm6, %v10836_v0, %v3202_v25  ;;  %v3612_v21 = vsel %vm10915_vm9, %v3609_v4, %v3606_v40  ;;  %v3208_v22 = vmul.f32 %v7903_v54, %v3207_v3 }
 0x3e4   : > { %3388 = vmatmul.f32.gmra.mxu0 %v3266_v26  ;;  %v3828_v45 = vsel %vm3444_vm7, %v10839_v34, %v3612_v21  ;;  %v3490_v30 = vmul.f32 1.442695, %v3415_v59  ;;  %v3618_v34 = vmul.f32 %v7905_v35, %v3617_v57  ;;  %vm10945_vm13 = vcmp.lt.f32.partialorder %v3619_v41, 0.0004427343 }
 0x3e5   : > { %v7911_v49 = vpop.eup %7910  ;;  %v2947_v23 = vmul.f32 1.442695, %v2853_v16  ;;  %3912 = vmatmul.f32.gmra.mxu1 %v3828_v45  ;;  %vm2885_vm3 = vcmp.gt.f32.partialorder %v10922_v8, 20.0  ;;  %vm3447_vm4 = vcmp.gt.f32.partialorder %v10925_v60, 20.0 }
 0x3e6   : > { %v7913_v17 = vpop.eup %7912  ;;  %v3212_v0 = vadd.f32 1.0, %v7911_v49  ;;  %v3215_v37 = vmul.f32 -0.5, %v7911_v49  ;;  %v3218_v44 = vand.u32 2147483647, %v7911_v49 }
 0x3e7   : > { %v7915_v12 = vpop.eup %7914  ;;  %7918 = vpow2.f32 %v2947_v23  ;;  %v3622_v2 = vadd.f32 1.0, %v7913_v17  ;;  %v3344_v33 = vpop.f32.mrf.mxu0  ;;  %v3625_v53 = vmul.f32 -0.5, %v7913_v17  ;;  %v3628_v7 = vand.u32 2147483647, %v7913_v17 }
 0x3e8   : > { %v7917_v31 = vpop.eup %7916  ;;  %7920 = vpow2.f32 %v3490_v30  ;;  %v2820_v61 = vpop.f32.mrf.mxu3  ;;  %v3205_v29 = vmul.f32 0.6931472, %v7915_v12  ;;  %v10952_v5 = vadd.f32 %v10693_v58, %v3344_v33  ;;  %v3216_v52 = vadd.f32 1.0, %v3215_v37  ;;  %v4435_v37 = vld [vmem:[#allocation14 + $0x10] sm:$0xff] }
 0x3e9   : > { %v10949_v9 = vadd.f32 %v8658_v62, %v2820_v61  ;;  %v3615_v28 = vmul.f32 0.6931472, %v7917_v31  ;;  %7922 = vlog2.f32 %v3212_v0  ;;  %v3626_v27 = vadd.f32 1.0, %v3625_v53 }
 0x3ea   : > { %v3211_v63 = vsel %vm10940_vm11, %v3208_v22, %v3205_v29  ;;  %7924 = vlog2.f32 %v3622_v2  ;;  %v3416_v20 = vmin.f32 %v10952_v5, 20.0  ;;  %vm10967_vm15 = vcmp.lt.f32.partialorder %v3218_v44, 0.0004427343 }
 0x3eb   : > { %v2854_v50 = vmin.f32 %v10949_v9, 20.0  ;;  %v3267_v36 = vsel %vm2883_vm10, %v10864_v24, %v3211_v63  ;;  %v3621_v58 = vsel %vm10945_vm13, %v3618_v34, %v3615_v28  ;;  %v3217_v24 = vmul.f32 %v7911_v49, %v3216_v52 }
 0x3ec   : > { %3391 = vmatmul.f32.gmra.mxu0 %v3267_v36  ;;  %v3829_v54 = vsel %vm3445_vm12, %v10867_v43, %v3621_v58  ;;  %v3492_v51 = vmul.f32 1.442695, %v3416_v20  ;;  %v4436_v43 = vld [vmem:[#allocation14 + $0x18] sm:$0xff]  ;;  %v3627_v55 = vmul.f32 %v7913_v17, %v3626_v27  ;;  %vm3629_vm1 = vcmp.lt.f32.partialorder %v3628_v7, 0.0004427343 }
 0x3ed   : > { %v7919_v15 = vpop.eup %7918  ;;  %v2949_v35 = vmul.f32 1.442695, %v2854_v50  ;;  %3915 = vmatmul.f32.gmra.mxu1 %v3829_v54  ;;  %4465 = vmatpush.msrb.mxu2 %v4436_v43  ;;  %v5025_v7 = vld [vmem:[#allocation16 + $0x58] sm:$0xff]  ;;  %vm2886_vm7 = vcmp.gt.f32.partialorder %v10949_v9, 20.0  ;;  %vm3448_vm9 = vcmp.gt.f32.partialorder %v10952_v5, 20.0 }
 0x3ee   : > { %v7921_v10 = vpop.eup %7920  ;;  %v3221_v1 = vadd.f32 1.0, %v7919_v15  ;;  %v3224_v46 = vmul.f32 -0.5, %v7919_v15  ;;  %v3227_v16 = vand.u32 2147483647, %v7919_v15  ;;  %5038 = vmatpush.msra.mxu3 %v5025_v7 }
 0x3ef   : > { %v7923_v39 = vpop.eup %7922  ;;  %7926 = vpow2.f32 %v2949_v35  ;;  %v3631_v14 = vadd.f32 1.0, %v7921_v10  ;;  %v3347_v47 = vpop.f32.mrf.mxu0  ;;  %v3634_v62 = vmul.f32 -0.5, %v7921_v10  ;;  %v3637_v23 = vand.u32 2147483647, %v7921_v10  ;;  %4466 = vmatpush.msrb.mxu2 %v4435_v37 }
 0x3f0   : > { %v7925_v56 = vpop.eup %7924  ;;  %7928 = vpow2.f32 %v3492_v51  ;;  %v3214_v48 = vmul.f32 0.6931472, %v7923_v39  ;;  %v10977_v19 = vadd.f32 %v10974_v38, %v3347_v47  ;;  %v3225_v26 = vadd.f32 1.0, %v3224_v46 }
 0x3f1   : > { %v3624_v18 = vmul.f32 0.6931472, %v7925_v56  ;;  %7930 = vlog2.f32 %v3221_v1  ;;  %v3635_v41 = vadd.f32 1.0, %v3634_v62  ;;  %vm10987_vm2 = vcmp.lt.f32.partialorder %v3227_v16, 0.0004427343 }
 0x3f2   : > { %v3220_v40 = vsel %vm10967_vm15, %v3217_v24, %v3214_v48  ;;  %7932 = vlog2.f32 %v3631_v14  ;;  %v3417_v25 = vmin.f32 %v10977_v19, 20.0  ;;  %v3226_v34 = vmul.f32 %v7919_v15, %v3225_v26 }
 0x3f3   : > { %v3268_v3 = vsel %vm2884_vm14, %v10892_v13, %v3220_v40  ;;  %v3630_v57 = vsel %vm3629_vm1, %v3627_v55, %v3624_v18  ;;  %v3636_v33 = vmul.f32 %v7921_v10, %v3635_v41  ;;  %vm3638_vm5 = vcmp.lt.f32.partialorder %v3637_v23, 0.0004427343 }
 0x3f4   : > { %3394 = vmatmul.f32.gmra.mxu0 %v3268_v3  ;;  %v3830_v59 = vsel %vm3446_vm0, %v10895_v11, %v3630_v57  ;;  %v3494_v45 = vmul.f32 1.442695, %v3417_v25  ;;  %vm3449_vm11 = vcmp.gt.f32.partialorder %v10977_v19, 20.0 }
 0x3f5   : > { %v7927_v21 = vpop.eup %7926  ;;  %3918 = vmatmul.f32.gmra.mxu1 %v3830_v59 }
 0x3f6   : > { %v7929_v49 = vpop.eup %7928  ;;  %v3230_v30 = vadd.f32 1.0, %v7927_v21  ;;  %7934 = vpow2.f32 %v3494_v45  ;;  %v3233_v13 = vmul.f32 -0.5, %v7927_v21  ;;  %v3236_v44 = vand.u32 2147483647, %v7927_v21 }
 0x3f7   : > { %v7931_v17 = vpop.eup %7930  ;;  %v3640_v0 = vadd.f32 1.0, %v7929_v49  ;;  %v3350_v22 = vpop.f32.mrf.mxu0  ;;  %v3643_v2 = vmul.f32 -0.5, %v7929_v49  ;;  %v3646_v58 = vand.u32 2147483647, %v7929_v49 }
 0x3f8   : > { %v7933_v12 = vpop.eup %7932  ;;  %v3223_v11 = vmul.f32 0.6931472, %v7931_v17  ;;  %7936 = vlog2.f32 %v3230_v30  ;;  %v10992_v31 = vadd.f32 %v10974_v38, %v3350_v22  ;;  %v3234_v63 = vadd.f32 1.0, %v3233_v13  ;;  %v5024_v13 = vld [vmem:[#allocation16 + $0x50] sm:$0xff] }
 0x3f9   : > { %v3633_v61 = vmul.f32 0.6931472, %v7933_v12  ;;  %7938 = vlog2.f32 %v3640_v0  ;;  %v3644_v50 = vadd.f32 1.0, %v3643_v2  ;;  %vm3237_vm6 = vcmp.lt.f32.partialorder %v3236_v44, 0.0004427343  ;;  %v4433_v0 = vld [vmem:[#allocation14] sm:$0xff]  ;;  %5039 = vmatpush.msra.mxu3 %v5024_v13 }
 0x3fa   : > { %v3229_v29 = vsel %vm10987_vm2, %v3226_v34, %v3223_v11  ;;  %v3418_v6 = vmin.f32 %v10992_v31, 20.0  ;;  %v3235_v51 = vmul.f32 %v7927_v21, %v3234_v63  ;;  %vm3647_vm8 = vcmp.lt.f32.partialorder %v3646_v58, 0.0004427343  ;;  %v11024_v63 = vld [vmem:[%s12755_s12] ss:$0 sm:$0xff] }
 0x3fb   : > { %v3269_v53 = vsel %vm2885_vm3, %v10922_v8, %v3229_v29  ;;  %v3639_v28 = vsel %vm3638_vm5, %v3636_v33, %v3633_v61  ;;  %v3645_v39 = vmul.f32 %v7929_v49, %v3644_v50  ;;  %vm3450_vm13 = vcmp.gt.f32.partialorder %v10992_v31, 20.0 }
 0x3fc   : > { %3397 = vmatmul.f32.gmra.mxu0 %v3269_v53  ;;  %v3831_v52 = vsel %vm3447_vm4, %v10925_v60, %v3639_v28  ;;  %v7935_v20 = vpop.eup %7934  ;;  %v3496_v36 = vmul.f32 1.442695, %v3418_v6 }
 0x3fd   : > { %3921 = vmatmul.f32.gmra.mxu1 %v3831_v52  ;;  %v3649_v27 = vadd.f32 1.0, %v7935_v20  ;;  %v3652_v10 = vmul.f32 -0.5, %v7935_v20  ;;  %v3655_v47 = vand.u32 2147483647, %v7935_v20 }
 0x3fe   : > { %v7937_v54 = vpop.eup %7936  ;;  %7940 = vpow2.f32 %v3496_v36 }
 0x3ff   : > { %v7939_v15 = vpop.eup %7938  ;;  %v3232_v35 = vmul.f32 0.6931472, %v7937_v54  ;;  %v3353_v8 = vpop.f32.mrf.mxu0  ;;  %7942 = vlog2.f32 %v3649_v27  ;;  %v3653_v56 = vadd.f32 1.0, %v3652_v10  ;;  %vm3656_vm10 = vcmp.lt.f32.partialorder %v3655_v47, 0.0004427343 }
 0x400   : > { %v3642_v1 = vmul.f32 0.6931472, %v7939_v15  ;;  %v11002_v60 = vadd.f32 %v10974_v38, %v3353_v8 }
 0x401   : > { %v3238_v24 = vsel %vm3237_vm6, %v3235_v51, %v3232_v35  ;;  %v3654_v40 = vmul.f32 %v7935_v20, %v3653_v56 }
 0x402   : > { %v3270_v4 = vsel %vm2886_vm7, %v10949_v9, %v3238_v24  ;;  %v3648_v14 = vsel %vm3647_vm8, %v3645_v39, %v3642_v1  ;;  %v3419_v32 = vmin.f32 %v11002_v60, 20.0  ;;  %v4434_v9 = vld [vmem:[#allocation14 + $0x8] sm:$0xff]  ;;  %vm3451_vm15 = vcmp.gt.f32.partialorder %v11002_v60, 20.0 }
 0x403   : > { %v3832_v43 = vsel %vm3448_vm9, %v10952_v5, %v3648_v14  ;;  %4467 = vmatpush.msrb.mxu2 %v4434_v9  ;;  %v5023_v14 = vld [vmem:[#allocation16 + $0x48] sm:$0xff] }
 0x404   : > { %3400 = vmatmul.f32.gmra.mxu0 %v3270_v4  ;;  %v7941_v48 = vpop.eup %7940  ;;  %v3498_v55 = vmul.f32 1.442695, %v3419_v32  ;;  %5040 = vmatpush.msra.mxu3 %v5023_v14 }
 0x405   : > { %3924 = vmatmul.f32.gmra.mxu1 %v3832_v43  ;;  %v7943_v46 = vpop.eup %7942  ;;  %v3658_v18 = vadd.f32 1.0, %v7941_v48  ;;  %v3661_v25 = vmul.f32 -0.5, %v7941_v48  ;;  %v3664_v21 = vand.u32 2147483647, %v7941_v48  ;;  %4468 = vmatpush.msrb.mxu2 %v4433_v0 }
 0x406   : > { %7944 = vpow2.f32 %v3498_v55  ;;  %v3651_v62 = vmul.f32 0.6931472, %v7943_v46 }
 0x407   : > { %v3356_v3 = vpop.f32.mrf.mxu0  ;;  %7946 = vlog2.f32 %v3658_v18  ;;  %v3662_v26 = vadd.f32 1.0, %v3661_v25  ;;  %vm3665_vm12 = vcmp.lt.f32.partialorder %v3664_v21, 0.0004427343 }
 0x408   : > { %v11010_v57 = vadd.f32 %v10974_v38, %v3356_v3  ;;  %v3657_v5 = vsel %vm3656_vm10, %v3654_v40, %v3651_v62 }
 0x409   : > { %v3833_v16 = vsel %vm3449_vm11, %v10977_v19, %v3657_v5  ;;  %v3663_v17 = vmul.f32 %v7941_v48, %v3662_v26 }
 0x40a   : > { %v3420_v59 = vmin.f32 %v11010_v57, 20.0  ;;  %vm3452_vm1 = vcmp.gt.f32.partialorder %v11010_v57, 20.0 }
 0x40c   : > { %v7945_v45 = vpop.eup %7944  ;;  %v3500_v41 = vmul.f32 1.442695, %v3420_v59 }
 0x40d   : > { %3927 = vmatmul.f32.gmra.mxu1 %v3833_v16  ;;  %v7947_v49 = vpop.eup %7946  ;;  %v3667_v23 = vadd.f32 1.0, %v7945_v45  ;;  %v3670_v42 = vmul.f32 -0.5, %v7945_v45  ;;  %v3673_v2 = vand.u32 2147483647, %v7945_v45 }
 0x40e   : > { %7948 = vpow2.f32 %v3500_v41  ;;  %v3660_v30 = vmul.f32 0.6931472, %v7947_v49 }
 0x40f   : > { %7950 = vlog2.f32 %v3667_v23  ;;  %v3671_v34 = vadd.f32 1.0, %v3670_v42  ;;  %vm3674_vm14 = vcmp.lt.f32.partialorder %v3673_v2, 0.0004427343 }
 0x410   : > { %v3359_v37 = vpop.f32.mrf.mxu0  ;;  %v3666_v12 = vsel %vm3665_vm12, %v3663_v17, %v3660_v30 }
 0x411   : > { %v11016_v19 = vadd.f32 %v10974_v38, %v3359_v37  ;;  %v3834_v22 = vsel %vm3450_vm13, %v10992_v31, %v3666_v12  ;;  %v3672_v28 = vmul.f32 %v7945_v45, %v3671_v34 }
 0x413   : > { %v3421_v11 = vmin.f32 %v11016_v19, 20.0  ;;  %vm3453_vm2 = vcmp.gt.f32.partialorder %v11016_v19, 20.0 }
 0x414   : > { %v7949_v61 = vpop.eup %7948 }
 0x415   : > { %v3502_v33 = vmul.f32 1.442695, %v3421_v11  ;;  %3930 = vmatmul.f32.gmra.mxu1 %v3834_v22  ;;  %v7951_v29 = vpop.eup %7950  ;;  %v3676_v6 = vadd.f32 1.0, %v7949_v61  ;;  %v3679_v52 = vmul.f32 -0.5, %v7949_v61  ;;  %v3682_v15 = vand.u32 2147483647, %v7949_v61 }
 0x416   : > { %v3669_v53 = vmul.f32 0.6931472, %v7951_v29 }
 0x417   : > { %7952 = vpow2.f32 %v3502_v33  ;;  %v3680_v27 = vadd.f32 1.0, %v3679_v52  ;;  %vm3683_vm0 = vcmp.lt.f32.partialorder %v3682_v15, 0.0004427343  ;;  %v5022_v15 = vld [vmem:[#allocation16 + $0x40] sm:$0xff] }
 0x418   : > { %v3362_v44 = vpop.f32.mrf.mxu0  ;;  %7954 = vlog2.f32 %v3676_v6  ;;  %v3675_v50 = vsel %vm3674_vm14, %v3672_v28, %v3669_v53  ;;  %5041 = vmatpush.msra.mxu3 %v5022_v15 }
 0x419   : > { %v11027_v31 = vadd.f32 %v10974_v38, %v3362_v44  ;;  %v3835_v20 = vsel %vm3451_vm15, %v11002_v60, %v3675_v50  ;;  %v3681_v60 = vmul.f32 %v7949_v61, %v3680_v27 }
 0x41a   : > { %v3889_v36 = vpop.f32.mrf.mxu1 }
 0x41b   : > { %v3422_v58 = vmin.f32 %v11027_v31, 20.0  ;;  %v11033_v54 = vadd.f32 %v11024_v63, %v3889_v36  ;;  %vm3454_vm4 = vcmp.gt.f32.partialorder %v11027_v31, 20.0 }
 0x41d   : > { %v7953_v35 = vpop.eup %7952  ;;  %v3504_v51 = vmul.f32 1.442695, %v3422_v58  ;;  %3933 = vmatmul.f32.gmra.mxu1 %v3835_v20  ;;  %v3985_v10 = vmin.f32 %v11033_v54, 20.0  ;;  %vm4017_vm7 = vcmp.gt.f32.partialorder %v11033_v54, 20.0 }
 0x41e   : > { %v7955_v7 = vpop.eup %7954  ;;  %v3685_v8 = vadd.f32 1.0, %v7953_v35  ;;  %v3688_v1 = vmul.f32 -0.5, %v7953_v35  ;;  %v3691_v46 = vand.u32 2147483647, %v7953_v35 }
 0x41f   : > { %7956 = vpow2.f32 %v3504_v51  ;;  %v4049_v39 = vmul.f32 1.442695, %v3985_v10  ;;  %v3678_v24 = vmul.f32 0.6931472, %v7955_v7 }
 0x420   : > { %v3365_v4 = vpop.f32.mrf.mxu0  ;;  %7958 = vlog2.f32 %v3685_v8  ;;  %v3689_v47 = vadd.f32 1.0, %v3688_v1  ;;  %vm3692_vm3 = vcmp.lt.f32.partialorder %v3691_v46, 0.0004427343 }
 0x421   : > { %v11037_v32 = vadd.f32 %v10974_v38, %v3365_v4  ;;  %7960 = vpow2.f32 %v4049_v39  ;;  %v3684_v43 = vsel %vm3683_vm0, %v3681_v60, %v3678_v24 }
 0x422   : > { %v3836_v56 = vsel %vm3452_vm1, %v11010_v57, %v3684_v43  ;;  %v3690_v9 = vmul.f32 %v7953_v35, %v3689_v47 }
 0x423   : > { %v3423_v48 = vmin.f32 %v11037_v32, 20.0  ;;  %vm3455_vm9 = vcmp.gt.f32.partialorder %v11037_v32, 20.0 }
 0x424   : > { %v3892_v55 = vpop.f32.mrf.mxu1 }
 0x425   : > { %v7957_v18 = vpop.eup %7956  ;;  %v3506_v62 = vmul.f32 1.442695, %v3423_v48  ;;  %3936 = vmatmul.f32.gmra.mxu1 %v3836_v56  ;;  %v11043_v40 = vadd.f32 %v11024_v63, %v3892_v55 }
 0x426   : > { %v7959_v25 = vpop.eup %7958  ;;  %v3694_v3 = vadd.f32 1.0, %v7957_v18  ;;  %v3697_v57 = vmul.f32 -0.5, %v7957_v18  ;;  %v3700_v0 = vand.u32 2147483647, %v7957_v18 }
 0x427   : > { %v7961_v5 = vpop.eup %7960  ;;  %7962 = vpow2.f32 %v3506_v62  ;;  %v3986_v16 = vmin.f32 %v11043_v40, 20.0  ;;  %v3687_v59 = vmul.f32 0.6931472, %v7959_v25  ;;  %vm4018_vm11 = vcmp.gt.f32.partialorder %v11043_v40, 20.0 }
 0x428   : > { %v3368_v26 = vpop.f32.mrf.mxu0  ;;  %7964 = vlog2.f32 %v3694_v3  ;;  %v4113_v21 = vadd.f32 1.0, %v7961_v5  ;;  %v4116_v23 = vmul.f32 -0.5, %v7961_v5  ;;  %v3698_v42 = vadd.f32 1.0, %v3697_v57 }
 0x429   : > { %v11048_v45 = vadd.f32 %v10974_v38, %v3368_v26  ;;  %v4051_v41 = vmul.f32 1.442695, %v3986_v16  ;;  %v3693_v49 = vsel %vm3692_vm3, %v3690_v9, %v3687_v59  ;;  %v4119_v12 = vand.u32 2147483647, %v7961_v5 }
 0x42a   : > { %v3837_v30 = vsel %vm3453_vm2, %v11016_v19, %v3693_v49  ;;  %7966 = vlog2.f32 %v4113_v21  ;;  %v4117_v37 = vadd.f32 1.0, %v4116_v23  ;;  %v3699_v6 = vmul.f32 %v7957_v18, %v3698_v42 }
 0x42b   : > { %v3424_v17 = vmin.f32 %v11048_v45, 20.0  ;;  %7968 = vpow2.f32 %v4051_v41  ;;  %vm3701_vm5 = vcmp.lt.f32.partialorder %v3700_v0, 0.0004427343  ;;  %vm11057_vm6 = vcmp.lt.f32.partialorder %v4119_v12, 0.0004427343 }
 0x42c   : > { %v3895_v13 = vpop.f32.mrf.mxu1  ;;  %v4118_v52 = vmul.f32 %v7961_v5, %v4117_v37  ;;  %vm3456_vm13 = vcmp.gt.f32.partialorder %v11048_v45, 20.0 }
 0x42d   : > { %v7963_v22 = vpop.eup %7962  ;;  %v3508_v11 = vmul.f32 1.442695, %v3424_v17  ;;  %3939 = vmatmul.f32.gmra.mxu1 %v3837_v30  ;;  %v11053_v34 = vadd.f32 %v11024_v63, %v3895_v13 }
 0x42e   : > { %v7965_v2 = vpop.eup %7964  ;;  %v3703_v61 = vadd.f32 1.0, %v7963_v22  ;;  %v3706_v19 = vmul.f32 -0.5, %v7963_v22  ;;  %v3709_v24 = vand.u32 2147483647, %v7963_v22 }
 0x42f   : > { %7970 = vpow2.f32 %v3508_v11  ;;  %v3987_v33 = vmin.f32 %v11053_v34, 20.0  ;;  %v3696_v29 = vmul.f32 0.6931472, %v7965_v2  ;;  %vm4019_vm15 = vcmp.gt.f32.partialorder %v11053_v34, 20.0 }
 0x430   : > { %v7967_v53 = vpop.eup %7966  ;;  %v3371_v28 = vpop.f32.mrf.mxu0  ;;  %7972 = vlog2.f32 %v3703_v61  ;;  %v3707_v51 = vadd.f32 1.0, %v3706_v19  ;;  %vm3710_vm8 = vcmp.lt.f32.partialorder %v3709_v24, 0.0004427343 }
 0x431   : > { %v7969_v50 = vpop.eup %7968  ;;  %v11062_v20 = vadd.f32 %v10974_v38, %v3371_v28  ;;  %v4053_v36 = vmul.f32 1.442695, %v3987_v33  ;;  %v3702_v58 = vsel %vm3701_vm5, %v3699_v6, %v3696_v29  ;;  %v4115_v27 = vmul.f32 0.6931472, %v7967_v53  ;;  %v5021_v6 = vld [vmem:[#allocation16 + $0x38] sm:$0xff] }
 0x432   : > { %v3838_v35 = vsel %vm3454_vm4, %v11027_v31, %v3702_v58  ;;  %v4122_v10 = vadd.f32 1.0, %v7969_v50  ;;  %v4125_v7 = vmul.f32 -0.5, %v7969_v50  ;;  %v3708_v56 = vmul.f32 %v7963_v22, %v3707_v51  ;;  %5042 = vmatpush.msra.mxu3 %v5021_v6 }
 0x433   : > { %v3425_v8 = vmin.f32 %v11062_v20, 20.0  ;;  %7974 = vpow2.f32 %v4053_v36  ;;  %v4121_v1 = vsel %vm11057_vm6, %v4118_v52, %v4115_v27  ;;  %vm3457_vm1 = vcmp.gt.f32.partialorder %v11062_v20, 20.0 }
 0x434   : > { %v3898_v39 = vpop.f32.mrf.mxu1  ;;  %v4401_v60 = vsel %vm4017_vm7, %v11033_v54, %v4121_v1  ;;  %7976 = vlog2.f32 %v4122_v10  ;;  %v4126_v48 = vadd.f32 1.0, %v4125_v7  ;;  %v4128_v54 = vand.u32 2147483647, %v7969_v50 }
 0x435   : > { %v7971_v4 = vpop.eup %7970  ;;  %v3510_v14 = vmul.f32 1.442695, %v3425_v8  ;;  %3942 = vmatmul.f32.gmra.mxu1 %v3838_v35  ;;  %v11073_v31 = vadd.f32 %v11024_v63, %v3898_v39  ;;  %4469 = vmatmul.f32.vlgmr.msrb.gmra.mxu2 %v4401_v60 }
 0x436   : > { %v7973_v43 = vpop.eup %7972  ;;  %v3712_v47 = vadd.f32 1.0, %v7971_v4  ;;  %v3715_v18 = vmul.f32 -0.5, %v7971_v4  ;;  %v4127_v57 = vmul.f32 %v7969_v50, %v4126_v48  ;;  %v3718_v30 = vand.u32 2147483647, %v7971_v4 }
 0x437   : > { %7978 = vpow2.f32 %v3510_v14  ;;  %v3988_v55 = vmin.f32 %v11073_v31, 20.0  ;;  %v3705_v46 = vmul.f32 0.6931472, %v7973_v43  ;;  %vm4129_vm10 = vcmp.lt.f32.partialorder %v4128_v54, 0.0004427343 }
 0x438   : > { %7980 = vlog2.f32 %v3712_v47  ;;  %v3716_v21 = vadd.f32 1.0, %v3715_v18  ;;  %vm3719_vm12 = vcmp.lt.f32.partialorder %v3718_v30, 0.0004427343  ;;  %vm4020_vm3 = vcmp.gt.f32.partialorder %v11073_v31, 20.0 }
 0x439   : > { %v7975_v62 = vpop.eup %7974  ;;  %v3374_v25 = vpop.f32.mrf.mxu0  ;;  %v4055_v9 = vmul.f32 1.442695, %v3988_v55  ;;  %v3711_v3 = vsel %vm3710_vm8, %v3708_v56, %v3705_v46 }
 0x43a   : > { %v7977_v5 = vpop.eup %7976  ;;  %v11078_v16 = vadd.f32 %v10974_v38, %v3374_v25  ;;  %v3839_v59 = vsel %vm3455_vm9, %v11037_v32, %v3711_v3  ;;  %v4131_v26 = vadd.f32 1.0, %v7975_v62  ;;  %v4134_v49 = vmul.f32 -0.5, %v7975_v62 }
 0x43b   : > { %7982 = vpow2.f32 %v4055_v9  ;;  %v4124_v41 = vmul.f32 0.6931472, %v7977_v5  ;;  %v3717_v22 = vmul.f32 %v7971_v4, %v3716_v21  ;;  %v4137_v61 = vand.u32 2147483647, %v7975_v62 }
 0x43c   : > { %v3426_v23 = vmin.f32 %v11078_v16, 20.0  ;;  %7984 = vlog2.f32 %v4131_v26  ;;  %v4135_v11 = vadd.f32 1.0, %v4134_v49  ;;  %vm3458_vm4 = vcmp.gt.f32.partialorder %v11078_v16, 20.0 }
 0x43d   : > { %v7979_v17 = vpop.eup %7978  ;;  %3945 = vmatmul.f32.gmra.mxu1 %v3839_v59  ;;  %v4130_v42 = vsel %vm4129_vm10, %v4127_v57, %v4124_v41  ;;  %vm4138_vm14 = vcmp.lt.f32.partialorder %v4137_v61, 0.0004427343 }
 0x43e   : > { %v7981_v13 = vpop.eup %7980  ;;  %v3512_v0 = vmul.f32 1.442695, %v3426_v23  ;;  %v4402_v32 = vsel %vm4018_vm11, %v11043_v40, %v4130_v42  ;;  %v3721_v37 = vadd.f32 1.0, %v7979_v17  ;;  %v3724_v2 = vmul.f32 -0.5, %v7979_v17 }
 0x43f   : > { %v3714_v12 = vmul.f32 0.6931472, %v7981_v13  ;;  %4472 = vmatmul.f32.gmra.mxu2 %v4402_v32  ;;  %v4136_v58 = vmul.f32 %v7975_v62, %v4135_v11  ;;  %v3727_v10 = vand.u32 2147483647, %v7979_v17 }
 0x440   : > { %7986 = vpow2.f32 %v3512_v0  ;;  %v3725_v35 = vadd.f32 1.0, %v3724_v2 }
 0x441   : > { %v7983_v19 = vpop.eup %7982  ;;  %v3377_v33 = vpop.f32.mrf.mxu0  ;;  %v3720_v29 = vsel %vm3719_vm12, %v3717_v22, %v3714_v12  ;;  %7988 = vlog2.f32 %v3721_v37  ;;  %vm3728_vm0 = vcmp.lt.f32.partialorder %v3727_v10, 0.0004427343  ;;  %v5020_v12 = vld [vmem:[#allocation16 + $0x30] sm:$0xff] }
 0x442   : > { %v7985_v53 = vpop.eup %7984  ;;  %v11086_v28 = vadd.f32 %v10974_v38, %v3377_v33  ;;  %v3901_v40 = vpop.f32.mrf.mxu1  ;;  %v3840_v52 = vsel %vm3456_vm13, %v11048_v45, %v3720_v29  ;;  %v4140_v44 = vadd.f32 1.0, %v7983_v19  ;;  %v4143_v27 = vmul.f32 -0.5, %v7983_v19  ;;  %5043 = vmatpush.msra.mxu3 %v5020_v12 }
 0x443   : > { %v11090_v50 = vadd.f32 %v11024_v63, %v3901_v40  ;;  %v4133_v36 = vmul.f32 0.6931472, %v7985_v53  ;;  %v3726_v43 = vmul.f32 %v7979_v17, %v3725_v35  ;;  %v4146_v56 = vand.u32 2147483647, %v7983_v19 }
 0x444   : > { %v3427_v15 = vmin.f32 %v11086_v28, 20.0  ;;  %7990 = vlog2.f32 %v4140_v44  ;;  %v4144_v4 = vadd.f32 1.0, %v4143_v27  ;;  %vm3459_vm6 = vcmp.gt.f32.partialorder %v11086_v28, 20.0 }
 0x445   : > { %v3989_v51 = vmin.f32 %v11090_v50, 20.0  ;;  %3948 = vmatmul.f32.gmra.mxu1 %v3840_v52  ;;  %v4139_v45 = vsel %vm4138_vm14, %v4136_v58, %v4133_v36  ;;  %vm4147_vm2 = vcmp.lt.f32.partialorder %v4146_v56, 0.0004427343  ;;  %vm4021_vm8 = vcmp.gt.f32.partialorder %v11090_v50, 20.0 }
 0x446   : > { %v7987_v7 = vpop.eup %7986  ;;  %v3514_v8 = vmul.f32 1.442695, %v3427_v15  ;;  %v4403_v1 = vsel %vm4019_vm15, %v11053_v34, %v4139_v45  ;;  %v4145_v9 = vmul.f32 %v7983_v19, %v4144_v4 }
 0x447   : > { %v7989_v39 = vpop.eup %7988  ;;  %v4057_v24 = vmul.f32 1.442695, %v3989_v51  ;;  %4475 = vmatmul.f32.gmra.mxu2 %v4403_v1  ;;  %v3730_v60 = vadd.f32 1.0, %v7987_v7  ;;  %v3733_v48 = vmul.f32 -0.5, %v7987_v7  ;;  %v3736_v41 = vand.u32 2147483647, %v7987_v7 }
 0x448   : > { %7992 = vpow2.f32 %v3514_v8  ;;  %v3723_v14 = vmul.f32 0.6931472, %v7989_v39 }
 0x449   : > { %7994 = vpow2.f32 %v4057_v24  ;;  %v3380_v47 = vpop.f32.mrf.mxu0  ;;  %v3734_v59 = vadd.f32 1.0, %v3733_v48  ;;  %vm3737_vm5 = vcmp.lt.f32.partialorder %v3736_v41, 0.0004427343 }
 0x44a   : > { %v7991_v55 = vpop.eup %7990  ;;  %v11097_v46 = vadd.f32 %v10974_v38, %v3380_v47  ;;  %v3904_v18 = vpop.f32.mrf.mxu1  ;;  %v3729_v34 = vsel %vm3728_vm0, %v3726_v43, %v3723_v14  ;;  %7996 = vlog2.f32 %v3730_v60  ;;  %v5610_v60 = vld [vmem:[#allocation17 + $0x78] sm:$0xff] }
 0x44b   : > { %v11101_v54 = vadd.f32 %v11024_v63, %v3904_v18  ;;  %v3841_v62 = vsel %vm3457_vm1, %v11062_v20, %v3729_v34  ;;  %v4142_v25 = vmul.f32 0.6931472, %v7991_v55  ;;  %v3735_v32 = vmul.f32 %v7987_v7, %v3734_v59  ;;  %5615 = vmatpush.msra.mxu0 %v5610_v60 }
 0x44c   : > { %v3428_v3 = vmin.f32 %v11097_v46, 20.0  ;;  %vm3460_vm10 = vcmp.gt.f32.partialorder %v11097_v46, 20.0 }
 0x44d   : > { %v3990_v5 = vmin.f32 %v11101_v54, 20.0  ;;  %3951 = vmatmul.f32.gmra.mxu1 %v3841_v62  ;;  %v4148_v57 = vsel %vm4147_vm2, %v4145_v9, %v4142_v25  ;;  %vm4022_vm12 = vcmp.gt.f32.partialorder %v11101_v54, 20.0 }
 0x44e   : > { %v7993_v26 = vpop.eup %7992  ;;  %v3516_v21 = vmul.f32 1.442695, %v3428_v3  ;;  %v4404_v49 = vsel %vm4020_vm3, %v11073_v31, %v4148_v57 }
 0x44f   : > { %v7995_v23 = vpop.eup %7994  ;;  %v4059_v30 = vmul.f32 1.442695, %v3990_v5  ;;  %4478 = vmatmul.f32.gmra.mxu2 %v4404_v49  ;;  %v3739_v20 = vadd.f32 1.0, %v7993_v26  ;;  %v3742_v37 = vmul.f32 -0.5, %v7993_v26  ;;  %v3745_v19 = vand.u32 2147483647, %v7993_v26 }
 0x450   : > { %v7997_v17 = vpop.eup %7996  ;;  %7998 = vpow2.f32 %v3516_v21  ;;  %v4149_v42 = vadd.f32 1.0, %v7995_v23  ;;  %v4152_v31 = vmul.f32 -0.5, %v7995_v23  ;;  %v4155_v6 = vand.u32 2147483647, %v7995_v23 }
 0x451   : > { %8000 = vpow2.f32 %v4059_v30  ;;  %v3383_v13 = vpop.f32.mrf.mxu0  ;;  %v3732_v0 = vmul.f32 0.6931472, %v7997_v17  ;;  %v3743_v40 = vadd.f32 1.0, %v3742_v37  ;;  %vm11121_vm7 = vcmp.lt.f32.partialorder %v3745_v19, 0.0004427343  ;;  %v5019_v37 = vld [vmem:[#allocation16 + $0x28] sm:$0xff] }
 0x452   : > { %v11110_v22 = vadd.f32 %v10974_v38, %v3383_v13  ;;  %v3907_v11 = vpop.f32.mrf.mxu1  ;;  %8002 = vlog2.f32 %v3739_v20  ;;  %v4153_v36 = vadd.f32 1.0, %v4152_v31  ;;  %vm11126_vm9 = vcmp.lt.f32.partialorder %v4155_v6, 0.0004427343  ;;  %5044 = vmatpush.msra.mxu3 %v5019_v37  ;;  %v11201_v37 = vld [vmem:[%s12901_s10] ss:$0 sm:$0xff] }
 0x453   : > { %v11113_v2 = vadd.f32 %v11024_v63, %v3907_v11  ;;  %v3738_v61 = vsel %vm3737_vm5, %v3735_v32, %v3732_v0  ;;  %8004 = vlog2.f32 %v4149_v42  ;;  %v3744_v39 = vmul.f32 %v7993_v26, %v3743_v40 }
 0x454   : > { %v3429_v33 = vmin.f32 %v11110_v22, 20.0  ;;  %v3842_v29 = vsel %vm3458_vm4, %v11078_v16, %v3738_v61  ;;  %v4154_v56 = vmul.f32 %v7995_v23, %v4153_v36  ;;  %vm3461_vm14 = vcmp.gt.f32.partialorder %v11110_v22, 20.0 }
 0x455   : > { %v3991_v53 = vmin.f32 %v11113_v2, 20.0  ;;  %3954 = vmatmul.f32.gmra.mxu1 %v3842_v29  ;;  %vm4023_vm0 = vcmp.gt.f32.partialorder %v11113_v2, 20.0 }
 0x456   : > { %v7999_v52 = vpop.eup %7998  ;;  %v3518_v44 = vmul.f32 1.442695, %v3429_v33 }
 0x457   : > { %v8001_v58 = vpop.eup %8000  ;;  %v4061_v27 = vmul.f32 1.442695, %v3991_v53  ;;  %v3748_v35 = vadd.f32 1.0, %v7999_v52  ;;  %v3751_v10 = vmul.f32 -0.5, %v7999_v52  ;;  %v3754_v55 = vand.u32 2147483647, %v7999_v52 }
 0x458   : > { %v8003_v16 = vpop.eup %8002  ;;  %8006 = vpow2.f32 %v3518_v44  ;;  %v4158_v45 = vadd.f32 1.0, %v8001_v58  ;;  %v4161_v24 = vmul.f32 -0.5, %v8001_v58  ;;  %v4164_v26 = vand.u32 2147483647, %v8001_v58 }
 0x459   : > { %v8005_v7 = vpop.eup %8004  ;;  %8008 = vpow2.f32 %v4061_v27  ;;  %v3386_v8 = vpop.f32.mrf.mxu0  ;;  %v3741_v1 = vmul.f32 0.6931472, %v8003_v16  ;;  %v3752_v25 = vadd.f32 1.0, %v3751_v10  ;;  %vm11149_vm11 = vcmp.lt.f32.partialorder %v3754_v55, 0.0004427343 }
 0x45a   : > { %v11131_v4 = vadd.f32 %v10974_v38, %v3386_v8  ;;  %v3910_v14 = vpop.f32.mrf.mxu1  ;;  %v4151_v43 = vmul.f32 0.6931472, %v8005_v7  ;;  %8010 = vlog2.f32 %v3748_v35  ;;  %v4162_v5 = vadd.f32 1.0, %v4161_v24 }
 0x45b   : > { %v11134_v47 = vadd.f32 %v11024_v63, %v3910_v14  ;;  %v3747_v48 = vsel %vm11121_vm7, %v3744_v39, %v3741_v1  ;;  %8012 = vlog2.f32 %v4158_v45  ;;  %v3753_v30 = vmul.f32 %v7999_v52, %v3752_v25  ;;  %v5609_v14 = vld [vmem:[#allocation17 + $0x70] sm:$0xff] }
 0x45c   : > { %v3430_v18 = vmin.f32 %v11131_v4, 20.0  ;;  %v3843_v34 = vsel %vm3459_vm6, %v11086_v28, %v3747_v48  ;;  %v4157_v62 = vsel %vm11126_vm9, %v4154_v56, %v4151_v43  ;;  %v4163_v0 = vmul.f32 %v8001_v58, %v4162_v5  ;;  %5616 = vmatpush.msra.mxu0 %v5609_v14  ;;  %v5608_v14 = vld [vmem:[#allocation17 + $0x68] sm:$0xff] }
 0x45d   : > { %v3992_v9 = vmin.f32 %v11134_v47, 20.0  ;;  %3957 = vmatmul.f32.gmra.mxu1 %v3843_v34  ;;  %v4405_v3 = vsel %vm4021_vm8, %v11090_v50, %v4157_v62  ;;  %vm4165_vm13 = vcmp.lt.f32.partialorder %v4164_v26, 0.0004427343  ;;  %vm3462_vm2 = vcmp.gt.f32.partialorder %v11131_v4, 20.0 }
 0x45e   : > { %v8007_v59 = vpop.eup %8006  ;;  %v3520_v57 = vmul.f32 1.442695, %v3430_v18  ;;  %4481 = vmatmul.f32.gmra.mxu2 %v4405_v3  ;;  %vm4024_vm4 = vcmp.gt.f32.partialorder %v11134_v47, 20.0  ;;  %5617 = vmatpush.msra.mxu0 %v5608_v14 }
 0x45f   : > { %v8009_v21 = vpop.eup %8008  ;;  %v4063_v28 = vmul.f32 1.442695, %v3992_v9  ;;  %v3757_v49 = vadd.f32 1.0, %v8007_v59  ;;  %v3760_v50 = vmul.f32 -0.5, %v8007_v59  ;;  %v3763_v33 = vand.u32 2147483647, %v8007_v59 }
 0x460   : > { %v8011_v23 = vpop.eup %8010  ;;  %8014 = vpow2.f32 %v3520_v57  ;;  %v4167_v20 = vadd.f32 1.0, %v8009_v21  ;;  %v4170_v32 = vmul.f32 -0.5, %v8009_v21  ;;  %v4173_v15 = vand.u32 2147483647, %v8009_v21 }
 0x461   : > { %v8013_v17 = vpop.eup %8012  ;;  %8016 = vpow2.f32 %v4063_v28  ;;  %v3389_v42 = vpop.f32.mrf.mxu0  ;;  %v3750_v13 = vmul.f32 0.6931472, %v8011_v23  ;;  %v3761_v40 = vadd.f32 1.0, %v3760_v50  ;;  %vm11171_vm15 = vcmp.lt.f32.partialorder %v3763_v33, 0.0004427343 }
 0x462   : > { %v11155_v12 = vadd.f32 %v10974_v38, %v3389_v42  ;;  %v3913_v11 = vpop.f32.mrf.mxu1  ;;  %v4160_v31 = vmul.f32 0.6931472, %v8013_v17  ;;  %8018 = vlog2.f32 %v3757_v49  ;;  %v4171_v36 = vadd.f32 1.0, %v4170_v32  ;;  %v5018_v32 = vld [vmem:[#allocation16 + $0x20] sm:$0xff] }
 0x463   : > { %v11158_v61 = vadd.f32 %v11024_v63, %v3913_v11  ;;  %v3756_v19 = vsel %vm11149_vm11, %v3753_v30, %v3750_v13  ;;  %8020 = vlog2.f32 %v4167_v20  ;;  %v3762_v45 = vmul.f32 %v8007_v59, %v3761_v40  ;;  %5045 = vmatpush.msra.mxu3 %v5018_v32 }
 0x464   : > { %v3431_v29 = vmin.f32 %v11155_v12, 20.0  ;;  %v3844_v6 = vsel %vm3460_vm10, %v11097_v46, %v3756_v19  ;;  %v4166_v53 = vsel %vm4165_vm13, %v4163_v0, %v4160_v31  ;;  %v4172_v24 = vmul.f32 %v8009_v21, %v4171_v36 }
 0x465   : > { %v3993_v52 = vmin.f32 %v11158_v61, 20.0  ;;  %3960 = vmatmul.f32.gmra.mxu1 %v3844_v6  ;;  %v4406_v44 = vsel %vm4022_vm12, %v11101_v54, %v4166_v53  ;;  %vm4174_vm1 = vcmp.lt.f32.partialorder %v4173_v15, 0.0004427343  ;;  %vm3463_vm6 = vcmp.gt.f32.partialorder %v11155_v12, 20.0 }
 0x466   : > { %v8015_v58 = vpop.eup %8014  ;;  %v3522_v27 = vmul.f32 1.442695, %v3431_v29  ;;  %4484 = vmatmul.f32.gmra.mxu2 %v4406_v44  ;;  %vm4025_vm8 = vcmp.gt.f32.partialorder %v11158_v61, 20.0 }
 0x467   : > { %v8017_v35 = vpop.eup %8016  ;;  %v4065_v16 = vmul.f32 1.442695, %v3993_v52  ;;  %v3766_v51 = vadd.f32 1.0, %v8015_v58  ;;  %v3769_v54 = vmul.f32 -0.5, %v8015_v58  ;;  %v3772_v34 = vand.u32 2147483647, %v8015_v58 }
 0x468   : > { %v8019_v10 = vpop.eup %8018  ;;  %8022 = vpow2.f32 %v3522_v27  ;;  %v4176_v7 = vadd.f32 1.0, %v8017_v35  ;;  %v4179_v60 = vmul.f32 -0.5, %v8017_v35  ;;  %v4182_v21 = vand.u32 2147483647, %v8017_v35 }
 0x469   : > { %v8021_v8 = vpop.eup %8020  ;;  %8024 = vpow2.f32 %v4065_v16  ;;  %v3392_v1 = vpop.f32.mrf.mxu0  ;;  %v3759_v39 = vmul.f32 0.6931472, %v8019_v10  ;;  %v3770_v9 = vadd.f32 1.0, %v3769_v54  ;;  %vm11193_vm3 = vcmp.lt.f32.partialorder %v3772_v34, 0.0004427343 }
 0x46a   : > { %v11177_v43 = vadd.f32 %v10974_v38, %v3392_v1  ;;  %v3916_v56 = vpop.f32.mrf.mxu1  ;;  %v4169_v48 = vmul.f32 0.6931472, %v8021_v8  ;;  %8026 = vlog2.f32 %v3766_v51  ;;  %v4180_v59 = vadd.f32 1.0, %v4179_v60 }
 0x46b   : > { %v11180_v55 = vadd.f32 %v11024_v63, %v3916_v56  ;;  %v3765_v18 = vsel %vm11171_vm15, %v3762_v45, %v3759_v39  ;;  %8028 = vlog2.f32 %v4176_v7  ;;  %v3771_v30 = vmul.f32 %v8015_v58, %v3770_v9 }
 0x46c   : > { %v3432_v62 = vmin.f32 %v11177_v43, 20.0  ;;  %v3845_v38 = vsel %vm3461_vm14, %v11110_v22, %v3765_v18  ;;  %v4175_v25 = vsel %vm4174_vm1, %v4172_v24, %v4169_v48  ;;  %v4181_v13 = vmul.f32 %v8017_v35, %v4180_v59 }
 0x46d   : > { %v3994_v3 = vmin.f32 %v11180_v55, 20.0  ;;  %3963 = vmatmul.f32.gmra.mxu1 %v3845_v38  ;;  %v4407_v5 = vsel %vm4023_vm0, %v11113_v2, %v4175_v25  ;;  %vm4183_vm5 = vcmp.lt.f32.partialorder %v4182_v21, 0.0004427343  ;;  %vm3464_vm10 = vcmp.gt.f32.partialorder %v11177_v43, 20.0 }
 0x46e   : > { %v8023_v57 = vpop.eup %8022  ;;  %v3524_v26 = vmul.f32 1.442695, %v3432_v62  ;;  %4487 = vmatmul.f32.gmra.mxu2 %v4407_v5  ;;  %vm4026_vm11 = vcmp.gt.f32.partialorder %v11180_v55, 20.0 }
 0x46f   : > { %v8025_v28 = vpop.eup %8024  ;;  %v4067_v41 = vmul.f32 1.442695, %v3994_v3  ;;  %v3775_v49 = vadd.f32 1.0, %v8023_v57  ;;  %v3778_v2 = vmul.f32 -0.5, %v8023_v57  ;;  %v3781_v6 = vand.u32 2147483647, %v8023_v57 }
 0x470   : > { %v8027_v23 = vpop.eup %8026  ;;  %8030 = vpow2.f32 %v3524_v26  ;;  %v4185_v50 = vadd.f32 1.0, %v8025_v28  ;;  %v4188_v0 = vmul.f32 -0.5, %v8025_v28  ;;  %v4191_v16 = vand.u32 2147483647, %v8025_v28 }
 0x471   : > { %v8029_v20 = vpop.eup %8028  ;;  %8032 = vpow2.f32 %v4067_v41  ;;  %v3395_v17 = vpop.f32.mrf.mxu0  ;;  %v3768_v42 = vmul.f32 0.6931472, %v8027_v23  ;;  %v3779_v44 = vadd.f32 1.0, %v3778_v2  ;;  %vm11222_vm7 = vcmp.lt.f32.partialorder %v3781_v6, 0.0004427343 }
 0x472   : > { %v11204_v11 = vadd.f32 %v11201_v37, %v3395_v17  ;;  %v3919_v31 = vpop.f32.mrf.mxu1  ;;  %v4178_v19 = vmul.f32 0.6931472, %v8029_v20  ;;  %8034 = vlog2.f32 %v3775_v49  ;;  %v4189_v27 = vadd.f32 1.0, %v4188_v0  ;;  %v5017_v0 = vld [vmem:[#allocation16 + $0x18] sm:$0xff] }
 0x473   : > { %v11207_v33 = vadd.f32 %v11024_v63, %v3919_v31  ;;  %v3774_v29 = vsel %vm11193_vm3, %v3771_v30, %v3768_v42  ;;  %8036 = vlog2.f32 %v4185_v50  ;;  %vm4192_vm9 = vcmp.lt.f32.partialorder %v4191_v16, 0.0004427343  ;;  %5046 = vmatpush.msra.mxu3 %v5017_v0 }
 0x474   : > { %v3433_v53 = vmin.f32 %v11204_v11, 20.0  ;;  %v3846_v40 = vsel %vm3462_vm2, %v11131_v4, %v3774_v29  ;;  %v4184_v52 = vsel %vm4183_vm5, %v4181_v13, %v4178_v19  ;;  %v4190_v24 = vmul.f32 %v8025_v28, %v4189_v27 }
 0x475   : > { %v3995_v36 = vmin.f32 %v11207_v33, 20.0  ;;  %3966 = vmatmul.f32.gmra.mxu1 %v3846_v40  ;;  %v4408_v58 = vsel %vm4024_vm4, %v11134_v47, %v4184_v52  ;;  %v3780_v47 = vmul.f32 %v8023_v57, %v3779_v44  ;;  %vm3465_vm14 = vcmp.gt.f32.partialorder %v11204_v11, 20.0 }
 0x476   : > { %v8031_v15 = vpop.eup %8030  ;;  %v3526_v35 = vmul.f32 1.442695, %v3433_v53  ;;  %4490 = vmatmul.f32.gmra.mxu2 %v4408_v58  ;;  %vm4027_vm1 = vcmp.gt.f32.partialorder %v11207_v33, 20.0 }
 0x477   : > { %v11220_v46 = vpop.eup %8032  ;;  %v4069_v51 = vmul.f32 1.442695, %v3995_v36  ;;  %v3784_v10 = vadd.f32 1.0, %v8031_v15  ;;  %v3787_v54 = vmul.f32 -0.5, %v8031_v15  ;;  %v3790_v38 = vand.u32 2147483647, %v8031_v15 }
 0x478   : > { %v8035_v45 = vpop.eup %8034  ;;  %8038 = vpow2.f32 %v3526_v35  ;;  %v4194_v7 = vadd.f32 1.0, %v11220_v46  ;;  %v4197_v60 = vmul.f32 -0.5, %v11220_v46 }
 0x479   : > { %v8037_v8 = vpop.eup %8036  ;;  %8040 = vpow2.f32 %v4069_v51  ;;  %v3398_v1 = vpop.f32.mrf.mxu0  ;;  %v3777_v39 = vmul.f32 0.6931472, %v8035_v45  ;;  %v3788_v5 = vadd.f32 1.0, %v3787_v54  ;;  %vm11250_vm12 = vcmp.lt.f32.partialorder %v3790_v38, 0.0004427343 }
 0x47a   : > { %v11230_v56 = vadd.f32 %v11201_v37, %v3398_v1  ;;  %v3922_v48 = vpop.f32.mrf.mxu1  ;;  %v4187_v18 = vmul.f32 0.6931472, %v8037_v8  ;;  %8042 = vlog2.f32 %v3784_v10  ;;  %v4198_v26 = vadd.f32 1.0, %v4197_v60  ;;  %v5607_v1 = vld [vmem:[#allocation17 + $0x60] sm:$0xff] }
 0x47b   : > { %v11233_v34 = vadd.f32 %v11024_v63, %v3922_v48  ;;  %v3783_v62 = vsel %vm11222_vm7, %v3780_v47, %v3777_v39  ;;  %8044 = vlog2.f32 %v4194_v7  ;;  %v3789_v30 = vmul.f32 %v8031_v15, %v3788_v5  ;;  %5618 = vmatpush.msra.mxu0 %v5607_v1 }
 0x47c   : > { %v3434_v25 = vmin.f32 %v11230_v56, 20.0  ;;  %v3847_v9 = vsel %vm3463_vm6, %v11155_v12, %v3783_v62  ;;  %v4193_v3 = vsel %vm4192_vm9, %v4190_v24, %v4187_v18  ;;  %v4200_v12 = vand.u32 2147483647, %v11220_v46 }
 0x47d   : > { %v3996_v59 = vmin.f32 %v11233_v34, 20.0  ;;  %3969 = vmatmul.f32.gmra.mxu1 %v3847_v9  ;;  %v4409_v57 = vsel %vm4025_vm8, %v11158_v61, %v4193_v3  ;;  %v4199_v42 = vmul.f32 %v11220_v46, %v4198_v26  ;;  %vm3466_vm2 = vcmp.gt.f32.partialorder %v11230_v56, 20.0 }
 0x47e   : > { %v8039_v21 = vpop.eup %8038  ;;  %v3528_v28 = vmul.f32 1.442695, %v3434_v25  ;;  %4493 = vmatmul.f32.gmra.mxu2 %v4409_v57  ;;  %vm4201_vm13 = vcmp.lt.f32.partialorder %v4200_v12, 0.0004427343  ;;  %vm4028_vm5 = vcmp.gt.f32.partialorder %v11233_v34, 20.0 }
 0x47f   : > { %v11246_v41 = vpop.eup %8040  ;;  %v4071_v22 = vmul.f32 1.442695, %v3996_v59  ;;  %v3793_v49 = vadd.f32 1.0, %v8039_v21  ;;  %v3796_v13 = vmul.f32 -0.5, %v8039_v21  ;;  %v3799_v44 = vand.u32 2147483647, %v8039_v21 }
 0x480   : > { %v8043_v23 = vpop.eup %8042  ;;  %8046 = vpow2.f32 %v3528_v28  ;;  %v4203_v61 = vadd.f32 1.0, %v11246_v41  ;;  %v4206_v29 = vmul.f32 -0.5, %v11246_v41  ;;  %v4209_v4 = vand.u32 2147483647, %v11246_v41 }
 0x481   : > { %v8045_v50 = vpop.eup %8044  ;;  %8048 = vpow2.f32 %v4071_v22  ;;  %v3401_v20 = vpop.f32.mrf.mxu0  ;;  %v3786_v17 = vmul.f32 0.6931472, %v8043_v23  ;;  %v3797_v27 = vadd.f32 1.0, %v3796_v13  ;;  %vm11275_vm15 = vcmp.lt.f32.partialorder %v3799_v44, 0.0004427343 }
 0x482   : > { %v11257_v32 = vadd.f32 %v11201_v37, %v3401_v20  ;;  %v3925_v31 = vpop.f32.mrf.mxu1  ;;  %v4196_v19 = vmul.f32 0.6931472, %v8045_v50  ;;  %8050 = vlog2.f32 %v3793_v49  ;;  %v4207_v16 = vadd.f32 1.0, %v4206_v29 }
 0x483   : > { %v11261_v6 = vadd.f32 %v11024_v63, %v3925_v31  ;;  %v3792_v53 = vsel %vm11250_vm12, %v3789_v30, %v3786_v17  ;;  %8052 = vlog2.f32 %v4203_v61  ;;  %v3798_v7 = vmul.f32 %v8039_v21, %v3797_v27  ;;  %v5016_v30 = vld [vmem:[#allocation16 + $0x10] sm:$0xff]  ;;  %v11299_v17 = vld [vmem:[%s12755_s12] ss:$0 sm:$0xff] }
 0x484   : > { %v3435_v40 = vmin.f32 %v11257_v32, 20.0  ;;  %v3848_v37 = vsel %vm3464_vm10, %v11177_v43, %v3792_v53  ;;  %v4202_v52 = vsel %vm4201_vm13, %v4199_v42, %v4196_v19  ;;  %v4208_v60 = vmul.f32 %v11246_v41, %v4207_v16  ;;  %5047 = vmatpush.msra.mxu3 %v5016_v30 }
 0x485   : > { %v3997_v36 = vmin.f32 %v11261_v6, 20.0  ;;  %3972 = vmatmul.f32.gmra.mxu1 %v3848_v37  ;;  %v4410_v58 = vsel %vm4026_vm11, %v11180_v55, %v4202_v52  ;;  %vm4210_vm0 = vcmp.lt.f32.partialorder %v4209_v4, 0.0004427343  ;;  %vm3467_vm7 = vcmp.gt.f32.partialorder %v11257_v32, 20.0 }
 0x486   : > { %v8047_v15 = vpop.eup %8046  ;;  %v3530_v35 = vmul.f32 1.442695, %v3435_v40  ;;  %4496 = vmatmul.f32.gmra.mxu2 %v4410_v58  ;;  %vm4029_vm9 = vcmp.gt.f32.partialorder %v11261_v6, 20.0 }
 0x487   : > { %v8049_v46 = vpop.eup %8048  ;;  %v4073_v51 = vmul.f32 1.442695, %v3997_v36  ;;  %v3802_v10 = vadd.f32 1.0, %v8047_v15  ;;  %v3805_v8 = vmul.f32 -0.5, %v8047_v15  ;;  %v3808_v25 = vand.u32 2147483647, %v8047_v15 }
 0x488   : > { %v8051_v43 = vpop.eup %8050  ;;  %8054 = vpow2.f32 %v3530_v35  ;;  %v4212_v47 = vadd.f32 1.0, %v8049_v46  ;;  %v4215_v14 = vmul.f32 -0.5, %v8049_v46  ;;  %v4218_v21 = vand.u32 2147483647, %v8049_v46 }
 0x489   : > { %v8053_v55 = vpop.eup %8052  ;;  %8056 = vpow2.f32 %v4073_v51  ;;  %v3795_v54 = vmul.f32 0.6931472, %v8051_v43  ;;  %vm11292_vm3 = vcmp.lt.f32.partialorder %v3808_v25, 0.0004427343 }
 0x48a   : > { %v3928_v39 = vpop.f32.mrf.mxu1  ;;  %v4205_v24 = vmul.f32 0.6931472, %v8053_v55  ;;  %8058 = vlog2.f32 %v3802_v10  ;;  %v4216_v59 = vadd.f32 1.0, %v4215_v14  ;;  %vm4219_vm4 = vcmp.lt.f32.partialorder %v4218_v21, 0.0004427343 }
 0x48b   : > { %v11281_v48 = vadd.f32 %v11024_v63, %v3928_v39  ;;  %v3801_v18 = vsel %vm11275_vm15, %v3798_v7, %v3795_v54  ;;  %8060 = vlog2.f32 %v4212_v47  ;;  %v3806_v63 = vadd.f32 1.0, %v3805_v8 }
 0x48c   : > { %v3849_v62 = vsel %vm3465_vm14, %v11204_v11, %v3801_v18  ;;  %v4211_v38 = vsel %vm4210_vm0, %v4208_v60, %v4205_v24  ;;  %v4217_v50 = vmul.f32 %v8049_v46, %v4216_v59  ;;  %v5606_v46 = vld [vmem:[#allocation17 + $0x58] sm:$0xff] }
 0x48d   : > { %v3998_v9 = vmin.f32 %v11281_v48, 20.0  ;;  %3975 = vmatmul.f32.gmra.mxu1 %v3849_v62  ;;  %v4411_v3 = vsel %vm4027_vm1, %v11207_v33, %v4211_v38  ;;  %v3807_v33 = vmul.f32 %v8047_v15, %v3806_v63  ;;  %5619 = vmatpush.msra.mxu0 %v5606_v46  ;;  %vm4030_vm11 = vcmp.gt.f32.partialorder %v11281_v48, 20.0 }
 0x48e   : > { %v8055_v5 = vpop.eup %8054  ;;  %4499 = vmatmul.f32.gmra.mxu2 %v4411_v3 }
 0x48f   : > { %v8057_v57 = vpop.eup %8056  ;;  %v4075_v26 = vmul.f32 1.442695, %v3998_v9  ;;  %v3811_v28 = vadd.f32 1.0, %v8055_v5  ;;  %v3814_v23 = vmul.f32 -0.5, %v8055_v5  ;;  %v3817_v40 = vand.u32 2147483647, %v8055_v5 }
 0x490   : > { %v8059_v41 = vpop.eup %8058  ;;  %v4221_v22 = vadd.f32 1.0, %v8057_v57  ;;  %v4224_v20 = vmul.f32 -0.5, %v8057_v57  ;;  %v4227_v36 = vand.u32 2147483647, %v8057_v57 }
 0x491   : > { %v8061_v12 = vpop.eup %8060  ;;  %8062 = vpow2.f32 %v4075_v26  ;;  %v3804_v49 = vmul.f32 0.6931472, %v8059_v41  ;;  %v3815_v53 = vadd.f32 1.0, %v3814_v23  ;;  %vm3818_vm6 = vcmp.lt.f32.partialorder %v3817_v40, 0.0004427343 }
 0x492   : > { %v3931_v2 = vpop.f32.mrf.mxu1  ;;  %v4214_v61 = vmul.f32 0.6931472, %v8061_v12  ;;  %8064 = vlog2.f32 %v3811_v28  ;;  %v4225_v37 = vadd.f32 1.0, %v4224_v20  ;;  %vm4228_vm8 = vcmp.lt.f32.partialorder %v4227_v36, 0.0004427343  ;;  %v5605_v12 = vld [vmem:[#allocation17 + $0x50] sm:$0xff] }
 0x493   : > { %v11302_v42 = vadd.f32 %v11299_v17, %v3931_v2  ;;  %v3810_v13 = vsel %vm11292_vm3, %v3807_v33, %v3804_v49  ;;  %8066 = vlog2.f32 %v4221_v22  ;;  %v3816_v35 = vmul.f32 %v8055_v5, %v3815_v53  ;;  %5620 = vmatpush.msra.mxu0 %v5605_v12  ;;  %v11341_v36 = vld [vmem:[%s12757_s14] ss:$0 sm:$0xff] }
 0x494   : > { %v3850_v0 = vsel %vm3466_vm2, %v11230_v56, %v3810_v13  ;;  %v4220_v31 = vsel %vm4219_vm4, %v4217_v50, %v4214_v61  ;;  %v4226_v10 = vmul.f32 %v8057_v57, %v4225_v37 }
 0x495   : > { %v3999_v19 = vmin.f32 %v11302_v42, 20.0  ;;  %3978 = vmatmul.f32.gmra.mxu1 %v3850_v0  ;;  %v4412_v29 = vsel %vm4028_vm5, %v11233_v34, %v4220_v31  ;;  %vm4031_vm13 = vcmp.gt.f32.partialorder %v11302_v42, 20.0 }
 0x496   : > { %4502 = vmatmul.f32.gmra.mxu2 %v4412_v29  ;;  %v5014_v29 = vld [vmem:[#allocation16] sm:$0xff] }
 0x497   : > { %v8063_v52 = vpop.eup %8062  ;;  %v4077_v44 = vmul.f32 1.442695, %v3999_v19 }
 0x498   : > { %v8065_v58 = vpop.eup %8064  ;;  %v4230_v27 = vadd.f32 1.0, %v8063_v52  ;;  %v4233_v16 = vmul.f32 -0.5, %v8063_v52  ;;  %v4236_v8 = vand.u32 2147483647, %v8063_v52 }
 0x499   : > { %v8067_v15 = vpop.eup %8066  ;;  %8068 = vpow2.f32 %v4077_v44  ;;  %v3813_v56 = vmul.f32 0.6931472, %v8065_v58 }
 0x49a   : > { %v3934_v51 = vpop.f32.mrf.mxu1  ;;  %v4223_v4 = vmul.f32 0.6931472, %v8067_v15  ;;  %8070 = vlog2.f32 %v4230_v27  ;;  %v4234_v7 = vadd.f32 1.0, %v4233_v16  ;;  %vm4237_vm10 = vcmp.lt.f32.partialorder %v4236_v8, 0.0004427343 }
 0x49b   : > { %v11313_v34 = vadd.f32 %v11299_v17, %v3934_v51  ;;  %v3819_v43 = vsel %vm3818_vm6, %v3816_v35, %v3813_v56 }
 0x49c   : > { %v3851_v45 = vsel %vm3467_vm7, %v11257_v32, %v3819_v43  ;;  %v4229_v47 = vsel %vm4228_vm8, %v4226_v10, %v4223_v4  ;;  %v4235_v18 = vmul.f32 %v8063_v52, %v4234_v7  ;;  %v5015_v32 = vld [vmem:[#allocation16 + $0x8] sm:$0xff] }
 0x49d   : > { %v4000_v55 = vmin.f32 %v11313_v34, 20.0  ;;  %3981 = vmatmul.f32.gmra.mxu1 %v3851_v45  ;;  %v4413_v54 = vsel %vm4029_vm9, %v11261_v6, %v4229_v47  ;;  %5048 = vmatpush.msra.mxu3 %v5015_v32  ;;  %vm4032_vm15 = vcmp.gt.f32.partialorder %v11313_v34, 20.0  ;;  %v5604_v43 = vld [vmem:[#allocation17 + $0x48] sm:$0xff] }
 0x49e   : > { %4505 = vmatmul.f32.gmra.mxu2 %v4413_v54  ;;  %5621 = vmatpush.msra.mxu0 %v5604_v43 }
 0x49f   : > { %v8069_v1 = vpop.eup %8068  ;;  %v4079_v39 = vmul.f32 1.442695, %v4000_v55  ;;  %5049 = vmatpush.msra.mxu3 %v5014_v29 }
 0x4a0   : > { %v8071_v24 = vpop.eup %8070  ;;  %v4239_v60 = vadd.f32 1.0, %v8069_v1  ;;  %v4242_v62 = vmul.f32 -0.5, %v8069_v1  ;;  %v4245_v5 = vand.u32 2147483647, %v8069_v1 }
 0x4a1   : > { %8072 = vpow2.f32 %v4079_v39  ;;  %v4232_v14 = vmul.f32 0.6931472, %v8071_v24 }
 0x4a2   : > { %v3937_v38 = vpop.f32.mrf.mxu1  ;;  %8074 = vlog2.f32 %v4239_v60  ;;  %v4243_v63 = vadd.f32 1.0, %v4242_v62  ;;  %vm4246_vm12 = vcmp.lt.f32.partialorder %v4245_v5, 0.0004427343 }
 0x4a3   : > { %v11321_v25 = vadd.f32 %v11299_v17, %v3937_v38  ;;  %v4238_v6 = vsel %vm4237_vm10, %v4235_v18, %v4232_v14 }
 0x4a4   : > { %v4414_v9 = vsel %vm4030_vm11, %v11281_v48, %v4238_v6  ;;  %v4244_v41 = vmul.f32 %v8069_v1, %v4243_v63 }
 0x4a5   : > { %v4001_v3 = vmin.f32 %v11321_v25, 20.0  ;;  %vm4033_vm1 = vcmp.gt.f32.partialorder %v11321_v25, 20.0 }
 0x4a6   : > { %4508 = vmatmul.f32.gmra.mxu2 %v4414_v9 }
 0x4a7   : > { %v8073_v59 = vpop.eup %8072  ;;  %v4081_v57 = vmul.f32 1.442695, %v4001_v3 }
 0x4a8   : > { %v8075_v26 = vpop.eup %8074  ;;  %v4248_v21 = vadd.f32 1.0, %v8073_v59  ;;  %v4251_v11 = vmul.f32 -0.5, %v8073_v59  ;;  %v4254_v2 = vand.u32 2147483647, %v8073_v59 }
 0x4a9   : > { %8076 = vpow2.f32 %v4081_v57  ;;  %v4241_v28 = vmul.f32 0.6931472, %v8075_v26 }
 0x4aa   : > { %v3940_v22 = vpop.f32.mrf.mxu1  ;;  %8078 = vlog2.f32 %v4248_v21  ;;  %v4252_v30 = vadd.f32 1.0, %v4251_v11  ;;  %vm4255_vm14 = vcmp.lt.f32.partialorder %v4254_v2, 0.0004427343 }
 0x4ab   : > { %v11327_v49 = vadd.f32 %v11299_v17, %v3940_v22  ;;  %v4247_v48 = vsel %vm4246_vm12, %v4244_v41, %v4241_v28 }
 0x4ac   : > { %v4415_v33 = vsel %vm4031_vm13, %v11302_v42, %v4247_v48  ;;  %v4253_v19 = vmul.f32 %v8073_v59, %v4252_v30 }
 0x4ad   : > { %v4002_v23 = vmin.f32 %v11327_v49, 20.0  ;;  %vm4034_vm3 = vcmp.gt.f32.partialorder %v11327_v49, 20.0 }
 0x4ae   : > { %4511 = vmatmul.f32.gmra.mxu2 %v4415_v33 }
 0x4af   : > { %v8077_v61 = vpop.eup %8076  ;;  %v4083_v50 = vmul.f32 1.442695, %v4002_v23 }
 0x4b0   : > { %v8079_v20 = vpop.eup %8078  ;;  %v4257_v13 = vadd.f32 1.0, %v8077_v61  ;;  %v4260_v0 = vmul.f32 -0.5, %v8077_v61  ;;  %v4263_v58 = vand.u32 2147483647, %v8077_v61 }
 0x4b1   : > { %8080 = vpow2.f32 %v4083_v50  ;;  %v4250_v31 = vmul.f32 0.6931472, %v8079_v20 }
 0x4b2   : > { %v3943_v53 = vpop.f32.mrf.mxu1  ;;  %8082 = vlog2.f32 %v4257_v13  ;;  %v4261_v52 = vadd.f32 1.0, %v4260_v0  ;;  %vm4264_vm0 = vcmp.lt.f32.partialorder %v4263_v58, 0.0004427343 }
 0x4b3   : > { %v11333_v42 = vadd.f32 %v11299_v17, %v3943_v53  ;;  %v4256_v40 = vsel %vm4255_vm14, %v4253_v19, %v4250_v31 }
 0x4b4   : > { %v4416_v37 = vsel %vm4032_vm15, %v11313_v34, %v4256_v40  ;;  %v4262_v35 = vmul.f32 %v8077_v61, %v4261_v52 }
 0x4b5   : > { %v4003_v44 = vmin.f32 %v11333_v42, 20.0  ;;  %vm4035_vm4 = vcmp.gt.f32.partialorder %v11333_v42, 20.0 }
 0x4b6   : > { %4514 = vmatmul.f32.gmra.mxu2 %v4416_v37 }
 0x4b7   : > { %v8081_v27 = vpop.eup %8080  ;;  %v4085_v15 = vmul.f32 1.442695, %v4003_v44 }
 0x4b8   : > { %v8083_v56 = vpop.eup %8082  ;;  %v4470_v16 = vpop.f32.mrf.mxu2  ;;  %v4266_v46 = vadd.f32 1.0, %v8081_v27  ;;  %v4269_v10 = vmul.f32 -0.5, %v8081_v27  ;;  %v4272_v39 = vand.u32 2147483647, %v8081_v27 }
 0x4b9   : > { %8084 = vpow2.f32 %v4085_v15  ;;  %v4259_v51 = vmul.f32 0.6931472, %v8083_v56  ;;  %v11344_v4 = vadd.f32 %v11341_v36, %v4470_v16 }
 0x4ba   : > { %v3946_v34 = vpop.f32.mrf.mxu1  ;;  %8086 = vlog2.f32 %v4266_v46  ;;  %v4270_v1 = vadd.f32 1.0, %v4269_v10  ;;  %vm4273_vm2 = vcmp.lt.f32.partialorder %v4272_v39, 0.0004427343 }
 0x4bb   : > { %v11347_v45 = vadd.f32 %v11299_v17, %v3946_v34  ;;  %v4265_v47 = vsel %vm4264_vm0, %v4262_v35, %v4259_v51  ;;  %v4566_v55 = vmin.f32 %v11344_v4, 20.0  ;;  %vm4598_vm6 = vcmp.gt.f32.partialorder %v11344_v4, 20.0  ;;  %v5603_v51 = vld [vmem:[#allocation17 + $0x40] sm:$0xff] }
 0x4bc   : > { %v4417_v54 = vsel %vm4033_vm1, %v11321_v25, %v4265_v47  ;;  %v4271_v32 = vmul.f32 %v8081_v27, %v4270_v1  ;;  %5622 = vmatpush.msra.mxu0 %v5603_v51 }
 0x4bd   : > { %v4004_v7 = vmin.f32 %v11347_v45, 20.0  ;;  %v4630_v8 = vmul.f32 1.442695, %v4566_v55  ;;  %vm4036_vm9 = vcmp.gt.f32.partialorder %v11347_v45, 20.0 }
 0x4be   : > { %4517 = vmatmul.f32.gmra.mxu2 %v4417_v54 }
 0x4bf   : > { %v8085_v24 = vpop.eup %8084  ;;  %v4087_v60 = vmul.f32 1.442695, %v4004_v7  ;;  %8088 = vpow2.f32 %v4630_v8 }
 0x4c0   : > { %v8087_v14 = vpop.eup %8086  ;;  %v4275_v18 = vadd.f32 1.0, %v8085_v24  ;;  %v4278_v38 = vmul.f32 -0.5, %v8085_v24  ;;  %v4281_v28 = vand.u32 2147483647, %v8085_v24 }
 0x4c1   : > { %8090 = vpow2.f32 %v4087_v60  ;;  %v4268_v62 = vmul.f32 0.6931472, %v8087_v14 }
 0x4c2   : > { %v3949_v6 = vpop.f32.mrf.mxu1  ;;  %v4473_v9 = vpop.f32.mrf.mxu2  ;;  %8092 = vlog2.f32 %v4275_v18  ;;  %v4279_v21 = vadd.f32 1.0, %v4278_v38  ;;  %vm4282_vm5 = vcmp.lt.f32.partialorder %v4281_v28, 0.0004427343 }
 0x4c3   : > { %v11354_v25 = vadd.f32 %v11299_v17, %v3949_v6  ;;  %v4274_v3 = vsel %vm4273_vm2, %v4271_v32, %v4268_v62  ;;  %v11358_v63 = vadd.f32 %v11341_v36, %v4473_v9 }
 0x4c4   : > { %v4418_v5 = vsel %vm4034_vm3, %v11327_v49, %v4274_v3  ;;  %v4280_v49 = vmul.f32 %v8085_v24, %v4279_v21 }
 0x4c5   : > { %v8089_v59 = vpop.eup %8088  ;;  %v4005_v57 = vmin.f32 %v11354_v25, 20.0  ;;  %v4567_v26 = vmin.f32 %v11358_v63, 20.0  ;;  %vm4037_vm10 = vcmp.gt.f32.partialorder %v11354_v25, 20.0  ;;  %vm4599_vm11 = vcmp.gt.f32.partialorder %v11358_v63, 20.0 }
 0x4c6   : > { %4520 = vmatmul.f32.gmra.mxu2 %v4418_v5  ;;  %v4694_v41 = vadd.f32 1.0, %v8089_v59  ;;  %v4697_v11 = vmul.f32 -0.5, %v8089_v59  ;;  %v4700_v53 = vand.u32 2147483647, %v8089_v59 }
 0x4c7   : > { %v8091_v22 = vpop.eup %8090  ;;  %v4089_v12 = vmul.f32 1.442695, %v4005_v57  ;;  %v4632_v48 = vmul.f32 1.442695, %v4567_v26 }
 0x4c8   : > { %v8093_v33 = vpop.eup %8092  ;;  %v4284_v23 = vadd.f32 1.0, %v8091_v22  ;;  %v4287_v30 = vmul.f32 -0.5, %v8091_v22  ;;  %8094 = vlog2.f32 %v4694_v41  ;;  %v4698_v20 = vadd.f32 1.0, %v4697_v11 }
 0x4c9   : > { %8096 = vpow2.f32 %v4089_v12  ;;  %v4277_v2 = vmul.f32 0.6931472, %v8093_v33  ;;  %v4290_v44 = vand.u32 2147483647, %v8091_v22  ;;  %vm4701_vm7 = vcmp.lt.f32.partialorder %v4700_v53, 0.0004427343 }
 0x4ca   : > { %8098 = vpow2.f32 %v4632_v48  ;;  %v3952_v61 = vpop.f32.mrf.mxu1  ;;  %v4476_v50 = vpop.f32.mrf.mxu2  ;;  %v4288_v29 = vadd.f32 1.0, %v4287_v30  ;;  %v4699_v35 = vmul.f32 %v8089_v59, %v4698_v20 }
 0x4cb   : > { %v11365_v13 = vadd.f32 %v11299_v17, %v3952_v61  ;;  %v4283_v0 = vsel %vm4282_vm5, %v4280_v49, %v4277_v2  ;;  %v11368_v31 = vadd.f32 %v11341_v36, %v4476_v50  ;;  %8100 = vlog2.f32 %v4284_v23 }
 0x4cc   : > { %v4419_v19 = vsel %vm4035_vm4, %v11333_v42, %v4283_v0  ;;  %v4289_v46 = vmul.f32 %v8091_v22, %v4288_v29  ;;  %vm4291_vm8 = vcmp.lt.f32.partialorder %v4290_v44, 0.0004427343 }
 0x4cd   : > { %v4006_v40 = vmin.f32 %v11365_v13, 20.0  ;;  %v4568_v37 = vmin.f32 %v11368_v31, 20.0  ;;  %vm4038_vm14 = vcmp.gt.f32.partialorder %v11365_v13, 20.0  ;;  %vm4600_vm15 = vcmp.gt.f32.partialorder %v11368_v31, 20.0 }
 0x4ce   : > { %v8095_v52 = vpop.eup %8094  ;;  %4523 = vmatmul.f32.gmra.mxu2 %v4419_v19 }
 0x4cf   : > { %v8097_v58 = vpop.eup %8096  ;;  %v4091_v27 = vmul.f32 1.442695, %v4006_v40  ;;  %v4634_v15 = vmul.f32 1.442695, %v4568_v37  ;;  %v4696_v56 = vmul.f32 0.6931472, %v8095_v52 }
 0x4d0   : > { %v8099_v16 = vpop.eup %8098  ;;  %v4293_v42 = vadd.f32 1.0, %v8097_v58  ;;  %v4296_v43 = vmul.f32 -0.5, %v8097_v58  ;;  %v4299_v62 = vand.u32 2147483647, %v8097_v58 }
 0x4d1   : > { %v8101_v10 = vpop.eup %8100  ;;  %8102 = vpow2.f32 %v4091_v27  ;;  %v4702_v34 = vsel %vm4701_vm7, %v4699_v35, %v4696_v56  ;;  %v4703_v47 = vadd.f32 1.0, %v8099_v16  ;;  %v4706_v1 = vmul.f32 -0.5, %v8099_v16 }
 0x4d2   : > { %8104 = vpow2.f32 %v4634_v15  ;;  %v3955_v55 = vpop.f32.mrf.mxu1  ;;  %v4286_v54 = vmul.f32 0.6931472, %v8101_v10  ;;  %v4479_v7 = vpop.f32.mrf.mxu2  ;;  %v4982_v8 = vsel %vm4598_vm6, %v11344_v4, %v4702_v34  ;;  %v4297_v32 = vadd.f32 1.0, %v4296_v43 }
 0x4d3   : > { %v11376_v39 = vadd.f32 %v11299_v17, %v3955_v55  ;;  %v11379_v24 = vadd.f32 %v11341_v36, %v4479_v7  ;;  %5050 = vmatmul.f32.vlgmr.msra.gmra.mxu3 %v4982_v8  ;;  %8106 = vlog2.f32 %v4293_v42  ;;  %v4707_v38 = vadd.f32 1.0, %v4706_v1 }
 0x4d4   : > { %v4292_v60 = vsel %vm4291_vm8, %v4289_v46, %v4286_v54  ;;  %8108 = vlog2.f32 %v4703_v47  ;;  %v4709_v59 = vand.u32 2147483647, %v8099_v16  ;;  %vm11387_vm12 = vcmp.lt.f32.partialorder %v4299_v62, 0.0004427343 }
 0x4d5   : > { %v4007_v14 = vmin.f32 %v11376_v39, 20.0  ;;  %v4420_v18 = vsel %vm4036_vm9, %v11347_v45, %v4292_v60  ;;  %v4569_v4 = vmin.f32 %v11379_v24, 20.0  ;;  %v4298_v12 = vmul.f32 %v8097_v58, %v4297_v32  ;;  %v5602_v58 = vld [vmem:[#allocation17 + $0x38] sm:$0xff] }
 0x4d6   : > { %4526 = vmatmul.f32.gmra.mxu2 %v4420_v18  ;;  %v4708_v48 = vmul.f32 %v8099_v16, %v4707_v38  ;;  %vm4710_vm13 = vcmp.lt.f32.partialorder %v4709_v59, 0.0004427343  ;;  %5623 = vmatpush.msra.mxu0 %v5602_v58  ;;  %vm4039_vm3 = vcmp.gt.f32.partialorder %v11376_v39, 20.0  ;;  %vm4601_vm5 = vcmp.gt.f32.partialorder %v11379_v24, 20.0 }
 0x4d7   : > { %v8103_v6 = vpop.eup %8102  ;;  %v4093_v9 = vmul.f32 1.442695, %v4007_v14  ;;  %v4636_v3 = vmul.f32 1.442695, %v4569_v4 }
 0x4d8   : > { %v8105_v5 = vpop.eup %8104  ;;  %v4302_v57 = vadd.f32 1.0, %v8103_v6  ;;  %v4305_v21 = vmul.f32 -0.5, %v8103_v6  ;;  %v4308_v49 = vand.u32 2147483647, %v8103_v6 }
 0x4d9   : > { %v8107_v26 = vpop.eup %8106  ;;  %8110 = vpow2.f32 %v4093_v9  ;;  %v4712_v28 = vadd.f32 1.0, %v8105_v5  ;;  %v4715_v30 = vmul.f32 -0.5, %v8105_v5 }
 0x4da   : > { %v8109_v41 = vpop.eup %8108  ;;  %8112 = vpow2.f32 %v4636_v3  ;;  %v3958_v11 = vpop.f32.mrf.mxu1  ;;  %v4295_v22 = vmul.f32 0.6931472, %v8107_v26  ;;  %v4306_v0 = vadd.f32 1.0, %v4305_v21  ;;  %vm11405_vm0 = vcmp.lt.f32.partialorder %v4308_v49, 0.0004427343 }
 0x4db   : > { %v11392_v33 = vadd.f32 %v11299_v17, %v3958_v11  ;;  %v4705_v23 = vmul.f32 0.6931472, %v8109_v41  ;;  %8114 = vlog2.f32 %v4302_v57  ;;  %v4716_v40 = vadd.f32 1.0, %v4715_v30 }
 0x4dc   : > { %v4301_v2 = vsel %vm11387_vm12, %v4298_v12, %v4295_v22  ;;  %8116 = vlog2.f32 %v4712_v28 }
 0x4dd   : > { %v4008_v61 = vmin.f32 %v11392_v33, 20.0  ;;  %v4421_v50 = vsel %vm4037_vm10, %v11354_v25, %v4301_v2  ;;  %v4711_v20 = vsel %vm4710_vm13, %v4708_v48, %v4705_v23  ;;  %v4718_v25 = vand.u32 2147483647, %v8105_v5 }
 0x4de   : > { %4529 = vmatmul.f32.gmra.mxu2 %v4421_v50  ;;  %v4983_v19 = vsel %vm4599_vm11, %v11358_v63, %v4711_v20  ;;  %v4307_v63 = vmul.f32 %v8103_v6, %v4306_v0  ;;  %v4717_v47 = vmul.f32 %v8105_v5, %v4716_v40  ;;  %vm4040_vm6 = vcmp.gt.f32.partialorder %v11392_v33, 20.0  ;;  %v5601_v40 = vld [vmem:[#allocation17 + $0x30] sm:$0xff] }
 0x4df   : > { %v8111_v29 = vpop.eup %8110  ;;  %v4095_v53 = vmul.f32 1.442695, %v4008_v61  ;;  %5053 = vmatmul.f32.gmra.mxu3 %v4983_v19  ;;  %vm4719_vm1 = vcmp.lt.f32.partialorder %v4718_v25, 0.0004427343  ;;  %5624 = vmatpush.msra.mxu0 %v5601_v40 }
 0x4e0   : > { %v8113_v37 = vpop.eup %8112  ;;  %v4311_v44 = vadd.f32 1.0, %v8111_v29  ;;  %v4314_v56 = vmul.f32 -0.5, %v8111_v29  ;;  %v4317_v7 = vand.u32 2147483647, %v8111_v29 }
 0x4e1   : > { %v8115_v27 = vpop.eup %8114  ;;  %8118 = vpow2.f32 %v4095_v53  ;;  %v4482_v15 = vpop.f32.mrf.mxu2  ;;  %v4721_v35 = vadd.f32 1.0, %v8113_v37  ;;  %v4724_v10 = vmul.f32 -0.5, %v8113_v37  ;;  %v4727_v6 = vand.u32 2147483647, %v8113_v37 }
 0x4e2   : > { %v8117_v16 = vpop.eup %8116  ;;  %v11410_v46 = vadd.f32 %v11341_v36, %v4482_v15  ;;  %v3961_v42 = vpop.f32.mrf.mxu1  ;;  %v4304_v51 = vmul.f32 0.6931472, %v8115_v27  ;;  %8120 = vlog2.f32 %v4311_v44  ;;  %v4315_v14 = vadd.f32 1.0, %v4314_v56 }
 0x4e3   : > { %v11413_v34 = vadd.f32 %v11299_v17, %v3961_v42  ;;  %v4714_v43 = vmul.f32 0.6931472, %v8117_v16  ;;  %8122 = vlog2.f32 %v4721_v35  ;;  %v4725_v62 = vadd.f32 1.0, %v4724_v10 }
 0x4e4   : > { %v4570_v55 = vmin.f32 %v11410_v46, 20.0  ;;  %v4310_v54 = vsel %vm11405_vm0, %v4307_v63, %v4304_v51  ;;  %vm11425_vm2 = vcmp.lt.f32.partialorder %v4317_v7, 0.0004427343  ;;  %v4316_v26 = vmul.f32 %v8111_v29, %v4315_v14 }
 0x4e5   : > { %v4009_v8 = vmin.f32 %v11413_v34, 20.0  ;;  %v4422_v1 = vsel %vm4038_vm14, %v11365_v13, %v4310_v54  ;;  %v4720_v60 = vsel %vm4719_vm1, %v4717_v47, %v4714_v43  ;;  %v4726_v41 = vmul.f32 %v8113_v37, %v4725_v62 }
 0x4e6   : > { %v4638_v18 = vmul.f32 1.442695, %v4570_v55  ;;  %4532 = vmatmul.f32.gmra.mxu2 %v4422_v1  ;;  %v4984_v4 = vsel %vm4600_vm15, %v11368_v31, %v4720_v60  ;;  %vm4728_vm4 = vcmp.lt.f32.partialorder %v4727_v6, 0.0004427343  ;;  %vm4602_vm8 = vcmp.gt.f32.partialorder %v11410_v46, 20.0 }
 0x4e7   : > { %v8119_v32 = vpop.eup %8118  ;;  %v4097_v38 = vmul.f32 1.442695, %v4009_v8  ;;  %5056 = vmatmul.f32.gmra.mxu3 %v4984_v4  ;;  %vm4041_vm10 = vcmp.gt.f32.partialorder %v11413_v34, 20.0  ;;  %v6191_v4 = vld [vmem:[#allocation19 + $0x78] sm:$0xff] }
 0x4e8   : > { %v8121_v9 = vpop.eup %8120  ;;  %8124 = vpow2.f32 %v4638_v18  ;;  %v4320_v13 = vadd.f32 1.0, %v8119_v32  ;;  %v4323_v45 = vmul.f32 -0.5, %v8119_v32  ;;  %v4326_v20 = vand.u32 2147483647, %v8119_v32  ;;  %6196 = vmatpush.msra.mxu1 %v6191_v4 }
 0x4e9   : > { %v8123_v5 = vpop.eup %8122  ;;  %8126 = vpow2.f32 %v4097_v38  ;;  %v4485_v59 = vpop.f32.mrf.mxu2  ;;  %v4313_v57 = vmul.f32 0.6931472, %v8121_v9 }
 0x4ea   : > { %v11430_v31 = vadd.f32 %v11341_v36, %v4485_v59  ;;  %v3964_v21 = vpop.f32.mrf.mxu1  ;;  %v4723_v28 = vmul.f32 0.6931472, %v8123_v5  ;;  %8128 = vlog2.f32 %v4320_v13  ;;  %v4324_v49 = vadd.f32 1.0, %v4323_v45 }
 0x4eb   : > { %v11433_v11 = vadd.f32 %v11299_v17, %v3964_v21  ;;  %v4319_v22 = vsel %vm11425_vm2, %v4316_v26, %v4313_v57  ;;  %vm4327_vm7 = vcmp.lt.f32.partialorder %v4326_v20, 0.0004427343 }
 0x4ec   : > { %v4571_v12 = vmin.f32 %v11430_v31, 20.0  ;;  %v4423_v48 = vsel %vm4039_vm3, %v11376_v39, %v4319_v22  ;;  %v4729_v23 = vsel %vm4728_vm4, %v4726_v41, %v4723_v28  ;;  %v4325_v25 = vmul.f32 %v8119_v32, %v4324_v49 }
 0x4ed   : > { %v4010_v30 = vmin.f32 %v11433_v11, 20.0  ;;  %v4985_v2 = vsel %vm4601_vm5, %v11379_v24, %v4729_v23  ;;  %vm4603_vm12 = vcmp.gt.f32.partialorder %v11430_v31, 20.0  ;;  %vm4042_vm14 = vcmp.gt.f32.partialorder %v11433_v11, 20.0 }
 0x4ee   : > { %v8125_v61 = vpop.eup %8124  ;;  %v4640_v50 = vmul.f32 1.442695, %v4571_v12  ;;  %4535 = vmatmul.f32.gmra.mxu2 %v4423_v48 }
 0x4ef   : > { %v8127_v0 = vpop.eup %8126  ;;  %v4099_v19 = vmul.f32 1.442695, %v4010_v30  ;;  %5059 = vmatmul.f32.gmra.mxu3 %v4985_v2  ;;  %v4730_v29 = vadd.f32 1.0, %v8125_v61  ;;  %v4733_v24 = vmul.f32 -0.5, %v8125_v61  ;;  %v4736_v56 = vand.u32 2147483647, %v8125_v61 }
 0x4f0   : > { %v8129_v53 = vpop.eup %8128  ;;  %8130 = vpow2.f32 %v4640_v50  ;;  %v4329_v39 = vadd.f32 1.0, %v8127_v0  ;;  %v4332_v27 = vmul.f32 -0.5, %v8127_v0  ;;  %v4335_v42 = vand.u32 2147483647, %v8127_v0 }
 0x4f1   : > { %8132 = vpow2.f32 %v4099_v19  ;;  %v4488_v37 = vpop.f32.mrf.mxu2  ;;  %v4322_v52 = vmul.f32 0.6931472, %v8129_v53  ;;  %v4734_v10 = vadd.f32 1.0, %v4733_v24  ;;  %vm11456_vm9 = vcmp.lt.f32.partialorder %v4736_v56, 0.0004427343  ;;  %v5600_v53 = vld [vmem:[#allocation17 + $0x28] sm:$0xff] }
 0x4f2   : > { %v11445_v44 = vadd.f32 %v11341_v36, %v4488_v37  ;;  %v3967_v58 = vpop.f32.mrf.mxu1  ;;  %8134 = vlog2.f32 %v4730_v29  ;;  %v4333_v55 = vadd.f32 1.0, %v4332_v27  ;;  %vm11461_vm11 = vcmp.lt.f32.partialorder %v4335_v42, 0.0004427343  ;;  %5625 = vmatpush.msra.mxu0 %v5600_v53  ;;  %v5599_v53 = vld [vmem:[#allocation17 + $0x20] sm:$0xff] }
 0x4f3   : > { %v11448_v15 = vadd.f32 %v11299_v17, %v3967_v58  ;;  %v4328_v63 = vsel %vm4327_vm7, %v4325_v25, %v4322_v52  ;;  %8136 = vlog2.f32 %v4329_v39  ;;  %v4735_v6 = vmul.f32 %v8125_v61, %v4734_v10 }
 0x4f4   : > { %v4572_v35 = vmin.f32 %v11445_v44, 20.0  ;;  %v4424_v16 = vsel %vm4040_vm6, %v11392_v33, %v4328_v63  ;;  %v4334_v59 = vmul.f32 %v8127_v0, %v4333_v55  ;;  %vm4604_vm0 = vcmp.gt.f32.partialorder %v11445_v44, 20.0  ;;  %5626 = vmatpush.msra.mxu0 %v5599_v53 }
 0x4f5   : > { %v4011_v51 = vmin.f32 %v11448_v15, 20.0  ;;  %vm4043_vm2 = vcmp.gt.f32.partialorder %v11448_v15, 20.0 }
 0x4f6   : > { %v8131_v43 = vpop.eup %8130  ;;  %v4642_v47 = vmul.f32 1.442695, %v4572_v35  ;;  %4538 = vmatmul.f32.gmra.mxu2 %v4424_v16 }
 0x4f7   : > { %v8133_v54 = vpop.eup %8132  ;;  %v4101_v7 = vmul.f32 1.442695, %v4011_v51  ;;  %v4739_v1 = vadd.f32 1.0, %v8131_v43  ;;  %v4742_v14 = vmul.f32 -0.5, %v8131_v43  ;;  %v4745_v45 = vand.u32 2147483647, %v8131_v43 }
 0x4f8   : > { %v8135_v33 = vpop.eup %8134  ;;  %8138 = vpow2.f32 %v4642_v47  ;;  %v4338_v18 = vadd.f32 1.0, %v8133_v54  ;;  %v4341_v9 = vmul.f32 -0.5, %v8133_v54  ;;  %v4344_v49 = vand.u32 2147483647, %v8133_v54 }
 0x4f9   : > { %v8137_v62 = vpop.eup %8136  ;;  %8140 = vpow2.f32 %v4101_v7  ;;  %v4491_v32 = vpop.f32.mrf.mxu2  ;;  %v4732_v38 = vmul.f32 0.6931472, %v8135_v33  ;;  %v4743_v22 = vadd.f32 1.0, %v4742_v14  ;;  %vm11484_vm13 = vcmp.lt.f32.partialorder %v4745_v45, 0.0004427343 }
 0x4fa   : > { %v11466_v3 = vadd.f32 %v11341_v36, %v4491_v32  ;;  %v3970_v13 = vpop.f32.mrf.mxu1  ;;  %v4331_v5 = vmul.f32 0.6931472, %v8137_v62  ;;  %8142 = vlog2.f32 %v4739_v1  ;;  %v4342_v23 = vadd.f32 1.0, %v4341_v9  ;;  %v6190_v62 = vld [vmem:[#allocation19 + $0x70] sm:$0xff] }
 0x4fb   : > { %v11469_v57 = vadd.f32 %v11299_v17, %v3970_v13  ;;  %v4738_v26 = vsel %vm11456_vm9, %v4735_v6, %v4732_v38  ;;  %8144 = vlog2.f32 %v4338_v18  ;;  %v4744_v19 = vmul.f32 %v8131_v43, %v4743_v22  ;;  %6197 = vmatpush.msra.mxu1 %v6190_v62 }
 0x4fc   : > { %v4573_v21 = vmin.f32 %v11466_v3, 20.0  ;;  %v4986_v28 = vsel %vm4602_vm8, %v11410_v46, %v4738_v26  ;;  %v4337_v41 = vsel %vm11461_vm11, %v4334_v59, %v4331_v5  ;;  %v4343_v52 = vmul.f32 %v8133_v54, %v4342_v23 }
 0x4fd   : > { %v4012_v12 = vmin.f32 %v11469_v57, 20.0  ;;  %5062 = vmatmul.f32.gmra.mxu3 %v4986_v28  ;;  %v4425_v48 = vsel %vm4041_vm10, %v11413_v34, %v4337_v41  ;;  %vm4345_vm15 = vcmp.lt.f32.partialorder %v4344_v49, 0.0004427343  ;;  %vm4605_vm4 = vcmp.gt.f32.partialorder %v11466_v3, 20.0 }
 0x4fe   : > { %v8139_v30 = vpop.eup %8138  ;;  %v4644_v2 = vmul.f32 1.442695, %v4573_v21  ;;  %4541 = vmatmul.f32.gmra.mxu2 %v4425_v48  ;;  %vm4044_vm6 = vcmp.gt.f32.partialorder %v11469_v57, 20.0 }
 0x4ff   : > { %v8141_v61 = vpop.eup %8140  ;;  %v4103_v46 = vmul.f32 1.442695, %v4012_v12  ;;  %v4748_v20 = vadd.f32 1.0, %v8139_v30  ;;  %v4751_v34 = vmul.f32 -0.5, %v8139_v30  ;;  %v4754_v35 = vand.u32 2147483647, %v8139_v30 }
 0x500   : > { %v8143_v0 = vpop.eup %8142  ;;  %8146 = vpow2.f32 %v4644_v2  ;;  %v4347_v29 = vadd.f32 1.0, %v8141_v61  ;;  %v4350_v25 = vmul.f32 -0.5, %v8141_v61  ;;  %v4353_v8 = vand.u32 2147483647, %v8141_v61 }
 0x501   : > { %v8145_v39 = vpop.eup %8144  ;;  %8148 = vpow2.f32 %v4103_v46  ;;  %v4494_v40 = vpop.f32.mrf.mxu2  ;;  %v4741_v37 = vmul.f32 0.6931472, %v8143_v0  ;;  %v4752_v10 = vadd.f32 1.0, %v4751_v34  ;;  %vm11506_vm1 = vcmp.lt.f32.partialorder %v4754_v35, 0.0004427343 }
 0x502   : > { %v11490_v24 = vadd.f32 %v11341_v36, %v4494_v40  ;;  %v3973_v58 = vpop.f32.mrf.mxu1  ;;  %v4340_v27 = vmul.f32 0.6931472, %v8145_v39  ;;  %8150 = vlog2.f32 %v4748_v20  ;;  %v4351_v55 = vadd.f32 1.0, %v4350_v25 }
 0x503   : > { %v11493_v63 = vadd.f32 %v11299_v17, %v3973_v58  ;;  %v4747_v56 = vsel %vm11484_vm13, %v4744_v19, %v4741_v37  ;;  %8152 = vlog2.f32 %v4347_v29  ;;  %v4753_v18 = vmul.f32 %v8139_v30, %v4752_v10 }
 0x504   : > { %v4574_v16 = vmin.f32 %v11490_v24, 20.0  ;;  %v4987_v42 = vsel %vm4603_vm12, %v11430_v31, %v4747_v56  ;;  %v4346_v51 = vsel %vm4345_vm15, %v4343_v52, %v4340_v27  ;;  %v4352_v9 = vmul.f32 %v8141_v61, %v4351_v55 }
 0x505   : > { %v4013_v43 = vmin.f32 %v11493_v63, 20.0  ;;  %5065 = vmatmul.f32.gmra.mxu3 %v4987_v42  ;;  %v4426_v47 = vsel %vm4042_vm14, %v11433_v11, %v4346_v51  ;;  %vm4354_vm3 = vcmp.lt.f32.partialorder %v4353_v8, 0.0004427343  ;;  %vm4606_vm8 = vcmp.gt.f32.partialorder %v11490_v24, 20.0 }
 0x506   : > { %v8147_v54 = vpop.eup %8146  ;;  %v4646_v7 = vmul.f32 1.442695, %v4574_v16  ;;  %4544 = vmatmul.f32.gmra.mxu2 %v4426_v47  ;;  %vm4045_vm10 = vcmp.gt.f32.partialorder %v11493_v63, 20.0 }
 0x507   : > { %v8149_v1 = vpop.eup %8148  ;;  %v4105_v33 = vmul.f32 1.442695, %v4013_v43  ;;  %v4757_v60 = vadd.f32 1.0, %v8147_v54  ;;  %v4760_v11 = vmul.f32 -0.5, %v8147_v54  ;;  %v4763_v28 = vand.u32 2147483647, %v8147_v54 }
 0x508   : > { %v8151_v14 = vpop.eup %8150  ;;  %8154 = vpow2.f32 %v4646_v7  ;;  %v4356_v4 = vadd.f32 1.0, %v8149_v1  ;;  %v4359_v13 = vmul.f32 -0.5, %v8149_v1  ;;  %v4362_v46 = vand.u32 2147483647, %v8149_v1 }
 0x509   : > { %v8153_v32 = vpop.eup %8152  ;;  %8156 = vpow2.f32 %v4105_v33  ;;  %v4497_v38 = vpop.f32.mrf.mxu2  ;;  %v4750_v6 = vmul.f32 0.6931472, %v8151_v14  ;;  %v4761_v48 = vadd.f32 1.0, %v4760_v11  ;;  %vm11528_vm5 = vcmp.lt.f32.partialorder %v4763_v28, 0.0004427343 }
 0x50a   : > { %v11512_v5 = vadd.f32 %v11341_v36, %v4497_v38  ;;  %v3976_v59 = vpop.f32.mrf.mxu1  ;;  %v4349_v26 = vmul.f32 0.6931472, %v8153_v32  ;;  %8158 = vlog2.f32 %v4757_v60  ;;  %v4360_v2 = vadd.f32 1.0, %v4359_v13 }
 0x50b   : > { %v11515_v45 = vadd.f32 %v11299_v17, %v3976_v59  ;;  %v4756_v21 = vsel %vm11506_vm1, %v4753_v18, %v4750_v6  ;;  %8160 = vlog2.f32 %v4356_v4  ;;  %v4762_v34 = vmul.f32 %v8147_v54, %v4761_v48  ;;  %v6189_v4 = vld [vmem:[#allocation19 + $0x68] sm:$0xff] }
 0x50c   : > { %v4575_v41 = vmin.f32 %v11512_v5, 20.0  ;;  %v4988_v22 = vsel %vm4604_vm0, %v11445_v44, %v4756_v21  ;;  %v4355_v12 = vsel %vm4354_vm3, %v4352_v9, %v4349_v26  ;;  %v4361_v52 = vmul.f32 %v8149_v1, %v4360_v2  ;;  %6198 = vmatpush.msra.mxu1 %v6189_v4  ;;  %v8662_v21 = vld [vmem:[%s12755_s12] ss:$0 sm:$0xff] }
 0x50d   : > { %v4014_v23 = vmin.f32 %v11515_v45, 20.0  ;;  %5068 = vmatmul.f32.gmra.mxu3 %v4988_v22  ;;  %v4427_v30 = vsel %vm4043_vm2, %v11448_v15, %v4355_v12  ;;  %vm4363_vm7 = vcmp.lt.f32.partialorder %v4362_v46, 0.0004427343  ;;  %vm4607_vm12 = vcmp.gt.f32.partialorder %v11512_v5, 20.0  ;;  %v11602_v4 = vld [vmem:[%s12757_s14] ss:$0 sm:$0xff] }
 0x50e   : > { %v8155_v49 = vpop.eup %8154  ;;  %v4648_v61 = vmul.f32 1.442695, %v4575_v41  ;;  %4547 = vmatmul.f32.gmra.mxu2 %v4427_v30  ;;  %vm4046_vm14 = vcmp.gt.f32.partialorder %v11515_v45, 20.0 }
 0x50f   : > { %v8157_v50 = vpop.eup %8156  ;;  %v4107_v20 = vmul.f32 1.442695, %v4014_v23  ;;  %v4766_v0 = vadd.f32 1.0, %v8155_v49  ;;  %v4769_v15 = vmul.f32 -0.5, %v8155_v49  ;;  %v4772_v42 = vand.u32 2147483647, %v8155_v49 }
 0x510   : > { %v8159_v19 = vpop.eup %8158  ;;  %8162 = vpow2.f32 %v4648_v61  ;;  %v4365_v29 = vadd.f32 1.0, %v8157_v50  ;;  %v4368_v25 = vmul.f32 -0.5, %v8157_v50  ;;  %v4371_v1 = vand.u32 2147483647, %v8157_v50 }
 0x511   : > { %v8161_v39 = vpop.eup %8160  ;;  %8164 = vpow2.f32 %v4107_v20  ;;  %v4500_v40 = vpop.f32.mrf.mxu2  ;;  %v4759_v37 = vmul.f32 0.6931472, %v8159_v19  ;;  %v4770_v47 = vadd.f32 1.0, %v4769_v15  ;;  %vm11552_vm9 = vcmp.lt.f32.partialorder %v4772_v42, 0.0004427343 }
 0x512   : > { %v11534_v58 = vadd.f32 %v11341_v36, %v4500_v40  ;;  %v3979_v27 = vpop.f32.mrf.mxu1  ;;  %v4358_v56 = vmul.f32 0.6931472, %v8161_v39  ;;  %8166 = vlog2.f32 %v4766_v0  ;;  %v4369_v54 = vadd.f32 1.0, %v4368_v25 }
 0x513   : > { %v11537_v35 = vadd.f32 %v11299_v17, %v3979_v27  ;;  %v4765_v16 = vsel %vm11528_vm5, %v4762_v34, %v4759_v37  ;;  %8168 = vlog2.f32 %v4365_v29  ;;  %vm4372_vm11 = vcmp.lt.f32.partialorder %v4371_v1, 0.0004427343 }
 0x514   : > { %v4576_v51 = vmin.f32 %v11534_v58, 20.0  ;;  %v4989_v10 = vsel %vm4605_vm4, %v11466_v3, %v4765_v16  ;;  %v4364_v43 = vsel %vm4363_vm7, %v4361_v52, %v4358_v56  ;;  %v4370_v6 = vmul.f32 %v8157_v50, %v4369_v54 }
 0x515   : > { %v4015_v55 = vmin.f32 %v11537_v35, 20.0  ;;  %5071 = vmatmul.f32.gmra.mxu3 %v4989_v10  ;;  %v4428_v17 = vsel %vm4044_vm6, %v11469_v57, %v4364_v43  ;;  %v4771_v57 = vmul.f32 %v8155_v49, %v4770_v47  ;;  %vm4608_vm1 = vcmp.gt.f32.partialorder %v11534_v58, 20.0 }
 0x516   : > { %v8163_v7 = vpop.eup %8162  ;;  %v4650_v8 = vmul.f32 1.442695, %v4576_v51  ;;  %4550 = vmatmul.f32.gmra.mxu2 %v4428_v17  ;;  %vm4047_vm2 = vcmp.gt.f32.partialorder %v11537_v35, 20.0 }
 0x517   : > { %v11550_v33 = vpop.eup %8164  ;;  %v4109_v31 = vmul.f32 1.442695, %v4015_v55  ;;  %v4775_v60 = vadd.f32 1.0, %v8163_v7  ;;  %v4778_v18 = vmul.f32 -0.5, %v8163_v7  ;;  %v4781_v22 = vand.u32 2147483647, %v8163_v7 }
 0x518   : > { %v8167_v14 = vpop.eup %8166  ;;  %8170 = vpow2.f32 %v4650_v8  ;;  %v4374_v11 = vadd.f32 1.0, %v11550_v33  ;;  %v4377_v9 = vmul.f32 -0.5, %v11550_v33  ;;  %v4380_v0 = vand.u32 2147483647, %v11550_v33 }
 0x519   : > { %v8169_v62 = vpop.eup %8168  ;;  %8172 = vpow2.f32 %v4109_v31  ;;  %v4503_v32 = vpop.f32.mrf.mxu2  ;;  %v4768_v38 = vmul.f32 0.6931472, %v8167_v14  ;;  %v4779_v30 = vadd.f32 1.0, %v4778_v18  ;;  %vm11579_vm13 = vcmp.lt.f32.partialorder %v4781_v22, 0.0004427343 }
 0x51a   : > { %v11560_v13 = vadd.f32 %v11341_v36, %v4503_v32  ;;  %v3982_v59 = vpop.f32.mrf.mxu1  ;;  %v4367_v26 = vmul.f32 0.6931472, %v8169_v62  ;;  %8174 = vlog2.f32 %v4775_v60  ;;  %v4378_v61 = vadd.f32 1.0, %v4377_v9  ;;  %v6188_v60 = vld [vmem:[#allocation19 + $0x60] sm:$0xff] }
 0x51b   : > { %v11565_v28 = vadd.f32 %v8662_v21, %v3982_v59  ;;  %v4774_v41 = vsel %vm11552_vm9, %v4771_v57, %v4768_v38  ;;  %8176 = vlog2.f32 %v4374_v11  ;;  %v4780_v34 = vmul.f32 %v8163_v7, %v4779_v30  ;;  %6199 = vmatpush.msra.mxu1 %v6188_v60 }
 0x51c   : > { %v4577_v12 = vmin.f32 %v11560_v13, 20.0  ;;  %v4990_v48 = vsel %vm4606_vm8, %v11490_v24, %v4774_v41  ;;  %v4373_v23 = vsel %vm4372_vm11, %v4370_v6, %v4367_v26  ;;  %v4379_v37 = vmul.f32 %v11550_v33, %v4378_v61 }
 0x51d   : > { %v4016_v2 = vmin.f32 %v11565_v28, 20.0  ;;  %5074 = vmatmul.f32.gmra.mxu3 %v4990_v48  ;;  %v4429_v49 = vsel %vm4045_vm10, %v11493_v63, %v4373_v23  ;;  %v5598_v63 = vld [vmem:[#allocation17 + $0x18] sm:$0xff]  ;;  %vm4381_vm15 = vcmp.lt.f32.partialorder %v4380_v0, 0.0004427343  ;;  %vm4609_vm5 = vcmp.gt.f32.partialorder %v11560_v13, 20.0 }
 0x51e   : > { %v8171_v46 = vpop.eup %8170  ;;  %v4652_v50 = vmul.f32 1.442695, %v4577_v12  ;;  %4553 = vmatmul.f32.gmra.mxu2 %v4429_v49  ;;  %5627 = vmatpush.msra.mxu0 %v5598_v63  ;;  %vm4048_vm7 = vcmp.gt.f32.partialorder %v11565_v28, 20.0 }
 0x51f   : > { %v8173_v20 = vpop.eup %8172  ;;  %v4111_v44 = vmul.f32 1.442695, %v4016_v2  ;;  %v4784_v24 = vadd.f32 1.0, %v8171_v46  ;;  %v4787_v52 = vmul.f32 -0.5, %v8171_v46  ;;  %v4790_v43 = vand.u32 2147483647, %v8171_v46 }
 0x520   : > { %v8175_v19 = vpop.eup %8174  ;;  %8178 = vpow2.f32 %v4652_v50  ;;  %v4383_v29 = vadd.f32 1.0, %v8173_v20  ;;  %v4386_v56 = vmul.f32 -0.5, %v8173_v20  ;;  %v4389_v8 = vand.u32 2147483647, %v8173_v20 }
 0x521   : > { %v8177_v53 = vpop.eup %8176  ;;  %8180 = vpow2.f32 %v4111_v44  ;;  %v4506_v39 = vpop.f32.mrf.mxu2  ;;  %v4777_v40 = vmul.f32 0.6931472, %v8175_v19  ;;  %v4788_v47 = vadd.f32 1.0, %v4787_v52  ;;  %vm11595_vm0 = vcmp.lt.f32.partialorder %v4790_v43, 0.0004427343  ;;  %v5597_v44 = vld [vmem:[#allocation17 + $0x10] sm:$0xff] }
 0x522   : > { %v11585_v25 = vadd.f32 %v11341_v36, %v4506_v39  ;;  %v4376_v27 = vmul.f32 0.6931472, %v8177_v53  ;;  %8182 = vlog2.f32 %v4784_v24  ;;  %v4387_v54 = vadd.f32 1.0, %v4386_v56  ;;  %5628 = vmatpush.msra.mxu0 %v5597_v44 }
 0x523   : > { %v4783_v16 = vsel %vm11579_vm13, %v4780_v34, %v4777_v40  ;;  %8184 = vlog2.f32 %v4383_v29  ;;  %v4789_v18 = vmul.f32 %v8171_v46, %v4788_v47  ;;  %vm4390_vm3 = vcmp.lt.f32.partialorder %v4389_v8, 0.0004427343 }
 0x524   : > { %v4578_v42 = vmin.f32 %v11585_v25, 20.0  ;;  %v4991_v51 = vsel %vm4607_vm12, %v11512_v5, %v4783_v16  ;;  %v4382_v10 = vsel %vm4381_vm15, %v4379_v37, %v4376_v27  ;;  %v4388_v38 = vmul.f32 %v8173_v20, %v4387_v54 }
 0x525   : > { %5077 = vmatmul.f32.gmra.mxu3 %v4991_v51  ;;  %v4430_v36 = vsel %vm4046_vm14, %v11515_v45, %v4382_v10  ;;  %vm4610_vm9 = vcmp.gt.f32.partialorder %v11585_v25, 20.0 }
 0x526   : > { %v8179_v55 = vpop.eup %8178  ;;  %v4654_v17 = vmul.f32 1.442695, %v4578_v42  ;;  %4556 = vmatmul.f32.gmra.mxu2 %v4430_v36 }
 0x527   : > { %v8181_v7 = vpop.eup %8180  ;;  %v4793_v1 = vadd.f32 1.0, %v8179_v55  ;;  %v4796_v5 = vmul.f32 -0.5, %v8179_v55  ;;  %v4799_v22 = vand.u32 2147483647, %v8179_v55 }
 0x528   : > { %v8183_v33 = vpop.eup %8182  ;;  %8186 = vpow2.f32 %v4654_v17  ;;  %v4392_v3 = vadd.f32 1.0, %v8181_v7  ;;  %v4395_v11 = vmul.f32 -0.5, %v8181_v7  ;;  %v4398_v30 = vand.u32 2147483647, %v8181_v7 }
 0x529   : > { %v8185_v14 = vpop.eup %8184  ;;  %v4509_v57 = vpop.f32.mrf.mxu2  ;;  %v4786_v45 = vmul.f32 0.6931472, %v8183_v33  ;;  %8188 = vlog2.f32 %v4793_v1  ;;  %v4797_v21 = vadd.f32 1.0, %v4796_v5  ;;  %vm4800_vm4 = vcmp.lt.f32.partialorder %v4799_v22, 0.0004427343  ;;  %v5596_v5 = vld [vmem:[#allocation17 + $0x8] sm:$0xff] }
 0x52a   : > { %v11605_v62 = vadd.f32 %v11602_v4, %v4509_v57  ;;  %v4385_v32 = vmul.f32 0.6931472, %v8185_v14  ;;  %8190 = vlog2.f32 %v4392_v3  ;;  %v4396_v12 = vadd.f32 1.0, %v4395_v11  ;;  %5629 = vmatpush.msra.mxu0 %v5596_v5 }
 0x52b   : > { %v4792_v6 = vsel %vm11595_vm0, %v4789_v18, %v4786_v45  ;;  %v4798_v50 = vmul.f32 %v8179_v55, %v4797_v21  ;;  %vm4399_vm6 = vcmp.lt.f32.partialorder %v4398_v30, 0.0004427343  ;;  %v6186_v21 = vld [vmem:[#allocation19 + $0x50] sm:$0xff] }
 0x52c   : > { %v4579_v9 = vmin.f32 %v11605_v62, 20.0  ;;  %v4992_v59 = vsel %vm4608_vm1, %v11534_v58, %v4792_v6  ;;  %v4391_v26 = vsel %vm4390_vm3, %v4388_v38, %v4385_v32  ;;  %v4397_v24 = vmul.f32 %v8181_v7, %v4396_v12 }
 0x52d   : > { %5080 = vmatmul.f32.gmra.mxu3 %v4992_v59  ;;  %v4431_v41 = vsel %vm4047_vm2, %v11537_v35, %v4391_v26  ;;  %vm4611_vm11 = vcmp.gt.f32.partialorder %v11605_v62, 20.0 }
 0x52e   : > { %v8187_v48 = vpop.eup %8186  ;;  %v4656_v23 = vmul.f32 1.442695, %v4579_v9  ;;  %4559 = vmatmul.f32.gmra.mxu2 %v4431_v41 }
 0x52f   : > { %v8189_v2 = vpop.eup %8188  ;;  %v4802_v49 = vadd.f32 1.0, %v8187_v48  ;;  %v4805_v20 = vmul.f32 -0.5, %v8187_v48  ;;  %v4808_v39 = vand.u32 2147483647, %v8187_v48 }
 0x530   : > { %v8191_v61 = vpop.eup %8190  ;;  %8192 = vpow2.f32 %v4656_v23  ;;  %v4795_v46 = vmul.f32 0.6931472, %v8189_v2 }
 0x531   : > { %v4512_v58 = vpop.f32.mrf.mxu2  ;;  %v4394_v0 = vmul.f32 0.6931472, %v8191_v61  ;;  %8194 = vlog2.f32 %v4802_v49  ;;  %v4806_v53 = vadd.f32 1.0, %v4805_v20  ;;  %vm4809_vm8 = vcmp.lt.f32.partialorder %v4808_v39, 0.0004427343 }
 0x532   : > { %v11615_v35 = vadd.f32 %v11602_v4, %v4512_v58  ;;  %v4801_v19 = vsel %vm4800_vm4, %v4798_v50, %v4795_v46  ;;  %v5595_v58 = vld [vmem:[#allocation17] sm:$0xff] }
 0x533   : > { %v4993_v34 = vsel %vm4609_vm5, %v11560_v13, %v4801_v19  ;;  %v4400_v15 = vsel %vm4399_vm6, %v4397_v24, %v4394_v0  ;;  %v4807_v16 = vmul.f32 %v8187_v48, %v4806_v53  ;;  %v6187_v13 = vld [vmem:[#allocation19 + $0x58] sm:$0xff]  ;;  %5630 = vmatpush.msra.mxu0 %v5595_v58 }
 0x534   : > { %v4580_v29 = vmin.f32 %v11615_v35, 20.0  ;;  %v4432_v63 = vsel %vm4048_vm7, %v11565_v28, %v4400_v15  ;;  %6200 = vmatpush.msra.mxu1 %v6187_v13  ;;  %vm4612_vm13 = vcmp.gt.f32.partialorder %v11615_v35, 20.0  ;;  %v6185_v13 = vld [vmem:[#allocation19 + $0x48] sm:$0xff] }
 0x535   : > { %5083 = vmatmul.f32.gmra.mxu3 %v4993_v34  ;;  %v11648_v34 = vld [vmem:[%s12976_s7] ss:$0 sm:$0xff] }
 0x536   : > { %v8193_v40 = vpop.eup %8192  ;;  %v4658_v37 = vmul.f32 1.442695, %v4580_v29  ;;  %4562 = vmatmul.f32.gmra.mxu2 %v4432_v63  ;;  %6201 = vmatpush.msra.mxu1 %v6186_v21 }
 0x537   : > { %v8195_v52 = vpop.eup %8194  ;;  %v4811_v27 = vadd.f32 1.0, %v8193_v40  ;;  %v4814_v42 = vmul.f32 -0.5, %v8193_v40  ;;  %v4817_v55 = vand.u32 2147483647, %v8193_v40 }
 0x538   : > { %8196 = vpow2.f32 %v4658_v37  ;;  %v4804_v56 = vmul.f32 0.6931472, %v8195_v52  ;;  %6202 = vmatpush.msra.mxu1 %v6185_v13 }
 0x539   : > { %v4515_v51 = vpop.f32.mrf.mxu2  ;;  %8198 = vlog2.f32 %v4811_v27  ;;  %v4815_v47 = vadd.f32 1.0, %v4814_v42  ;;  %vm4818_vm10 = vcmp.lt.f32.partialorder %v4817_v55, 0.0004427343 }
 0x53a   : > { %v11623_v10 = vadd.f32 %v11602_v4, %v4515_v51  ;;  %v4810_v28 = vsel %vm4809_vm8, %v4807_v16, %v4804_v56 }
 0x53b   : > { %v4994_v43 = vsel %vm4610_vm9, %v11585_v25, %v4810_v28  ;;  %v4816_v33 = vmul.f32 %v8193_v40, %v4815_v47 }
 0x53c   : > { %v4581_v36 = vmin.f32 %v11623_v10, 20.0  ;;  %vm4613_vm15 = vcmp.gt.f32.partialorder %v11623_v10, 20.0 }
 0x53d   : > { %5086 = vmatmul.f32.gmra.mxu3 %v4994_v43 }
 0x53e   : > { %v8197_v17 = vpop.eup %8196  ;;  %v4660_v54 = vmul.f32 1.442695, %v4581_v36 }
 0x53f   : > { %v8199_v7 = vpop.eup %8198  ;;  %v4820_v8 = vadd.f32 1.0, %v8197_v17  ;;  %v4823_v31 = vmul.f32 -0.5, %v8197_v17  ;;  %v4826_v18 = vand.u32 2147483647, %v8197_v17 }
 0x540   : > { %8200 = vpow2.f32 %v4660_v54  ;;  %v4813_v1 = vmul.f32 0.6931472, %v8199_v7 }
 0x541   : > { %v4518_v3 = vpop.f32.mrf.mxu2  ;;  %8202 = vlog2.f32 %v4820_v8  ;;  %v4824_v45 = vadd.f32 1.0, %v4823_v31  ;;  %vm4827_vm12 = vcmp.lt.f32.partialorder %v4826_v18, 0.0004427343 }
 0x542   : > { %v11629_v25 = vadd.f32 %v11602_v4, %v4518_v3  ;;  %v4819_v60 = vsel %vm4818_vm10, %v4816_v33, %v4813_v1 }
 0x543   : > { %v4995_v14 = vsel %vm4611_vm11, %v11605_v62, %v4819_v60  ;;  %v4825_v59 = vmul.f32 %v8197_v17, %v4824_v45 }
 0x544   : > { %v4582_v57 = vmin.f32 %v11629_v25, 20.0  ;;  %vm4614_vm1 = vcmp.gt.f32.partialorder %v11629_v25, 20.0 }
 0x545   : > { %5089 = vmatmul.f32.gmra.mxu3 %v4995_v14 }
 0x546   : > { %v8201_v11 = vpop.eup %8200  ;;  %v4662_v32 = vmul.f32 1.442695, %v4582_v57 }
 0x547   : > { %v8203_v38 = vpop.eup %8202  ;;  %v4829_v6 = vadd.f32 1.0, %v8201_v11  ;;  %v4832_v26 = vmul.f32 -0.5, %v8201_v11  ;;  %v4835_v30 = vand.u32 2147483647, %v8201_v11 }
 0x548   : > { %8204 = vpow2.f32 %v4662_v32  ;;  %v4822_v9 = vmul.f32 0.6931472, %v8203_v38 }
 0x549   : > { %v4521_v41 = vpop.f32.mrf.mxu2  ;;  %8206 = vlog2.f32 %v4829_v6  ;;  %v4833_v23 = vadd.f32 1.0, %v4832_v26  ;;  %vm4836_vm14 = vcmp.lt.f32.partialorder %v4835_v30, 0.0004427343 }
 0x54a   : > { %v11635_v62 = vadd.f32 %v11602_v4, %v4521_v41  ;;  %v4828_v22 = vsel %vm4827_vm12, %v4825_v59, %v4822_v9 }
 0x54b   : > { %v4996_v12 = vsel %vm4612_vm13, %v11615_v35, %v4828_v22  ;;  %v4834_v20 = vmul.f32 %v8201_v11, %v4833_v23 }
 0x54c   : > { %v4583_v48 = vmin.f32 %v11635_v62, 20.0  ;;  %vm4615_vm3 = vcmp.gt.f32.partialorder %v11635_v62, 20.0 }
 0x54d   : > { %5092 = vmatmul.f32.gmra.mxu3 %v4996_v12 }
 0x54e   : > { %v8205_v2 = vpop.eup %8204  ;;  %v4664_v49 = vmul.f32 1.442695, %v4583_v48 }
 0x54f   : > { %v8207_v61 = vpop.eup %8206  ;;  %v4838_v46 = vadd.f32 1.0, %v8205_v2  ;;  %v4841_v44 = vmul.f32 -0.5, %v8205_v2  ;;  %v4844_v63 = vand.u32 2147483647, %v8205_v2 }
 0x550   : > { %8208 = vpow2.f32 %v4664_v49  ;;  %v4831_v50 = vmul.f32 0.6931472, %v8207_v61 }
 0x551   : > { %v4524_v0 = vpop.f32.mrf.mxu2  ;;  %8210 = vlog2.f32 %v4838_v46  ;;  %v4842_v29 = vadd.f32 1.0, %v4841_v44  ;;  %vm4845_vm0 = vcmp.lt.f32.partialorder %v4844_v63, 0.0004427343 }
 0x552   : > { %v11641_v24 = vadd.f32 %v11602_v4, %v4524_v0  ;;  %v4837_v35 = vsel %vm4836_vm14, %v4834_v20, %v4831_v50 }
 0x553   : > { %v4997_v19 = vsel %vm4613_vm15, %v11623_v10, %v4837_v35  ;;  %v4843_v16 = vmul.f32 %v8205_v2, %v4842_v29  ;;  %v6184_v2 = vld [vmem:[#allocation19 + $0x40] sm:$0xff] }
 0x554   : > { %v4584_v15 = vmin.f32 %v11641_v24, 20.0  ;;  %vm4616_vm4 = vcmp.gt.f32.partialorder %v11641_v24, 20.0  ;;  %6203 = vmatpush.msra.mxu1 %v6184_v2 }
 0x555   : > { %5095 = vmatmul.f32.gmra.mxu3 %v4997_v19 }
 0x556   : > { %v8209_v53 = vpop.eup %8208  ;;  %v4666_v39 = vmul.f32 1.442695, %v4584_v15  ;;  %v5051_v40 = vpop.f32.mrf.mxu3 }
 0x557   : > { %v8211_v37 = vpop.eup %8210  ;;  %v11652_v52 = vadd.f32 %v11648_v34, %v5051_v40  ;;  %v4847_v27 = vadd.f32 1.0, %v8209_v53  ;;  %v4850_v42 = vmul.f32 -0.5, %v8209_v53  ;;  %v4853_v54 = vand.u32 2147483647, %v8209_v53 }
 0x558   : > { %8212 = vpow2.f32 %v4666_v39  ;;  %v4840_v56 = vmul.f32 0.6931472, %v8211_v37 }
 0x559   : > { %v4527_v51 = vpop.f32.mrf.mxu2  ;;  %v5147_v10 = vmin.f32 %v11652_v52, 20.0  ;;  %8214 = vlog2.f32 %v4847_v27  ;;  %v4851_v17 = vadd.f32 1.0, %v4850_v42  ;;  %vm4854_vm2 = vcmp.lt.f32.partialorder %v4853_v54, 0.0004427343 }
 0x55a   : > { %v11656_v28 = vadd.f32 %v11602_v4, %v4527_v51  ;;  %v4846_v43 = vsel %vm4845_vm0, %v4843_v16, %v4840_v56  ;;  %vm5179_vm7 = vcmp.gt.f32.partialorder %v11652_v52, 20.0 }
 0x55b   : > { %v4998_v36 = vsel %vm4614_vm1, %v11629_v25, %v4846_v43  ;;  %v5211_v47 = vmul.f32 1.442695, %v5147_v10  ;;  %v4852_v5 = vmul.f32 %v8209_v53, %v4851_v17 }
 0x55c   : > { %v4585_v55 = vmin.f32 %v11656_v28, 20.0  ;;  %vm4617_vm9 = vcmp.gt.f32.partialorder %v11656_v28, 20.0 }
 0x55d   : > { %5098 = vmatmul.f32.gmra.mxu3 %v4998_v36  ;;  %8216 = vpow2.f32 %v5211_v47 }
 0x55e   : > { %v8213_v7 = vpop.eup %8212  ;;  %v4668_v8 = vmul.f32 1.442695, %v4585_v55 }
 0x55f   : > { %v8215_v1 = vpop.eup %8214  ;;  %v4856_v33 = vadd.f32 1.0, %v8213_v7  ;;  %v4859_v3 = vmul.f32 -0.5, %v8213_v7  ;;  %v4862_v59 = vand.u32 2147483647, %v8213_v7 }
 0x560   : > { %8218 = vpow2.f32 %v4668_v8  ;;  %v4849_v31 = vmul.f32 0.6931472, %v8215_v1 }
 0x561   : > { %v4530_v60 = vpop.f32.mrf.mxu2  ;;  %8220 = vlog2.f32 %v4856_v33  ;;  %v4860_v38 = vadd.f32 1.0, %v4859_v3  ;;  %vm4863_vm5 = vcmp.lt.f32.partialorder %v4862_v59, 0.0004427343  ;;  %v6183_v59 = vld [vmem:[#allocation19 + $0x38] sm:$0xff] }
 0x562   : > { %v11662_v25 = vadd.f32 %v11602_v4, %v4530_v60  ;;  %v4855_v14 = vsel %vm4854_vm2, %v4852_v5, %v4849_v31  ;;  %v5054_v57 = vpop.f32.mrf.mxu3  ;;  %6204 = vmatpush.msra.mxu1 %v6183_v59 }
 0x563   : > { %v8217_v45 = vpop.eup %8216  ;;  %v4999_v18 = vsel %vm4615_vm3, %v11635_v62, %v4855_v14  ;;  %v11667_v11 = vadd.f32 %v11648_v34, %v5054_v57  ;;  %v4861_v23 = vmul.f32 %v8213_v7, %v4860_v38 }
 0x564   : > { %v4586_v32 = vmin.f32 %v11662_v25, 20.0  ;;  %v5275_v6 = vadd.f32 1.0, %v8217_v45  ;;  %v5278_v26 = vmul.f32 -0.5, %v8217_v45  ;;  %v5281_v44 = vand.u32 2147483647, %v8217_v45 }
 0x565   : > { %5101 = vmatmul.f32.gmra.mxu3 %v4999_v18  ;;  %v5148_v9 = vmin.f32 %v11667_v11, 20.0  ;;  %vm4618_vm10 = vcmp.gt.f32.partialorder %v11662_v25, 20.0  ;;  %vm5180_vm11 = vcmp.gt.f32.partialorder %v11667_v11, 20.0 }
 0x566   : > { %v8219_v21 = vpop.eup %8218  ;;  %v4670_v41 = vmul.f32 1.442695, %v4586_v32  ;;  %8222 = vlog2.f32 %v5275_v6  ;;  %v5279_v61 = vadd.f32 1.0, %v5278_v26  ;;  %vm5282_vm6 = vcmp.lt.f32.partialorder %v5281_v44, 0.0004427343 }
 0x567   : > { %v8221_v22 = vpop.eup %8220  ;;  %v5213_v12 = vmul.f32 1.442695, %v5148_v9  ;;  %v4865_v48 = vadd.f32 1.0, %v8219_v21  ;;  %v4868_v30 = vmul.f32 -0.5, %v8219_v21  ;;  %v4871_v37 = vand.u32 2147483647, %v8219_v21 }
 0x568   : > { %8224 = vpow2.f32 %v4670_v41  ;;  %v4858_v62 = vmul.f32 0.6931472, %v8221_v22  ;;  %v5280_v53 = vmul.f32 %v8217_v45, %v5279_v61 }
 0x569   : > { %8226 = vpow2.f32 %v5213_v12  ;;  %v4533_v49 = vpop.f32.mrf.mxu2  ;;  %v4869_v15 = vadd.f32 1.0, %v4868_v30  ;;  %vm4872_vm8 = vcmp.lt.f32.partialorder %v4871_v37, 0.0004427343 }
 0x56a   : > { %v11673_v46 = vadd.f32 %v11602_v4, %v4533_v49  ;;  %v4864_v50 = vsel %vm4863_vm5, %v4861_v23, %v4858_v62  ;;  %v5057_v20 = vpop.f32.mrf.mxu3  ;;  %8228 = vlog2.f32 %v4865_v48 }
 0x56b   : > { %v5000_v58 = vsel %vm4616_vm4, %v11641_v24, %v4864_v50  ;;  %v11677_v0 = vadd.f32 %v11648_v34, %v5057_v20  ;;  %v4870_v13 = vmul.f32 %v8219_v21, %v4869_v15 }
 0x56c   : > { %v8223_v35 = vpop.eup %8222  ;;  %v4587_v19 = vmin.f32 %v11673_v46, 20.0  ;;  %vm4619_vm14 = vcmp.gt.f32.partialorder %v11673_v46, 20.0 }
 0x56d   : > { %5104 = vmatmul.f32.gmra.mxu3 %v5000_v58  ;;  %v5149_v29 = vmin.f32 %v11677_v0, 20.0  ;;  %v5277_v63 = vmul.f32 0.6931472, %v8223_v35  ;;  %vm5181_vm0 = vcmp.gt.f32.partialorder %v11677_v0, 20.0 }
 0x56e   : > { %v8225_v39 = vpop.eup %8224  ;;  %v4672_v40 = vmul.f32 1.442695, %v4587_v19 }
 0x56f   : > { %v8227_v27 = vpop.eup %8226  ;;  %v5215_v24 = vmul.f32 1.442695, %v5149_v29  ;;  %v5283_v56 = vsel %vm5282_vm6, %v5280_v53, %v5277_v63  ;;  %v4874_v16 = vadd.f32 1.0, %v8225_v39  ;;  %v4877_v47 = vmul.f32 -0.5, %v8225_v39 }
 0x570   : > { %v8229_v42 = vpop.eup %8228  ;;  %8230 = vpow2.f32 %v4672_v40  ;;  %v5563_v51 = vsel %vm5179_vm7, %v11652_v52, %v5283_v56  ;;  %v5284_v10 = vadd.f32 1.0, %v8227_v27  ;;  %v5287_v55 = vmul.f32 -0.5, %v8227_v27 }
 0x571   : > { %8232 = vpow2.f32 %v5215_v24  ;;  %v4536_v43 = vpop.f32.mrf.mxu2  ;;  %v4867_v36 = vmul.f32 0.6931472, %v8229_v42  ;;  %5631 = vmatmul.f32.vlgmr.msra.gmra.mxu0 %v5563_v51  ;;  %v4880_v33 = vand.u32 2147483647, %v8225_v39  ;;  %v4878_v5 = vadd.f32 1.0, %v4877_v47 }
 0x572   : > { %v11684_v17 = vadd.f32 %v11602_v4, %v4536_v43  ;;  %v5060_v54 = vpop.f32.mrf.mxu3  ;;  %8234 = vlog2.f32 %v4874_v16  ;;  %v5288_v3 = vadd.f32 1.0, %v5287_v55  ;;  %v5290_v18 = vand.u32 2147483647, %v8227_v27 }
 0x573   : > { %v4873_v7 = vsel %vm4872_vm8, %v4870_v13, %v4867_v36  ;;  %v11688_v8 = vadd.f32 %v11648_v34, %v5060_v54  ;;  %8236 = vlog2.f32 %v5284_v10  ;;  %vm11695_vm12 = vcmp.lt.f32.partialorder %v4880_v33, 0.0004427343 }
 0x574   : > { %v4588_v52 = vmin.f32 %v11684_v17, 20.0  ;;  %v5001_v1 = vsel %vm4617_vm9, %v11656_v28, %v4873_v7  ;;  %v4879_v22 = vmul.f32 %v8225_v39, %v4878_v5  ;;  %v5289_v12 = vmul.f32 %v8227_v27, %v5288_v3 }
 0x575   : > { %5107 = vmatmul.f32.gmra.mxu3 %v5001_v1  ;;  %v5150_v31 = vmin.f32 %v11688_v8, 20.0  ;;  %vm5291_vm13 = vcmp.lt.f32.partialorder %v5290_v18, 0.0004427343  ;;  %vm4620_vm3 = vcmp.gt.f32.partialorder %v11684_v17, 20.0  ;;  %vm5182_vm5 = vcmp.gt.f32.partialorder %v11688_v8, 20.0 }
 0x576   : > { %v8231_v60 = vpop.eup %8230  ;;  %v4674_v14 = vmul.f32 1.442695, %v4588_v52 }
 0x577   : > { %v8233_v57 = vpop.eup %8232  ;;  %v5217_v45 = vmul.f32 1.442695, %v5150_v31  ;;  %v4883_v32 = vadd.f32 1.0, %v8231_v60  ;;  %v4886_v6 = vmul.f32 -0.5, %v8231_v60  ;;  %v4889_v2 = vand.u32 2147483647, %v8231_v60 }
 0x578   : > { %v8235_v38 = vpop.eup %8234  ;;  %8238 = vpow2.f32 %v4674_v14  ;;  %v5293_v9 = vadd.f32 1.0, %v8233_v57  ;;  %v5296_v23 = vmul.f32 -0.5, %v8233_v57 }
 0x579   : > { %v8237_v26 = vpop.eup %8236  ;;  %8240 = vpow2.f32 %v5217_v45  ;;  %v4539_v21 = vpop.f32.mrf.mxu2  ;;  %v4876_v41 = vmul.f32 0.6931472, %v8235_v38  ;;  %v4887_v20 = vadd.f32 1.0, %v4886_v6  ;;  %vm11712_vm15 = vcmp.lt.f32.partialorder %v4889_v2, 0.0004427343  ;;  %v6182_v6 = vld [vmem:[#allocation19 + $0x30] sm:$0xff] }
 0x57a   : > { %v11700_v48 = vadd.f32 %v11602_v4, %v4539_v21  ;;  %v5286_v62 = vmul.f32 0.6931472, %v8237_v26  ;;  %8242 = vlog2.f32 %v4883_v32  ;;  %v5297_v19 = vadd.f32 1.0, %v5296_v23  ;;  %6205 = vmatpush.msra.mxu1 %v6182_v6 }
 0x57b   : > { %v4882_v30 = vsel %vm11695_vm12, %v4879_v22, %v4876_v41  ;;  %8244 = vlog2.f32 %v5293_v9  ;;  %v4888_v40 = vmul.f32 %v8231_v60, %v4887_v20 }
 0x57c   : > { %v4589_v49 = vmin.f32 %v11700_v48, 20.0  ;;  %v5002_v61 = vsel %vm4618_vm10, %v11662_v25, %v4882_v30  ;;  %v5292_v50 = vsel %vm5291_vm13, %v5289_v12, %v5286_v62  ;;  %v5299_v25 = vand.u32 2147483647, %v8233_v57 }
 0x57d   : > { %5110 = vmatmul.f32.gmra.mxu3 %v5002_v61  ;;  %v5564_v44 = vsel %vm5180_vm11, %v11667_v11, %v5292_v50  ;;  %v5298_v10 = vmul.f32 %v8233_v57, %v5297_v19  ;;  %vm4621_vm6 = vcmp.gt.f32.partialorder %v11700_v48, 20.0  ;;  %v6181_v57 = vld [vmem:[#allocation19 + $0x28] sm:$0xff] }
 0x57e   : > { %v8239_v58 = vpop.eup %8238  ;;  %v4676_v35 = vmul.f32 1.442695, %v4589_v49  ;;  %5634 = vmatmul.f32.gmra.mxu0 %v5564_v44  ;;  %vm5300_vm1 = vcmp.lt.f32.partialorder %v5299_v25, 0.0004427343  ;;  %6206 = vmatpush.msra.mxu1 %v6181_v57 }
 0x57f   : > { %v8241_v15 = vpop.eup %8240  ;;  %v4892_v63 = vadd.f32 1.0, %v8239_v58  ;;  %v4895_v11 = vmul.f32 -0.5, %v8239_v58  ;;  %v4898_v47 = vand.u32 2147483647, %v8239_v58 }
 0x580   : > { %v8243_v53 = vpop.eup %8242  ;;  %8246 = vpow2.f32 %v4676_v35  ;;  %v5063_v39 = vpop.f32.mrf.mxu3  ;;  %v5302_v37 = vadd.f32 1.0, %v8241_v15  ;;  %v5305_v42 = vmul.f32 -0.5, %v8241_v15  ;;  %v5308_v60 = vand.u32 2147483647, %v8241_v15 }
 0x581   : > { %v8245_v27 = vpop.eup %8244  ;;  %v11718_v24 = vadd.f32 %v11648_v34, %v5063_v39  ;;  %v4542_v56 = vpop.f32.mrf.mxu2  ;;  %v4885_v16 = vmul.f32 0.6931472, %v8243_v53  ;;  %8248 = vlog2.f32 %v4892_v63  ;;  %v4896_v52 = vadd.f32 1.0, %v4895_v11 }
 0x582   : > { %v11721_v13 = vadd.f32 %v11602_v4, %v4542_v56  ;;  %v5295_v51 = vmul.f32 0.6931472, %v8245_v27  ;;  %8250 = vlog2.f32 %v5302_v37  ;;  %v5306_v31 = vadd.f32 1.0, %v5305_v42 }
 0x583   : > { %v5151_v43 = vmin.f32 %v11718_v24, 20.0  ;;  %v4891_v36 = vsel %vm11712_vm15, %v4888_v40, %v4885_v16  ;;  %vm11733_vm2 = vcmp.lt.f32.partialorder %v4898_v47, 0.0004427343  ;;  %v4897_v38 = vmul.f32 %v8239_v58, %v4896_v52 }
 0x584   : > { %v4590_v55 = vmin.f32 %v11721_v13, 20.0  ;;  %v5003_v54 = vsel %vm4619_vm14, %v11673_v46, %v4891_v36  ;;  %v5301_v7 = vsel %vm5300_vm1, %v5298_v10, %v5295_v51  ;;  %v5307_v26 = vmul.f32 %v8241_v15, %v5306_v31 }
 0x585   : > { %v5219_v1 = vmul.f32 1.442695, %v5151_v43  ;;  %5113 = vmatmul.f32.gmra.mxu3 %v5003_v54  ;;  %v5565_v33 = vsel %vm5181_vm0, %v11677_v0, %v5301_v7  ;;  %vm5309_vm4 = vcmp.lt.f32.partialorder %v5308_v60, 0.0004427343  ;;  %vm5183_vm8 = vcmp.gt.f32.partialorder %v11718_v24, 20.0 }
 0x586   : > { %v8247_v5 = vpop.eup %8246  ;;  %v4678_v3 = vmul.f32 1.442695, %v4590_v55  ;;  %5637 = vmatmul.f32.gmra.mxu0 %v5565_v33  ;;  %vm4622_vm10 = vcmp.gt.f32.partialorder %v11721_v13, 20.0 }
 0x587   : > { %v8249_v14 = vpop.eup %8248  ;;  %8252 = vpow2.f32 %v5219_v1  ;;  %v4901_v46 = vadd.f32 1.0, %v8247_v5  ;;  %v4904_v28 = vmul.f32 -0.5, %v8247_v5  ;;  %v4907_v50 = vand.u32 2147483647, %v8247_v5 }
 0x588   : > { %v8251_v45 = vpop.eup %8250  ;;  %8254 = vpow2.f32 %v4678_v3  ;;  %v5066_v18 = vpop.f32.mrf.mxu3  ;;  %v4894_v32 = vmul.f32 0.6931472, %v8249_v14 }
 0x589   : > { %v11738_v0 = vadd.f32 %v11648_v34, %v5066_v18  ;;  %v4545_v9 = vpop.f32.mrf.mxu2  ;;  %v5304_v59 = vmul.f32 0.6931472, %v8251_v45  ;;  %8256 = vlog2.f32 %v4901_v46  ;;  %v4905_v2 = vadd.f32 1.0, %v4904_v28 }
 0x58a   : > { %v11741_v21 = vadd.f32 %v11602_v4, %v4545_v9  ;;  %v4900_v41 = vsel %vm11733_vm2, %v4897_v38, %v4894_v32  ;;  %vm4908_vm7 = vcmp.lt.f32.partialorder %v4907_v50, 0.0004427343 }
 0x58b   : > { %v5152_v22 = vmin.f32 %v11738_v0, 20.0  ;;  %v5004_v12 = vsel %vm4620_vm3, %v11684_v17, %v4900_v41  ;;  %v5310_v62 = vsel %vm5309_vm4, %v5307_v26, %v5304_v59  ;;  %v4906_v29 = vmul.f32 %v8247_v5, %v4905_v2 }
 0x58c   : > { %v4591_v23 = vmin.f32 %v11741_v21, 20.0  ;;  %v5566_v30 = vsel %vm5182_vm5, %v11688_v8, %v5310_v62  ;;  %v6772_v8 = vld [vmem:[#allocation20 + $0x78] sm:$0xff]  ;;  %vm5184_vm12 = vcmp.gt.f32.partialorder %v11738_v0, 20.0  ;;  %vm4623_vm14 = vcmp.gt.f32.partialorder %v11741_v21, 20.0 }
 0x58d   : > { %v8253_v49 = vpop.eup %8252  ;;  %v5221_v61 = vmul.f32 1.442695, %v5152_v22  ;;  %5116 = vmatmul.f32.gmra.mxu3 %v5004_v12  ;;  %6777 = vmatpush.msra.mxu2 %v6772_v8 }
 0x58e   : > { %v8255_v20 = vpop.eup %8254  ;;  %v4680_v44 = vmul.f32 1.442695, %v4591_v23  ;;  %5640 = vmatmul.f32.gmra.mxu0 %v5566_v30  ;;  %v5311_v58 = vadd.f32 1.0, %v8253_v49  ;;  %v5314_v25 = vmul.f32 -0.5, %v8253_v49  ;;  %v5317_v37 = vand.u32 2147483647, %v8253_v49 }
 0x58f   : > { %v8257_v35 = vpop.eup %8256  ;;  %8258 = vpow2.f32 %v5221_v61  ;;  %v4910_v17 = vadd.f32 1.0, %v8255_v20  ;;  %v4913_v39 = vmul.f32 -0.5, %v8255_v20  ;;  %v4916_v16 = vand.u32 2147483647, %v8255_v20 }
 0x590   : > { %8260 = vpow2.f32 %v4680_v44  ;;  %v5069_v19 = vpop.f32.mrf.mxu3  ;;  %v4903_v15 = vmul.f32 0.6931472, %v8257_v35  ;;  %v5315_v51 = vadd.f32 1.0, %v5314_v25  ;;  %vm11764_vm9 = vcmp.lt.f32.partialorder %v5317_v37, 0.0004427343  ;;  %v6771_v25 = vld [vmem:[#allocation20 + $0x70] sm:$0xff] }
 0x591   : > { %v11753_v63 = vadd.f32 %v11648_v34, %v5069_v19  ;;  %v4548_v53 = vpop.f32.mrf.mxu2  ;;  %8262 = vlog2.f32 %v5311_v58  ;;  %v4914_v36 = vadd.f32 1.0, %v4913_v39  ;;  %vm11769_vm11 = vcmp.lt.f32.partialorder %v4916_v16, 0.0004427343  ;;  %6778 = vmatpush.msra.mxu2 %v6771_v25 }
 0x592   : > { %v11756_v40 = vadd.f32 %v11602_v4, %v4548_v53  ;;  %v4909_v11 = vsel %vm4908_vm7, %v4906_v29, %v4903_v15  ;;  %8264 = vlog2.f32 %v4910_v17  ;;  %v5316_v60 = vmul.f32 %v8253_v49, %v5315_v51 }
 0x593   : > { %v5153_v27 = vmin.f32 %v11753_v63, 20.0  ;;  %v5005_v56 = vsel %vm4621_vm6, %v11700_v48, %v4909_v11  ;;  %v4915_v32 = vmul.f32 %v8255_v20, %v4914_v36  ;;  %vm5185_vm0 = vcmp.gt.f32.partialorder %v11753_v63, 20.0 }
 0x594   : > { %v4592_v42 = vmin.f32 %v11756_v40, 20.0  ;;  %vm4624_vm2 = vcmp.gt.f32.partialorder %v11756_v40, 20.0 }
 0x595   : > { %v8259_v10 = vpop.eup %8258  ;;  %v5223_v43 = vmul.f32 1.442695, %v5153_v27  ;;  %5119 = vmatmul.f32.gmra.mxu3 %v5005_v56 }
 0x596   : > { %v8261_v47 = vpop.eup %8260  ;;  %v4682_v55 = vmul.f32 1.442695, %v4592_v42  ;;  %v5320_v7 = vadd.f32 1.0, %v8259_v10  ;;  %v5323_v1 = vmul.f32 -0.5, %v8259_v10  ;;  %v5326_v6 = vand.u32 2147483647, %v8259_v10 }
 0x597   : > { %v8263_v48 = vpop.eup %8262  ;;  %8266 = vpow2.f32 %v5223_v43  ;;  %v4919_v33 = vadd.f32 1.0, %v8261_v47  ;;  %v4922_v14 = vmul.f32 -0.5, %v8261_v47  ;;  %v4925_v2 = vand.u32 2147483647, %v8261_v47 }
 0x598   : > { %v8265_v31 = vpop.eup %8264  ;;  %8268 = vpow2.f32 %v4682_v55  ;;  %v5072_v5 = vpop.f32.mrf.mxu3  ;;  %v5313_v3 = vmul.f32 0.6931472, %v8263_v48  ;;  %v5324_v41 = vadd.f32 1.0, %v5323_v1  ;;  %vm11792_vm13 = vcmp.lt.f32.partialorder %v5326_v6, 0.0004427343 }
 0x599   : > { %v11774_v46 = vadd.f32 %v11648_v34, %v5072_v5  ;;  %v4551_v45 = vpop.f32.mrf.mxu2  ;;  %v4912_v18 = vmul.f32 0.6931472, %v8265_v31  ;;  %8270 = vlog2.f32 %v5320_v7  ;;  %v4923_v62 = vadd.f32 1.0, %v4922_v14  ;;  %v6180_v5 = vld [vmem:[#allocation19 + $0x20] sm:$0xff] }
 0x59a   : > { %v11777_v38 = vadd.f32 %v11602_v4, %v4551_v45  ;;  %v5319_v28 = vsel %vm11764_vm9, %v5316_v60, %v5313_v3  ;;  %8272 = vlog2.f32 %v4919_v33  ;;  %v5325_v44 = vmul.f32 %v8259_v10, %v5324_v41  ;;  %6207 = vmatpush.msra.mxu1 %v6180_v5  ;;  %v6179_v5 = vld [vmem:[#allocation19 + $0x18] sm:$0xff] }
 0x59b   : > { %v5154_v9 = vmin.f32 %v11774_v46, 20.0  ;;  %v5567_v59 = vsel %vm5183_vm8, %v11718_v24, %v5319_v28  ;;  %v4918_v26 = vsel %vm11769_vm11, %v4915_v32, %v4912_v18  ;;  %v4924_v15 = vmul.f32 %v8261_v47, %v4923_v62 }
 0x59c   : > { %v4593_v22 = vmin.f32 %v11777_v38, 20.0  ;;  %5643 = vmatmul.f32.gmra.mxu0 %v5567_v59  ;;  %v5006_v12 = vsel %vm4622_vm10, %v11721_v13, %v4918_v26  ;;  %vm4926_vm15 = vcmp.lt.f32.partialorder %v4925_v2, 0.0004427343  ;;  %vm5186_vm4 = vcmp.gt.f32.partialorder %v11774_v46, 20.0  ;;  %6208 = vmatpush.msra.mxu1 %v6179_v5 }
 0x59d   : > { %v8267_v23 = vpop.eup %8266  ;;  %v5225_v30 = vmul.f32 1.442695, %v5154_v9  ;;  %5122 = vmatmul.f32.gmra.mxu3 %v5006_v12  ;;  %vm4625_vm6 = vcmp.gt.f32.partialorder %v11777_v38, 20.0 }
 0x59e   : > { %v8269_v49 = vpop.eup %8268  ;;  %v4684_v24 = vmul.f32 1.442695, %v4593_v22  ;;  %v5329_v50 = vadd.f32 1.0, %v8267_v23  ;;  %v5332_v13 = vmul.f32 -0.5, %v8267_v23  ;;  %v5335_v27 = vand.u32 2147483647, %v8267_v23 }
 0x59f   : > { %v8271_v20 = vpop.eup %8270  ;;  %8274 = vpow2.f32 %v5225_v30  ;;  %v4928_v58 = vadd.f32 1.0, %v8269_v49  ;;  %v4931_v29 = vmul.f32 -0.5, %v8269_v49  ;;  %v4934_v54 = vand.u32 2147483647, %v8269_v49 }
 0x5a0   : > { %v8273_v35 = vpop.eup %8272  ;;  %8276 = vpow2.f32 %v4684_v24  ;;  %v5075_v17 = vpop.f32.mrf.mxu3  ;;  %v5322_v19 = vmul.f32 0.6931472, %v8271_v20  ;;  %v5333_v51 = vadd.f32 1.0, %v5332_v13  ;;  %vm11814_vm1 = vcmp.lt.f32.partialorder %v5335_v27, 0.0004427343 }
 0x5a1   : > { %v11798_v8 = vadd.f32 %v11648_v34, %v5075_v17  ;;  %v4554_v53 = vpop.f32.mrf.mxu2  ;;  %v4921_v39 = vmul.f32 0.6931472, %v8273_v35  ;;  %8278 = vlog2.f32 %v5329_v50  ;;  %v4932_v36 = vadd.f32 1.0, %v4931_v29 }
 0x5a2   : > { %v11801_v11 = vadd.f32 %v11602_v4, %v4554_v53  ;;  %v5328_v37 = vsel %vm11792_vm13, %v5325_v44, %v5322_v19  ;;  %8280 = vlog2.f32 %v4928_v58  ;;  %v5334_v33 = vmul.f32 %v8267_v23, %v5333_v51  ;;  %v6770_v58 = vld [vmem:[#allocation20 + $0x68] sm:$0xff] }
 0x5a3   : > { %v5155_v56 = vmin.f32 %v11798_v8, 20.0  ;;  %v5568_v16 = vsel %vm5184_vm12, %v11738_v0, %v5328_v37  ;;  %v4927_v42 = vsel %vm4926_vm15, %v4924_v15, %v4921_v39  ;;  %v4933_v57 = vmul.f32 %v8269_v49, %v4932_v36  ;;  %6779 = vmatpush.msra.mxu2 %v6770_v58  ;;  %v8664_v37 = vld [vmem:[%s12757_s14] ss:$0 sm:$0xff] }
 0x5a4   : > { %v4594_v10 = vmin.f32 %v11801_v11, 20.0  ;;  %5646 = vmatmul.f32.gmra.mxu0 %v5568_v16  ;;  %v5007_v43 = vsel %vm4623_vm14, %v11741_v21, %v4927_v42  ;;  %vm4935_vm3 = vcmp.lt.f32.partialorder %v4934_v54, 0.0004427343  ;;  %vm5187_vm8 = vcmp.gt.f32.partialorder %v11798_v8, 20.0  ;;  %v6769_v58 = vld [vmem:[#allocation20 + $0x60] sm:$0xff] }
 0x5a5   : > { %v8275_v47 = vpop.eup %8274  ;;  %v5227_v55 = vmul.f32 1.442695, %v5155_v56  ;;  %5125 = vmatmul.f32.gmra.mxu3 %v5007_v43  ;;  %vm4626_vm10 = vcmp.gt.f32.partialorder %v11801_v11, 20.0  ;;  %6780 = vmatpush.msra.mxu2 %v6769_v58 }
 0x5a6   : > { %v8277_v7 = vpop.eup %8276  ;;  %v4686_v48 = vmul.f32 1.442695, %v4594_v10  ;;  %v5338_v52 = vadd.f32 1.0, %v8275_v47  ;;  %v5341_v21 = vmul.f32 -0.5, %v8275_v47  ;;  %v5344_v59 = vand.u32 2147483647, %v8275_v47 }
 0x5a7   : > { %v8279_v1 = vpop.eup %8278  ;;  %8282 = vpow2.f32 %v5227_v55  ;;  %v4937_v31 = vadd.f32 1.0, %v8277_v7  ;;  %v4940_v45 = vmul.f32 -0.5, %v8277_v7  ;;  %v4943_v49 = vand.u32 2147483647, %v8277_v7 }
 0x5a8   : > { %v8281_v3 = vpop.eup %8280  ;;  %8284 = vpow2.f32 %v4686_v48  ;;  %v5078_v60 = vpop.f32.mrf.mxu3  ;;  %v5331_v14 = vmul.f32 0.6931472, %v8279_v1  ;;  %v5342_v12 = vadd.f32 1.0, %v5341_v21  ;;  %vm11836_vm5 = vcmp.lt.f32.partialorder %v5344_v59, 0.0004427343 }
 0x5a9   : > { %v11820_v18 = vadd.f32 %v11648_v34, %v5078_v60  ;;  %v4557_v32 = vpop.f32.mrf.mxu2  ;;  %v4930_v28 = vmul.f32 0.6931472, %v8281_v3  ;;  %8286 = vlog2.f32 %v5338_v52  ;;  %v4941_v23 = vadd.f32 1.0, %v4940_v45 }
 0x5aa   : > { %v11823_v6 = vadd.f32 %v11602_v4, %v4557_v32  ;;  %v5337_v9 = vsel %vm11814_vm1, %v5334_v33, %v5331_v14  ;;  %8288 = vlog2.f32 %v4937_v31  ;;  %v5343_v44 = vmul.f32 %v8275_v47, %v5342_v12 }
 0x5ab   : > { %v5156_v26 = vmin.f32 %v11820_v18, 20.0  ;;  %v5569_v41 = vsel %vm5185_vm0, %v11753_v63, %v5337_v9  ;;  %v4936_v22 = vsel %vm4935_vm3, %v4933_v57, %v4930_v28  ;;  %v4942_v15 = vmul.f32 %v8277_v7, %v4941_v23 }
 0x5ac   : > { %v4595_v62 = vmin.f32 %v11823_v6, 20.0  ;;  %5649 = vmatmul.f32.gmra.mxu0 %v5569_v41  ;;  %v5008_v4 = vsel %vm4624_vm2, %v11756_v40, %v4936_v22  ;;  %vm4944_vm7 = vcmp.lt.f32.partialorder %v4943_v49, 0.0004427343  ;;  %vm5188_vm12 = vcmp.gt.f32.partialorder %v11820_v18, 20.0 }
 0x5ad   : > { %v8283_v30 = vpop.eup %8282  ;;  %v5229_v2 = vmul.f32 1.442695, %v5156_v26  ;;  %5128 = vmatmul.f32.gmra.mxu3 %v5008_v4  ;;  %vm4627_vm14 = vcmp.gt.f32.partialorder %v11823_v6, 20.0 }
 0x5ae   : > { %v8285_v24 = vpop.eup %8284  ;;  %v4688_v61 = vmul.f32 1.442695, %v4595_v62  ;;  %v5347_v50 = vadd.f32 1.0, %v8283_v30  ;;  %v5350_v40 = vmul.f32 -0.5, %v8283_v30  ;;  %v5353_v16 = vand.u32 2147483647, %v8283_v30 }
 0x5af   : > { %v8287_v20 = vpop.eup %8286  ;;  %8290 = vpow2.f32 %v5229_v2  ;;  %v4946_v13 = vadd.f32 1.0, %v8285_v24  ;;  %v4949_v29 = vmul.f32 -0.5, %v8285_v24  ;;  %v4952_v48 = vand.u32 2147483647, %v8285_v24 }
 0x5b0   : > { %v8289_v35 = vpop.eup %8288  ;;  %8292 = vpow2.f32 %v4688_v61  ;;  %v5081_v17 = vpop.f32.mrf.mxu3  ;;  %v5340_v19 = vmul.f32 0.6931472, %v8287_v20  ;;  %v5351_v43 = vadd.f32 1.0, %v5350_v40  ;;  %vm11860_vm9 = vcmp.lt.f32.partialorder %v5353_v16, 0.0004427343 }
 0x5b1   : > { %v11842_v25 = vadd.f32 %v11648_v34, %v5081_v17  ;;  %v4560_v53 = vpop.f32.mrf.mxu2  ;;  %v4939_v39 = vmul.f32 0.6931472, %v8289_v35  ;;  %8294 = vlog2.f32 %v5347_v50  ;;  %v4950_v55 = vadd.f32 1.0, %v4949_v29 }
 0x5b2   : > { %v11847_v27 = vadd.f32 %v8664_v37, %v4560_v53  ;;  %v5346_v56 = vsel %vm11836_vm5, %v5343_v44, %v5340_v19  ;;  %8296 = vlog2.f32 %v4946_v13  ;;  %v5352_v21 = vmul.f32 %v8283_v30, %v5351_v43 }
 0x5b3   : > { %v5157_v42 = vmin.f32 %v11842_v25, 20.0  ;;  %v5570_v51 = vsel %vm5186_vm4, %v11774_v46, %v5346_v56  ;;  %v4945_v10 = vsel %vm4944_vm7, %v4942_v15, %v4939_v39  ;;  %v4951_v57 = vmul.f32 %v8285_v24, %v4950_v55  ;;  %v6178_v46 = vld [vmem:[#allocation19 + $0x10] sm:$0xff] }
 0x5b4   : > { %v4596_v36 = vmin.f32 %v11847_v27, 20.0  ;;  %5652 = vmatmul.f32.gmra.mxu0 %v5570_v51  ;;  %v5009_v47 = vsel %vm4625_vm6, %v11777_v38, %v4945_v10  ;;  %vm4953_vm11 = vcmp.lt.f32.partialorder %v4952_v48, 0.0004427343  ;;  %6209 = vmatpush.msra.mxu1 %v6178_v46  ;;  %vm5189_vm1 = vcmp.gt.f32.partialorder %v11842_v25, 20.0 }
 0x5b5   : > { %v8291_v54 = vpop.eup %8290  ;;  %v5231_v7 = vmul.f32 1.442695, %v5157_v42  ;;  %5131 = vmatmul.f32.gmra.mxu3 %v5009_v47  ;;  %vm4628_vm2 = vcmp.gt.f32.partialorder %v11847_v27, 20.0 }
 0x5b6   : > { %v8293_v0 = vpop.eup %8292  ;;  %v4690_v52 = vmul.f32 1.442695, %v4596_v36  ;;  %v5356_v1 = vadd.f32 1.0, %v8291_v54  ;;  %v5359_v38 = vmul.f32 -0.5, %v8291_v54  ;;  %v5362_v41 = vand.u32 2147483647, %v8291_v54 }
 0x5b7   : > { %v8295_v33 = vpop.eup %8294  ;;  %8298 = vpow2.f32 %v5231_v7  ;;  %v4955_v31 = vadd.f32 1.0, %v8293_v0  ;;  %v4958_v45 = vmul.f32 -0.5, %v8293_v0  ;;  %v4961_v50 = vand.u32 2147483647, %v8293_v0 }
 0x5b8   : > { %v8297_v3 = vpop.eup %8296  ;;  %8300 = vpow2.f32 %v4690_v52  ;;  %v5084_v60 = vpop.f32.mrf.mxu3  ;;  %v5349_v14 = vmul.f32 0.6931472, %v8295_v33  ;;  %v5360_v4 = vadd.f32 1.0, %v5359_v38  ;;  %vm11881_vm13 = vcmp.lt.f32.partialorder %v5362_v41, 0.0004427343 }
 0x5b9   : > { %v11866_v32 = vadd.f32 %v11648_v34, %v5084_v60  ;;  %v4563_v28 = vpop.f32.mrf.mxu2  ;;  %v4948_v9 = vmul.f32 0.6931472, %v8297_v3  ;;  %8302 = vlog2.f32 %v5356_v1  ;;  %v4959_v2 = vadd.f32 1.0, %v4958_v45 }
 0x5ba   : > { %v11868_v59 = vadd.f32 %v8664_v37, %v4563_v28  ;;  %v5355_v26 = vsel %vm11860_vm9, %v5352_v21, %v5349_v14  ;;  %8304 = vlog2.f32 %v4955_v31  ;;  %v5361_v44 = vmul.f32 %v8291_v54, %v5360_v4  ;;  %v11903_v31 = vld [vmem:[%s12976_s7] ss:$0 sm:$0xff] }
 0x5bb   : > { %v5158_v22 = vmin.f32 %v11866_v32, 20.0  ;;  %v5571_v12 = vsel %vm5187_vm8, %v11798_v8, %v5355_v26  ;;  %v4954_v62 = vsel %vm4953_vm11, %v4951_v57, %v4948_v9  ;;  %v4960_v19 = vmul.f32 %v8293_v0, %v4959_v2 }
 0x5bc   : > { %v4597_v23 = vmin.f32 %v11868_v59, 20.0  ;;  %5655 = vmatmul.f32.gmra.mxu0 %v5571_v12  ;;  %v5010_v30 = vsel %vm4626_vm10, %v11801_v11, %v4954_v62  ;;  %vm4962_vm15 = vcmp.lt.f32.partialorder %v4961_v50, 0.0004427343  ;;  %vm5190_vm5 = vcmp.gt.f32.partialorder %v11866_v32, 20.0 }
 0x5bd   : > { %v8299_v49 = vpop.eup %8298  ;;  %v5233_v24 = vmul.f32 1.442695, %v5158_v22  ;;  %5134 = vmatmul.f32.gmra.mxu3 %v5010_v30  ;;  %vm4629_vm7 = vcmp.gt.f32.partialorder %v11868_v59, 20.0 }
 0x5be   : > { %v8301_v61 = vpop.eup %8300  ;;  %v4692_v63 = vmul.f32 1.442695, %v4597_v23  ;;  %v5365_v20 = vadd.f32 1.0, %v8299_v49  ;;  %v5368_v15 = vmul.f32 -0.5, %v8299_v49  ;;  %v5371_v51 = vand.u32 2147483647, %v8299_v49 }
 0x5bf   : > { %v8303_v8 = vpop.eup %8302  ;;  %8306 = vpow2.f32 %v5233_v24  ;;  %v4964_v13 = vadd.f32 1.0, %v8301_v61  ;;  %v4967_v39 = vmul.f32 -0.5, %v8301_v61  ;;  %v4970_v54 = vand.u32 2147483647, %v8301_v61 }
 0x5c0   : > { %v8305_v11 = vpop.eup %8304  ;;  %8308 = vpow2.f32 %v4692_v63  ;;  %v5087_v35 = vpop.f32.mrf.mxu3  ;;  %v5358_v17 = vmul.f32 0.6931472, %v8303_v8  ;;  %v5369_v10 = vadd.f32 1.0, %v5368_v15  ;;  %vm11896_vm0 = vcmp.lt.f32.partialorder %v5371_v51, 0.0004427343  ;;  %v6768_v63 = vld [vmem:[#allocation20 + $0x58] sm:$0xff] }
 0x5c1   : > { %v11886_v29 = vadd.f32 %v11648_v34, %v5087_v35  ;;  %v4957_v53 = vmul.f32 0.6931472, %v8305_v11  ;;  %8310 = vlog2.f32 %v5365_v20  ;;  %v4968_v47 = vadd.f32 1.0, %v4967_v39  ;;  %6781 = vmatpush.msra.mxu2 %v6768_v63 }
 0x5c2   : > { %v5364_v37 = vsel %vm11881_vm13, %v5361_v44, %v5358_v17  ;;  %8312 = vlog2.f32 %v4964_v13  ;;  %v5370_v21 = vmul.f32 %v8299_v49, %v5369_v10  ;;  %vm4971_vm3 = vcmp.lt.f32.partialorder %v4970_v54, 0.0004427343 }
 0x5c3   : > { %v5159_v56 = vmin.f32 %v11886_v29, 20.0  ;;  %v5572_v16 = vsel %vm5188_vm12, %v11820_v18, %v5364_v37  ;;  %v4963_v42 = vsel %vm4962_vm15, %v4960_v19, %v4957_v53  ;;  %v4969_v60 = vmul.f32 %v8301_v61, %v4968_v47 }
 0x5c4   : > { %5658 = vmatmul.f32.gmra.mxu0 %v5572_v16  ;;  %v5011_v34 = vsel %vm4627_vm14, %v11823_v6, %v4963_v42  ;;  %vm5191_vm9 = vcmp.gt.f32.partialorder %v11886_v29, 20.0 }
 0x5c5   : > { %v8307_v43 = vpop.eup %8306  ;;  %v5235_v36 = vmul.f32 1.442695, %v5159_v56  ;;  %5137 = vmatmul.f32.gmra.mxu3 %v5011_v34 }
 0x5c6   : > { %v8309_v55 = vpop.eup %8308  ;;  %v5374_v7 = vadd.f32 1.0, %v8307_v43  ;;  %v5377_v18 = vmul.f32 -0.5, %v8307_v43  ;;  %v5380_v41 = vand.u32 2147483647, %v8307_v43 }
 0x5c7   : > { %v8311_v48 = vpop.eup %8310  ;;  %8314 = vpow2.f32 %v5235_v36  ;;  %v4973_v52 = vadd.f32 1.0, %v8309_v55  ;;  %v4976_v38 = vmul.f32 -0.5, %v8309_v55  ;;  %v4979_v4 = vand.u32 2147483647, %v8309_v55 }
 0x5c8   : > { %v8313_v1 = vpop.eup %8312  ;;  %v5090_v33 = vpop.f32.mrf.mxu3  ;;  %v5367_v6 = vmul.f32 0.6931472, %v8311_v48  ;;  %8316 = vlog2.f32 %v5374_v7  ;;  %v5378_v9 = vadd.f32 1.0, %v5377_v18  ;;  %vm5381_vm4 = vcmp.lt.f32.partialorder %v5380_v41, 0.0004427343  ;;  %v6767_v18 = vld [vmem:[#allocation20 + $0x50] sm:$0xff] }
 0x5c9   : > { %v11906_v5 = vadd.f32 %v11903_v31, %v5090_v33  ;;  %v4966_v3 = vmul.f32 0.6931472, %v8313_v1  ;;  %8318 = vlog2.f32 %v4973_v52  ;;  %v4977_v22 = vadd.f32 1.0, %v4976_v38  ;;  %6782 = vmatpush.msra.mxu2 %v6767_v18 }
 0x5ca   : > { %v5373_v14 = vsel %vm11896_vm0, %v5370_v21, %v5367_v6  ;;  %v5379_v24 = vmul.f32 %v8307_v43, %v5378_v9  ;;  %vm4980_vm6 = vcmp.lt.f32.partialorder %v4979_v4, 0.0004427343  ;;  %v6176_v9 = vld [vmem:[#allocation19] sm:$0xff] }
 0x5cb   : > { %v5160_v57 = vmin.f32 %v11906_v5, 20.0  ;;  %v5573_v45 = vsel %vm5189_vm1, %v11842_v25, %v5373_v14  ;;  %v4972_v28 = vsel %vm4971_vm3, %v4969_v60, %v4966_v3  ;;  %v4978_v20 = vmul.f32 %v8309_v55, %v4977_v22  ;;  %v11944_v4 = vld [vmem:[%s12999_s0] ss:$0 sm:$0xff] }
 0x5cc   : > { %5661 = vmatmul.f32.gmra.mxu0 %v5573_v45  ;;  %v5012_v26 = vsel %vm4628_vm2, %v11847_v27, %v4972_v28  ;;  %vm5192_vm11 = vcmp.gt.f32.partialorder %v11906_v5, 20.0 }
 0x5cd   : > { %v8315_v12 = vpop.eup %8314  ;;  %v5237_v62 = vmul.f32 1.442695, %v5160_v57  ;;  %5140 = vmatmul.f32.gmra.mxu3 %v5012_v26 }
 0x5ce   : > { %v8317_v23 = vpop.eup %8316  ;;  %v5383_v30 = vadd.f32 1.0, %v8315_v12  ;;  %v5386_v61 = vmul.f32 -0.5, %v8315_v12  ;;  %v5389_v35 = vand.u32 2147483647, %v8315_v12 }
 0x5cf   : > { %v8319_v2 = vpop.eup %8318  ;;  %8320 = vpow2.f32 %v5237_v62  ;;  %v5376_v49 = vmul.f32 0.6931472, %v8317_v23 }
 0x5d0   : > { %v5093_v25 = vpop.f32.mrf.mxu3  ;;  %v4975_v50 = vmul.f32 0.6931472, %v8319_v2  ;;  %8322 = vlog2.f32 %v5383_v30  ;;  %v5387_v11 = vadd.f32 1.0, %v5386_v61  ;;  %vm5390_vm8 = vcmp.lt.f32.partialorder %v5389_v35, 0.0004427343 }
 0x5d1   : > { %v11916_v27 = vadd.f32 %v11903_v31, %v5093_v25  ;;  %v5382_v8 = vsel %vm5381_vm4, %v5379_v24, %v5376_v49 }
 0x5d2   : > { %v5574_v44 = vsel %vm5190_vm5, %v11866_v32, %v5382_v8  ;;  %v4981_v40 = vsel %vm4980_vm6, %v4978_v20, %v4975_v50  ;;  %v5388_v37 = vmul.f32 %v8315_v12, %v5387_v11  ;;  %v6177_v32 = vld [vmem:[#allocation19 + $0x8] sm:$0xff] }
 0x5d3   : > { %v5161_v13 = vmin.f32 %v11916_v27, 20.0  ;;  %v5013_v58 = vsel %vm4629_vm7, %v11868_v59, %v4981_v40  ;;  %6210 = vmatpush.msra.mxu1 %v6177_v32  ;;  %vm5193_vm13 = vcmp.gt.f32.partialorder %v11916_v27, 20.0 }
 0x5d4   : > { %5664 = vmatmul.f32.gmra.mxu0 %v5574_v44 }
 0x5d5   : > { %v8321_v17 = vpop.eup %8320  ;;  %v5239_v19 = vmul.f32 1.442695, %v5161_v13  ;;  %5143 = vmatmul.f32.gmra.mxu3 %v5013_v58  ;;  %6211 = vmatpush.msra.mxu1 %v6176_v9 }
 0x5d6   : > { %v8323_v15 = vpop.eup %8322  ;;  %v5392_v53 = vadd.f32 1.0, %v8321_v17  ;;  %v5395_v56 = vmul.f32 -0.5, %v8321_v17  ;;  %v5398_v43 = vand.u32 2147483647, %v8321_v17 }
 0x5d7   : > { %8324 = vpow2.f32 %v5239_v19  ;;  %v5385_v39 = vmul.f32 0.6931472, %v8323_v15 }
 0x5d8   : > { %v5096_v16 = vpop.f32.mrf.mxu3  ;;  %8326 = vlog2.f32 %v5392_v53  ;;  %v5396_v10 = vadd.f32 1.0, %v5395_v56  ;;  %vm5399_vm10 = vcmp.lt.f32.partialorder %v5398_v43, 0.0004427343 }
 0x5d9   : > { %v11924_v42 = vadd.f32 %v11903_v31, %v5096_v16  ;;  %v5391_v59 = vsel %vm5390_vm8, %v5388_v37, %v5385_v39 }
 0x5da   : > { %v5575_v51 = vsel %vm5191_vm9, %v11886_v29, %v5391_v59  ;;  %v5397_v48 = vmul.f32 %v8321_v17, %v5396_v10 }
 0x5db   : > { %v5162_v34 = vmin.f32 %v11924_v42, 20.0  ;;  %vm5194_vm15 = vcmp.gt.f32.partialorder %v11924_v42, 20.0 }
 0x5dc   : > { %5667 = vmatmul.f32.gmra.mxu0 %v5575_v51 }
 0x5dd   : > { %v8325_v36 = vpop.eup %8324  ;;  %v5241_v47 = vmul.f32 1.442695, %v5162_v34 }
 0x5de   : > { %v8327_v55 = vpop.eup %8326  ;;  %v5401_v54 = vadd.f32 1.0, %v8325_v36  ;;  %v5404_v0 = vmul.f32 -0.5, %v8325_v36  ;;  %v5407_v21 = vand.u32 2147483647, %v8325_v36 }
 0x5df   : > { %8328 = vpow2.f32 %v5241_v47  ;;  %v5394_v7 = vmul.f32 0.6931472, %v8327_v55 }
 0x5e0   : > { %v5099_v52 = vpop.f32.mrf.mxu3  ;;  %8330 = vlog2.f32 %v5401_v54  ;;  %v5405_v6 = vadd.f32 1.0, %v5404_v0  ;;  %vm5408_vm12 = vcmp.lt.f32.partialorder %v5407_v21, 0.0004427343 }
 0x5e1   : > { %v11930_v29 = vadd.f32 %v11903_v31, %v5099_v52  ;;  %v5400_v46 = vsel %vm5399_vm10, %v5397_v48, %v5394_v7 }
 0x5e2   : > { %v5576_v1 = vsel %vm5192_vm11, %v11906_v5, %v5400_v46  ;;  %v5406_v28 = vmul.f32 %v8325_v36, %v5405_v6 }
 0x5e3   : > { %v5163_v33 = vmin.f32 %v11930_v29, 20.0  ;;  %vm5195_vm1 = vcmp.gt.f32.partialorder %v11930_v29, 20.0 }
 0x5e4   : > { %5670 = vmatmul.f32.gmra.mxu0 %v5576_v1 }
 0x5e5   : > { %v8329_v38 = vpop.eup %8328  ;;  %v5243_v3 = vmul.f32 1.442695, %v5163_v33 }
 0x5e6   : > { %v8331_v60 = vpop.eup %8330  ;;  %v5410_v14 = vadd.f32 1.0, %v8329_v38  ;;  %v5413_v57 = vmul.f32 -0.5, %v8329_v38  ;;  %v5416_v23 = vand.u32 2147483647, %v8329_v38 }
 0x5e7   : > { %8332 = vpow2.f32 %v5243_v3  ;;  %v5403_v45 = vmul.f32 0.6931472, %v8331_v60  ;;  %v6765_v3 = vld [vmem:[#allocation20 + $0x40] sm:$0xff] }
 0x5e8   : > { %v5102_v26 = vpop.f32.mrf.mxu3  ;;  %8334 = vlog2.f32 %v5410_v14  ;;  %v5414_v12 = vadd.f32 1.0, %v5413_v57  ;;  %vm5417_vm14 = vcmp.lt.f32.partialorder %v5416_v23, 0.0004427343 }
 0x5e9   : > { %v11936_v5 = vadd.f32 %v11903_v31, %v5102_v26  ;;  %v5409_v41 = vsel %vm5408_vm12, %v5406_v28, %v5403_v45 }
 0x5ea   : > { %v5577_v22 = vsel %vm5193_vm13, %v11916_v27, %v5409_v41  ;;  %v5415_v24 = vmul.f32 %v8329_v38, %v5414_v12  ;;  %v6766_v27 = vld [vmem:[#allocation20 + $0x48] sm:$0xff] }
 0x5eb   : > { %v5164_v62 = vmin.f32 %v11936_v5, 20.0  ;;  %6783 = vmatpush.msra.mxu2 %v6766_v27  ;;  %vm5196_vm3 = vcmp.gt.f32.partialorder %v11936_v5, 20.0 }
 0x5ec   : > { %5673 = vmatmul.f32.gmra.mxu0 %v5577_v22 }
 0x5ed   : > { %v8333_v30 = vpop.eup %8332  ;;  %v5245_v2 = vmul.f32 1.442695, %v5164_v62  ;;  %6784 = vmatpush.msra.mxu2 %v6765_v3 }
 0x5ee   : > { %v8335_v49 = vpop.eup %8334  ;;  %v5632_v61 = vpop.f32.mrf.mxu0  ;;  %v5419_v63 = vadd.f32 1.0, %v8333_v30  ;;  %v5422_v20 = vmul.f32 -0.5, %v8333_v30  ;;  %v5425_v19 = vand.u32 2147483647, %v8333_v30 }
 0x5ef   : > { %8336 = vpow2.f32 %v5245_v2  ;;  %v5412_v25 = vmul.f32 0.6931472, %v8335_v49  ;;  %v11947_v50 = vadd.f32 %v11944_v4, %v5632_v61 }
 0x5f0   : > { %v5105_v8 = vpop.f32.mrf.mxu3  ;;  %8338 = vlog2.f32 %v5419_v63  ;;  %v5423_v17 = vadd.f32 1.0, %v5422_v20  ;;  %vm5426_vm0 = vcmp.lt.f32.partialorder %v5425_v19, 0.0004427343 }
 0x5f1   : > { %v11950_v44 = vadd.f32 %v11903_v31, %v5105_v8  ;;  %v5418_v40 = vsel %vm5417_vm14, %v5415_v24, %v5412_v25  ;;  %v5728_v13 = vmin.f32 %v11947_v50, 20.0  ;;  %vm5760_vm4 = vcmp.gt.f32.partialorder %v11947_v50, 20.0 }
 0x5f2   : > { %v5578_v58 = vsel %vm5194_vm15, %v11924_v42, %v5418_v40  ;;  %v5424_v32 = vmul.f32 %v8333_v30, %v5423_v17 }
 0x5f3   : > { %v5165_v11 = vmin.f32 %v11950_v44, 20.0  ;;  %v5792_v35 = vmul.f32 1.442695, %v5728_v13  ;;  %vm5197_vm5 = vcmp.gt.f32.partialorder %v11950_v44, 20.0 }
 0x5f4   : > { %5676 = vmatmul.f32.gmra.mxu0 %v5578_v58 }
 0x5f5   : > { %v8337_v15 = vpop.eup %8336  ;;  %v5247_v53 = vmul.f32 1.442695, %v5165_v11  ;;  %8340 = vpow2.f32 %v5792_v35 }
 0x5f6   : > { %v8339_v39 = vpop.eup %8338  ;;  %v5428_v37 = vadd.f32 1.0, %v8337_v15  ;;  %v5431_v16 = vmul.f32 -0.5, %v8337_v15  ;;  %v5434_v54 = vand.u32 2147483647, %v8337_v15 }
 0x5f7   : > { %8342 = vpow2.f32 %v5247_v53  ;;  %v5421_v56 = vmul.f32 0.6931472, %v8339_v39 }
 0x5f8   : > { %v5108_v59 = vpop.f32.mrf.mxu3  ;;  %8344 = vlog2.f32 %v5428_v37  ;;  %v5432_v47 = vadd.f32 1.0, %v5431_v16  ;;  %vm5435_vm2 = vcmp.lt.f32.partialorder %v5434_v54, 0.0004427343 }
 0x5f9   : > { %v11957_v42 = vadd.f32 %v11903_v31, %v5108_v59  ;;  %v5427_v51 = vsel %vm5426_vm0, %v5424_v32, %v5421_v56 }
 0x5fa   : > { %v5579_v34 = vsel %vm5195_vm1, %v11930_v29, %v5427_v51  ;;  %v5433_v1 = vmul.f32 %v8337_v15, %v5432_v47 }
 0x5fb   : > { %v11961_v10 = vpop.eup %8340  ;;  %v5166_v43 = vmin.f32 %v11957_v42, 20.0  ;;  %v5635_v36 = vpop.f32.mrf.mxu0  ;;  %vm5198_vm8 = vcmp.gt.f32.partialorder %v11957_v42, 20.0 }
 0x5fc   : > { %5679 = vmatmul.f32.gmra.mxu0 %v5579_v34  ;;  %v11965_v55 = vadd.f32 %v11944_v4, %v5635_v36  ;;  %v5856_v0 = vadd.f32 1.0, %v11961_v10  ;;  %v5859_v38 = vmul.f32 -0.5, %v11961_v10  ;;  %v5862_v2 = vand.u32 2147483647, %v11961_v10 }
 0x5fd   : > { %v8343_v7 = vpop.eup %8342  ;;  %v5249_v48 = vmul.f32 1.442695, %v5166_v43 }
 0x5fe   : > { %v8345_v18 = vpop.eup %8344  ;;  %v5729_v52 = vmin.f32 %v11965_v55, 20.0  ;;  %v5437_v46 = vadd.f32 1.0, %v8343_v7  ;;  %v5440_v33 = vmul.f32 -0.5, %v8343_v7  ;;  %v5443_v41 = vand.u32 2147483647, %v8343_v7 }
 0x5ff   : > { %8346 = vpow2.f32 %v5249_v48  ;;  %v5430_v29 = vmul.f32 0.6931472, %v8345_v18  ;;  %v5860_v22 = vadd.f32 1.0, %v5859_v38  ;;  %vm5863_vm7 = vcmp.lt.f32.partialorder %v5862_v2, 0.0004427343  ;;  %v6764_v18 = vld [vmem:[#allocation20 + $0x38] sm:$0xff] }
 0x600   : > { %v5111_v6 = vpop.f32.mrf.mxu3  ;;  %v5794_v21 = vmul.f32 1.442695, %v5729_v52  ;;  %8348 = vlog2.f32 %v5437_v46  ;;  %v5441_v9 = vadd.f32 1.0, %v5440_v33  ;;  %vm5444_vm6 = vcmp.lt.f32.partialorder %v5443_v41, 0.0004427343  ;;  %6785 = vmatpush.msra.mxu2 %v6764_v18 }
 0x601   : > { %v11971_v60 = vadd.f32 %v11903_v31, %v5111_v6  ;;  %v5436_v14 = vsel %vm5435_vm2, %v5433_v1, %v5430_v29  ;;  %8350 = vlog2.f32 %v5856_v0  ;;  %v5861_v8 = vmul.f32 %v11961_v10, %v5860_v22 }
 0x602   : > { %8352 = vpow2.f32 %v5794_v21  ;;  %v5580_v57 = vsel %vm5196_vm3, %v11936_v5, %v5436_v14  ;;  %v5442_v61 = vmul.f32 %v8343_v7, %v5441_v9  ;;  %vm5761_vm11 = vcmp.gt.f32.partialorder %v11965_v55, 20.0 }
 0x603   : > { %v5167_v45 = vmin.f32 %v11971_v60, 20.0  ;;  %v5638_v28 = vpop.f32.mrf.mxu0  ;;  %vm5199_vm12 = vcmp.gt.f32.partialorder %v11971_v60, 20.0 }
 0x604   : > { %5682 = vmatmul.f32.gmra.mxu0 %v5580_v57  ;;  %v11977_v26 = vadd.f32 %v11944_v4, %v5638_v28 }
 0x605   : > { %v8347_v12 = vpop.eup %8346  ;;  %v5251_v62 = vmul.f32 1.442695, %v5167_v45 }
 0x606   : > { %v8349_v23 = vpop.eup %8348  ;;  %v5730_v30 = vmin.f32 %v11977_v26, 20.0  ;;  %v5446_v5 = vadd.f32 1.0, %v8347_v12  ;;  %v5449_v63 = vmul.f32 -0.5, %v8347_v12  ;;  %v5452_v56 = vand.u32 2147483647, %v8347_v12 }
 0x607   : > { %v8351_v49 = vpop.eup %8350  ;;  %8354 = vpow2.f32 %v5251_v62  ;;  %v5439_v24 = vmul.f32 0.6931472, %v8349_v23  ;;  %vm5762_vm15 = vcmp.gt.f32.partialorder %v11977_v26, 20.0 }
 0x608   : > { %v8353_v25 = vpop.eup %8352  ;;  %v5114_v20 = vpop.f32.mrf.mxu3  ;;  %v5796_v27 = vmul.f32 1.442695, %v5730_v30  ;;  %8356 = vlog2.f32 %v5446_v5  ;;  %v5858_v58 = vmul.f32 0.6931472, %v8351_v49  ;;  %v5450_v53 = vadd.f32 1.0, %v5449_v63 }
 0x609   : > { %v11985_v40 = vadd.f32 %v11903_v31, %v5114_v20  ;;  %v5445_v13 = vsel %vm5444_vm6, %v5442_v61, %v5439_v24  ;;  %v5865_v11 = vadd.f32 1.0, %v8353_v25  ;;  %v5868_v17 = vmul.f32 -0.5, %v8353_v25 }
 0x60a   : > { %8358 = vpow2.f32 %v5796_v27  ;;  %v5581_v35 = vsel %vm5197_vm5, %v11950_v44, %v5445_v13  ;;  %v5864_v39 = vsel %vm5863_vm7, %v5861_v8, %v5858_v58  ;;  %v5451_v47 = vmul.f32 %v8347_v12, %v5450_v53 }
 0x60b   : > { %v5168_v19 = vmin.f32 %v11985_v40, 20.0  ;;  %v5641_v15 = vpop.f32.mrf.mxu0  ;;  %8360 = vlog2.f32 %v5865_v11  ;;  %v6144_v32 = vsel %vm5760_vm4, %v11947_v50, %v5864_v39  ;;  %v5869_v16 = vadd.f32 1.0, %v5868_v17 }
 0x60c   : > { %5685 = vmatmul.f32.gmra.mxu0 %v5581_v35  ;;  %v11992_v37 = vadd.f32 %v11944_v4, %v5641_v15  ;;  %6212 = vmatmul.f32.vlgmr.msra.gmra.mxu1 %v6144_v32  ;;  %v5871_v54 = vand.u32 2147483647, %v8353_v25  ;;  %vm5453_vm9 = vcmp.lt.f32.partialorder %v5452_v56, 0.0004427343  ;;  %vm5200_vm1 = vcmp.gt.f32.partialorder %v11985_v40, 20.0 }
 0x60d   : > { %v8355_v59 = vpop.eup %8354  ;;  %v5253_v44 = vmul.f32 1.442695, %v5168_v19  ;;  %v5870_v50 = vmul.f32 %v8353_v25, %v5869_v16 }
 0x60e   : > { %v8357_v51 = vpop.eup %8356  ;;  %v5731_v34 = vmin.f32 %v11992_v37, 20.0  ;;  %v5455_v10 = vadd.f32 1.0, %v8355_v59  ;;  %v5458_v43 = vmul.f32 -0.5, %v8355_v59  ;;  %vm5872_vm10 = vcmp.lt.f32.partialorder %v5871_v54, 0.0004427343 }
 0x60f   : > { %8362 = vpow2.f32 %v5253_v44  ;;  %v5448_v36 = vmul.f32 0.6931472, %v8357_v51  ;;  %v5461_v14 = vand.u32 2147483647, %v8355_v59  ;;  %vm5763_vm3 = vcmp.gt.f32.partialorder %v11992_v37, 20.0 }
 0x610   : > { %v8359_v7 = vpop.eup %8358  ;;  %v5117_v48 = vpop.f32.mrf.mxu3  ;;  %v5798_v0 = vmul.f32 1.442695, %v5731_v34  ;;  %8364 = vlog2.f32 %v5455_v10  ;;  %v5459_v21 = vadd.f32 1.0, %v5458_v43  ;;  %v6763_v43 = vld [vmem:[#allocation20 + $0x30] sm:$0xff] }
 0x611   : > { %v8361_v52 = vpop.eup %8360  ;;  %v12000_v46 = vadd.f32 %v11903_v31, %v5117_v48  ;;  %v5454_v29 = vsel %vm5453_vm9, %v5451_v47, %v5448_v36  ;;  %v5874_v1 = vadd.f32 1.0, %v8359_v7  ;;  %v5877_v33 = vmul.f32 -0.5, %v8359_v7  ;;  %6786 = vmatpush.msra.mxu2 %v6763_v43 }
 0x612   : > { %8366 = vpow2.f32 %v5798_v0  ;;  %v5582_v6 = vsel %vm5198_vm8, %v11957_v42, %v5454_v29  ;;  %v5867_v38 = vmul.f32 0.6931472, %v8361_v52  ;;  %v5460_v12 = vmul.f32 %v8355_v59, %v5459_v21 }
 0x613   : > { %v5169_v3 = vmin.f32 %v12000_v46, 20.0  ;;  %8368 = vlog2.f32 %v5874_v1  ;;  %v5878_v41 = vadd.f32 1.0, %v5877_v33  ;;  %v5880_v30 = vand.u32 2147483647, %v8359_v7 }
 0x614   : > { %5688 = vmatmul.f32.gmra.mxu0 %v5582_v6  ;;  %v5873_v57 = vsel %vm5872_vm10, %v5870_v50, %v5867_v38  ;;  %vm5462_vm13 = vcmp.lt.f32.partialorder %v5461_v14, 0.0004427343  ;;  %vm5201_vm4 = vcmp.gt.f32.partialorder %v12000_v46, 20.0 }
 0x615   : > { %v8363_v45 = vpop.eup %8362  ;;  %v5255_v28 = vmul.f32 1.442695, %v5169_v3  ;;  %v6145_v9 = vsel %vm5761_vm11, %v11965_v55, %v5873_v57  ;;  %v5879_v63 = vmul.f32 %v8359_v7, %v5878_v41  ;;  %vm5881_vm14 = vcmp.lt.f32.partialorder %v5880_v30, 0.0004427343 }
 0x616   : > { %v8365_v22 = vpop.eup %8364  ;;  %6215 = vmatmul.f32.gmra.mxu1 %v6145_v9  ;;  %v5464_v42 = vadd.f32 1.0, %v8363_v45  ;;  %v5467_v23 = vmul.f32 -0.5, %v8363_v45  ;;  %v5470_v17 = vand.u32 2147483647, %v8363_v45 }
 0x617   : > { %8370 = vpow2.f32 %v5255_v28  ;;  %v5457_v62 = vmul.f32 0.6931472, %v8365_v22 }
 0x618   : > { %v8367_v5 = vpop.eup %8366  ;;  %v5120_v2 = vpop.f32.mrf.mxu3  ;;  %8372 = vlog2.f32 %v5464_v42  ;;  %v5468_v11 = vadd.f32 1.0, %v5467_v23  ;;  %vm5471_vm0 = vcmp.lt.f32.partialorder %v5470_v17, 0.0004427343 }
 0x619   : > { %v8369_v49 = vpop.eup %8368  ;;  %v12010_v24 = vadd.f32 %v11903_v31, %v5120_v2  ;;  %v5644_v55 = vpop.f32.mrf.mxu0  ;;  %v5463_v61 = vsel %vm5462_vm13, %v5460_v12, %v5457_v62  ;;  %v5883_v25 = vadd.f32 1.0, %v8367_v5  ;;  %v5886_v13 = vmul.f32 -0.5, %v8367_v5 }
 0x61a   : > { %v12013_v20 = vadd.f32 %v11944_v4, %v5644_v55  ;;  %v5583_v27 = vsel %vm5199_vm12, %v11971_v60, %v5463_v61  ;;  %v5876_v8 = vmul.f32 0.6931472, %v8369_v49  ;;  %v5469_v44 = vmul.f32 %v8363_v45, %v5468_v11 }
 0x61b   : > { %v5170_v58 = vmin.f32 %v12010_v24, 20.0  ;;  %8374 = vlog2.f32 %v5883_v25  ;;  %v5887_v16 = vadd.f32 1.0, %v5886_v13  ;;  %v5889_v51 = vand.u32 2147483647, %v8367_v5 }
 0x61c   : > { %v5732_v35 = vmin.f32 %v12013_v20, 20.0  ;;  %5691 = vmatmul.f32.gmra.mxu0 %v5583_v27  ;;  %v5882_v19 = vsel %vm5881_vm14, %v5879_v63, %v5876_v8  ;;  %vm5202_vm6 = vcmp.gt.f32.partialorder %v12010_v24, 20.0  ;;  %vm5764_vm8 = vcmp.gt.f32.partialorder %v12013_v20, 20.0 }
 0x61d   : > { %v8371_v15 = vpop.eup %8370  ;;  %v5257_v53 = vmul.f32 1.442695, %v5170_v58  ;;  %v6146_v39 = vsel %vm5762_vm15, %v11977_v26, %v5882_v19  ;;  %v5888_v50 = vmul.f32 %v8367_v5, %v5887_v16  ;;  %vm5890_vm2 = vcmp.lt.f32.partialorder %v5889_v51, 0.0004427343 }
 0x61e   : > { %v8373_v56 = vpop.eup %8372  ;;  %v5800_v60 = vmul.f32 1.442695, %v5732_v35  ;;  %6218 = vmatmul.f32.gmra.mxu1 %v6146_v39  ;;  %v5473_v32 = vadd.f32 1.0, %v8371_v15  ;;  %v5476_v10 = vmul.f32 -0.5, %v8371_v15  ;;  %v5479_v21 = vand.u32 2147483647, %v8371_v15 }
 0x61f   : > { %8376 = vpow2.f32 %v5257_v53  ;;  %v5466_v59 = vmul.f32 0.6931472, %v8373_v56 }
 0x620   : > { %8378 = vpow2.f32 %v5800_v60  ;;  %v5123_v34 = vpop.f32.mrf.mxu3  ;;  %v5477_v29 = vadd.f32 1.0, %v5476_v10  ;;  %vm5480_vm5 = vcmp.lt.f32.partialorder %v5479_v21, 0.0004427343 }
 0x621   : > { %v8375_v36 = vpop.eup %8374  ;;  %v12021_v47 = vadd.f32 %v11903_v31, %v5123_v34  ;;  %v5647_v54 = vpop.f32.mrf.mxu0  ;;  %v5472_v26 = vsel %vm5471_vm0, %v5469_v44, %v5466_v59  ;;  %8380 = vlog2.f32 %v5473_v32  ;;  %v6762_v32 = vld [vmem:[#allocation20 + $0x28] sm:$0xff] }
 0x622   : > { %v12025_v7 = vadd.f32 %v11944_v4, %v5647_v54  ;;  %v5584_v48 = vsel %vm5200_vm1, %v11985_v40, %v5472_v26  ;;  %v5885_v0 = vmul.f32 0.6931472, %v8375_v36  ;;  %v5478_v41 = vmul.f32 %v8371_v15, %v5477_v29  ;;  %6787 = vmatpush.msra.mxu2 %v6762_v32  ;;  %v6761_v32 = vld [vmem:[#allocation20 + $0x20] sm:$0xff] }
 0x623   : > { %v5171_v18 = vmin.f32 %v12021_v47, 20.0  ;;  %vm5203_vm10 = vcmp.gt.f32.partialorder %v12021_v47, 20.0 }
 0x624   : > { %v5733_v52 = vmin.f32 %v12025_v7, 20.0  ;;  %5694 = vmatmul.f32.gmra.mxu0 %v5584_v48  ;;  %v5891_v1 = vsel %vm5890_vm2, %v5888_v50, %v5885_v0  ;;  %vm5765_vm12 = vcmp.gt.f32.partialorder %v12025_v7, 20.0  ;;  %6788 = vmatpush.msra.mxu2 %v6761_v32 }
 0x625   : > { %v8377_v33 = vpop.eup %8376  ;;  %v5259_v6 = vmul.f32 1.442695, %v5171_v18  ;;  %v6147_v38 = vsel %vm5763_vm3, %v11992_v37, %v5891_v1 }
 0x626   : > { %v8379_v3 = vpop.eup %8378  ;;  %v5802_v14 = vmul.f32 1.442695, %v5733_v52  ;;  %6221 = vmatmul.f32.gmra.mxu1 %v6147_v38  ;;  %v5482_v40 = vadd.f32 1.0, %v8377_v33  ;;  %v5485_v22 = vmul.f32 -0.5, %v8377_v33  ;;  %v5488_v30 = vand.u32 2147483647, %v8377_v33 }
 0x627   : > { %v8381_v57 = vpop.eup %8380  ;;  %8382 = vpow2.f32 %v5259_v6  ;;  %v5892_v45 = vadd.f32 1.0, %v8379_v3  ;;  %v5895_v37 = vmul.f32 -0.5, %v8379_v3  ;;  %v5898_v49 = vand.u32 2147483647, %v8379_v3 }
 0x628   : > { %8384 = vpow2.f32 %v5802_v14  ;;  %v5126_v28 = vpop.f32.mrf.mxu3  ;;  %v5475_v9 = vmul.f32 0.6931472, %v8381_v57  ;;  %v5486_v61 = vadd.f32 1.0, %v5485_v22  ;;  %vm12045_vm7 = vcmp.lt.f32.partialorder %v5488_v30, 0.0004427343 }
 0x629   : > { %v12034_v12 = vadd.f32 %v11903_v31, %v5126_v28  ;;  %v5650_v42 = vpop.f32.mrf.mxu0  ;;  %8386 = vlog2.f32 %v5482_v40  ;;  %v5896_v27 = vadd.f32 1.0, %v5895_v37  ;;  %vm12050_vm9 = vcmp.lt.f32.partialorder %v5898_v49, 0.0004427343 }
 0x62a   : > { %v12037_v62 = vadd.f32 %v11944_v4, %v5650_v42  ;;  %v5481_v23 = vsel %vm5480_vm5, %v5478_v41, %v5475_v9  ;;  %8388 = vlog2.f32 %v5892_v45  ;;  %v5487_v56 = vmul.f32 %v8377_v33, %v5486_v61 }
 0x62b   : > { %v5172_v5 = vmin.f32 %v12034_v12, 20.0  ;;  %v5585_v2 = vsel %vm5201_vm4, %v12000_v46, %v5481_v23  ;;  %v5897_v51 = vmul.f32 %v8379_v3, %v5896_v27  ;;  %vm5204_vm14 = vcmp.gt.f32.partialorder %v12034_v12, 20.0 }
 0x62c   : > { %v5734_v55 = vmin.f32 %v12037_v62, 20.0  ;;  %5697 = vmatmul.f32.gmra.mxu0 %v5585_v2  ;;  %vm5766_vm0 = vcmp.gt.f32.partialorder %v12037_v62, 20.0 }
 0x62d   : > { %v8383_v63 = vpop.eup %8382  ;;  %v5261_v25 = vmul.f32 1.442695, %v5172_v5 }
 0x62e   : > { %v8385_v8 = vpop.eup %8384  ;;  %v5804_v13 = vmul.f32 1.442695, %v5734_v55  ;;  %v5491_v11 = vadd.f32 1.0, %v8383_v63  ;;  %v5494_v17 = vmul.f32 -0.5, %v8383_v63  ;;  %v5497_v43 = vand.u32 2147483647, %v8383_v63 }
 0x62f   : > { %v8387_v46 = vpop.eup %8386  ;;  %8390 = vpow2.f32 %v5261_v25  ;;  %v5901_v19 = vadd.f32 1.0, %v8385_v8  ;;  %v5904_v60 = vmul.f32 -0.5, %v8385_v8  ;;  %v5907_v1 = vand.u32 2147483647, %v8385_v8 }
 0x630   : > { %v8389_v15 = vpop.eup %8388  ;;  %8392 = vpow2.f32 %v5804_v13  ;;  %v5129_v53 = vpop.f32.mrf.mxu3  ;;  %v5484_v39 = vmul.f32 0.6931472, %v8387_v46  ;;  %v5495_v48 = vadd.f32 1.0, %v5494_v17  ;;  %vm12073_vm11 = vcmp.lt.f32.partialorder %v5497_v43, 0.0004427343 }
 0x631   : > { %v12055_v16 = vadd.f32 %v11903_v31, %v5129_v53  ;;  %v5653_v59 = vpop.f32.mrf.mxu0  ;;  %v5894_v44 = vmul.f32 0.6931472, %v8389_v15  ;;  %8394 = vlog2.f32 %v5491_v11  ;;  %v5905_v18 = vadd.f32 1.0, %v5904_v60 }
 0x632   : > { %v12058_v34 = vadd.f32 %v11944_v4, %v5653_v59  ;;  %v5490_v10 = vsel %vm12045_vm7, %v5487_v56, %v5484_v39  ;;  %8396 = vlog2.f32 %v5901_v19  ;;  %v5496_v3 = vmul.f32 %v8383_v63, %v5495_v48 }
 0x633   : > { %v5173_v36 = vmin.f32 %v12055_v16, 20.0  ;;  %v5586_v54 = vsel %vm5202_vm6, %v12010_v24, %v5490_v10  ;;  %v5900_v26 = vsel %vm12050_vm9, %v5897_v51, %v5894_v44  ;;  %v5906_v28 = vmul.f32 %v8385_v8, %v5905_v18 }
 0x634   : > { %v5735_v0 = vmin.f32 %v12058_v34, 20.0  ;;  %5700 = vmatmul.f32.gmra.mxu0 %v5586_v54  ;;  %v6148_v50 = vsel %vm5764_vm8, %v12013_v20, %v5900_v26  ;;  %vm5908_vm13 = vcmp.lt.f32.partialorder %v5907_v1, 0.0004427343  ;;  %vm5205_vm2 = vcmp.gt.f32.partialorder %v12055_v16, 20.0 }
 0x635   : > { %v8391_v52 = vpop.eup %8390  ;;  %v5263_v29 = vmul.f32 1.442695, %v5173_v36  ;;  %6224 = vmatmul.f32.gmra.mxu1 %v6148_v50  ;;  %vm5767_vm4 = vcmp.gt.f32.partialorder %v12058_v34, 20.0 }
 0x636   : > { %v8393_v33 = vpop.eup %8392  ;;  %v5806_v24 = vmul.f32 1.442695, %v5735_v0  ;;  %v5500_v21 = vadd.f32 1.0, %v8391_v52  ;;  %v5503_v20 = vmul.f32 -0.5, %v8391_v52  ;;  %v5506_v30 = vand.u32 2147483647, %v8391_v52 }
 0x637   : > { %v8395_v38 = vpop.eup %8394  ;;  %8398 = vpow2.f32 %v5263_v29  ;;  %v5910_v14 = vadd.f32 1.0, %v8393_v33  ;;  %v5913_v9 = vmul.f32 -0.5, %v8393_v33  ;;  %v5916_v13 = vand.u32 2147483647, %v8393_v33 }
 0x638   : > { %v8397_v40 = vpop.eup %8396  ;;  %8400 = vpow2.f32 %v5806_v24  ;;  %v5132_v57 = vpop.f32.mrf.mxu3  ;;  %v5493_v45 = vmul.f32 0.6931472, %v8395_v38  ;;  %v5504_v55 = vadd.f32 1.0, %v5503_v20  ;;  %vm12095_vm15 = vcmp.lt.f32.partialorder %v5506_v30, 0.0004427343 }
 0x639   : > { %v12079_v41 = vadd.f32 %v11903_v31, %v5132_v57  ;;  %v5656_v22 = vpop.f32.mrf.mxu0  ;;  %v5903_v42 = vmul.f32 0.6931472, %v8397_v40  ;;  %8402 = vlog2.f32 %v5500_v21  ;;  %v5914_v25 = vadd.f32 1.0, %v5913_v9 }
 0x63a   : > { %v12082_v37 = vadd.f32 %v11944_v4, %v5656_v22  ;;  %v5499_v23 = vsel %vm12073_vm11, %v5496_v3, %v5493_v45  ;;  %8404 = vlog2.f32 %v5910_v14  ;;  %v5505_v17 = vmul.f32 %v8391_v52, %v5504_v55 }
 0x63b   : > { %v5174_v5 = vmin.f32 %v12079_v41, 20.0  ;;  %v5587_v2 = vsel %vm5203_vm10, %v12021_v47, %v5499_v23  ;;  %v5909_v49 = vsel %vm5908_vm13, %v5906_v28, %v5903_v42  ;;  %v5915_v56 = vmul.f32 %v8393_v33, %v5914_v25 }
 0x63c   : > { %v5736_v61 = vmin.f32 %v12082_v37, 20.0  ;;  %5703 = vmatmul.f32.gmra.mxu0 %v5587_v2  ;;  %v6149_v63 = vsel %vm5765_vm12, %v12025_v7, %v5909_v49  ;;  %vm5917_vm1 = vcmp.lt.f32.partialorder %v5916_v13, 0.0004427343  ;;  %vm5206_vm6 = vcmp.gt.f32.partialorder %v12079_v41, 20.0 }
 0x63d   : > { %v8399_v27 = vpop.eup %8398  ;;  %v5265_v8 = vmul.f32 1.442695, %v5174_v5  ;;  %6227 = vmatmul.f32.gmra.mxu1 %v6149_v63  ;;  %vm5768_vm8 = vcmp.gt.f32.partialorder %v12082_v37, 20.0 }
 0x63e   : > { %v8401_v58 = vpop.eup %8400  ;;  %v5808_v11 = vmul.f32 1.442695, %v5736_v61  ;;  %v5509_v46 = vadd.f32 1.0, %v8399_v27  ;;  %v5512_v7 = vmul.f32 -0.5, %v8399_v27  ;;  %v5515_v36 = vand.u32 2147483647, %v8399_v27 }
 0x63f   : > { %v8403_v35 = vpop.eup %8402  ;;  %8406 = vpow2.f32 %v5265_v8  ;;  %v5919_v19 = vadd.f32 1.0, %v8401_v58  ;;  %v5922_v60 = vmul.f32 -0.5, %v8401_v58  ;;  %v5925_v33 = vand.u32 2147483647, %v8401_v58 }
 0x640   : > { %v8405_v15 = vpop.eup %8404  ;;  %8408 = vpow2.f32 %v5808_v11  ;;  %v5135_v53 = vpop.f32.mrf.mxu3  ;;  %v5502_v39 = vmul.f32 0.6931472, %v8403_v35  ;;  %v5513_v0 = vadd.f32 1.0, %v5512_v7  ;;  %vm12117_vm3 = vcmp.lt.f32.partialorder %v5515_v36, 0.0004427343 }
 0x641   : > { %v12101_v59 = vadd.f32 %v11903_v31, %v5135_v53  ;;  %v5659_v44 = vpop.f32.mrf.mxu0  ;;  %v5912_v51 = vmul.f32 0.6931472, %v8405_v15  ;;  %8410 = vlog2.f32 %v5509_v46  ;;  %v5923_v52 = vadd.f32 1.0, %v5922_v60  ;;  %v8666_v60 = vld [vmem:[%s12976_s7] ss:$0 sm:$0xff] }
 0x642   : > { %v12104_v10 = vadd.f32 %v11944_v4, %v5659_v44  ;;  %v5508_v43 = vsel %vm12095_vm15, %v5505_v17, %v5502_v39  ;;  %8412 = vlog2.f32 %v5919_v19  ;;  %v5514_v3 = vmul.f32 %v8399_v27, %v5513_v0 }
 0x643   : > { %v5175_v54 = vmin.f32 %v12101_v59, 20.0  ;;  %v5588_v26 = vsel %vm5204_vm14, %v12034_v12, %v5508_v43  ;;  %v5918_v48 = vsel %vm5917_vm1, %v5915_v56, %v5912_v51  ;;  %v5924_v45 = vmul.f32 %v8401_v58, %v5923_v52  ;;  %v6760_v56 = vld [vmem:[#allocation20 + $0x18] sm:$0xff] }
 0x644   : > { %v5737_v50 = vmin.f32 %v12104_v10, 20.0  ;;  %5706 = vmatmul.f32.gmra.mxu0 %v5588_v26  ;;  %v6150_v18 = vsel %vm5766_vm0, %v12037_v62, %v5918_v48  ;;  %vm5926_vm5 = vcmp.lt.f32.partialorder %v5925_v33, 0.0004427343  ;;  %6789 = vmatpush.msra.mxu2 %v6760_v56  ;;  %vm5207_vm10 = vcmp.gt.f32.partialorder %v12101_v59, 20.0  ;;  %v12197_v56 = vld [vmem:[%s12999_s0] ss:$0 sm:$0xff] }
 0x645   : > { %v8407_v29 = vpop.eup %8406  ;;  %v5267_v1 = vmul.f32 1.442695, %v5175_v54  ;;  %6230 = vmatmul.f32.gmra.mxu1 %v6150_v18  ;;  %vm5769_vm11 = vcmp.gt.f32.partialorder %v12104_v10, 20.0 }
 0x646   : > { %v8409_v24 = vpop.eup %8408  ;;  %v5810_v6 = vmul.f32 1.442695, %v5737_v50  ;;  %v5518_v21 = vadd.f32 1.0, %v8407_v29  ;;  %v5521_v62 = vmul.f32 -0.5, %v8407_v29  ;;  %v5524_v5 = vand.u32 2147483647, %v8407_v29 }
 0x647   : > { %v8411_v38 = vpop.eup %8410  ;;  %8414 = vpow2.f32 %v5267_v1  ;;  %v5928_v20 = vadd.f32 1.0, %v8409_v24  ;;  %v5931_v28 = vmul.f32 -0.5, %v8409_v24  ;;  %v5934_v13 = vand.u32 2147483647, %v8409_v24 }
 0x648   : > { %v8413_v14 = vpop.eup %8412  ;;  %8416 = vpow2.f32 %v5810_v6  ;;  %v5138_v40 = vpop.f32.mrf.mxu3  ;;  %v5511_v57 = vmul.f32 0.6931472, %v8411_v38  ;;  %v5522_v55 = vadd.f32 1.0, %v5521_v62  ;;  %vm12141_vm7 = vcmp.lt.f32.partialorder %v5524_v5, 0.0004427343 }
 0x649   : > { %v12123_v9 = vadd.f32 %v11903_v31, %v5138_v40  ;;  %v5662_v22 = vpop.f32.mrf.mxu0  ;;  %v5921_v42 = vmul.f32 0.6931472, %v8413_v14  ;;  %8418 = vlog2.f32 %v5518_v21  ;;  %v5932_v25 = vadd.f32 1.0, %v5931_v28 }
 0x64a   : > { %v12126_v23 = vadd.f32 %v11944_v4, %v5662_v22  ;;  %v5517_v30 = vsel %vm12117_vm3, %v5514_v3, %v5511_v57  ;;  %8420 = vlog2.f32 %v5928_v20  ;;  %vm5935_vm9 = vcmp.lt.f32.partialorder %v5934_v13, 0.0004427343 }
 0x64b   : > { %v5176_v2 = vmin.f32 %v12123_v9, 20.0  ;;  %v5589_v49 = vsel %vm5205_vm2, %v12055_v16, %v5517_v30  ;;  %v5927_v31 = vsel %vm5926_vm5, %v5924_v45, %v5921_v42  ;;  %v5933_v53 = vmul.f32 %v8409_v24, %v5932_v25 }
 0x64c   : > { %v5738_v61 = vmin.f32 %v12126_v23, 20.0  ;;  %5709 = vmatmul.f32.gmra.mxu0 %v5589_v49  ;;  %v6151_v63 = vsel %vm5767_vm4, %v12058_v34, %v5927_v31  ;;  %v5523_v34 = vmul.f32 %v8407_v29, %v5522_v55  ;;  %vm5208_vm14 = vcmp.gt.f32.partialorder %v12123_v9, 20.0 }
 0x64d   : > { %v8415_v27 = vpop.eup %8414  ;;  %v5269_v8 = vmul.f32 1.442695, %v5176_v2  ;;  %6233 = vmatmul.f32.gmra.mxu1 %v6151_v63  ;;  %vm5770_vm1 = vcmp.gt.f32.partialorder %v12126_v23, 20.0 }
 0x64e   : > { %v12139_v58 = vpop.eup %8416  ;;  %v5812_v11 = vmul.f32 1.442695, %v5738_v61  ;;  %v5527_v47 = vadd.f32 1.0, %v8415_v27  ;;  %v5530_v35 = vmul.f32 -0.5, %v8415_v27  ;;  %v5533_v54 = vand.u32 2147483647, %v8415_v27 }
 0x64f   : > { %v8419_v46 = vpop.eup %8418  ;;  %8422 = vpow2.f32 %v5269_v8  ;;  %v5937_v17 = vadd.f32 1.0, %v12139_v58  ;;  %v5940_v39 = vmul.f32 -0.5, %v12139_v58 }
 0x650   : > { %v8421_v7 = vpop.eup %8420  ;;  %8424 = vpow2.f32 %v5812_v11  ;;  %v5141_v19 = vpop.f32.mrf.mxu3  ;;  %v5520_v15 = vmul.f32 0.6931472, %v8419_v46  ;;  %v5531_v50 = vadd.f32 1.0, %v5530_v35  ;;  %vm12169_vm12 = vcmp.lt.f32.partialorder %v5533_v54, 0.0004427343 }
 0x651   : > { %v12151_v32 = vadd.f32 %v8666_v60, %v5141_v19  ;;  %v5665_v44 = vpop.f32.mrf.mxu0  ;;  %v5930_v51 = vmul.f32 0.6931472, %v8421_v7  ;;  %8426 = vlog2.f32 %v5527_v47  ;;  %v5941_v29 = vadd.f32 1.0, %v5940_v39  ;;  %v6759_v7 = vld [vmem:[#allocation20 + $0x10] sm:$0xff] }
 0x652   : > { %v12154_v43 = vadd.f32 %v11944_v4, %v5665_v44  ;;  %v5526_v36 = vsel %vm12141_vm7, %v5523_v34, %v5520_v15  ;;  %8428 = vlog2.f32 %v5937_v17  ;;  %v5532_v38 = vmul.f32 %v8415_v27, %v5531_v50  ;;  %6790 = vmatpush.msra.mxu2 %v6759_v7 }
 0x653   : > { %v5177_v26 = vmin.f32 %v12151_v32, 20.0  ;;  %v5590_v48 = vsel %vm5206_vm6, %v12079_v41, %v5526_v36  ;;  %v5936_v0 = vsel %vm5935_vm9, %v5933_v53, %v5930_v51  ;;  %v5943_v41 = vand.u32 2147483647, %v12139_v58 }
 0x654   : > { %v5739_v18 = vmin.f32 %v12154_v43, 20.0  ;;  %5712 = vmatmul.f32.gmra.mxu0 %v5590_v48  ;;  %v6152_v52 = vsel %vm5768_vm8, %v12082_v37, %v5936_v0  ;;  %v5942_v40 = vmul.f32 %v12139_v58, %v5941_v29  ;;  %vm5209_vm2 = vcmp.gt.f32.partialorder %v12151_v32, 20.0 }
 0x655   : > { %v8423_v1 = vpop.eup %8422  ;;  %v5271_v33 = vmul.f32 1.442695, %v5177_v26  ;;  %6236 = vmatmul.f32.gmra.mxu1 %v6152_v52  ;;  %vm5944_vm13 = vcmp.lt.f32.partialorder %v5943_v41, 0.0004427343  ;;  %vm5771_vm5 = vcmp.gt.f32.partialorder %v12154_v43, 20.0 }
 0x656   : > { %v8425_v24 = vpop.eup %8424  ;;  %v5814_v6 = vmul.f32 1.442695, %v5739_v18  ;;  %v5536_v12 = vadd.f32 1.0, %v8423_v1  ;;  %v5539_v57 = vmul.f32 -0.5, %v8423_v1  ;;  %v5542_v55 = vand.u32 2147483647, %v8423_v1 }
 0x657   : > { %v8427_v21 = vpop.eup %8426  ;;  %8430 = vpow2.f32 %v5271_v33  ;;  %v5946_v37 = vadd.f32 1.0, %v8425_v24  ;;  %v5949_v42 = vmul.f32 -0.5, %v8425_v24  ;;  %v5952_v11 = vand.u32 2147483647, %v8425_v24 }
 0x658   : > { %v8429_v62 = vpop.eup %8428  ;;  %8432 = vpow2.f32 %v5814_v6  ;;  %v5144_v20 = vpop.f32.mrf.mxu3  ;;  %v5529_v14 = vmul.f32 0.6931472, %v8427_v21  ;;  %v5540_v63 = vadd.f32 1.0, %v5539_v57  ;;  %vm12190_vm15 = vcmp.lt.f32.partialorder %v5542_v55, 0.0004427343 }
 0x659   : > { %v12174_v45 = vadd.f32 %v8666_v60, %v5144_v20  ;;  %v5668_v28 = vpop.f32.mrf.mxu0  ;;  %v5939_v22 = vmul.f32 0.6931472, %v8429_v62  ;;  %8434 = vlog2.f32 %v5536_v12  ;;  %v5950_v8 = vadd.f32 1.0, %v5949_v42 }
 0x65a   : > { %v12177_v30 = vadd.f32 %v11944_v4, %v5668_v28  ;;  %v5535_v5 = vsel %vm12169_vm12, %v5532_v38, %v5529_v14  ;;  %8436 = vlog2.f32 %v5946_v37  ;;  %v5541_v35 = vmul.f32 %v8423_v1, %v5540_v63 }
 0x65b   : > { %v5178_v2 = vmin.f32 %v12174_v45, 20.0  ;;  %v5591_v49 = vsel %vm5207_vm10, %v12101_v59, %v5535_v5  ;;  %v5945_v31 = vsel %vm5944_vm13, %v5942_v40, %v5939_v22  ;;  %v5951_v53 = vmul.f32 %v8425_v24, %v5950_v8  ;;  %v6758_v8 = vld [vmem:[#allocation20 + $0x8] sm:$0xff] }
 0x65c   : > { %v5740_v61 = vmin.f32 %v12177_v30, 20.0  ;;  %5715 = vmatmul.f32.gmra.mxu0 %v5591_v49  ;;  %v6153_v4 = vsel %vm5769_vm11, %v12104_v10, %v5945_v31  ;;  %vm5953_vm0 = vcmp.lt.f32.partialorder %v5952_v11, 0.0004427343  ;;  %6791 = vmatpush.msra.mxu2 %v6758_v8  ;;  %vm5210_vm7 = vcmp.gt.f32.partialorder %v12174_v45, 20.0 }
 0x65d   : > { %v8431_v25 = vpop.eup %8430  ;;  %v5273_v27 = vmul.f32 1.442695, %v5178_v2  ;;  %6239 = vmatmul.f32.gmra.mxu1 %v6153_v4  ;;  %vm5772_vm9 = vcmp.gt.f32.partialorder %v12177_v30, 20.0 }
 0x65e   : > { %v8433_v13 = vpop.eup %8432  ;;  %v5816_v58 = vmul.f32 1.442695, %v5740_v61  ;;  %v5545_v16 = vadd.f32 1.0, %v8431_v25  ;;  %v5548_v17 = vmul.f32 -0.5, %v8431_v25  ;;  %v5551_v54 = vand.u32 2147483647, %v8431_v25 }
 0x65f   : > { %v8435_v47 = vpop.eup %8434  ;;  %8438 = vpow2.f32 %v5273_v27  ;;  %v5955_v46 = vadd.f32 1.0, %v8433_v13  ;;  %v5958_v39 = vmul.f32 -0.5, %v8433_v13  ;;  %v5961_v1 = vand.u32 2147483647, %v8433_v13 }
 0x660   : > { %v8437_v34 = vpop.eup %8436  ;;  %8440 = vpow2.f32 %v5816_v58  ;;  %v5538_v10 = vmul.f32 0.6931472, %v8435_v47  ;;  %v5549_v0 = vadd.f32 1.0, %v5548_v17  ;;  %vm12211_vm3 = vcmp.lt.f32.partialorder %v5551_v54, 0.0004427343 }
 0x661   : > { %v5671_v19 = vpop.f32.mrf.mxu0  ;;  %v5948_v15 = vmul.f32 0.6931472, %v8437_v34  ;;  %8442 = vlog2.f32 %v5545_v16  ;;  %v5959_v18 = vadd.f32 1.0, %v5958_v39  ;;  %vm5962_vm4 = vcmp.lt.f32.partialorder %v5961_v1, 0.0004427343 }
 0x662   : > { %v12200_v60 = vadd.f32 %v12197_v56, %v5671_v19  ;;  %v5544_v44 = vsel %vm12190_vm15, %v5541_v35, %v5538_v10  ;;  %8444 = vlog2.f32 %v5955_v46 }
 0x663   : > { %v5592_v51 = vsel %vm5208_vm14, %v12123_v9, %v5544_v44  ;;  %v5954_v36 = vsel %vm5953_vm0, %v5951_v53, %v5948_v15  ;;  %v5960_v37 = vmul.f32 %v8433_v13, %v5959_v18 }
 0x664   : > { %v5741_v26 = vmin.f32 %v12200_v60, 20.0  ;;  %5718 = vmatmul.f32.gmra.mxu0 %v5592_v51  ;;  %v6154_v48 = vsel %vm5770_vm1, %v12126_v23, %v5954_v36  ;;  %v5550_v23 = vmul.f32 %v8431_v25, %v5549_v0  ;;  %vm5773_vm11 = vcmp.gt.f32.partialorder %v12200_v60, 20.0 }
 0x665   : > { %v8439_v50 = vpop.eup %8438  ;;  %6242 = vmatmul.f32.gmra.mxu1 %v6154_v48 }
 0x666   : > { %v8441_v52 = vpop.eup %8440  ;;  %v5818_v29 = vmul.f32 1.442695, %v5741_v26  ;;  %v5554_v33 = vadd.f32 1.0, %v8439_v50  ;;  %v5557_v21 = vmul.f32 -0.5, %v8439_v50  ;;  %v5560_v5 = vand.u32 2147483647, %v8439_v50 }
 0x667   : > { %v8443_v24 = vpop.eup %8442  ;;  %v5964_v6 = vadd.f32 1.0, %v8441_v52  ;;  %v5967_v62 = vmul.f32 -0.5, %v8441_v52  ;;  %v5970_v55 = vand.u32 2147483647, %v8441_v52 }
 0x668   : > { %v8445_v41 = vpop.eup %8444  ;;  %8446 = vpow2.f32 %v5818_v29  ;;  %v5547_v12 = vmul.f32 0.6931472, %v8443_v24  ;;  %v5558_v42 = vadd.f32 1.0, %v5557_v21  ;;  %vm5561_vm6 = vcmp.lt.f32.partialorder %v5560_v5, 0.0004427343  ;;  %v6757_v24 = vld [vmem:[#allocation20] sm:$0xff] }
 0x669   : > { %v5674_v38 = vpop.f32.mrf.mxu0  ;;  %v5957_v3 = vmul.f32 0.6931472, %v8445_v41  ;;  %8448 = vlog2.f32 %v5554_v33  ;;  %v5968_v2 = vadd.f32 1.0, %v5967_v62  ;;  %vm5971_vm8 = vcmp.lt.f32.partialorder %v5970_v55, 0.0004427343  ;;  %6792 = vmatpush.msra.mxu2 %v6757_v24 }
 0x66a   : > { %v12216_v20 = vadd.f32 %v12197_v56, %v5674_v38  ;;  %v5553_v14 = vsel %vm12211_vm3, %v5550_v23, %v5547_v12  ;;  %8450 = vlog2.f32 %v5964_v6  ;;  %v5559_v25 = vmul.f32 %v8439_v50, %v5558_v42  ;;  %v12249_v62 = vld [vmem:[%s13018_s18] ss:$0 sm:$0xff] }
 0x66b   : > { %v5593_v40 = vsel %vm5209_vm2, %v12151_v32, %v5553_v14  ;;  %v5963_v57 = vsel %vm5962_vm4, %v5960_v37, %v5957_v3  ;;  %v5969_v11 = vmul.f32 %v8441_v52, %v5968_v2 }
 0x66c   : > { %v5742_v28 = vmin.f32 %v12216_v20, 20.0  ;;  %5721 = vmatmul.f32.gmra.mxu0 %v5593_v40  ;;  %v6155_v22 = vsel %vm5771_vm5, %v12154_v43, %v5963_v57  ;;  %vm5774_vm13 = vcmp.gt.f32.partialorder %v12216_v20, 20.0 }
 0x66d   : > { %6245 = vmatmul.f32.gmra.mxu1 %v6155_v22 }
 0x66e   : > { %v8447_v49 = vpop.eup %8446  ;;  %v5820_v31 = vmul.f32 1.442695, %v5742_v28 }
 0x66f   : > { %v8449_v61 = vpop.eup %8448  ;;  %v5973_v4 = vadd.f32 1.0, %v8447_v49  ;;  %v5976_v27 = vmul.f32 -0.5, %v8447_v49  ;;  %v5979_v35 = vand.u32 2147483647, %v8447_v49 }
 0x670   : > { %v8451_v63 = vpop.eup %8450  ;;  %8452 = vpow2.f32 %v5820_v31  ;;  %v5556_v32 = vmul.f32 0.6931472, %v8449_v61 }
 0x671   : > { %v5677_v13 = vpop.f32.mrf.mxu0  ;;  %v5966_v58 = vmul.f32 0.6931472, %v8451_v63  ;;  %8454 = vlog2.f32 %v5973_v4  ;;  %v5977_v10 = vadd.f32 1.0, %v5976_v27  ;;  %vm5980_vm10 = vcmp.lt.f32.partialorder %v5979_v35, 0.0004427343 }
 0x672   : > { %v12227_v43 = vadd.f32 %v12197_v56, %v5677_v13  ;;  %v5562_v16 = vsel %vm5561_vm6, %v5559_v25, %v5556_v32 }
 0x673   : > { %v5594_v47 = vsel %vm5210_vm7, %v12174_v45, %v5562_v16  ;;  %v5972_v59 = vsel %vm5971_vm8, %v5969_v11, %v5966_v58  ;;  %v5978_v39 = vmul.f32 %v8447_v49, %v5977_v10 }
 0x674   : > { %v5743_v46 = vmin.f32 %v12227_v43, 20.0  ;;  %5724 = vmatmul.f32.gmra.mxu0 %v5594_v47  ;;  %v6156_v34 = vsel %vm5772_vm9, %v12177_v30, %v5972_v59  ;;  %vm5775_vm15 = vcmp.gt.f32.partialorder %v12227_v43, 20.0 }
 0x675   : > { %6248 = vmatmul.f32.gmra.mxu1 %v6156_v34 }
 0x676   : > { %v8453_v17 = vpop.eup %8452  ;;  %v5822_v7 = vmul.f32 1.442695, %v5743_v46 }
 0x677   : > { %v8455_v19 = vpop.eup %8454  ;;  %v5982_v15 = vadd.f32 1.0, %v8453_v17  ;;  %v5985_v44 = vmul.f32 -0.5, %v8453_v17  ;;  %v5988_v48 = vand.u32 2147483647, %v8453_v17 }
 0x678   : > { %8456 = vpow2.f32 %v5822_v7  ;;  %v5975_v53 = vmul.f32 0.6931472, %v8455_v19 }
 0x679   : > { %v5680_v45 = vpop.f32.mrf.mxu0  ;;  %8458 = vlog2.f32 %v5982_v15  ;;  %v5986_v26 = vadd.f32 1.0, %v5985_v44  ;;  %vm5989_vm12 = vcmp.lt.f32.partialorder %v5988_v48, 0.0004427343 }
 0x67a   : > { %v12235_v51 = vadd.f32 %v12197_v56, %v5680_v45  ;;  %v5981_v30 = vsel %vm5980_vm10, %v5978_v39, %v5975_v53 }
 0x67b   : > { %v6157_v36 = vsel %vm5773_vm11, %v12200_v60, %v5981_v30  ;;  %v5987_v1 = vmul.f32 %v8453_v17, %v5986_v26 }
 0x67c   : > { %v5744_v54 = vmin.f32 %v12235_v51, 20.0  ;;  %vm5776_vm1 = vcmp.gt.f32.partialorder %v12235_v51, 20.0 }
 0x67d   : > { %6251 = vmatmul.f32.gmra.mxu1 %v6157_v36 }
 0x67e   : > { %v8457_v0 = vpop.eup %8456  ;;  %v5824_v50 = vmul.f32 1.442695, %v5744_v54 }
 0x67f   : > { %v8459_v18 = vpop.eup %8458  ;;  %v5991_v52 = vadd.f32 1.0, %v8457_v0  ;;  %v5994_v33 = vmul.f32 -0.5, %v8457_v0  ;;  %v5997_v21 = vand.u32 2147483647, %v8457_v0 }
 0x680   : > { %8460 = vpow2.f32 %v5824_v50  ;;  %v5984_v29 = vmul.f32 0.6931472, %v8459_v18 }
 0x681   : > { %v5683_v9 = vpop.f32.mrf.mxu0  ;;  %8462 = vlog2.f32 %v5991_v52  ;;  %v5995_v23 = vadd.f32 1.0, %v5994_v33  ;;  %vm5998_vm14 = vcmp.lt.f32.partialorder %v5997_v21, 0.0004427343 }
 0x682   : > { %v12241_v60 = vadd.f32 %v12197_v56, %v5683_v9  ;;  %v5990_v6 = vsel %vm5989_vm12, %v5987_v1, %v5984_v29 }
 0x683   : > { %v6158_v41 = vsel %vm5774_vm13, %v12216_v20, %v5990_v6  ;;  %v5996_v57 = vmul.f32 %v8457_v0, %v5995_v23 }
 0x684   : > { %v5745_v12 = vmin.f32 %v12241_v60, 20.0  ;;  %vm5777_vm3 = vcmp.gt.f32.partialorder %v12241_v60, 20.0 }
 0x685   : > { %6254 = vmatmul.f32.gmra.mxu1 %v6158_v41 }
 0x686   : > { %v8461_v38 = vpop.eup %8460  ;;  %v5826_v3 = vmul.f32 1.442695, %v5745_v12 }
 0x687   : > { %v8463_v37 = vpop.eup %8462  ;;  %v6000_v14 = vadd.f32 1.0, %v8461_v38  ;;  %v6003_v28 = vmul.f32 -0.5, %v8461_v38  ;;  %v6006_v4 = vand.u32 2147483647, %v8461_v38 }
 0x688   : > { %8464 = vpow2.f32 %v5826_v3  ;;  %v5993_v40 = vmul.f32 0.6931472, %v8463_v37 }
 0x689   : > { %v5686_v22 = vpop.f32.mrf.mxu0  ;;  %8466 = vlog2.f32 %v6000_v14  ;;  %v6213_v5 = vpop.f32.mrf.mxu1  ;;  %v6004_v55 = vadd.f32 1.0, %v6003_v28  ;;  %vm6007_vm0 = vcmp.lt.f32.partialorder %v6006_v4, 0.0004427343 }
 0x68a   : > { %v12252_v20 = vadd.f32 %v12197_v56, %v5686_v22  ;;  %v5999_v42 = vsel %vm5998_vm14, %v5996_v57, %v5993_v40  ;;  %v12257_v49 = vadd.f32 %v12249_v62, %v6213_v5 }
 0x68b   : > { %v6159_v2 = vsel %vm5775_vm15, %v12227_v43, %v5999_v42  ;;  %v6005_v58 = vmul.f32 %v8461_v38, %v6004_v55 }
 0x68c   : > { %v5746_v31 = vmin.f32 %v12252_v20, 20.0  ;;  %v6309_v61 = vmin.f32 %v12257_v49, 20.0  ;;  %vm5778_vm4 = vcmp.gt.f32.partialorder %v12252_v20, 20.0  ;;  %vm6341_vm7 = vcmp.gt.f32.partialorder %v12257_v49, 20.0 }
 0x68d   : > { %6257 = vmatmul.f32.gmra.mxu1 %v6159_v2 }
 0x68e   : > { %v8465_v63 = vpop.eup %8464  ;;  %v5828_v32 = vmul.f32 1.442695, %v5746_v31  ;;  %v6373_v27 = vmul.f32 1.442695, %v6309_v61 }
 0x68f   : > { %v8467_v25 = vpop.eup %8466  ;;  %v6009_v8 = vadd.f32 1.0, %v8465_v63  ;;  %v6012_v43 = vmul.f32 -0.5, %v8465_v63  ;;  %v6015_v15 = vand.u32 2147483647, %v8465_v63 }
 0x690   : > { %8468 = vpow2.f32 %v5828_v32  ;;  %v6002_v13 = vmul.f32 0.6931472, %v8467_v25 }
 0x691   : > { %v5689_v11 = vpop.f32.mrf.mxu0  ;;  %8470 = vpow2.f32 %v6373_v27  ;;  %v6013_v35 = vadd.f32 1.0, %v6012_v43  ;;  %vm6016_vm2 = vcmp.lt.f32.partialorder %v6015_v15, 0.0004427343 }
 0x692   : > { %v12262_v16 = vadd.f32 %v12197_v56, %v5689_v11  ;;  %v6008_v47 = vsel %vm6007_vm0, %v6005_v58, %v6002_v13  ;;  %8472 = vlog2.f32 %v6009_v8 }
 0x693   : > { %v6160_v59 = vsel %vm5776_vm1, %v12235_v51, %v6008_v47  ;;  %v6216_v46 = vpop.f32.mrf.mxu1  ;;  %v6014_v26 = vmul.f32 %v8465_v63, %v6013_v35 }
 0x694   : > { %v5747_v34 = vmin.f32 %v12262_v16, 20.0  ;;  %v12268_v10 = vadd.f32 %v12249_v62, %v6216_v46  ;;  %vm5779_vm8 = vcmp.gt.f32.partialorder %v12262_v16, 20.0 }
 0x695   : > { %6260 = vmatmul.f32.gmra.mxu1 %v6160_v59 }
 0x696   : > { %v8469_v17 = vpop.eup %8468  ;;  %v5830_v7 = vmul.f32 1.442695, %v5747_v34  ;;  %v6310_v19 = vmin.f32 %v12268_v10, 20.0  ;;  %vm6342_vm11 = vcmp.gt.f32.partialorder %v12268_v10, 20.0 }
 0x697   : > { %v8471_v53 = vpop.eup %8470  ;;  %v6018_v39 = vadd.f32 1.0, %v8469_v17  ;;  %v6021_v30 = vmul.f32 -0.5, %v8469_v17  ;;  %v6024_v52 = vand.u32 2147483647, %v8469_v17 }
 0x698   : > { %v8473_v44 = vpop.eup %8472  ;;  %8474 = vpow2.f32 %v5830_v7  ;;  %v6375_v45 = vmul.f32 1.442695, %v6310_v19  ;;  %v6437_v51 = vadd.f32 1.0, %v8471_v53  ;;  %v6440_v48 = vmul.f32 -0.5, %v8471_v53 }
 0x699   : > { %v5692_v36 = vpop.f32.mrf.mxu0  ;;  %v6011_v54 = vmul.f32 0.6931472, %v8473_v44  ;;  %8476 = vlog2.f32 %v6018_v39  ;;  %v6022_v24 = vadd.f32 1.0, %v6021_v30  ;;  %v6443_v6 = vand.u32 2147483647, %v8471_v53 }
 0x69a   : > { %v12272_v0 = vadd.f32 %v12197_v56, %v5692_v36  ;;  %8478 = vpow2.f32 %v6375_v45  ;;  %v6441_v9 = vadd.f32 1.0, %v6440_v48  ;;  %vm12282_vm5 = vcmp.lt.f32.partialorder %v6024_v52, 0.0004427343 }
 0x69b   : > { %v6017_v50 = vsel %vm6016_vm2, %v6014_v26, %v6011_v54  ;;  %v6219_v18 = vpop.f32.mrf.mxu1  ;;  %8480 = vlog2.f32 %v6437_v51  ;;  %v6023_v57 = vmul.f32 %v8469_v17, %v6022_v24  ;;  %vm12286_vm6 = vcmp.lt.f32.partialorder %v6443_v6, 0.0004427343 }
 0x69c   : > { %v5748_v29 = vmin.f32 %v12272_v0, 20.0  ;;  %v6161_v1 = vsel %vm5777_vm3, %v12241_v60, %v6017_v50  ;;  %v12278_v33 = vadd.f32 %v12249_v62, %v6219_v18  ;;  %v6442_v42 = vmul.f32 %v8471_v53, %v6441_v9 }
 0x69d   : > { %6263 = vmatmul.f32.gmra.mxu1 %v6161_v1  ;;  %vm5780_vm12 = vcmp.gt.f32.partialorder %v12272_v0, 20.0 }
 0x69e   : > { %v8475_v41 = vpop.eup %8474  ;;  %v5832_v12 = vmul.f32 1.442695, %v5748_v29  ;;  %v6311_v23 = vmin.f32 %v12278_v33, 20.0  ;;  %vm6343_vm15 = vcmp.gt.f32.partialorder %v12278_v33, 20.0 }
 0x69f   : > { %v8477_v21 = vpop.eup %8476  ;;  %v6027_v3 = vadd.f32 1.0, %v8475_v41  ;;  %v6030_v60 = vmul.f32 -0.5, %v8475_v41  ;;  %v6033_v58 = vand.u32 2147483647, %v8475_v41 }
 0x6a0   : > { %v8479_v37 = vpop.eup %8478  ;;  %8482 = vpow2.f32 %v5832_v12  ;;  %v6377_v14 = vmul.f32 1.442695, %v6311_v23  ;;  %v6020_v40 = vmul.f32 0.6931472, %v8477_v21 }
 0x6a1   : > { %v8481_v28 = vpop.eup %8480  ;;  %v5695_v22 = vpop.f32.mrf.mxu0  ;;  %8484 = vlog2.f32 %v6027_v3  ;;  %v6446_v2 = vadd.f32 1.0, %v8479_v37  ;;  %v6031_v32 = vadd.f32 1.0, %v6030_v60  ;;  %v6449_v25 = vmul.f32 -0.5, %v8479_v37 }
 0x6a2   : > { %v12291_v31 = vadd.f32 %v12197_v56, %v5695_v22  ;;  %8486 = vpow2.f32 %v6377_v14  ;;  %v6026_v55 = vsel %vm12282_vm5, %v6023_v57, %v6020_v40  ;;  %v6439_v61 = vmul.f32 0.6931472, %v8481_v28 }
 0x6a3   : > { %v6162_v4 = vsel %vm5778_vm4, %v12252_v20, %v6026_v55  ;;  %v6222_v63 = vpop.f32.mrf.mxu1  ;;  %8488 = vlog2.f32 %v6446_v2  ;;  %v6450_v43 = vadd.f32 1.0, %v6449_v25  ;;  %v6032_v34 = vmul.f32 %v8475_v41, %v6031_v32 }
 0x6a4   : > { %v5749_v27 = vmin.f32 %v12291_v31, 20.0  ;;  %v12301_v8 = vadd.f32 %v12249_v62, %v6222_v63  ;;  %v6445_v13 = vsel %vm12286_vm6, %v6442_v42, %v6439_v61  ;;  %v6452_v17 = vand.u32 2147483647, %v8479_v37 }
 0x6a5   : > { %6266 = vmatmul.f32.gmra.mxu1 %v6162_v4  ;;  %v6725_v11 = vsel %vm6341_vm7, %v12257_v49, %v6445_v13  ;;  %vm6034_vm9 = vcmp.lt.f32.partialorder %v6033_v58, 0.0004427343  ;;  %v6451_v49 = vmul.f32 %v8479_v37, %v6450_v43  ;;  %vm5781_vm0 = vcmp.gt.f32.partialorder %v12291_v31, 20.0 }
 0x6a6   : > { %v8483_v20 = vpop.eup %8482  ;;  %v5834_v47 = vmul.f32 1.442695, %v5749_v27  ;;  %v6312_v59 = vmin.f32 %v12301_v8, 20.0  ;;  %6793 = vmatmul.f32.vlgmr.msra.gmra.mxu2 %v6725_v11  ;;  %vm6453_vm10 = vcmp.lt.f32.partialorder %v6452_v17, 0.0004427343  ;;  %vm6344_vm3 = vcmp.gt.f32.partialorder %v12301_v8, 20.0 }
 0x6a7   : > { %v8485_v46 = vpop.eup %8484  ;;  %v6036_v35 = vadd.f32 1.0, %v8483_v20  ;;  %v6039_v53 = vmul.f32 -0.5, %v8483_v20  ;;  %v6042_v52 = vand.u32 2147483647, %v8483_v20 }
 0x6a8   : > { %v8487_v7 = vpop.eup %8486  ;;  %8490 = vpow2.f32 %v5834_v47  ;;  %v6379_v19 = vmul.f32 1.442695, %v6312_v59  ;;  %v6029_v15 = vmul.f32 0.6931472, %v8485_v46 }
 0x6a9   : > { %v8489_v39 = vpop.eup %8488  ;;  %v5698_v44 = vpop.f32.mrf.mxu0  ;;  %8492 = vlog2.f32 %v6036_v35  ;;  %v6455_v45 = vadd.f32 1.0, %v8487_v7  ;;  %v6458_v26 = vmul.f32 -0.5, %v8487_v7  ;;  %v6040_v50 = vadd.f32 1.0, %v6039_v53 }
 0x6aa   : > { %v12309_v30 = vadd.f32 %v12197_v56, %v5698_v44  ;;  %8494 = vpow2.f32 %v6379_v19  ;;  %v6035_v51 = vsel %vm6034_vm9, %v6032_v34, %v6029_v15  ;;  %v6448_v36 = vmul.f32 0.6931472, %v8489_v39 }
 0x6ab   : > { %v6163_v54 = vsel %vm5779_vm8, %v12262_v16, %v6035_v51  ;;  %8496 = vlog2.f32 %v6455_v45  ;;  %v6459_v1 = vadd.f32 1.0, %v6458_v26  ;;  %v6461_v41 = vand.u32 2147483647, %v8487_v7 }
 0x6ac   : > { %v5750_v48 = vmin.f32 %v12309_v30, 20.0  ;;  %v6454_v18 = vsel %vm6453_vm10, %v6451_v49, %v6448_v36  ;;  %v6041_v21 = vmul.f32 %v8483_v20, %v6040_v50  ;;  %vm6043_vm13 = vcmp.lt.f32.partialorder %v6042_v52, 0.0004427343 }
 0x6ad   : > { %6269 = vmatmul.f32.gmra.mxu1 %v6163_v54  ;;  %v6726_v29 = vsel %vm6342_vm11, %v12268_v10, %v6454_v18  ;;  %v6460_v37 = vmul.f32 %v8487_v7, %v6459_v1  ;;  %vm6462_vm14 = vcmp.lt.f32.partialorder %v6461_v41, 0.0004427343  ;;  %vm5782_vm4 = vcmp.gt.f32.partialorder %v12309_v30, 20.0 }
 0x6ae   : > { %v8491_v24 = vpop.eup %8490  ;;  %v5836_v9 = vmul.f32 1.442695, %v5750_v48  ;;  %6796 = vmatmul.f32.gmra.mxu2 %v6726_v29 }
 0x6af   : > { %v8493_v6 = vpop.eup %8492  ;;  %v6045_v16 = vadd.f32 1.0, %v8491_v24  ;;  %v6048_v38 = vmul.f32 -0.5, %v8491_v24  ;;  %v6051_v63 = vand.u32 2147483647, %v8491_v24 }
 0x6b0   : > { %v8495_v12 = vpop.eup %8494  ;;  %8498 = vpow2.f32 %v5836_v9  ;;  %v6038_v23 = vmul.f32 0.6931472, %v8493_v6 }
 0x6b1   : > { %v8497_v3 = vpop.eup %8496  ;;  %v5701_v60 = vpop.f32.mrf.mxu0  ;;  %8500 = vlog2.f32 %v6045_v16  ;;  %v6464_v10 = vadd.f32 1.0, %v8495_v12  ;;  %v6467_v22 = vmul.f32 -0.5, %v8495_v12  ;;  %v6049_v55 = vadd.f32 1.0, %v6048_v38 }
 0x6b2   : > { %v12319_v14 = vadd.f32 %v12197_v56, %v5701_v60  ;;  %v6225_v40 = vpop.f32.mrf.mxu1  ;;  %v6044_v57 = vsel %vm6043_vm13, %v6041_v21, %v6038_v23  ;;  %v6457_v28 = vmul.f32 0.6931472, %v8497_v3  ;;  %v6470_v43 = vand.u32 2147483647, %v8495_v12 }
 0x6b3   : > { %v12322_v42 = vadd.f32 %v12249_v62, %v6225_v40  ;;  %v6164_v5 = vsel %vm5780_vm12, %v12272_v0, %v6044_v57  ;;  %8502 = vlog2.f32 %v6464_v10  ;;  %v6468_v25 = vadd.f32 1.0, %v6467_v22 }
 0x6b4   : > { %v5751_v2 = vmin.f32 %v12319_v14, 20.0  ;;  %v6463_v61 = vsel %vm6462_vm14, %v6460_v37, %v6457_v28  ;;  %v6050_v47 = vmul.f32 %v8491_v24, %v6049_v55  ;;  %vm6052_vm1 = vcmp.lt.f32.partialorder %v6051_v63, 0.0004427343 }
 0x6b5   : > { %v6313_v4 = vmin.f32 %v12322_v42, 20.0  ;;  %6272 = vmatmul.f32.gmra.mxu1 %v6164_v5  ;;  %v6727_v32 = vsel %vm6343_vm15, %v12278_v33, %v6463_v61  ;;  %v6469_v35 = vmul.f32 %v8495_v12, %v6468_v25  ;;  %vm6471_vm2 = vcmp.lt.f32.partialorder %v6470_v43, 0.0004427343 }
 0x6b6   : > { %v8499_v27 = vpop.eup %8498  ;;  %v5838_v13 = vmul.f32 1.442695, %v5751_v2  ;;  %6799 = vmatmul.f32.gmra.mxu2 %v6727_v32  ;;  %vm5783_vm6 = vcmp.gt.f32.partialorder %v12319_v14, 20.0  ;;  %vm6345_vm8 = vcmp.gt.f32.partialorder %v12322_v42, 20.0 }
 0x6b7   : > { %v8501_v58 = vpop.eup %8500  ;;  %v6381_v0 = vmul.f32 1.442695, %v6313_v4  ;;  %v6054_v11 = vadd.f32 1.0, %v8499_v27  ;;  %v6057_v34 = vmul.f32 -0.5, %v8499_v27  ;;  %v6060_v26 = vand.u32 2147483647, %v8499_v27 }
 0x6b8   : > { %8504 = vpow2.f32 %v5838_v13  ;;  %v6047_v20 = vmul.f32 0.6931472, %v8501_v58 }
 0x6b9   : > { %v8503_v59 = vpop.eup %8502  ;;  %8506 = vpow2.f32 %v6381_v0  ;;  %v5704_v46 = vpop.f32.mrf.mxu0  ;;  %v6058_v45 = vadd.f32 1.0, %v6057_v34  ;;  %vm6061_vm5 = vcmp.lt.f32.partialorder %v6060_v26, 0.0004427343 }
 0x6ba   : > { %v12333_v33 = vadd.f32 %v12197_v56, %v5704_v46  ;;  %v6228_v17 = vpop.f32.mrf.mxu1  ;;  %v6053_v7 = vsel %vm6052_vm1, %v6050_v47, %v6047_v20  ;;  %8508 = vlog2.f32 %v6054_v11  ;;  %v6466_v19 = vmul.f32 0.6931472, %v8503_v59 }
 0x6bb   : > { %v12336_v15 = vadd.f32 %v12249_v62, %v6228_v17  ;;  %v6165_v53 = vsel %vm5781_vm0, %v12291_v31, %v6053_v7  ;;  %v6059_v24 = vmul.f32 %v8499_v27, %v6058_v45 }
 0x6bc   : > { %v5752_v39 = vmin.f32 %v12333_v33, 20.0  ;;  %v6472_v44 = vsel %vm6471_vm2, %v6469_v35, %v6466_v19  ;;  %vm5784_vm10 = vcmp.gt.f32.partialorder %v12333_v33, 20.0 }
 0x6bd   : > { %v6314_v49 = vmin.f32 %v12336_v15, 20.0  ;;  %6275 = vmatmul.f32.gmra.mxu1 %v6165_v53  ;;  %v6728_v51 = vsel %vm6344_vm3, %v12301_v8, %v6472_v44  ;;  %vm6346_vm12 = vcmp.gt.f32.partialorder %v12336_v15, 20.0 }
 0x6be   : > { %v8505_v36 = vpop.eup %8504  ;;  %v5840_v54 = vmul.f32 1.442695, %v5752_v39  ;;  %6802 = vmatmul.f32.gmra.mxu2 %v6728_v51 }
 0x6bf   : > { %v8507_v48 = vpop.eup %8506  ;;  %v6383_v50 = vmul.f32 1.442695, %v6314_v49  ;;  %v6063_v18 = vadd.f32 1.0, %v8505_v36  ;;  %v6066_v9 = vmul.f32 -0.5, %v8505_v36  ;;  %v6069_v23 = vand.u32 2147483647, %v8505_v36 }
 0x6c0   : > { %v8509_v31 = vpop.eup %8508  ;;  %8510 = vpow2.f32 %v5840_v54  ;;  %v6473_v52 = vadd.f32 1.0, %v8507_v48  ;;  %v6476_v16 = vmul.f32 -0.5, %v8507_v48  ;;  %v6479_v3 = vand.u32 2147483647, %v8507_v48 }
 0x6c1   : > { %8512 = vpow2.f32 %v6383_v50  ;;  %v5707_v29 = vpop.f32.mrf.mxu0  ;;  %v6056_v1 = vmul.f32 0.6931472, %v8509_v31  ;;  %v6067_v37 = vadd.f32 1.0, %v6066_v9  ;;  %vm12356_vm7 = vcmp.lt.f32.partialorder %v6069_v23, 0.0004427343 }
 0x6c2   : > { %v12345_v6 = vadd.f32 %v12197_v56, %v5707_v29  ;;  %v6231_v8 = vpop.f32.mrf.mxu1  ;;  %8514 = vlog2.f32 %v6063_v18  ;;  %v6477_v57 = vadd.f32 1.0, %v6476_v16  ;;  %vm12361_vm9 = vcmp.lt.f32.partialorder %v6479_v3, 0.0004427343 }
 0x6c3   : > { %v12348_v41 = vadd.f32 %v12249_v62, %v6231_v8  ;;  %v6062_v12 = vsel %vm6061_vm5, %v6059_v24, %v6056_v1  ;;  %8516 = vlog2.f32 %v6473_v52  ;;  %v6068_v27 = vmul.f32 %v8505_v36, %v6067_v37 }
 0x6c4   : > { %v5753_v21 = vmin.f32 %v12345_v6, 20.0  ;;  %v6166_v38 = vsel %vm5782_vm4, %v12309_v30, %v6062_v12  ;;  %v6478_v43 = vmul.f32 %v8507_v48, %v6477_v57  ;;  %vm5785_vm14 = vcmp.gt.f32.partialorder %v12345_v6, 20.0 }
 0x6c5   : > { %v6315_v60 = vmin.f32 %v12348_v41, 20.0  ;;  %6278 = vmatmul.f32.gmra.mxu1 %v6166_v38  ;;  %vm6347_vm0 = vcmp.gt.f32.partialorder %v12348_v41, 20.0 }
 0x6c6   : > { %v8511_v10 = vpop.eup %8510  ;;  %v5842_v40 = vmul.f32 1.442695, %v5753_v21 }
 0x6c7   : > { %v8513_v28 = vpop.eup %8512  ;;  %v6385_v22 = vmul.f32 1.442695, %v6315_v60  ;;  %v6072_v2 = vadd.f32 1.0, %v8511_v10  ;;  %v6075_v61 = vmul.f32 -0.5, %v8511_v10  ;;  %v6078_v59 = vand.u32 2147483647, %v8511_v10 }
 0x6c8   : > { %v8515_v30 = vpop.eup %8514  ;;  %8518 = vpow2.f32 %v5842_v40  ;;  %v6482_v4 = vadd.f32 1.0, %v8513_v28  ;;  %v6485_v13 = vmul.f32 -0.5, %v8513_v28  ;;  %v6488_v49 = vand.u32 2147483647, %v8513_v28 }
 0x6c9   : > { %v8517_v63 = vpop.eup %8516  ;;  %8520 = vpow2.f32 %v6385_v22  ;;  %v5710_v32 = vpop.f32.mrf.mxu0  ;;  %v6065_v25 = vmul.f32 0.6931472, %v8515_v30  ;;  %v6076_v17 = vadd.f32 1.0, %v6075_v61  ;;  %vm12384_vm11 = vcmp.lt.f32.partialorder %v6078_v59, 0.0004427343 }
 0x6ca   : > { %v12366_v58 = vadd.f32 %v12197_v56, %v5710_v32  ;;  %v6234_v0 = vpop.f32.mrf.mxu1  ;;  %v6475_v11 = vmul.f32 0.6931472, %v8517_v63  ;;  %8522 = vlog2.f32 %v6072_v2  ;;  %v6486_v53 = vadd.f32 1.0, %v6485_v13 }
 0x6cb   : > { %v12369_v20 = vadd.f32 %v12249_v62, %v6234_v0  ;;  %v6071_v47 = vsel %vm12356_vm7, %v6068_v27, %v6065_v25  ;;  %8524 = vlog2.f32 %v6482_v4  ;;  %v6077_v26 = vmul.f32 %v8511_v10, %v6076_v17 }
 0x6cc   : > { %v5754_v46 = vmin.f32 %v12366_v58, 20.0  ;;  %v6167_v34 = vsel %vm5783_vm6, %v12319_v14, %v6071_v47  ;;  %v6481_v35 = vsel %vm12361_vm9, %v6478_v43, %v6475_v11  ;;  %v6487_v52 = vmul.f32 %v8513_v28, %v6486_v53 }
 0x6cd   : > { %v6316_v7 = vmin.f32 %v12369_v20, 20.0  ;;  %6281 = vmatmul.f32.gmra.mxu1 %v6167_v34  ;;  %v6729_v19 = vsel %vm6345_vm8, %v12322_v42, %v6481_v35  ;;  %vm6489_vm13 = vcmp.lt.f32.partialorder %v6488_v49, 0.0004427343  ;;  %vm5786_vm2 = vcmp.gt.f32.partialorder %v12366_v58, 20.0 }
 0x6ce   : > { %v8519_v39 = vpop.eup %8518  ;;  %v5844_v44 = vmul.f32 1.442695, %v5754_v46  ;;  %6805 = vmatmul.f32.gmra.mxu2 %v6729_v19  ;;  %vm6348_vm4 = vcmp.gt.f32.partialorder %v12369_v20, 20.0 }
 0x6cf   : > { %v8521_v45 = vpop.eup %8520  ;;  %v6387_v14 = vmul.f32 1.442695, %v6316_v7  ;;  %v6081_v36 = vadd.f32 1.0, %v8519_v39  ;;  %v6084_v42 = vmul.f32 -0.5, %v8519_v39  ;;  %v6087_v12 = vand.u32 2147483647, %v8519_v39 }
 0x6d0   : > { %v8523_v54 = vpop.eup %8522  ;;  %8526 = vpow2.f32 %v5844_v44  ;;  %v6491_v48 = vadd.f32 1.0, %v8521_v45  ;;  %v6494_v29 = vmul.f32 -0.5, %v8521_v45  ;;  %v6497_v28 = vand.u32 2147483647, %v8521_v45 }
 0x6d1   : > { %v8525_v50 = vpop.eup %8524  ;;  %8528 = vpow2.f32 %v6387_v14  ;;  %v5713_v18 = vpop.f32.mrf.mxu0  ;;  %v6074_v31 = vmul.f32 0.6931472, %v8523_v54  ;;  %v6085_v3 = vadd.f32 1.0, %v6084_v42  ;;  %vm12406_vm15 = vcmp.lt.f32.partialorder %v6087_v12, 0.0004427343 }
 0x6d2   : > { %v12390_v1 = vadd.f32 %v12197_v56, %v5713_v18  ;;  %v6237_v24 = vpop.f32.mrf.mxu1  ;;  %v6484_v9 = vmul.f32 0.6931472, %v8525_v50  ;;  %8530 = vlog2.f32 %v6081_v36  ;;  %v6495_v10 = vadd.f32 1.0, %v6494_v29 }
 0x6d3   : > { %v12393_v8 = vadd.f32 %v12249_v62, %v6237_v24  ;;  %v6080_v16 = vsel %vm12384_vm11, %v6077_v26, %v6074_v31  ;;  %8532 = vlog2.f32 %v6491_v48  ;;  %v6086_v55 = vmul.f32 %v8519_v39, %v6085_v3 }
 0x6d4   : > { %v5755_v23 = vmin.f32 %v12390_v1, 20.0  ;;  %v6168_v21 = vsel %vm5784_vm10, %v12333_v33, %v6080_v16  ;;  %v6490_v38 = vsel %vm6489_vm13, %v6487_v52, %v6484_v9  ;;  %v6496_v25 = vmul.f32 %v8521_v45, %v6495_v10 }
 0x6d5   : > { %v6317_v60 = vmin.f32 %v12393_v8, 20.0  ;;  %6284 = vmatmul.f32.gmra.mxu1 %v6168_v21  ;;  %v6730_v37 = vsel %vm6346_vm12, %v12336_v15, %v6490_v38  ;;  %vm6498_vm1 = vcmp.lt.f32.partialorder %v6497_v28, 0.0004427343  ;;  %vm5787_vm6 = vcmp.gt.f32.partialorder %v12390_v1, 20.0 }
 0x6d6   : > { %v8527_v40 = vpop.eup %8526  ;;  %v5846_v57 = vmul.f32 1.442695, %v5755_v23  ;;  %6808 = vmatmul.f32.gmra.mxu2 %v6730_v37  ;;  %vm6349_vm8 = vcmp.gt.f32.partialorder %v12393_v8, 20.0 }
 0x6d7   : > { %v8529_v22 = vpop.eup %8528  ;;  %v6389_v5 = vmul.f32 1.442695, %v6317_v60  ;;  %v6090_v2 = vadd.f32 1.0, %v8527_v40  ;;  %v6093_v15 = vmul.f32 -0.5, %v8527_v40  ;;  %v6096_v59 = vand.u32 2147483647, %v8527_v40 }
 0x6d8   : > { %v8531_v30 = vpop.eup %8530  ;;  %8534 = vpow2.f32 %v5846_v57  ;;  %v6500_v61 = vadd.f32 1.0, %v8529_v22  ;;  %v6503_v27 = vmul.f32 -0.5, %v8529_v22  ;;  %v6506_v49 = vand.u32 2147483647, %v8529_v22 }
 0x6d9   : > { %v8533_v4 = vpop.eup %8532  ;;  %8536 = vpow2.f32 %v6389_v5  ;;  %v5716_v63 = vpop.f32.mrf.mxu0  ;;  %v6083_v32 = vmul.f32 0.6931472, %v8531_v30  ;;  %v6094_v17 = vadd.f32 1.0, %v6093_v15  ;;  %vm12428_vm3 = vcmp.lt.f32.partialorder %v6096_v59, 0.0004427343 }
 0x6da   : > { %v12412_v13 = vadd.f32 %v12197_v56, %v5716_v63  ;;  %v6240_v0 = vpop.f32.mrf.mxu1  ;;  %v6493_v11 = vmul.f32 0.6931472, %v8533_v4  ;;  %8538 = vlog2.f32 %v6090_v2  ;;  %v6504_v53 = vadd.f32 1.0, %v6503_v27 }
 0x6db   : > { %v12415_v43 = vadd.f32 %v12249_v62, %v6240_v0  ;;  %v6089_v47 = vsel %vm12406_vm15, %v6086_v55, %v6083_v32  ;;  %8540 = vlog2.f32 %v6500_v61  ;;  %v6095_v54 = vmul.f32 %v8527_v40, %v6094_v17  ;;  %v8668_v32 = vld [vmem:[%s12999_s0] ss:$0 sm:$0xff]  ;;  %s6923_s0 = scalar_lea.sflag [#allocation4], %s9440_s29 }
 0x6dc   : > { %v5756_v46 = vmin.f32 %v12412_v13, 20.0  ;;  %v6169_v34 = vsel %vm5785_vm14, %v12345_v6, %v6089_v47  ;;  %v6499_v35 = vsel %vm6498_vm1, %v6496_v25, %v6493_v11  ;;  %v6505_v18 = vmul.f32 %v8529_v22, %v6504_v53 }
 0x6dd   : > { %v6318_v7 = vmin.f32 %v12415_v43, 20.0  ;;  %6287 = vmatmul.f32.gmra.mxu1 %v6169_v34  ;;  %v6731_v19 = vsel %vm6347_vm0, %v12348_v41, %v6499_v35  ;;  %vm6507_vm5 = vcmp.lt.f32.partialorder %v6506_v49, 0.0004427343  ;;  %vm5788_vm10 = vcmp.gt.f32.partialorder %v12412_v13, 20.0 }
 0x6de   : > { %v8535_v39 = vpop.eup %8534  ;;  %v5848_v44 = vmul.f32 1.442695, %v5756_v46  ;;  %6811 = vmatmul.f32.gmra.mxu2 %v6731_v19  ;;  %vm6350_vm11 = vcmp.gt.f32.partialorder %v12415_v43, 20.0 }
 0x6df   : > { %v8537_v45 = vpop.eup %8536  ;;  %v6391_v14 = vmul.f32 1.442695, %v6318_v7  ;;  %v6099_v51 = vadd.f32 1.0, %v8535_v39  ;;  %v6102_v41 = vmul.f32 -0.5, %v8535_v39  ;;  %v6105_v12 = vand.u32 2147483647, %v8535_v39 }
 0x6e0   : > { %v8539_v36 = vpop.eup %8538  ;;  %8542 = vpow2.f32 %v5848_v44  ;;  %v6509_v26 = vadd.f32 1.0, %v8537_v45  ;;  %v6512_v31 = vmul.f32 -0.5, %v8537_v45  ;;  %v6515_v57 = vand.u32 2147483647, %v8537_v45 }
 0x6e1   : > { %v8541_v42 = vpop.eup %8540  ;;  %8544 = vpow2.f32 %v6391_v14  ;;  %v5719_v48 = vpop.f32.mrf.mxu0  ;;  %v6092_v50 = vmul.f32 0.6931472, %v8539_v36  ;;  %v6103_v38 = vadd.f32 1.0, %v6102_v41  ;;  %vm12450_vm7 = vcmp.lt.f32.partialorder %v6105_v12, 0.0004427343 }
 0x6e2   : > { %v12434_v52 = vadd.f32 %v12197_v56, %v5719_v48  ;;  %v6243_v29 = vpop.f32.mrf.mxu1  ;;  %v6502_v24 = vmul.f32 0.6931472, %v8541_v42  ;;  %8546 = vlog2.f32 %v6099_v51  ;;  %v6513_v37 = vadd.f32 1.0, %v6512_v31 }
 0x6e3   : > { %v12437_v9 = vadd.f32 %v12249_v62, %v6243_v29  ;;  %v6098_v16 = vsel %vm12428_vm3, %v6095_v54, %v6092_v50  ;;  %8548 = vlog2.f32 %v6509_v26  ;;  %v6104_v2 = vmul.f32 %v8535_v39, %v6103_v38 }
 0x6e4   : > { %v5757_v23 = vmin.f32 %v12434_v52, 20.0  ;;  %v6170_v21 = vsel %vm5786_vm2, %v12366_v58, %v6098_v16  ;;  %v6508_v56 = vsel %vm6507_vm5, %v6505_v18, %v6502_v24  ;;  %v6514_v4 = vmul.f32 %v8537_v45, %v6513_v37 }
 0x6e5   : > { %v6319_v3 = vmin.f32 %v12437_v9, 20.0  ;;  %6290 = vmatmul.f32.gmra.mxu1 %v6170_v21  ;;  %v6732_v60 = vsel %vm6348_vm4, %v12369_v20, %v6508_v56  ;;  %vm6516_vm9 = vcmp.lt.f32.partialorder %v6515_v57, 0.0004427343  ;;  %vm5789_vm14 = vcmp.gt.f32.partialorder %v12434_v52, 20.0 }
 0x6e6   : > { %v8543_v10 = vpop.eup %8542  ;;  %v5850_v40 = vmul.f32 1.442695, %v5757_v23  ;;  %6814 = vmatmul.f32.gmra.mxu2 %v6732_v60  ;;  %vm6351_vm1 = vcmp.gt.f32.partialorder %v12437_v9, 20.0 }
 0x6e7   : > { %v8545_v28 = vpop.eup %8544  ;;  %v6393_v22 = vmul.f32 1.442695, %v6319_v3  ;;  %v6108_v5 = vadd.f32 1.0, %v8543_v10  ;;  %v6111_v20 = vmul.f32 -0.5, %v8543_v10  ;;  %v6114_v59 = vand.u32 2147483647, %v8543_v10 }
 0x6e8   : > { %v8547_v33 = vpop.eup %8546  ;;  %8550 = vpow2.f32 %v5850_v40  ;;  %v6518_v30 = vadd.f32 1.0, %v8545_v28  ;;  %v6521_v63 = vmul.f32 -0.5, %v8545_v28 }
 0x6e9   : > { %v8549_v55 = vpop.eup %8548  ;;  %8552 = vpow2.f32 %v6393_v22  ;;  %v5722_v15 = vpop.f32.mrf.mxu0  ;;  %v6101_v61 = vmul.f32 0.6931472, %v8547_v33  ;;  %v6112_v17 = vadd.f32 1.0, %v6111_v20  ;;  %vm12475_vm12 = vcmp.lt.f32.partialorder %v6114_v59, 0.0004427343 }
 0x6ea   : > { %v12458_v25 = vadd.f32 %v8668_v32, %v5722_v15  ;;  %v6246_v27 = vpop.f32.mrf.mxu1  ;;  %v6511_v0 = vmul.f32 0.6931472, %v8549_v55  ;;  %8554 = vlog2.f32 %v6108_v5  ;;  %v6522_v53 = vadd.f32 1.0, %v6521_v63 }
 0x6eb   : > { %v12461_v11 = vadd.f32 %v12249_v62, %v6246_v27  ;;  %v6107_v47 = vsel %vm12450_vm7, %v6104_v2, %v6101_v61  ;;  %8556 = vlog2.f32 %v6518_v30  ;;  %v6113_v51 = vmul.f32 %v8543_v10, %v6112_v17 }
 0x6ec   : > { %v5758_v46 = vmin.f32 %v12458_v25, 20.0  ;;  %v6171_v34 = vsel %vm5787_vm6, %v12390_v1, %v6107_v47  ;;  %v6517_v35 = vsel %vm6516_vm9, %v6514_v4, %v6511_v0  ;;  %v6524_v1 = vand.u32 2147483647, %v8545_v28 }
 0x6ed   : > { %v6320_v7 = vmin.f32 %v12461_v11, 20.0  ;;  %6293 = vmatmul.f32.gmra.mxu1 %v6171_v34  ;;  %v6733_v19 = vsel %vm6349_vm8, %v12393_v8, %v6517_v35  ;;  %v6523_v42 = vmul.f32 %v8545_v28, %v6522_v53  ;;  %vm5790_vm2 = vcmp.gt.f32.partialorder %v12458_v25, 20.0 }
 0x6ee   : > { %v8551_v39 = vpop.eup %8550  ;;  %v5852_v44 = vmul.f32 1.442695, %v5758_v46  ;;  %6817 = vmatmul.f32.gmra.mxu2 %v6733_v19  ;;  %vm6525_vm13 = vcmp.lt.f32.partialorder %v6524_v1, 0.0004427343  ;;  %vm6352_vm5 = vcmp.gt.f32.partialorder %v12461_v11, 20.0 }
 0x6ef   : > { %v8553_v49 = vpop.eup %8552  ;;  %v6395_v45 = vmul.f32 1.442695, %v6320_v7  ;;  %v6117_v14 = vadd.f32 1.0, %v8551_v39  ;;  %v6120_v48 = vmul.f32 -0.5, %v8551_v39  ;;  %v6123_v56 = vand.u32 2147483647, %v8551_v39 }
 0x6f0   : > { %v8555_v6 = vpop.eup %8554  ;;  %8558 = vpow2.f32 %v5852_v44  ;;  %v6527_v8 = vadd.f32 1.0, %v8553_v49  ;;  %v6530_v29 = vmul.f32 -0.5, %v8553_v49  ;;  %v6533_v22 = vand.u32 2147483647, %v8553_v49 }
 0x6f1   : > { %v8557_v54 = vpop.eup %8556  ;;  %8560 = vpow2.f32 %v6395_v45  ;;  %v5725_v41 = vpop.f32.mrf.mxu0  ;;  %v6110_v26 = vmul.f32 0.6931472, %v8555_v6  ;;  %v6121_v60 = vadd.f32 1.0, %v6120_v48  ;;  %vm12495_vm15 = vcmp.lt.f32.partialorder %v6123_v56, 0.0004427343 }
 0x6f2   : > { %v12479_v50 = vadd.f32 %v8668_v32, %v5725_v41  ;;  %v6249_v18 = vpop.f32.mrf.mxu1  ;;  %v6520_v31 = vmul.f32 0.6931472, %v8557_v54  ;;  %8562 = vlog2.f32 %v6117_v14  ;;  %v6531_v40 = vadd.f32 1.0, %v6530_v29 }
 0x6f3   : > { %v12482_v24 = vadd.f32 %v12249_v62, %v6249_v18  ;;  %v6116_v16 = vsel %vm12475_vm12, %v6113_v51, %v6110_v26  ;;  %8564 = vlog2.f32 %v6527_v8  ;;  %v6122_v20 = vmul.f32 %v8551_v39, %v6121_v60  ;;  %v12518_v8 = vld [vmem:[%s13018_s18] ss:$0 sm:$0xff] }
 0x6f4   : > { %v5759_v12 = vmin.f32 %v12479_v50, 20.0  ;;  %v6172_v23 = vsel %vm5788_vm10, %v12412_v13, %v6116_v16  ;;  %v6526_v21 = vsel %vm6525_vm13, %v6523_v42, %v6520_v31  ;;  %v6532_v61 = vmul.f32 %v8553_v49, %v6531_v40 }
 0x6f5   : > { %v6321_v38 = vmin.f32 %v12482_v24, 20.0  ;;  %6296 = vmatmul.f32.gmra.mxu1 %v6172_v23  ;;  %v6734_v3 = vsel %vm6350_vm11, %v12415_v43, %v6526_v21  ;;  %vm6534_vm0 = vcmp.lt.f32.partialorder %v6533_v22, 0.0004427343  ;;  %vm5791_vm7 = vcmp.gt.f32.partialorder %v12479_v50, 20.0 }
 0x6f6   : > { %v8559_v37 = vpop.eup %8558  ;;  %v5854_v10 = vmul.f32 1.442695, %v5759_v12  ;;  %6820 = vmatmul.f32.gmra.mxu2 %v6734_v3  ;;  %vm6353_vm9 = vcmp.gt.f32.partialorder %v12482_v24, 20.0 }
 0x6f7   : > { %v8561_v57 = vpop.eup %8560  ;;  %v6397_v28 = vmul.f32 1.442695, %v6321_v38  ;;  %v6126_v58 = vadd.f32 1.0, %v8559_v37  ;;  %v6129_v30 = vmul.f32 -0.5, %v8559_v37  ;;  %v6132_v47 = vand.u32 2147483647, %v8559_v37 }
 0x6f8   : > { %v8563_v5 = vpop.eup %8562  ;;  %8566 = vpow2.f32 %v5854_v10  ;;  %v6536_v33 = vadd.f32 1.0, %v8561_v57  ;;  %v6539_v4 = vmul.f32 -0.5, %v8561_v57  ;;  %v6542_v19 = vand.u32 2147483647, %v8561_v57 }
 0x6f9   : > { %v8565_v2 = vpop.eup %8564  ;;  %8568 = vpow2.f32 %v6397_v28  ;;  %v6119_v43 = vmul.f32 0.6931472, %v8563_v5  ;;  %vm12511_vm3 = vcmp.lt.f32.partialorder %v6132_v47, 0.0004427343 }
 0x6fa   : > { %v6252_v55 = vpop.f32.mrf.mxu1  ;;  %v6529_v15 = vmul.f32 0.6931472, %v8565_v2  ;;  %8570 = vlog2.f32 %v6126_v58  ;;  %v6540_v35 = vadd.f32 1.0, %v6539_v4  ;;  %vm6543_vm4 = vcmp.lt.f32.partialorder %v6542_v19, 0.0004427343 }
 0x6fb   : > { %v12500_v63 = vadd.f32 %v12249_v62, %v6252_v55  ;;  %v6125_v32 = vsel %vm12495_vm15, %v6122_v20, %v6119_v43  ;;  %8572 = vlog2.f32 %v6536_v33  ;;  %v6130_v62 = vadd.f32 1.0, %v6129_v30 }
 0x6fc   : > { %v6173_v27 = vsel %vm5789_vm14, %v12434_v52, %v6125_v32  ;;  %v6535_v0 = vsel %vm6534_vm0, %v6532_v61, %v6529_v15  ;;  %v6541_v51 = vmul.f32 %v8561_v57, %v6540_v35 }
 0x6fd   : > { %v6322_v59 = vmin.f32 %v12500_v63, 20.0  ;;  %6299 = vmatmul.f32.gmra.mxu1 %v6173_v27  ;;  %v6735_v46 = vsel %vm6351_vm1, %v12437_v9, %v6535_v0  ;;  %v6131_v9 = vmul.f32 %v8559_v37, %v6130_v62  ;;  %vm6354_vm11 = vcmp.gt.f32.partialorder %v12500_v63, 20.0 }
 0x6fe   : > { %v8567_v34 = vpop.eup %8566  ;;  %6823 = vmatmul.f32.gmra.mxu2 %v6735_v46 }
 0x6ff   : > { %v8569_v17 = vpop.eup %8568  ;;  %v6399_v7 = vmul.f32 1.442695, %v6322_v59  ;;  %v6135_v53 = vadd.f32 1.0, %v8567_v34  ;;  %v6138_v1 = vmul.f32 -0.5, %v8567_v34  ;;  %v6141_v29 = vand.u32 2147483647, %v8567_v34 }
 0x700   : > { %v8571_v39 = vpop.eup %8570  ;;  %v6545_v44 = vadd.f32 1.0, %v8569_v17  ;;  %v6548_v36 = vmul.f32 -0.5, %v8569_v17  ;;  %v6551_v21 = vand.u32 2147483647, %v8569_v17 }
 0x701   : > { %v8573_v49 = vpop.eup %8572  ;;  %8574 = vpow2.f32 %v6399_v7  ;;  %v6128_v45 = vmul.f32 0.6931472, %v8571_v39  ;;  %v6139_v31 = vadd.f32 1.0, %v6138_v1  ;;  %vm6142_vm6 = vcmp.lt.f32.partialorder %v6141_v29, 0.0004427343 }
 0x702   : > { %v6255_v14 = vpop.f32.mrf.mxu1  ;;  %v6538_v6 = vmul.f32 0.6931472, %v8573_v49  ;;  %8576 = vlog2.f32 %v6135_v53  ;;  %v6549_v16 = vadd.f32 1.0, %v6548_v36  ;;  %vm6552_vm8 = vcmp.lt.f32.partialorder %v6551_v21, 0.0004427343 }
 0x703   : > { %v12521_v54 = vadd.f32 %v12518_v8, %v6255_v14  ;;  %v6134_v41 = vsel %vm12511_vm3, %v6131_v9, %v6128_v45  ;;  %8578 = vlog2.f32 %v6545_v44  ;;  %v6140_v60 = vmul.f32 %v8567_v34, %v6139_v31 }
 0x704   : > { %v6174_v26 = vsel %vm5790_vm2, %v12458_v25, %v6134_v41  ;;  %v6544_v42 = vsel %vm6543_vm4, %v6541_v51, %v6538_v6  ;;  %v6550_v57 = vmul.f32 %v8569_v17, %v6549_v16  ;;  %v12560_v16 = vld [vmem:[%s13041_s16] ss:$0 sm:$0xff]  ;;  %s6937_s16 = sshll.u32 %s6934_s2, 4  ;;  %s6938_s16 = int_to_ptr.hbm [resolvable:$true] %s6937_s16 }
 0x705   : > { %v6323_v48 = vmin.f32 %v12521_v54, 20.0  ;;  %6302 = vmatmul.f32.gmra.mxu1 %v6174_v26  ;;  %v6736_v18 = vsel %vm6352_vm5, %v12461_v11, %v6544_v42  ;;  %vm6355_vm13 = vcmp.gt.f32.partialorder %v12521_v54, 20.0  ;;  %s9044_s7 = sshra.s32 %s6938_s16, 4  ;;  %s9045_s7 = int_to_ptr.hbm [resolvable:$true] %s9044_s7 }
 0x706   : > { %6826 = vmatmul.f32.gmra.mxu2 %v6736_v18  ;;  %s9046_s6 = scalar_lea.hbm %s9045_s7, 256  ;;  %p9051_p12 = scmp.lt.s32.totalorder %s9045_s7, %s13042_s13 }
 0x707   : > { %v8575_v12 = vpop.eup %8574  ;;  %v6401_v23 = vmul.f32 1.442695, %v6323_v48  ;;  %p9047_p1 = scmp.ne.s32.totalorder %s9045_s7, %s9046_s6  ;;  %p9052_p8 = scmp.lt.s32.totalorder %s9050_s11, %s9046_s6 }
 0x708   : > { %v8577_v56 = vpop.eup %8576  ;;  %v6554_v38 = vadd.f32 1.0, %v8575_v12  ;;  %v6557_v37 = vmul.f32 -0.5, %v8575_v12  ;;  %v6560_v2 = vand.u32 2147483647, %v8575_v12 }
 0x709   : > { %v8579_v3 = vpop.eup %8578  ;;  %8580 = vpow2.f32 %v6401_v23  ;;  %v6137_v25 = vmul.f32 0.6931472, %v8577_v56  ;;  %p9048_p3 = pnand %p9047_p1, %p9406_p13  ;;  %p9053_p7 = por %p9052_p8, %p9051_p12 }
 0x70a   : > { %v6258_v10 = vpop.f32.mrf.mxu1  ;;  %v6547_v40 = vmul.f32 0.6931472, %v8579_v3  ;;  %8582 = vlog2.f32 %v6554_v38  ;;  %v6558_v33 = vadd.f32 1.0, %v6557_v37  ;;  %vm6561_vm10 = vcmp.lt.f32.partialorder %v6560_v2, 0.0004427343 }
 0x70b   : > { %v12532_v11 = vadd.f32 %v12518_v8, %v6258_v10  ;;  %v6143_v28 = vsel %vm6142_vm6, %v6140_v60, %v6137_v25  ;;  %p9049_p5 = pneg %p9048_p3 }
 0x70c   : > { %v6175_v22 = vsel %vm5791_vm7, %v12479_v50, %v6143_v28  ;;  %v6553_v58 = vsel %vm6552_vm8, %v6550_v57, %v6547_v40  ;;  %v6559_v61 = vmul.f32 %v8575_v12, %v6558_v33 }
 0x70d   : > { %v6324_v5 = vmin.f32 %v12532_v11, 20.0  ;;  %6305 = vmatmul.f32.gmra.mxu1 %v6175_v22  ;;  %v6737_v13 = vsel %vm6353_vm9, %v12482_v24, %v6553_v58  ;;  %vm6356_vm15 = vcmp.gt.f32.partialorder %v12532_v11, 20.0  ;;  %p9054_p9 = pnand %p9053_p7, %p9049_p5 }
 0x70e   : > { %6829 = vmatmul.f32.gmra.mxu2 %v6737_v13 }
 0x70f   : > { %v8581_v43 = vpop.eup %8580  ;;  %v6403_v20 = vmul.f32 1.442695, %v6324_v5 }
 0x710   : > { %v8583_v30 = vpop.eup %8582  ;;  %v6563_v55 = vadd.f32 1.0, %v8581_v43  ;;  %v6566_v4 = vmul.f32 -0.5, %v8581_v43  ;;  %v6569_v59 = vand.u32 2147483647, %v8581_v43 }
 0x711   : > { %8584 = vpow2.f32 %v6403_v20  ;;  %v6556_v15 = vmul.f32 0.6931472, %v8583_v30 }
 0x712   : > { %v6261_v50 = vpop.f32.mrf.mxu1  ;;  %8586 = vlog2.f32 %v6563_v55  ;;  %v6567_v47 = vadd.f32 1.0, %v6566_v4  ;;  %vm6570_vm12 = vcmp.lt.f32.partialorder %v6569_v59, 0.0004427343 }
 0x713   : > { %v12540_v32 = vadd.f32 %v12518_v8, %v6261_v50  ;;  %v6562_v24 = vsel %vm6561_vm10, %v6559_v61, %v6556_v15 }
 0x714   : > { %v6738_v27 = vsel %vm6354_vm11, %v12500_v63, %v6562_v24  ;;  %v6568_v7 = vmul.f32 %v8581_v43, %v6567_v47 }
 0x715   : > { %v6325_v0 = vmin.f32 %v12540_v32, 20.0  ;;  %vm6357_vm1 = vcmp.gt.f32.partialorder %v12540_v32, 20.0 }
 0x716   : > { %6832 = vmatmul.f32.gmra.mxu2 %v6738_v27 }
 0x717   : > { %v8585_v46 = vpop.eup %8584  ;;  %v6405_v62 = vmul.f32 1.442695, %v6325_v0 }
 0x718   : > { %v8587_v34 = vpop.eup %8586  ;;  %v6572_v35 = vadd.f32 1.0, %v8585_v46  ;;  %v6575_v19 = vmul.f32 -0.5, %v8585_v46  ;;  %v6578_v45 = vand.u32 2147483647, %v8585_v46 }
 0x719   : > { %8588 = vpow2.f32 %v6405_v62  ;;  %v6565_v17 = vmul.f32 0.6931472, %v8587_v34 }
 0x71a   : > { %v6264_v53 = vpop.f32.mrf.mxu1  ;;  %8590 = vlog2.f32 %v6572_v35  ;;  %v6576_v49 = vadd.f32 1.0, %v6575_v19  ;;  %vm6579_vm14 = vcmp.lt.f32.partialorder %v6578_v45, 0.0004427343 }
 0x71b   : > { %v12546_v39 = vadd.f32 %v12518_v8, %v6264_v53  ;;  %v6571_v63 = vsel %vm6570_vm12, %v6568_v7, %v6565_v17 }
 0x71c   : > { %v6739_v52 = vsel %vm6355_vm13, %v12521_v54, %v6571_v63  ;;  %v6577_v36 = vmul.f32 %v8585_v46, %v6576_v49 }
 0x71d   : > { %v6326_v44 = vmin.f32 %v12546_v39, 20.0  ;;  %vm6358_vm3 = vcmp.gt.f32.partialorder %v12546_v39, 20.0 }
 0x71e   : > { %6835 = vmatmul.f32.gmra.mxu2 %v6739_v52 }
 0x71f   : > { %v8589_v9 = vpop.eup %8588  ;;  %v6407_v1 = vmul.f32 1.442695, %v6326_v44 }
 0x720   : > { %v8591_v14 = vpop.eup %8590  ;;  %v6581_v6 = vadd.f32 1.0, %v8589_v9  ;;  %v6584_v41 = vmul.f32 -0.5, %v8589_v9  ;;  %v6587_v29 = vand.u32 2147483647, %v8589_v9 }
 0x721   : > { %8592 = vpow2.f32 %v6407_v1  ;;  %v6574_v51 = vmul.f32 0.6931472, %v8591_v14 }
 0x722   : > { %v6267_v26 = vpop.f32.mrf.mxu1  ;;  %8594 = vlog2.f32 %v6581_v6  ;;  %v6585_v31 = vadd.f32 1.0, %v6584_v41  ;;  %vm6588_vm0 = vcmp.lt.f32.partialorder %v6587_v29, 0.0004427343 }
 0x723   : > { %v12552_v42 = vadd.f32 %v12518_v8, %v6267_v26  ;;  %v6580_v54 = vsel %vm6579_vm14, %v6577_v36, %v6574_v51 }
 0x724   : > { %v6740_v48 = vsel %vm6356_vm15, %v12532_v11, %v6580_v54  ;;  %v6586_v3 = vmul.f32 %v8589_v9, %v6585_v31 }
 0x725   : > { %v6327_v18 = vmin.f32 %v12552_v42, 20.0  ;;  %vm6359_vm5 = vcmp.gt.f32.partialorder %v12552_v42, 20.0 }
 0x726   : > { %6838 = vmatmul.f32.gmra.mxu2 %v6740_v48 }
 0x727   : > { %v8593_v12 = vpop.eup %8592  ;;  %v6409_v23 = vmul.f32 1.442695, %v6327_v18 }
 0x728   : > { %v8595_v21 = vpop.eup %8594  ;;  %v6590_v56 = vadd.f32 1.0, %v8593_v12  ;;  %v6593_v60 = vmul.f32 -0.5, %v8593_v12  ;;  %v6596_v58 = vand.u32 2147483647, %v8593_v12 }
 0x729   : > { %8596 = vpow2.f32 %v6409_v23  ;;  %v6583_v38 = vmul.f32 0.6931472, %v8595_v21  ;;  %v6794_v25 = vpop.f32.mrf.mxu2 }
 0x72a   : > { %v6270_v37 = vpop.f32.mrf.mxu1  ;;  %v6795_v10 = vadd.f32 %v12560_v16, %v6794_v25  ;;  %8598 = vlog2.f32 %v6590_v56  ;;  %v6594_v22 = vadd.f32 1.0, %v6593_v60  ;;  %vm6597_vm2 = vcmp.lt.f32.partialorder %v6596_v58, 0.0004427343 }
 0x72b   : > { %v12564_v40 = vadd.f32 %v12518_v8, %v6270_v37  ;;  %v6589_v57 = vsel %vm6588_vm0, %v6586_v3, %v6583_v38 }
 0x72c   : > { %v6741_v11 = vsel %vm6357_vm1, %v12540_v32, %v6589_v57  ;;  %6890 = vst [vmem:[%s12570_s1] sm:$0xff] %v6795_v10  ;;  %v6595_v20 = vmul.f32 %v8593_v12, %v6594_v22 }
 0x72d   : > { %v6328_v28 = vmin.f32 %v12564_v40, 20.0  ;;  %vm6360_vm7 = vcmp.gt.f32.partialorder %v12564_v40, 20.0 }
 0x72e   : > { %6841 = vmatmul.f32.gmra.mxu2 %v6741_v11 }
 0x72f   : > { %v8597_v5 = vpop.eup %8596  ;;  %v6411_v13 = vmul.f32 1.442695, %v6328_v28 }
 0x730   : > { %v8599_v33 = vpop.eup %8598  ;;  %v6599_v2 = vadd.f32 1.0, %v8597_v5  ;;  %v6602_v55 = vmul.f32 -0.5, %v8597_v5  ;;  %v6605_v0 = vand.u32 2147483647, %v8597_v5 }
 0x731   : > { %8600 = vpow2.f32 %v6411_v13  ;;  %v6592_v43 = vmul.f32 0.6931472, %v8599_v33  ;;  %v6797_v30 = vpop.f32.mrf.mxu2 }
 0x732   : > { %v6273_v15 = vpop.f32.mrf.mxu1  ;;  %v6798_v61 = vadd.f32 %v12560_v16, %v6797_v30  ;;  %8602 = vlog2.f32 %v6599_v2  ;;  %v6603_v27 = vadd.f32 1.0, %v6602_v55  ;;  %vm6606_vm4 = vcmp.lt.f32.partialorder %v6605_v0, 0.0004427343 }
 0x733   : > { %v12576_v4 = vadd.f32 %v12518_v8, %v6273_v15  ;;  %v6598_v50 = vsel %vm6597_vm2, %v6595_v20, %v6592_v43 }
 0x734   : > { %v6742_v32 = vsel %vm6358_vm3, %v12546_v39, %v6598_v50  ;;  %6891 = vst [vmem:[%s12570_s1 + $0x8] sm:$0xff] %v6798_v61  ;;  %v6604_v35 = vmul.f32 %v8597_v5, %v6603_v27 }
 0x735   : > { %v6329_v24 = vmin.f32 %v12576_v4, 20.0  ;;  %vm6361_vm9 = vcmp.gt.f32.partialorder %v12576_v4, 20.0 }
 0x736   : > { %6844 = vmatmul.f32.gmra.mxu2 %v6742_v32 }
 0x737   : > { %v8601_v47 = vpop.eup %8600  ;;  %v6413_v59 = vmul.f32 1.442695, %v6329_v24 }
 0x738   : > { %v8603_v46 = vpop.eup %8602  ;;  %v6608_v62 = vadd.f32 1.0, %v8601_v47  ;;  %v6611_v7 = vmul.f32 -0.5, %v8601_v47  ;;  %v6614_v45 = vand.u32 2147483647, %v8601_v47 }
 0x739   : > { %8604 = vpow2.f32 %v6413_v59  ;;  %v6601_v34 = vmul.f32 0.6931472, %v8603_v46  ;;  %v6800_v17 = vpop.f32.mrf.mxu2 }
 0x73a   : > { %v6276_v19 = vpop.f32.mrf.mxu1  ;;  %v6801_v53 = vadd.f32 %v12560_v16, %v6800_v17  ;;  %8606 = vlog2.f32 %v6608_v62  ;;  %v6612_v49 = vadd.f32 1.0, %v6611_v7  ;;  %vm6615_vm6 = vcmp.lt.f32.partialorder %v6614_v45, 0.0004427343 }
 0x73b   : > { %v12584_v39 = vadd.f32 %v12518_v8, %v6276_v19  ;;  %v6607_v63 = vsel %vm6606_vm4, %v6604_v35, %v6601_v34 }
 0x73c   : > { %v6743_v52 = vsel %vm6359_vm5, %v12552_v42, %v6607_v63  ;;  %6892 = vst [vmem:[%s12570_s1 + $0x10] sm:$0xff] %v6801_v53  ;;  %v6613_v36 = vmul.f32 %v8601_v47, %v6612_v49 }
 0x73d   : > { %v6330_v44 = vmin.f32 %v12584_v39, 20.0  ;;  %vm6362_vm11 = vcmp.gt.f32.partialorder %v12584_v39, 20.0 }
 0x73e   : > { %6847 = vmatmul.f32.gmra.mxu2 %v6743_v52 }
 0x73f   : > { %v8605_v9 = vpop.eup %8604  ;;  %v6415_v1 = vmul.f32 1.442695, %v6330_v44 }
 0x740   : > { %v8607_v14 = vpop.eup %8606  ;;  %v6617_v6 = vadd.f32 1.0, %v8605_v9  ;;  %v6620_v26 = vmul.f32 -0.5, %v8605_v9  ;;  %v6623_v23 = vand.u32 2147483647, %v8605_v9 }
 0x741   : > { %8608 = vpow2.f32 %v6415_v1  ;;  %v6610_v51 = vmul.f32 0.6931472, %v8607_v14  ;;  %v6803_v41 = vpop.f32.mrf.mxu2 }
 0x742   : > { %v6279_v54 = vpop.f32.mrf.mxu1  ;;  %v6804_v42 = vadd.f32 %v12560_v16, %v6803_v41  ;;  %8610 = vlog2.f32 %v6617_v6  ;;  %v6621_v12 = vadd.f32 1.0, %v6620_v26  ;;  %vm6624_vm8 = vcmp.lt.f32.partialorder %v6623_v23, 0.0004427343 }
 0x743   : > { %v12592_v48 = vadd.f32 %v12518_v8, %v6279_v54  ;;  %v6616_v18 = vsel %vm6615_vm6, %v6613_v36, %v6610_v51 }
 0x744   : > { %v6744_v31 = vsel %vm6360_vm7, %v12564_v40, %v6616_v18  ;;  %6893 = vst [vmem:[%s12570_s1 + $0x18] sm:$0xff] %v6804_v42  ;;  %v6622_v60 = vmul.f32 %v8605_v9, %v6621_v12 }
 0x745   : > { %v6331_v29 = vmin.f32 %v12592_v48, 20.0  ;;  %vm6363_vm13 = vcmp.gt.f32.partialorder %v12592_v48, 20.0 }
 0x746   : > { %6850 = vmatmul.f32.gmra.mxu2 %v6744_v31 }
 0x747   : > { %v8609_v21 = vpop.eup %8608  ;;  %v6417_v56 = vmul.f32 1.442695, %v6331_v29 }
 0x748   : > { %v8611_v38 = vpop.eup %8610  ;;  %v6626_v3 = vadd.f32 1.0, %v8609_v21  ;;  %v6629_v37 = vmul.f32 -0.5, %v8609_v21  ;;  %v6632_v58 = vand.u32 2147483647, %v8609_v21 }
 0x749   : > { %8612 = vpow2.f32 %v6417_v56  ;;  %v6619_v25 = vmul.f32 0.6931472, %v8611_v38 }
 0x74a   : > { %v6282_v10 = vpop.f32.mrf.mxu1  ;;  %8614 = vlog2.f32 %v6626_v3  ;;  %v6630_v22 = vadd.f32 1.0, %v6629_v37  ;;  %vm6633_vm10 = vcmp.lt.f32.partialorder %v6632_v58, 0.0004427343 }
 0x74b   : > { %v12599_v57 = vadd.f32 %v12518_v8, %v6282_v10  ;;  %v6625_v40 = vsel %vm6624_vm8, %v6622_v60, %v6619_v25 }
 0x74c   : > { %v6745_v11 = vsel %vm6361_vm9, %v12576_v4, %v6625_v40  ;;  %v6631_v30 = vmul.f32 %v8609_v21, %v6630_v22 }
 0x74d   : > { %v6332_v28 = vmin.f32 %v12599_v57, 20.0  ;;  %vm6364_vm15 = vcmp.gt.f32.partialorder %v12599_v57, 20.0 }
 0x74e   : > { %6853 = vmatmul.f32.gmra.mxu2 %v6745_v11 }
 0x74f   : > { %v8613_v5 = vpop.eup %8612  ;;  %v6419_v13 = vmul.f32 1.442695, %v6332_v28 }
 0x750   : > { %v8615_v33 = vpop.eup %8614  ;;  %v6635_v2 = vadd.f32 1.0, %v8613_v5  ;;  %v6638_v55 = vmul.f32 -0.5, %v8613_v5  ;;  %v6641_v0 = vand.u32 2147483647, %v8613_v5 }
 0x751   : > { %8616 = vpow2.f32 %v6419_v13  ;;  %v6806_v43 = vpop.f32.mrf.mxu2  ;;  %v6628_v20 = vmul.f32 0.6931472, %v8615_v33 }
 0x752   : > { %v6807_v15 = vadd.f32 %v12560_v16, %v6806_v43  ;;  %v6285_v61 = vpop.f32.mrf.mxu1  ;;  %8618 = vlog2.f32 %v6635_v2  ;;  %v6639_v27 = vadd.f32 1.0, %v6638_v55  ;;  %vm6642_vm12 = vcmp.lt.f32.partialorder %v6641_v0, 0.0004427343 }
 0x753   : > { %v12606_v4 = vadd.f32 %v12518_v8, %v6285_v61  ;;  %v6634_v50 = vsel %vm6633_vm10, %v6631_v30, %v6628_v20 }
 0x754   : > { %6894 = vst [vmem:[%s12570_s1 + $0x20] sm:$0xff] %v6807_v15  ;;  %v6746_v32 = vsel %vm6362_vm11, %v12584_v39, %v6634_v50  ;;  %v6640_v17 = vmul.f32 %v8613_v5, %v6639_v27 }
 0x755   : > { %v6333_v24 = vmin.f32 %v12606_v4, 20.0  ;;  %vm6365_vm1 = vcmp.gt.f32.partialorder %v12606_v4, 20.0 }
 0x756   : > { %6856 = vmatmul.f32.gmra.mxu2 %v6746_v32 }
 0x757   : > { %v8617_v47 = vpop.eup %8616  ;;  %v6421_v59 = vmul.f32 1.442695, %v6333_v24 }
 0x758   : > { %v8619_v46 = vpop.eup %8618  ;;  %v6644_v62 = vadd.f32 1.0, %v8617_v47  ;;  %v6647_v7 = vmul.f32 -0.5, %v8617_v47  ;;  %v6650_v45 = vand.u32 2147483647, %v8617_v47 }
 0x759   : > { %8620 = vpow2.f32 %v6421_v59  ;;  %v6809_v34 = vpop.f32.mrf.mxu2  ;;  %v6637_v35 = vmul.f32 0.6931472, %v8619_v46 }
 0x75a   : > { %v6810_v19 = vadd.f32 %v12560_v16, %v6809_v34  ;;  %v6288_v53 = vpop.f32.mrf.mxu1  ;;  %8622 = vlog2.f32 %v6644_v62  ;;  %v6648_v49 = vadd.f32 1.0, %v6647_v7  ;;  %vm6651_vm14 = vcmp.lt.f32.partialorder %v6650_v45, 0.0004427343 }
 0x75b   : > { %v12614_v39 = vadd.f32 %v12518_v8, %v6288_v53  ;;  %v6643_v63 = vsel %vm6642_vm12, %v6640_v17, %v6637_v35 }
 0x75c   : > { %6895 = vst [vmem:[%s12570_s1 + $0x28] sm:$0xff] %v6810_v19  ;;  %v6747_v52 = vsel %vm6363_vm13, %v12592_v48, %v6643_v63  ;;  %v6649_v41 = vmul.f32 %v8617_v47, %v6648_v49 }
 0x75d   : > { %v6334_v44 = vmin.f32 %v12614_v39, 20.0  ;;  %vm6366_vm3 = vcmp.gt.f32.partialorder %v12614_v39, 20.0 }
 0x75e   : > { %6859 = vmatmul.f32.gmra.mxu2 %v6747_v52 }
 0x75f   : > { %v8621_v9 = vpop.eup %8620  ;;  %v6423_v1 = vmul.f32 1.442695, %v6334_v44 }
 0x760   : > { %v8623_v14 = vpop.eup %8622  ;;  %v6653_v6 = vadd.f32 1.0, %v8621_v9  ;;  %v6656_v26 = vmul.f32 -0.5, %v8621_v9  ;;  %v6659_v23 = vand.u32 2147483647, %v8621_v9 }
 0x761   : > { %8624 = vpow2.f32 %v6423_v1  ;;  %v6812_v51 = vpop.f32.mrf.mxu2  ;;  %v6646_v36 = vmul.f32 0.6931472, %v8623_v14 }
 0x762   : > { %v6813_v54 = vadd.f32 %v12560_v16, %v6812_v51  ;;  %v6291_v42 = vpop.f32.mrf.mxu1  ;;  %8626 = vlog2.f32 %v6653_v6  ;;  %v6657_v12 = vadd.f32 1.0, %v6656_v26  ;;  %vm6660_vm0 = vcmp.lt.f32.partialorder %v6659_v23, 0.0004427343 }
 0x763   : > { %v12622_v48 = vadd.f32 %v12518_v8, %v6291_v42  ;;  %v6652_v18 = vsel %vm6651_vm14, %v6649_v41, %v6646_v36 }
 0x764   : > { %6896 = vst [vmem:[%s12570_s1 + $0x30] sm:$0xff] %v6813_v54  ;;  %v6748_v31 = vsel %vm6364_vm15, %v12599_v57, %v6652_v18  ;;  %v6658_v37 = vmul.f32 %v8621_v9, %v6657_v12 }
 0x765   : > { %v6335_v29 = vmin.f32 %v12622_v48, 20.0  ;;  %vm6367_vm5 = vcmp.gt.f32.partialorder %v12622_v48, 20.0 }
 0x766   : > { %6862 = vmatmul.f32.gmra.mxu2 %v6748_v31 }
 0x767   : > { %v8625_v21 = vpop.eup %8624  ;;  %v6425_v56 = vmul.f32 1.442695, %v6335_v29 }
 0x768   : > { %v8627_v38 = vpop.eup %8626  ;;  %v6662_v3 = vadd.f32 1.0, %v8625_v21  ;;  %v6665_v10 = vmul.f32 -0.5, %v8625_v21  ;;  %v6668_v13 = vand.u32 2147483647, %v8625_v21 }
 0x769   : > { %8628 = vpow2.f32 %v6425_v56  ;;  %v6815_v25 = vpop.f32.mrf.mxu2  ;;  %v6655_v60 = vmul.f32 0.6931472, %v8627_v38 }
 0x76a   : > { %v6816_v40 = vadd.f32 %v12560_v16, %v6815_v25  ;;  %v6294_v11 = vpop.f32.mrf.mxu1  ;;  %8630 = vlog2.f32 %v6662_v3  ;;  %v6666_v5 = vadd.f32 1.0, %v6665_v10  ;;  %vm6669_vm2 = vcmp.lt.f32.partialorder %v6668_v13, 0.0004427343 }
 0x76b   : > { %v12630_v57 = vadd.f32 %v12518_v8, %v6294_v11  ;;  %v6661_v28 = vsel %vm6660_vm0, %v6658_v37, %v6655_v60 }
 0x76c   : > { %6897 = vst [vmem:[%s12570_s1 + $0x38] sm:$0xff] %v6816_v40  ;;  %v6749_v22 = vsel %vm6365_vm1, %v12606_v4, %v6661_v28  ;;  %v6667_v15 = vmul.f32 %v8625_v21, %v6666_v5 }
 0x76d   : > { %v6336_v58 = vmin.f32 %v12630_v57, 20.0  ;;  %vm6368_vm7 = vcmp.gt.f32.partialorder %v12630_v57, 20.0 }
 0x76e   : > { %6865 = vmatmul.f32.gmra.mxu2 %v6749_v22 }
 0x76f   : > { %v8629_v33 = vpop.eup %8628  ;;  %v6427_v2 = vmul.f32 1.442695, %v6336_v58 }
 0x770   : > { %v8631_v43 = vpop.eup %8630  ;;  %v6671_v20 = vadd.f32 1.0, %v8629_v33  ;;  %v6674_v61 = vmul.f32 -0.5, %v8629_v33  ;;  %v6677_v59 = vand.u32 2147483647, %v8629_v33 }
 0x771   : > { %8632 = vpow2.f32 %v6427_v2  ;;  %v6818_v30 = vpop.f32.mrf.mxu2  ;;  %v6664_v55 = vmul.f32 0.6931472, %v8631_v43 }
 0x772   : > { %v6819_v50 = vadd.f32 %v12560_v16, %v6818_v30  ;;  %v6297_v32 = vpop.f32.mrf.mxu1  ;;  %8634 = vlog2.f32 %v6671_v20  ;;  %v6675_v47 = vadd.f32 1.0, %v6674_v61  ;;  %vm6678_vm4 = vcmp.lt.f32.partialorder %v6677_v59, 0.0004427343 }
 0x773   : > { %v12638_v4 = vadd.f32 %v12518_v8, %v6297_v32  ;;  %v6670_v24 = vsel %vm6669_vm2, %v6667_v15, %v6664_v55 }
 0x774   : > { %6898 = vst [vmem:[%s12570_s1 + $0x40] sm:$0xff] %v6819_v50  ;;  %v6750_v27 = vsel %vm6366_vm3, %v12614_v39, %v6670_v24  ;;  %v6676_v19 = vmul.f32 %v8629_v33, %v6675_v47 }
 0x775   : > { %v6337_v0 = vmin.f32 %v12638_v4, 20.0  ;;  %vm6369_vm9 = vcmp.gt.f32.partialorder %v12638_v4, 20.0 }
 0x776   : > { %6868 = vmatmul.f32.gmra.mxu2 %v6750_v27 }
 0x777   : > { %v8633_v46 = vpop.eup %8632  ;;  %v6429_v62 = vmul.f32 1.442695, %v6337_v0 }
 0x778   : > { %v8635_v34 = vpop.eup %8634  ;;  %v6680_v35 = vadd.f32 1.0, %v8633_v46  ;;  %v6683_v53 = vmul.f32 -0.5, %v8633_v46  ;;  %v6686_v1 = vand.u32 2147483647, %v8633_v46 }
 0x779   : > { %8636 = vpow2.f32 %v6429_v62  ;;  %v6821_v17 = vpop.f32.mrf.mxu2  ;;  %v6673_v7 = vmul.f32 0.6931472, %v8635_v34 }
 0x77a   : > { %v6822_v63 = vadd.f32 %v12560_v16, %v6821_v17  ;;  %v6300_v52 = vpop.f32.mrf.mxu1  ;;  %8638 = vlog2.f32 %v6680_v35  ;;  %v6684_v9 = vadd.f32 1.0, %v6683_v53  ;;  %vm6687_vm6 = vcmp.lt.f32.partialorder %v6686_v1, 0.0004427343 }
 0x77b   : > { %v12646_v39 = vadd.f32 %v12518_v8, %v6300_v52  ;;  %v6679_v44 = vsel %vm6678_vm4, %v6676_v19, %v6673_v7 }
 0x77c   : > { %6899 = vst [vmem:[%s12570_s1 + $0x48] sm:$0xff] %v6822_v63  ;;  %v6751_v49 = vsel %vm6367_vm5, %v12622_v48, %v6679_v44  ;;  %v6685_v54 = vmul.f32 %v8633_v46, %v6684_v9 }
 0x77d   : > { %v6338_v45 = vmin.f32 %v12646_v39, 20.0  ;;  %vm6370_vm11 = vcmp.gt.f32.partialorder %v12646_v39, 20.0 }
 0x77e   : > { %6871 = vmatmul.f32.gmra.mxu2 %v6751_v49 }
 0x77f   : > { %v8637_v14 = vpop.eup %8636  ;;  %v6431_v6 = vmul.f32 1.442695, %v6338_v45 }
 0x780   : > { %v8639_v51 = vpop.eup %8638  ;;  %v6689_v36 = vadd.f32 1.0, %v8637_v14  ;;  %v6692_v42 = vmul.f32 -0.5, %v8637_v14  ;;  %v6695_v56 = vand.u32 2147483647, %v8637_v14 }
 0x781   : > { %8640 = vpow2.f32 %v6431_v6  ;;  %v6824_v41 = vpop.f32.mrf.mxu2  ;;  %v6682_v26 = vmul.f32 0.6931472, %v8639_v51 }
 0x782   : > { %v6825_v18 = vadd.f32 %v12560_v16, %v6824_v41  ;;  %v6303_v31 = vpop.f32.mrf.mxu1  ;;  %8642 = vlog2.f32 %v6689_v36  ;;  %v6693_v21 = vadd.f32 1.0, %v6692_v42  ;;  %vm6696_vm8 = vcmp.lt.f32.partialorder %v6695_v56, 0.0004427343 }
 0x783   : > { %v12654_v48 = vadd.f32 %v12518_v8, %v6303_v31  ;;  %v6688_v29 = vsel %vm6687_vm6, %v6685_v54, %v6682_v26 }
 0x784   : > { %6900 = vst [vmem:[%s12570_s1 + $0x50] sm:$0xff] %v6825_v18  ;;  %v6752_v12 = vsel %vm6368_vm7, %v12630_v57, %v6688_v29  ;;  %v6694_v40 = vmul.f32 %v8637_v14, %v6693_v21 }
 0x785   : > { %v6339_v23 = vmin.f32 %v12654_v48, 20.0  ;;  %vm6371_vm13 = vcmp.gt.f32.partialorder %v12654_v48, 20.0 }
 0x786   : > { %6874 = vmatmul.f32.gmra.mxu2 %v6752_v12 }
 0x787   : > { %v8641_v38 = vpop.eup %8640  ;;  %v6433_v3 = vmul.f32 1.442695, %v6339_v23 }
 0x788   : > { %v8643_v25 = vpop.eup %8642  ;;  %v6698_v60 = vadd.f32 1.0, %v8641_v38  ;;  %v6701_v11 = vmul.f32 -0.5, %v8641_v38  ;;  %v6704_v2 = vand.u32 2147483647, %v8641_v38 }
 0x789   : > { %8644 = vpow2.f32 %v6433_v3  ;;  %v6827_v37 = vpop.f32.mrf.mxu2  ;;  %v6691_v10 = vmul.f32 0.6931472, %v8643_v25 }
 0x78a   : > { %v6828_v28 = vadd.f32 %v12560_v16, %v6827_v37  ;;  %v6306_v22 = vpop.f32.mrf.mxu1  ;;  %8646 = vlog2.f32 %v6698_v60  ;;  %v6702_v33 = vadd.f32 1.0, %v6701_v11  ;;  %vm6705_vm10 = vcmp.lt.f32.partialorder %v6704_v2, 0.0004427343 }
 0x78b   : > { %v6307_v57 = vadd.f32 %v12518_v8, %v6306_v22  ;;  %v6697_v58 = vsel %vm6696_vm8, %v6694_v40, %v6691_v10 }
 0x78c   : > { %6901 = vst [vmem:[%s12570_s1 + $0x58] sm:$0xff] %v6828_v28  ;;  %v6753_v5 = vsel %vm6369_vm9, %v12638_v4, %v6697_v58  ;;  %v6703_v50 = vmul.f32 %v8641_v38, %v6702_v33 }
 0x78d   : > { %v6340_v13 = vmin.f32 %v6307_v57, 20.0  ;;  %vm6372_vm15 = vcmp.gt.f32.partialorder %v6307_v57, 20.0 }
 0x78e   : > { %6877 = vmatmul.f32.gmra.mxu2 %v6753_v5 }
 0x78f   : > { %v8645_v43 = vpop.eup %8644  ;;  %v6435_v20 = vmul.f32 1.442695, %v6340_v13 }
 0x790   : > { %v8647_v30 = vpop.eup %8646  ;;  %v6707_v55 = vadd.f32 1.0, %v8645_v43  ;;  %v6710_v8 = vmul.f32 -0.5, %v8645_v43  ;;  %v6713_v0 = vand.u32 2147483647, %v8645_v43 }
 0x791   : > { %8648 = vpow2.f32 %v6435_v20  ;;  %v6830_v15 = vpop.f32.mrf.mxu2  ;;  %v6700_v61 = vmul.f32 0.6931472, %v8647_v30 }
 0x792   : > { %v6831_v32 = vadd.f32 %v12560_v16, %v6830_v15  ;;  %8650 = vlog2.f32 %v6707_v55  ;;  %v6711_v27 = vadd.f32 1.0, %v6710_v8  ;;  %vm6714_vm12 = vcmp.lt.f32.partialorder %v6713_v0, 0.0004427343 }
 0x793   : > { %v6706_v4 = vsel %vm6705_vm10, %v6703_v50, %v6700_v61 }
 0x794   : > { %6902 = vst [vmem:[%s12570_s1 + $0x60] sm:$0xff] %v6831_v32  ;;  %v6754_v24 = vsel %vm6370_vm11, %v12646_v39, %v6706_v4  ;;  %v6712_v35 = vmul.f32 %v8645_v43, %v6711_v27 }
 0x796   : > { %6880 = vmatmul.f32.gmra.mxu2 %v6754_v24 }
 0x797   : > { %v8649_v47 = vpop.eup %8648 }
 0x798   : > { %v8651_v59 = vpop.eup %8650  ;;  %v6716_v46 = vadd.f32 1.0, %v8649_v47  ;;  %v6719_v17 = vmul.f32 -0.5, %v8649_v47  ;;  %v6722_v52 = vand.u32 2147483647, %v8649_v47 }
 0x799   : > { %v6833_v62 = vpop.f32.mrf.mxu2  ;;  %v6709_v34 = vmul.f32 0.6931472, %v8651_v59 }
 0x79a   : > { %v6834_v7 = vadd.f32 %v12560_v16, %v6833_v62  ;;  %8652 = vlog2.f32 %v6716_v46  ;;  %v6720_v63 = vadd.f32 1.0, %v6719_v17  ;;  %vm6723_vm14 = vcmp.lt.f32.partialorder %v6722_v52, 0.0004427343 }
 0x79b   : > { %v6715_v19 = vsel %vm6714_vm12, %v6712_v35, %v6709_v34 }
 0x79c   : > { %6903 = vst [vmem:[%s12570_s1 + $0x68] sm:$0xff] %v6834_v7  ;;  %v6755_v53 = vsel %vm6371_vm13, %v12654_v48, %v6715_v19  ;;  %v6721_v45 = vmul.f32 %v8649_v47, %v6720_v63 }
 0x79e   : > { %6883 = vmatmul.f32.gmra.mxu2 %v6755_v53 }
 0x7a0   : > { %v8653_v39 = vpop.eup %8652 }
 0x7a1   : > { %v6836_v44 = vpop.f32.mrf.mxu2  ;;  %v6718_v49 = vmul.f32 0.6931472, %v8653_v39 }
 0x7a2   : > { %v6837_v9 = vadd.f32 %v12560_v16, %v6836_v44 }
 0x7a3   : > { %v6724_v1 = vsel %vm6723_vm14, %v6721_v45, %v6718_v49 }
 0x7a4   : > { %6904 = vst [vmem:[%s12570_s1 + $0x70] sm:$0xff] %v6837_v9  ;;  %v6756_v14 = vsel %vm6372_vm15, %v6307_v57, %v6724_v1 }
 0x7a6   : > { %6886 = vmatmul.f32.gmra.mxu2 %v6756_v14 }
 0x7a9   : > { %v6839_v6 = vpop.f32.mrf.mxu2 }
 0x7aa   : > { %v6840_v51 = vadd.f32 %v12560_v16, %v6839_v6 }
 0x7ac   : > { %6905 = vst [vmem:[%s12570_s1 + $0x78] sm:$0xff] %v6840_v51 }
 0x7b1   : > { %v6842_v36 = vpop.f32.mrf.mxu2 }
 0x7b2   : > { %v6843_v41 = vadd.f32 %v12560_v16, %v6842_v36 }
 0x7b4   : > { %6906 = vst [vmem:[%s12570_s1 + $0x80] sm:$0xff] %v6843_v41 }
 0x7b9   : > { %v6845_v26 = vpop.f32.mrf.mxu2 }
 0x7ba   : > { %v6846_v54 = vadd.f32 %v12560_v16, %v6845_v26 }
 0x7bc   : > { %6907 = vst [vmem:[%s12570_s1 + $0x88] sm:$0xff] %v6846_v54 }
 0x7c1   : > { %v6848_v42 = vpop.f32.mrf.mxu2 }
 0x7c2   : > { %v6849_v18 = vadd.f32 %v12560_v16, %v6848_v42 }
 0x7c4   : > { %6908 = vst [vmem:[%s12570_s1 + $0x90] sm:$0xff] %v6849_v18 }
 0x7c9   : > { %v6851_v31 = vpop.f32.mrf.mxu2 }
 0x7ca   : > { %v6852_v48 = vadd.f32 %v12560_v16, %v6851_v31 }
 0x7cc   : > { %6909 = vst [vmem:[%s12570_s1 + $0x98] sm:$0xff] %v6852_v48 }
 0x7d1   : > { %v6854_v29 = vpop.f32.mrf.mxu2 }
 0x7d2   : > { %v6855_v12 = vadd.f32 %v12560_v16, %v6854_v29 }
 0x7d4   : > { %6910 = vst [vmem:[%s12570_s1 + $0xa0] sm:$0xff] %v6855_v12 }
 0x7d9   : > { %v6857_v23 = vpop.f32.mrf.mxu2 }
 0x7da   : > { %v6858_v21 = vadd.f32 %v12560_v16, %v6857_v23 }
 0x7dc   : > { %6911 = vst [vmem:[%s12570_s1 + $0xa8] sm:$0xff] %v6858_v21 }
 0x7e1   : > { %v6860_v56 = vpop.f32.mrf.mxu2 }
 0x7e2   : > { %v6861_v38 = vadd.f32 %v12560_v16, %v6860_v56 }
 0x7e4   : > { %6912 = vst [vmem:[%s12570_s1 + $0xb0] sm:$0xff] %v6861_v38 }
 0x7e9   : > { %v6863_v3 = vpop.f32.mrf.mxu2 }
 0x7ea   : > { %v6864_v25 = vadd.f32 %v12560_v16, %v6863_v3 }
 0x7ec   : > { %6913 = vst [vmem:[%s12570_s1 + $0xb8] sm:$0xff] %v6864_v25 }
 0x7f1   : > { %v6866_v60 = vpop.f32.mrf.mxu2 }
 0x7f2   : > { %v6867_v37 = vadd.f32 %v12560_v16, %v6866_v60 }
 0x7f4   : > { %6914 = vst [vmem:[%s12570_s1 + $0xc0] sm:$0xff] %v6867_v37 }
 0x7f9   : > { %v6869_v10 = vpop.f32.mrf.mxu2 }
 0x7fa   : > { %v6870_v40 = vadd.f32 %v12560_v16, %v6869_v10 }
 0x7fc   : > { %6915 = vst [vmem:[%s12570_s1 + $0xc8] sm:$0xff] %v6870_v40 }
 0x801   : > { %v6872_v11 = vpop.f32.mrf.mxu2 }
 0x802   : > { %v6873_v28 = vadd.f32 %v12560_v16, %v6872_v11 }
 0x804   : > { %6916 = vst [vmem:[%s12570_s1 + $0xd0] sm:$0xff] %v6873_v28 }
 0x809   : > { %v6875_v22 = vpop.f32.mrf.mxu2 }
 0x80a   : > { %v6876_v57 = vadd.f32 %v12560_v16, %v6875_v22 }
 0x80c   : > { %6917 = vst [vmem:[%s12570_s1 + $0xd8] sm:$0xff] %v6876_v57 }
 0x811   : > { %v6878_v58 = vpop.f32.mrf.mxu2 }
 0x812   : > { %v6879_v5 = vadd.f32 %v12560_v16, %v6878_v58 }
 0x814   : > { %6918 = vst [vmem:[%s12570_s1 + $0xe0] sm:$0xff] %v6879_v5 }
 0x819   : > { %v6881_v13 = vpop.f32.mrf.mxu2 }
 0x81a   : > { %v6882_v33 = vadd.f32 %v12560_v16, %v6881_v13 }
 0x81c   : > { %6919 = vst [vmem:[%s12570_s1 + $0xe8] sm:$0xff] %v6882_v33 }
 0x821   : > { %v6884_v2 = vpop.f32.mrf.mxu2 }
 0x822   : > { %v6885_v43 = vadd.f32 %v12560_v16, %v6884_v2 }
 0x824   : > { %6920 = vst [vmem:[%s12570_s1 + $0xf0] sm:$0xff] %v6885_v43 }
 0x829   : > { %v6887_v20 = vpop.f32.mrf.mxu2 }
 0x82a   : > { %v6888_v30 = vadd.f32 %v12560_v16, %v6887_v20 }
 0x82c   : > { %6921 = vst [vmem:[%s12570_s1 + $0xf8] sm:$0xff] %v6888_v30 }
 0x82d   : > { %9057 = shalt.err (!%p9054_p9)
}
 0x82e   : > { %s9135_s29 = smov 128   ;;  %s9136_s1 = smov 8  }
 0x82f   : > { %7248 = dma.vmem_to_hbm [thread:$0]  (%p9406_p13), %s6936_s15, 4096, %s6938_s16, %s6923_s0, %s9135_s29, %s9135_s29, %s9136_s1  }
 0x830 PF: > { %s6952_s10 = sand.u32 1, %s9108_s4   ;;  %p13043_p10 = scmp.ge.s32.totalorder %s9120_s25, 2 }
 0x831   : > { %s6953_s8 = scalar_lea.sflag [#allocation4], %s6952_s10 }
 0x832   : > { %p7289_p11 = pnand %p13043_p10, %p9411_p4 }
 0x834   : > { %p7290_p0 = pneg %p7289_p11 }
 0x836   : > { %9103 = dma.done.wait (%p7290_p0), %s6953_s8, 4096  }
 0x837   : > { %9105 = vsyncadd (%p7290_p0), %s6953_s8, 4294963200  ;;  %p42_p2 = scmp.ge.s32.totalorder %s9386_s22, 4   ;;  %s13044_s4 = smov %s9112_s30 }
 0x838   : > { %s13045_s30 = smov %s9116_s24  ;;  %s13046_s24 = smov %s9398_s26 }
 0x839   : > { %s13047_s25 = smov %s9386_s22  ;;  %44 = sbr.rel (!%p42_p2) target bundleno = 32 (0x20), region = 201 }
 0x83e   :  { %6959 = vsyncpa [#allocation3], 1 }
 0x83f   :  { %6961 = vsyncpa [#allocation3 + $0x1], 1 }
 0x840   :  { %6962 = vsyncpa [#allocation6], 1 }
 0x841   :  { %6963 = vsyncpa [#allocation9], 1 }
 0x842   :  { %6964 = vsyncpa [#allocation12], 1 }
 0x843   :  { %6965 = vsyncpa [#allocation15], 1 }
 0x844   :  { %6966 = vsyncpa [#allocation18], 1 }
 0x845   :  { %6967 = vsyncpa [#allocation21], 1 }
 0x846   :  { %6968 = vsyncpa [#allocation4], 1 }
 0x847   :  { %6970 = vsyncpa [#allocation4 + $0x1], 1 }

</bundles_post_ra>
